<compile_context>
chip_gen: v6e
topology: v6e:2x2x1
jax: 0.10.0
libtpu: 0.0.40
codegen_flags: <defaults>
</compile_context>

<pallas_src>
import jax
import jax.numpy as jnp
import numpy as np
from jax import lax
from jax.experimental import pallas as pl
from jax.experimental.pallas import tpu as pltpu

B = 2                       # batch
DIM = 300                   # ConvE dimension (default branch)
H0, W0 = 15, 20             # embedding reshaped to (1, 15, 20)
HS, WS = 2 * H0, W0         # stacked input (30, 20)
CK, KH, KW = 32, 3, 3       # Conv2d(1, 32, (3, 3))
NTAP = KH * KW              # 9
HC, WC = HS - KH + 1, WS - KW + 1       # (28, 18)
PP = HC * WC                # 504 spatial positions per channel
FLAT = CK * PP              # 16128 (torch .view(B, -1) size)
CPAD = 512                  # per-channel slot, 128-aligned (504 real + 8 zeros)
FLATP = CK * CPAD           # 16384 padded K for the FC matmul
TK = 8192                   # FC K-tile (multiple of 128) -> 2 grid steps
NK = FLATP // TK
EPS = 1e-5                  # BatchNorm eps


# ----------------------------------------------------------------------------
# Fused kernel: conv+BN+ReLU prologue (k == 0) into VMEM scratch, then
# K-tiled Linear(16128, 300) + folded BN2 + ReLU accumulated over the grid.
# ----------------------------------------------------------------------------
def _conve_fused_kernel(wconv_ref, cshift_ref,            # SMEM scalars
                        patches_ref, w_ref, fcshift_ref,  # VMEM inputs
                        out_ref,                          # (B, DIM) f32 output
                        act_ref):                         # (B, FLATP) f32 scratch
    k = pl.program_id(0)

    @pl.when(k == 0)
    def _prologue():
        out_ref[...] = jnp.zeros_like(out_ref)
        # Zero the scratch once so the 8 pad lanes per channel are exact zeros.
        act_ref[...] = jnp.zeros_like(act_ref)
        # 9 pre-flattened conv taps, each (B, 504); the 32x9 unrolled MAC chain
        # is ~0.6 us of VALU work and is hidden under the k=1 weight-tile DMA.
        pt = [patches_ref[t] for t in range(NTAP)]
        for c in range(CK):
            acc = pt[0] * wconv_ref[c * NTAP]
            for t in range(1, NTAP):
                acc = acc + pt[t] * wconv_ref[c * NTAP + t]
            # conv bias + bn0/bn1 already folded into weights & cshift.
            y = jnp.maximum(acc + cshift_ref[c], 0.0)          # (B, 504)
            act_ref[:, c * CPAD:c * CPAD + PP] = y             # 128-aligned offset

    off = pl.multiple_of(k * TK, 128)
    a = act_ref[:, pl.ds(off, TK)].astype(jnp.bfloat16)        # (B, TK)
    out_ref[...] += jnp.dot(a, w_ref[...],
                            preferred_element_type=jnp.float32)

    @pl.when(k == NK - 1)
    def _epilogue():
        # fc bias + bn2 folded into fcshift (scale folded into the weight).
        out_ref[...] = jnp.maximum(out_ref[...] + fcshift_ref[...], 0.0)


def conve_fused(patches, wconv_scaled, chan_shift, wfc_bf16, fc_shift):
    cost = pl.CostEstimate(
        flops=2 * B * FLAT * DIM + 2 * B * CK * PP * NTAP,
        transcendentals=0,
        bytes_accessed=FLATP * DIM * 2 + NTAP * B * PP * 4 + B * DIM * 4
                       + (CK * NTAP + CK + DIM) * 4,
    )
    return pl.pallas_call(
        _conve_fused_kernel,
        out_shape=jax.ShapeDtypeStruct((B, DIM), jnp.float32),
        grid=(NK,),
        in_specs=[
            pl.BlockSpec(memory_space=pltpu.MemorySpace.SMEM),   # wconv (288,)
            pl.BlockSpec(memory_space=pltpu.MemorySpace.SMEM),   # chan_shift (32,)
            pl.BlockSpec((NTAP, B, PP), lambda k: (0, 0, 0)),    # patches (resident)
            pl.BlockSpec((TK, DIM), lambda k: (k, 0)),           # bf16 weight tile
            pl.BlockSpec((1, DIM), lambda k: (0, 0)),            # fc shift (resident)
        ],
        out_specs=pl.BlockSpec((B, DIM), lambda k: (0, 0)),      # VMEM-resident acc
        scratch_shapes=[pltpu.VMEM((B, FLATP), jnp.float32)],
        compiler_params=pltpu.CompilerParams(
            dimension_semantics=("arbitrary",),
            vmem_limit_bytes=32 * 1024 * 1024),
        cost_estimate=cost,
    )(wconv_scaled, chan_shift, patches, wfc_bf16, fc_shift)


# ----------------------------------------------------------------------------
# Full ConvE.forward wrapper (glue only: stack + tiny 36 KB im2col so the
# kernel's conv taps arrive pre-flattened in (h*18 + w) order).
# ----------------------------------------------------------------------------
def conve_forward(head_emb, rel_emb, params):
    h = head_emb.reshape(B, H0, W0)
    r = rel_emb.reshape(B, H0, W0)
    stacked = jnp.concatenate([h, r], axis=1)          # (B, 30, 20); NCHW C=1 squeezed
    # inp_drop / feature_map_drop / hidden_drop: identity in eval mode.
    taps = [stacked[:, dh:dh + HC, dw:dw + WC].reshape(B, PP)
            for dh in range(KH) for dw in range(KW)]
    patches = jnp.stack(taps, axis=0)                  # (9, B, 504)
    return conve_fused(patches, params["wconv_scaled"], params["chan_shift"],
                       params["wfc_bf16"], params["fc_shift"])


if __name__ == "__main__":
    key = jax.random.PRNGKey(0)
    keys = jax.random.split(key, 10)

    # Encoder outputs (stand-ins for ent_encoder / rel_encoder forward).
    head = jax.random.normal(keys[0], (B, DIM), jnp.float32)
    rel = jax.random.normal(keys[1], (B, DIM), jnp.float32)

    # Module parameters (shapes from ConvE.__init__), deterministic init.
    wconv = jax.random.normal(keys[2], (CK, 1, KH, KW), jnp.float32) * 0.1
    bconv = jax.random.normal(keys[3], (CK,), jnp.float32) * 0.1
    wfc = jax.random.normal(keys[4], (DIM, FLAT), jnp.float32) * 0.01
    bfc = jax.random.normal(keys[5], (DIM,), jnp.float32) * 0.01
    # BatchNorm affine params (running_mean=0, running_var=1 -- eval mode).
    g0, be0 = jnp.ones((1,), jnp.float32), jnp.zeros((1,), jnp.float32)
    g1 = 1.0 + 0.1 * jax.random.normal(keys[6], (CK,), jnp.float32)
    be1 = 0.1 * jax.random.normal(keys[7], (CK,), jnp.float32)
    g2 = 1.0 + 0.1 * jax.random.normal(keys[8], (DIM,), jnp.float32)
    be2 = 0.1 * jax.random.normal(keys[9], (DIM,), jnp.float32)

    inv = 1.0 / jnp.sqrt(1.0 + EPS)      # 1 / sqrt(running_var + eps)
    s0, t0 = g0 * inv, be0               # bn0
    s1, t1 = g1 * inv, be1               # bn1
    s2, t2 = g2 * inv, be2               # bn2

    # ---- offline parameter folding (eval-mode BN + biases) ------------------
    w2d = wconv.reshape(CK, NTAP)
    chan_scale = s0[0] * s1                                       # (32,)
    wconv_scaled = (w2d * chan_scale[:, None]).reshape(CK * NTAP) # (288,)
    chan_shift = (t0[0] * w2d.sum(axis=1) + bconv) * s1 + t1      # (32,)
    # FC weight: transpose to (FLAT, DIM), fold bn2 scale into columns,
    # zero-pad each 504-row channel block to 512 rows, cast to bf16.
    wfc_t = jnp.transpose(wfc) * s2[None, :]                      # (16128, 300)
    wfc_pad = jnp.zeros((CK, CPAD, DIM), jnp.float32)
    wfc_pad = wfc_pad.at[:, :PP, :].set(wfc_t.reshape(CK, PP, DIM))
    wfc_bf16 = wfc_pad.reshape(FLATP, DIM).astype(jnp.bfloat16)   # (16384, 300)
    fc_shift = (bfc * s2 + t2).reshape(1, DIM)                    # (1, 300)

    params = dict(wconv_scaled=wconv_scaled, chan_shift=chan_shift,
                  wfc_bf16=wfc_bf16, fc_shift=fc_shift)

    out = jax.jit(conve_forward)(head, rel, params)
    out = jax.block_until_ready(out)

    # Pure-JAX f32 reference (same eval-mode BN semantics, unfolded params).
    def reference(head_emb, rel_emb):
        h = head_emb.reshape(B, 1, H0, W0)
        r = rel_emb.reshape(B, 1, H0, W0)
        x = jnp.concatenate([h, r], axis=2)
        x = x * s0[0] + t0[0]
        y = lax.conv_general_dilated(
            x, wconv, window_strides=(1, 1), padding="VALID",
            dimension_numbers=("NCHW", "OIHW", "NCHW"))
        y = y + bconv[None, :, None, None]
        y = y * s1[None, :, None, None] + t1[None, :, None, None]
        y = jnp.maximum(y, 0.0)
        flat = y.reshape(B, FLAT)
        z = flat @ wfc.T + bfc
        z = z * s2 + t2
        return jnp.maximum(z, 0.0)

    ref = jax.block_until_ready(reference(head, rel))
    np.testing.assert_allclose(np.asarray(out), np.asarray(ref),
                               rtol=2e-2, atol=2e-2)
    print("KERNEL_OK")
</pallas_src>

<mosaic_0001>
module attributes {stable_mosaic.version = 11 : i64} {
  func.func @_conve_fused_kernel(%arg0: i32, %arg1: memref<288xf32, #tpu.memory_space<smem>>, %arg2: memref<32xf32, #tpu.memory_space<smem>>, %arg3: memref<9x2x504xf32, #tpu.memory_space<vmem>>, %arg4: memref<8192x300xbf16, #tpu.memory_space<vmem>>, %arg5: memref<1x300xf32, #tpu.memory_space<vmem>>, %arg6: memref<2x300xf32, #tpu.memory_space<vmem>>, %arg7: memref<2x16384xf32, #tpu.memory_space<vmem>>) attributes {dimension_semantics = [#tpu.dimension_semantics<arbitrary>], iteration_bounds = array<i64: 2>, scalar_prefetch = 0 : i64, scratch_operands = 1 : i64, tpu.core_type = #tpu.core_type<tc>, window_params = [{transform_indices = @transform_0, window_bounds = array<i64: 288>}, {transform_indices = @transform_1, window_bounds = array<i64: 32>}, {pipeline_mode = #tpu.pipeline_mode<synchronous>, transform_indices = @transform_2, window_bounds = array<i64: 9, 2, 504>}, {transform_indices = @transform_3, window_bounds = array<i64: 8192, 300>}, {pipeline_mode = #tpu.pipeline_mode<synchronous>, transform_indices = @transform_4, window_bounds = array<i64: 1, 300>}, {pipeline_mode = #tpu.pipeline_mode<synchronous>, transform_indices = @transform_5, window_bounds = array<i64: 2, 300>}]} {
    %c0_i32 = arith.constant 0 : i32
    %0 = arith.cmpi eq, %arg0, %c0_i32 : i32
    %1 = arith.extui %0 : i1 to i32
    %c0_i32_0 = arith.constant 0 : i32
    %2 = arith.cmpi ne, %1, %c0_i32_0 : i32
    scf.if %2 {
      %cst_8 = arith.constant 0.000000e+00 : f32
      %16 = vector.broadcast %cst_8 : f32 to vector<2x300xf32>
      %c0_9 = arith.constant 0 : index
      %c0_10 = arith.constant 0 : index
      %17 = vector.load %arg6[%c0_9, %c0_10] : memref<2x300xf32, #tpu.memory_space<vmem>>, vector<2x300xf32>
      tpu.vector_store %arg6[%c0_9, %c0_10], %16 {strides = array<i32>} : memref<2x300xf32, #tpu.memory_space<vmem>>, vector<2x300xf32>,
      %cst_11 = arith.constant 0.000000e+00 : f32
      %18 = vector.broadcast %cst_11 : f32 to vector<2x16384xf32>
      %c0_12 = arith.constant 0 : index
      %c0_13 = arith.constant 0 : index
      %19 = vector.load %arg7[%c0_12, %c0_13] : memref<2x16384xf32, #tpu.memory_space<vmem>>, vector<2x16384xf32>
      tpu.vector_store %arg7[%c0_12, %c0_13], %18 {strides = array<i32>} : memref<2x16384xf32, #tpu.memory_space<vmem>>, vector<2x16384xf32>,
      %c0_14 = arith.constant 0 : index
      %c0_15 = arith.constant 0 : index
      %c0_16 = arith.constant 0 : index
      %20 = vector.load %arg3[%c0_14, %c0_15, %c0_16] : memref<9x2x504xf32, #tpu.memory_space<vmem>>, vector<1x2x504xf32>
      %21 = vector.shape_cast %20 : vector<1x2x504xf32> to vector<2x504xf32>
      %c1 = arith.constant 1 : index
      %c0_17 = arith.constant 0 : index
      %c0_18 = arith.constant 0 : index
      %22 = vector.load %arg3[%c1, %c0_17, %c0_18] : memref<9x2x504xf32, #tpu.memory_space<vmem>>, vector<1x2x504xf32>
      %23 = vector.shape_cast %22 : vector<1x2x504xf32> to vector<2x504xf32>
      %c2 = arith.constant 2 : index
      %c0_19 = arith.constant 0 : index
      %c0_20 = arith.constant 0 : index
      %24 = vector.load %arg3[%c2, %c0_19, %c0_20] : memref<9x2x504xf32, #tpu.memory_space<vmem>>, vector<1x2x504xf32>
      %25 = vector.shape_cast %24 : vector<1x2x504xf32> to vector<2x504xf32>
      %c3 = arith.constant 3 : index
      %c0_21 = arith.constant 0 : index
      %c0_22 = arith.constant 0 : index
      %26 = vector.load %arg3[%c3, %c0_21, %c0_22] : memref<9x2x504xf32, #tpu.memory_space<vmem>>, vector<1x2x504xf32>
      %27 = vector.shape_cast %26 : vector<1x2x504xf32> to vector<2x504xf32>
      %c4 = arith.constant 4 : index
      %c0_23 = arith.constant 0 : index
      %c0_24 = arith.constant 0 : index
      %28 = vector.load %arg3[%c4, %c0_23, %c0_24] : memref<9x2x504xf32, #tpu.memory_space<vmem>>, vector<1x2x504xf32>
      %29 = vector.shape_cast %28 : vector<1x2x504xf32> to vector<2x504xf32>
      %c5 = arith.constant 5 : index
      %c0_25 = arith.constant 0 : index
      %c0_26 = arith.constant 0 : index
      %30 = vector.load %arg3[%c5, %c0_25, %c0_26] : memref<9x2x504xf32, #tpu.memory_space<vmem>>, vector<1x2x504xf32>
      %31 = vector.shape_cast %30 : vector<1x2x504xf32> to vector<2x504xf32>
      %c6 = arith.constant 6 : index
      %c0_27 = arith.constant 0 : index
      %c0_28 = arith.constant 0 : index
      %32 = vector.load %arg3[%c6, %c0_27, %c0_28] : memref<9x2x504xf32, #tpu.memory_space<vmem>>, vector<1x2x504xf32>
      %33 = vector.shape_cast %32 : vector<1x2x504xf32> to vector<2x504xf32>
      %c7 = arith.constant 7 : index
      %c0_29 = arith.constant 0 : index
      %c0_30 = arith.constant 0 : index
      %34 = vector.load %arg3[%c7, %c0_29, %c0_30] : memref<9x2x504xf32, #tpu.memory_space<vmem>>, vector<1x2x504xf32>
      %35 = vector.shape_cast %34 : vector<1x2x504xf32> to vector<2x504xf32>
      %c8 = arith.constant 8 : index
      %c0_31 = arith.constant 0 : index
      %c0_32 = arith.constant 0 : index
      %36 = vector.load %arg3[%c8, %c0_31, %c0_32] : memref<9x2x504xf32, #tpu.memory_space<vmem>>, vector<1x2x504xf32>
      %37 = vector.shape_cast %36 : vector<1x2x504xf32> to vector<2x504xf32>
      %c0_33 = arith.constant 0 : index
      %38 = memref.load %arg1[%c0_33] : memref<288xf32, #tpu.memory_space<smem>>
      %39 = vector.broadcast %38 : f32 to vector<2x504xf32>
      %40 = arith.mulf %21, %39 : vector<2x504xf32>
      %c1_34 = arith.constant 1 : index
      %41 = memref.load %arg1[%c1_34] : memref<288xf32, #tpu.memory_space<smem>>
      %42 = vector.broadcast %41 : f32 to vector<2x504xf32>
      %43 = arith.mulf %23, %42 : vector<2x504xf32>
      %44 = arith.addf %40, %43 : vector<2x504xf32>
      %c2_35 = arith.constant 2 : index
      %45 = memref.load %arg1[%c2_35] : memref<288xf32, #tpu.memory_space<smem>>
      %46 = vector.broadcast %45 : f32 to vector<2x504xf32>
      %47 = arith.mulf %25, %46 : vector<2x504xf32>
      %48 = arith.addf %44, %47 : vector<2x504xf32>
      %c3_36 = arith.constant 3 : index
      %49 = memref.load %arg1[%c3_36] : memref<288xf32, #tpu.memory_space<smem>>
      %50 = vector.broadcast %49 : f32 to vector<2x504xf32>
      %51 = arith.mulf %27, %50 : vector<2x504xf32>
      %52 = arith.addf %48, %51 : vector<2x504xf32>
      %c4_37 = arith.constant 4 : index
      %53 = memref.load %arg1[%c4_37] : memref<288xf32, #tpu.memory_space<smem>>
      %54 = vector.broadcast %53 : f32 to vector<2x504xf32>
      %55 = arith.mulf %29, %54 : vector<2x504xf32>
      %56 = arith.addf %52, %55 : vector<2x504xf32>
      %c5_38 = arith.constant 5 : index
      %57 = memref.load %arg1[%c5_38] : memref<288xf32, #tpu.memory_space<smem>>
      %58 = vector.broadcast %57 : f32 to vector<2x504xf32>
      %59 = arith.mulf %31, %58 : vector<2x504xf32>
      %60 = arith.addf %56, %59 : vector<2x504xf32>
      %c6_39 = arith.constant 6 : index
      %61 = memref.load %arg1[%c6_39] : memref<288xf32, #tpu.memory_space<smem>>
      %62 = vector.broadcast %61 : f32 to vector<2x504xf32>
      %63 = arith.mulf %33, %62 : vector<2x504xf32>
      %64 = arith.addf %60, %63 : vector<2x504xf32>
      %c7_40 = arith.constant 7 : index
      %65 = memref.load %arg1[%c7_40] : memref<288xf32, #tpu.memory_space<smem>>
      %66 = vector.broadcast %65 : f32 to vector<2x504xf32>
      %67 = arith.mulf %35, %66 : vector<2x504xf32>
      %68 = arith.addf %64, %67 : vector<2x504xf32>
      %c8_41 = arith.constant 8 : index
      %69 = memref.load %arg1[%c8_41] : memref<288xf32, #tpu.memory_space<smem>>
      %70 = vector.broadcast %69 : f32 to vector<2x504xf32>
      %71 = arith.mulf %37, %70 : vector<2x504xf32>
      %72 = arith.addf %68, %71 : vector<2x504xf32>
      %c0_42 = arith.constant 0 : index
      %73 = memref.load %arg2[%c0_42] : memref<32xf32, #tpu.memory_space<smem>>
      %74 = vector.broadcast %73 : f32 to vector<2x504xf32>
      %75 = arith.addf %72, %74 : vector<2x504xf32>
      %cst_43 = arith.constant 0.000000e+00 : f32
      %76 = vector.broadcast %cst_43 : f32 to vector<2x504xf32>
      %77 = arith.maximumf %75, %76 : vector<2x504xf32>
      %c0_44 = arith.constant 0 : index
      %c0_45 = arith.constant 0 : index
      %78 = vector.load %arg7[%c0_44, %c0_45] : memref<2x16384xf32, #tpu.memory_space<vmem>>, vector<2x504xf32>
      tpu.vector_store %arg7[%c0_44, %c0_45], %77 {strides = array<i32>} : memref<2x16384xf32, #tpu.memory_space<vmem>>, vector<2x504xf32>,
      %c9 = arith.constant 9 : index
      %79 = memref.load %arg1[%c9] : memref<288xf32, #tpu.memory_space<smem>>
      %80 = vector.broadcast %79 : f32 to vector<2x504xf32>
      %81 = arith.mulf %21, %80 : vector<2x504xf32>
      %c10 = arith.constant 10 : index
      %82 = memref.load %arg1[%c10] : memref<288xf32, #tpu.memory_space<smem>>
      %83 = vector.broadcast %82 : f32 to vector<2x504xf32>
      %84 = arith.mulf %23, %83 : vector<2x504xf32>
      %85 = arith.addf %81, %84 : vector<2x504xf32>
      %c11 = arith.constant 11 : index
      %86 = memref.load %arg1[%c11] : memref<288xf32, #tpu.memory_space<smem>>
      %87 = vector.broadcast %86 : f32 to vector<2x504xf32>
      %88 = arith.mulf %25, %87 : vector<2x504xf32>
      %89 = arith.addf %85, %88 : vector<2x504xf32>
      %c12 = arith.constant 12 : index
      %90 = memref.load %arg1[%c12] : memref<288xf32, #tpu.memory_space<smem>>
      %91 = vector.broadcast %90 : f32 to vector<2x504xf32>
      %92 = arith.mulf %27, %91 : vector<2x504xf32>
      %93 = arith.addf %89, %92 : vector<2x504xf32>
      %c13 = arith.constant 13 : index
      %94 = memref.load %arg1[%c13] : memref<288xf32, #tpu.memory_space<smem>>
      %95 = vector.broadcast %94 : f32 to vector<2x504xf32>
      %96 = arith.mulf %29, %95 : vector<2x504xf32>
      %97 = arith.addf %93, %96 : vector<2x504xf32>
      %c14 = arith.constant 14 : index
      %98 = memref.load %arg1[%c14] : memref<288xf32, #tpu.memory_space<smem>>
      %99 = vector.broadcast %98 : f32 to vector<2x504xf32>
      %100 = arith.mulf %31, %99 : vector<2x504xf32>
      %101 = arith.addf %97, %100 : vector<2x504xf32>
      %c15 = arith.constant 15 : index
      %102 = memref.load %arg1[%c15] : memref<288xf32, #tpu.memory_space<smem>>
      %103 = vector.broadcast %102 : f32 to vector<2x504xf32>
      %104 = arith.mulf %33, %103 : vector<2x504xf32>
      %105 = arith.addf %101, %104 : vector<2x504xf32>
      %c16 = arith.constant 16 : index
      %106 = memref.load %arg1[%c16] : memref<288xf32, #tpu.memory_space<smem>>
      %107 = vector.broadcast %106 : f32 to vector<2x504xf32>
      %108 = arith.mulf %35, %107 : vector<2x504xf32>
      %109 = arith.addf %105, %108 : vector<2x504xf32>
      %c17 = arith.constant 17 : index
      %110 = memref.load %arg1[%c17] : memref<288xf32, #tpu.memory_space<smem>>
      %111 = vector.broadcast %110 : f32 to vector<2x504xf32>
      %112 = arith.mulf %37, %111 : vector<2x504xf32>
      %113 = arith.addf %109, %112 : vector<2x504xf32>
      %c1_46 = arith.constant 1 : index
      %114 = memref.load %arg2[%c1_46] : memref<32xf32, #tpu.memory_space<smem>>
      %115 = vector.broadcast %114 : f32 to vector<2x504xf32>
      %116 = arith.addf %113, %115 : vector<2x504xf32>
      %cst_47 = arith.constant 0.000000e+00 : f32
      %117 = vector.broadcast %cst_47 : f32 to vector<2x504xf32>
      %118 = arith.maximumf %116, %117 : vector<2x504xf32>
      %c0_48 = arith.constant 0 : index
      %c512 = arith.constant 512 : index
      %119 = vector.load %arg7[%c0_48, %c512] : memref<2x16384xf32, #tpu.memory_space<vmem>>, vector<2x504xf32>
      tpu.vector_store %arg7[%c0_48, %c512], %118 {strides = array<i32>} : memref<2x16384xf32, #tpu.memory_space<vmem>>, vector<2x504xf32>,
      %c18 = arith.constant 18 : index
      %120 = memref.load %arg1[%c18] : memref<288xf32, #tpu.memory_space<smem>>
      %121 = vector.broadcast %120 : f32 to vector<2x504xf32>
      %122 = arith.mulf %21, %121 : vector<2x504xf32>
      %c19 = arith.constant 19 : index
      %123 = memref.load %arg1[%c19] : memref<288xf32, #tpu.memory_space<smem>>
      %124 = vector.broadcast %123 : f32 to vector<2x504xf32>
      %125 = arith.mulf %23, %124 : vector<2x504xf32>
      %126 = arith.addf %122, %125 : vector<2x504xf32>
      %c20 = arith.constant 20 : index
      %127 = memref.load %arg1[%c20] : memref<288xf32, #tpu.memory_space<smem>>
      %128 = vector.broadcast %127 : f32 to vector<2x504xf32>
      %129 = arith.mulf %25, %128 : vector<2x504xf32>
      %130 = arith.addf %126, %129 : vector<2x504xf32>
      %c21 = arith.constant 21 : index
      %131 = memref.load %arg1[%c21] : memref<288xf32, #tpu.memory_space<smem>>
      %132 = vector.broadcast %131 : f32 to vector<2x504xf32>
      %133 = arith.mulf %27, %132 : vector<2x504xf32>
      %134 = arith.addf %130, %133 : vector<2x504xf32>
      %c22 = arith.constant 22 : index
      %135 = memref.load %arg1[%c22] : memref<288xf32, #tpu.memory_space<smem>>
      %136 = vector.broadcast %135 : f32 to vector<2x504xf32>
      %137 = arith.mulf %29, %136 : vector<2x504xf32>
      %138 = arith.addf %134, %137 : vector<2x504xf32>
      %c23 = arith.constant 23 : index
      %139 = memref.load %arg1[%c23] : memref<288xf32, #tpu.memory_space<smem>>
      %140 = vector.broadcast %139 : f32 to vector<2x504xf32>
      %141 = arith.mulf %31, %140 : vector<2x504xf32>
      %142 = arith.addf %138, %141 : vector<2x504xf32>
      %c24 = arith.constant 24 : index
      %143 = memref.load %arg1[%c24] : memref<288xf32, #tpu.memory_space<smem>>
      %144 = vector.broadcast %143 : f32 to vector<2x504xf32>
      %145 = arith.mulf %33, %144 : vector<2x504xf32>
      %146 = arith.addf %142, %145 : vector<2x504xf32>
      %c25 = arith.constant 25 : index
      %147 = memref.load %arg1[%c25] : memref<288xf32, #tpu.memory_space<smem>>
      %148 = vector.broadcast %147 : f32 to vector<2x504xf32>
      %149 = arith.mulf %35, %148 : vector<2x504xf32>
      %150 = arith.addf %146, %149 : vector<2x504xf32>
      %c26 = arith.constant 26 : index
      %151 = memref.load %arg1[%c26] : memref<288xf32, #tpu.memory_space<smem>>
      %152 = vector.broadcast %151 : f32 to vector<2x504xf32>
      %153 = arith.mulf %37, %152 : vector<2x504xf32>
      %154 = arith.addf %150, %153 : vector<2x504xf32>
      %c2_49 = arith.constant 2 : index
      %155 = memref.load %arg2[%c2_49] : memref<32xf32, #tpu.memory_space<smem>>
      %156 = vector.broadcast %155 : f32 to vector<2x504xf32>
      %157 = arith.addf %154, %156 : vector<2x504xf32>
      %cst_50 = arith.constant 0.000000e+00 : f32
      %158 = vector.broadcast %cst_50 : f32 to vector<2x504xf32>
      %159 = arith.maximumf %157, %158 : vector<2x504xf32>
      %c0_51 = arith.constant 0 : index
      %c1024 = arith.constant 1024 : index
      %160 = vector.load %arg7[%c0_51, %c1024] : memref<2x16384xf32, #tpu.memory_space<vmem>>, vector<2x504xf32>
      tpu.vector_store %arg7[%c0_51, %c1024], %159 {strides = array<i32>} : memref<2x16384xf32, #tpu.memory_space<vmem>>, vector<2x504xf32>,
      %c27 = arith.constant 27 : index
      %161 = memref.load %arg1[%c27] : memref<288xf32, #tpu.memory_space<smem>>
      %162 = vector.broadcast %161 : f32 to vector<2x504xf32>
      %163 = arith.mulf %21, %162 : vector<2x504xf32>
      %c28 = arith.constant 28 : index
      %164 = memref.load %arg1[%c28] : memref<288xf32, #tpu.memory_space<smem>>
      %165 = vector.broadcast %164 : f32 to vector<2x504xf32>
      %166 = arith.mulf %23, %165 : vector<2x504xf32>
      %167 = arith.addf %163, %166 : vector<2x504xf32>
      %c29 = arith.constant 29 : index
      %168 = memref.load %arg1[%c29] : memref<288xf32, #tpu.memory_space<smem>>
      %169 = vector.broadcast %168 : f32 to vector<2x504xf32>
      %170 = arith.mulf %25, %169 : vector<2x504xf32>
      %171 = arith.addf %167, %170 : vector<2x504xf32>
      %c30 = arith.constant 30 : index
      %172 = memref.load %arg1[%c30] : memref<288xf32, #tpu.memory_space<smem>>
      %173 = vector.broadcast %172 : f32 to vector<2x504xf32>
      %174 = arith.mulf %27, %173 : vector<2x504xf32>
      %175 = arith.addf %171, %174 : vector<2x504xf32>
      %c31 = arith.constant 31 : index
      %176 = memref.load %arg1[%c31] : memref<288xf32, #tpu.memory_space<smem>>
      %177 = vector.broadcast %176 : f32 to vector<2x504xf32>
      %178 = arith.mulf %29, %177 : vector<2x504xf32>
      %179 = arith.addf %175, %178 : vector<2x504xf32>
      %c32 = arith.constant 32 : index
      %180 = memref.load %arg1[%c32] : memref<288xf32, #tpu.memory_space<smem>>
      %181 = vector.broadcast %180 : f32 to vector<2x504xf32>
      %182 = arith.mulf %31, %181 : vector<2x504xf32>
      %183 = arith.addf %179, %182 : vector<2x504xf32>
      %c33 = arith.constant 33 : index
      %184 = memref.load %arg1[%c33] : memref<288xf32, #tpu.memory_space<smem>>
      %185 = vector.broadcast %184 : f32 to vector<2x504xf32>
      %186 = arith.mulf %33, %185 : vector<2x504xf32>
      %187 = arith.addf %183, %186 : vector<2x504xf32>
      %c34 = arith.constant 34 : index
      %188 = memref.load %arg1[%c34] : memref<288xf32, #tpu.memory_space<smem>>
      %189 = vector.broadcast %188 : f32 to vector<2x504xf32>
      %190 = arith.mulf %35, %189 : vector<2x504xf32>
      %191 = arith.addf %187, %190 : vector<2x504xf32>
      %c35 = arith.constant 35 : index
      %192 = memref.load %arg1[%c35] : memref<288xf32, #tpu.memory_space<smem>>
      %193 = vector.broadcast %192 : f32 to vector<2x504xf32>
      %194 = arith.mulf %37, %193 : vector<2x504xf32>
      %195 = arith.addf %191, %194 : vector<2x504xf32>
      %c3_52 = arith.constant 3 : index
      %196 = memref.load %arg2[%c3_52] : memref<32xf32, #tpu.memory_space<smem>>
      %197 = vector.broadcast %196 : f32 to vector<2x504xf32>
      %198 = arith.addf %195, %197 : vector<2x504xf32>
      %cst_53 = arith.constant 0.000000e+00 : f32
      %199 = vector.broadcast %cst_53 : f32 to vector<2x504xf32>
      %200 = arith.maximumf %198, %199 : vector<2x504xf32>
      %c0_54 = arith.constant 0 : index
      %c1536 = arith.constant 1536 : index
      %201 = vector.load %arg7[%c0_54, %c1536] : memref<2x16384xf32, #tpu.memory_space<vmem>>, vector<2x504xf32>
      tpu.vector_store %arg7[%c0_54, %c1536], %200 {strides = array<i32>} : memref<2x16384xf32, #tpu.memory_space<vmem>>, vector<2x504xf32>,
      %c36 = arith.constant 36 : index
      %202 = memref.load %arg1[%c36] : memref<288xf32, #tpu.memory_space<smem>>
      %203 = vector.broadcast %202 : f32 to vector<2x504xf32>
      %204 = arith.mulf %21, %203 : vector<2x504xf32>
      %c37 = arith.constant 37 : index
      %205 = memref.load %arg1[%c37] : memref<288xf32, #tpu.memory_space<smem>>
      %206 = vector.broadcast %205 : f32 to vector<2x504xf32>
      %207 = arith.mulf %23, %206 : vector<2x504xf32>
      %208 = arith.addf %204, %207 : vector<2x504xf32>
      %c38 = arith.constant 38 : index
      %209 = memref.load %arg1[%c38] : memref<288xf32, #tpu.memory_space<smem>>
      %210 = vector.broadcast %209 : f32 to vector<2x504xf32>
      %211 = arith.mulf %25, %210 : vector<2x504xf32>
      %212 = arith.addf %208, %211 : vector<2x504xf32>
      %c39 = arith.constant 39 : index
      %213 = memref.load %arg1[%c39] : memref<288xf32, #tpu.memory_space<smem>>
      %214 = vector.broadcast %213 : f32 to vector<2x504xf32>
      %215 = arith.mulf %27, %214 : vector<2x504xf32>
      %216 = arith.addf %212, %215 : vector<2x504xf32>
      %c40 = arith.constant 40 : index
      %217 = memref.load %arg1[%c40] : memref<288xf32, #tpu.memory_space<smem>>
      %218 = vector.broadcast %217 : f32 to vector<2x504xf32>
      %219 = arith.mulf %29, %218 : vector<2x504xf32>
      %220 = arith.addf %216, %219 : vector<2x504xf32>
      %c41 = arith.constant 41 : index
      %221 = memref.load %arg1[%c41] : memref<288xf32, #tpu.memory_space<smem>>
      %222 = vector.broadcast %221 : f32 to vector<2x504xf32>
      %223 = arith.mulf %31, %222 : vector<2x504xf32>
      %224 = arith.addf %220, %223 : vector<2x504xf32>
      %c42 = arith.constant 42 : index
      %225 = memref.load %arg1[%c42] : memref<288xf32, #tpu.memory_space<smem>>
      %226 = vector.broadcast %225 : f32 to vector<2x504xf32>
      %227 = arith.mulf %33, %226 : vector<2x504xf32>
      %228 = arith.addf %224, %227 : vector<2x504xf32>
      %c43 = arith.constant 43 : index
      %229 = memref.load %arg1[%c43] : memref<288xf32, #tpu.memory_space<smem>>
      %230 = vector.broadcast %229 : f32 to vector<2x504xf32>
      %231 = arith.mulf %35, %230 : vector<2x504xf32>
      %232 = arith.addf %228, %231 : vector<2x504xf32>
      %c44 = arith.constant 44 : index
      %233 = memref.load %arg1[%c44] : memref<288xf32, #tpu.memory_space<smem>>
      %234 = vector.broadcast %233 : f32 to vector<2x504xf32>
      %235 = arith.mulf %37, %234 : vector<2x504xf32>
      %236 = arith.addf %232, %235 : vector<2x504xf32>
      %c4_55 = arith.constant 4 : index
      %237 = memref.load %arg2[%c4_55] : memref<32xf32, #tpu.memory_space<smem>>
      %238 = vector.broadcast %237 : f32 to vector<2x504xf32>
      %239 = arith.addf %236, %238 : vector<2x504xf32>
      %cst_56 = arith.constant 0.000000e+00 : f32
      %240 = vector.broadcast %cst_56 : f32 to vector<2x504xf32>
      %241 = arith.maximumf %239, %240 : vector<2x504xf32>
      %c0_57 = arith.constant 0 : index
      %c2048 = arith.constant 2048 : index
      %242 = vector.load %arg7[%c0_57, %c2048] : memref<2x16384xf32, #tpu.memory_space<vmem>>, vector<2x504xf32>
      tpu.vector_store %arg7[%c0_57, %c2048], %241 {strides = array<i32>} : memref<2x16384xf32, #tpu.memory_space<vmem>>, vector<2x504xf32>,
      %c45 = arith.constant 45 : index
      %243 = memref.load %arg1[%c45] : memref<288xf32, #tpu.memory_space<smem>>
      %244 = vector.broadcast %243 : f32 to vector<2x504xf32>
      %245 = arith.mulf %21, %244 : vector<2x504xf32>
      %c46 = arith.constant 46 : index
      %246 = memref.load %arg1[%c46] : memref<288xf32, #tpu.memory_space<smem>>
      %247 = vector.broadcast %246 : f32 to vector<2x504xf32>
      %248 = arith.mulf %23, %247 : vector<2x504xf32>
      %249 = arith.addf %245, %248 : vector<2x504xf32>
      %c47 = arith.constant 47 : index
      %250 = memref.load %arg1[%c47] : memref<288xf32, #tpu.memory_space<smem>>
      %251 = vector.broadcast %250 : f32 to vector<2x504xf32>
      %252 = arith.mulf %25, %251 : vector<2x504xf32>
      %253 = arith.addf %249, %252 : vector<2x504xf32>
      %c48 = arith.constant 48 : index
      %254 = memref.load %arg1[%c48] : memref<288xf32, #tpu.memory_space<smem>>
      %255 = vector.broadcast %254 : f32 to vector<2x504xf32>
      %256 = arith.mulf %27, %255 : vector<2x504xf32>
      %257 = arith.addf %253, %256 : vector<2x504xf32>
      %c49 = arith.constant 49 : index
      %258 = memref.load %arg1[%c49] : memref<288xf32, #tpu.memory_space<smem>>
      %259 = vector.broadcast %258 : f32 to vector<2x504xf32>
      %260 = arith.mulf %29, %259 : vector<2x504xf32>
      %261 = arith.addf %257, %260 : vector<2x504xf32>
      %c50 = arith.constant 50 : index
      %262 = memref.load %arg1[%c50] : memref<288xf32, #tpu.memory_space<smem>>
      %263 = vector.broadcast %262 : f32 to vector<2x504xf32>
      %264 = arith.mulf %31, %263 : vector<2x504xf32>
      %265 = arith.addf %261, %264 : vector<2x504xf32>
      %c51 = arith.constant 51 : index
      %266 = memref.load %arg1[%c51] : memref<288xf32, #tpu.memory_space<smem>>
      %267 = vector.broadcast %266 : f32 to vector<2x504xf32>
      %268 = arith.mulf %33, %267 : vector<2x504xf32>
      %269 = arith.addf %265, %268 : vector<2x504xf32>
      %c52 = arith.constant 52 : index
      %270 = memref.load %arg1[%c52] : memref<288xf32, #tpu.memory_space<smem>>
      %271 = vector.broadcast %270 : f32 to vector<2x504xf32>
      %272 = arith.mulf %35, %271 : vector<2x504xf32>
      %273 = arith.addf %269, %272 : vector<2x504xf32>
      %c53 = arith.constant 53 : index
      %274 = memref.load %arg1[%c53] : memref<288xf32, #tpu.memory_space<smem>>
      %275 = vector.broadcast %274 : f32 to vector<2x504xf32>
      %276 = arith.mulf %37, %275 : vector<2x504xf32>
      %277 = arith.addf %273, %276 : vector<2x504xf32>
      %c5_58 = arith.constant 5 : index
      %278 = memref.load %arg2[%c5_58] : memref<32xf32, #tpu.memory_space<smem>>
      %279 = vector.broadcast %278 : f32 to vector<2x504xf32>
      %280 = arith.addf %277, %279 : vector<2x504xf32>
      %cst_59 = arith.constant 0.000000e+00 : f32
      %281 = vector.broadcast %cst_59 : f32 to vector<2x504xf32>
      %282 = arith.maximumf %280, %281 : vector<2x504xf32>
      %c0_60 = arith.constant 0 : index
      %c2560 = arith.constant 2560 : index
      %283 = vector.load %arg7[%c0_60, %c2560] : memref<2x16384xf32, #tpu.memory_space<vmem>>, vector<2x504xf32>
      tpu.vector_store %arg7[%c0_60, %c2560], %282 {strides = array<i32>} : memref<2x16384xf32, #tpu.memory_space<vmem>>, vector<2x504xf32>,
      %c54 = arith.constant 54 : index
      %284 = memref.load %arg1[%c54] : memref<288xf32, #tpu.memory_space<smem>>
      %285 = vector.broadcast %284 : f32 to vector<2x504xf32>
      %286 = arith.mulf %21, %285 : vector<2x504xf32>
      %c55 = arith.constant 55 : index
      %287 = memref.load %arg1[%c55] : memref<288xf32, #tpu.memory_space<smem>>
      %288 = vector.broadcast %287 : f32 to vector<2x504xf32>
      %289 = arith.mulf %23, %288 : vector<2x504xf32>
      %290 = arith.addf %286, %289 : vector<2x504xf32>
      %c56 = arith.constant 56 : index
      %291 = memref.load %arg1[%c56] : memref<288xf32, #tpu.memory_space<smem>>
      %292 = vector.broadcast %291 : f32 to vector<2x504xf32>
      %293 = arith.mulf %25, %292 : vector<2x504xf32>
      %294 = arith.addf %290, %293 : vector<2x504xf32>
      %c57 = arith.constant 57 : index
      %295 = memref.load %arg1[%c57] : memref<288xf32, #tpu.memory_space<smem>>
      %296 = vector.broadcast %295 : f32 to vector<2x504xf32>
      %297 = arith.mulf %27, %296 : vector<2x504xf32>
      %298 = arith.addf %294, %297 : vector<2x504xf32>
      %c58 = arith.constant 58 : index
      %299 = memref.load %arg1[%c58] : memref<288xf32, #tpu.memory_space<smem>>
      %300 = vector.broadcast %299 : f32 to vector<2x504xf32>
      %301 = arith.mulf %29, %300 : vector<2x504xf32>
      %302 = arith.addf %298, %301 : vector<2x504xf32>
      %c59 = arith.constant 59 : index
      %303 = memref.load %arg1[%c59] : memref<288xf32, #tpu.memory_space<smem>>
      %304 = vector.broadcast %303 : f32 to vector<2x504xf32>
      %305 = arith.mulf %31, %304 : vector<2x504xf32>
      %306 = arith.addf %302, %305 : vector<2x504xf32>
      %c60 = arith.constant 60 : index
      %307 = memref.load %arg1[%c60] : memref<288xf32, #tpu.memory_space<smem>>
      %308 = vector.broadcast %307 : f32 to vector<2x504xf32>
      %309 = arith.mulf %33, %308 : vector<2x504xf32>
      %310 = arith.addf %306, %309 : vector<2x504xf32>
      %c61 = arith.constant 61 : index
      %311 = memref.load %arg1[%c61] : memref<288xf32, #tpu.memory_space<smem>>
      %312 = vector.broadcast %311 : f32 to vector<2x504xf32>
      %313 = arith.mulf %35, %312 : vector<2x504xf32>
      %314 = arith.addf %310, %313 : vector<2x504xf32>
      %c62 = arith.constant 62 : index
      %315 = memref.load %arg1[%c62] : memref<288xf32, #tpu.memory_space<smem>>
      %316 = vector.broadcast %315 : f32 to vector<2x504xf32>
      %317 = arith.mulf %37, %316 : vector<2x504xf32>
      %318 = arith.addf %314, %317 : vector<2x504xf32>
      %c6_61 = arith.constant 6 : index
      %319 = memref.load %arg2[%c6_61] : memref<32xf32, #tpu.memory_space<smem>>
      %320 = vector.broadcast %319 : f32 to vector<2x504xf32>
      %321 = arith.addf %318, %320 : vector<2x504xf32>
      %cst_62 = arith.constant 0.000000e+00 : f32
      %322 = vector.broadcast %cst_62 : f32 to vector<2x504xf32>
      %323 = arith.maximumf %321, %322 : vector<2x504xf32>
      %c0_63 = arith.constant 0 : index
      %c3072 = arith.constant 3072 : index
      %324 = vector.load %arg7[%c0_63, %c3072] : memref<2x16384xf32, #tpu.memory_space<vmem>>, vector<2x504xf32>
      tpu.vector_store %arg7[%c0_63, %c3072], %323 {strides = array<i32>} : memref<2x16384xf32, #tpu.memory_space<vmem>>, vector<2x504xf32>,
      %c63 = arith.constant 63 : index
      %325 = memref.load %arg1[%c63] : memref<288xf32, #tpu.memory_space<smem>>
      %326 = vector.broadcast %325 : f32 to vector<2x504xf32>
      %327 = arith.mulf %21, %326 : vector<2x504xf32>
      %c64 = arith.constant 64 : index
      %328 = memref.load %arg1[%c64] : memref<288xf32, #tpu.memory_space<smem>>
      %329 = vector.broadcast %328 : f32 to vector<2x504xf32>
      %330 = arith.mulf %23, %329 : vector<2x504xf32>
      %331 = arith.addf %327, %330 : vector<2x504xf32>
      %c65 = arith.constant 65 : index
      %332 = memref.load %arg1[%c65] : memref<288xf32, #tpu.memory_space<smem>>
      %333 = vector.broadcast %332 : f32 to vector<2x504xf32>
      %334 = arith.mulf %25, %333 : vector<2x504xf32>
      %335 = arith.addf %331, %334 : vector<2x504xf32>
      %c66 = arith.constant 66 : index
      %336 = memref.load %arg1[%c66] : memref<288xf32, #tpu.memory_space<smem>>
      %337 = vector.broadcast %336 : f32 to vector<2x504xf32>
      %338 = arith.mulf %27, %337 : vector<2x504xf32>
      %339 = arith.addf %335, %338 : vector<2x504xf32>
      %c67 = arith.constant 67 : index
      %340 = memref.load %arg1[%c67] : memref<288xf32, #tpu.memory_space<smem>>
      %341 = vector.broadcast %340 : f32 to vector<2x504xf32>
      %342 = arith.mulf %29, %341 : vector<2x504xf32>
      %343 = arith.addf %339, %342 : vector<2x504xf32>
      %c68 = arith.constant 68 : index
      %344 = memref.load %arg1[%c68] : memref<288xf32, #tpu.memory_space<smem>>
      %345 = vector.broadcast %344 : f32 to vector<2x504xf32>
      %346 = arith.mulf %31, %345 : vector<2x504xf32>
      %347 = arith.addf %343, %346 : vector<2x504xf32>
      %c69 = arith.constant 69 : index
      %348 = memref.load %arg1[%c69] : memref<288xf32, #tpu.memory_space<smem>>
      %349 = vector.broadcast %348 : f32 to vector<2x504xf32>
      %350 = arith.mulf %33, %349 : vector<2x504xf32>
      %351 = arith.addf %347, %350 : vector<2x504xf32>
      %c70 = arith.constant 70 : index
      %352 = memref.load %arg1[%c70] : memref<288xf32, #tpu.memory_space<smem>>
      %353 = vector.broadcast %352 : f32 to vector<2x504xf32>
      %354 = arith.mulf %35, %353 : vector<2x504xf32>
      %355 = arith.addf %351, %354 : vector<2x504xf32>
      %c71 = arith.constant 71 : index
      %356 = memref.load %arg1[%c71] : memref<288xf32, #tpu.memory_space<smem>>
      %357 = vector.broadcast %356 : f32 to vector<2x504xf32>
      %358 = arith.mulf %37, %357 : vector<2x504xf32>
      %359 = arith.addf %355, %358 : vector<2x504xf32>
      %c7_64 = arith.constant 7 : index
      %360 = memref.load %arg2[%c7_64] : memref<32xf32, #tpu.memory_space<smem>>
      %361 = vector.broadcast %360 : f32 to vector<2x504xf32>
      %362 = arith.addf %359, %361 : vector<2x504xf32>
      %cst_65 = arith.constant 0.000000e+00 : f32
      %363 = vector.broadcast %cst_65 : f32 to vector<2x504xf32>
      %364 = arith.maximumf %362, %363 : vector<2x504xf32>
      %c0_66 = arith.constant 0 : index
      %c3584 = arith.constant 3584 : index
      %365 = vector.load %arg7[%c0_66, %c3584] : memref<2x16384xf32, #tpu.memory_space<vmem>>, vector<2x504xf32>
      tpu.vector_store %arg7[%c0_66, %c3584], %364 {strides = array<i32>} : memref<2x16384xf32, #tpu.memory_space<vmem>>, vector<2x504xf32>,
      %c72 = arith.constant 72 : index
      %366 = memref.load %arg1[%c72] : memref<288xf32, #tpu.memory_space<smem>>
      %367 = vector.broadcast %366 : f32 to vector<2x504xf32>
      %368 = arith.mulf %21, %367 : vector<2x504xf32>
      %c73 = arith.constant 73 : index
      %369 = memref.load %arg1[%c73] : memref<288xf32, #tpu.memory_space<smem>>
      %370 = vector.broadcast %369 : f32 to vector<2x504xf32>
      %371 = arith.mulf %23, %370 : vector<2x504xf32>
      %372 = arith.addf %368, %371 : vector<2x504xf32>
      %c74 = arith.constant 74 : index
      %373 = memref.load %arg1[%c74] : memref<288xf32, #tpu.memory_space<smem>>
      %374 = vector.broadcast %373 : f32 to vector<2x504xf32>
      %375 = arith.mulf %25, %374 : vector<2x504xf32>
      %376 = arith.addf %372, %375 : vector<2x504xf32>
      %c75 = arith.constant 75 : index
      %377 = memref.load %arg1[%c75] : memref<288xf32, #tpu.memory_space<smem>>
      %378 = vector.broadcast %377 : f32 to vector<2x504xf32>
      %379 = arith.mulf %27, %378 : vector<2x504xf32>
      %380 = arith.addf %376, %379 : vector<2x504xf32>
      %c76 = arith.constant 76 : index
      %381 = memref.load %arg1[%c76] : memref<288xf32, #tpu.memory_space<smem>>
      %382 = vector.broadcast %381 : f32 to vector<2x504xf32>
      %383 = arith.mulf %29, %382 : vector<2x504xf32>
      %384 = arith.addf %380, %383 : vector<2x504xf32>
      %c77 = arith.constant 77 : index
      %385 = memref.load %arg1[%c77] : memref<288xf32, #tpu.memory_space<smem>>
      %386 = vector.broadcast %385 : f32 to vector<2x504xf32>
      %387 = arith.mulf %31, %386 : vector<2x504xf32>
      %388 = arith.addf %384, %387 : vector<2x504xf32>
      %c78 = arith.constant 78 : index
      %389 = memref.load %arg1[%c78] : memref<288xf32, #tpu.memory_space<smem>>
      %390 = vector.broadcast %389 : f32 to vector<2x504xf32>
      %391 = arith.mulf %33, %390 : vector<2x504xf32>
      %392 = arith.addf %388, %391 : vector<2x504xf32>
      %c79 = arith.constant 79 : index
      %393 = memref.load %arg1[%c79] : memref<288xf32, #tpu.memory_space<smem>>
      %394 = vector.broadcast %393 : f32 to vector<2x504xf32>
      %395 = arith.mulf %35, %394 : vector<2x504xf32>
      %396 = arith.addf %392, %395 : vector<2x504xf32>
      %c80 = arith.constant 80 : index
      %397 = memref.load %arg1[%c80] : memref<288xf32, #tpu.memory_space<smem>>
      %398 = vector.broadcast %397 : f32 to vector<2x504xf32>
      %399 = arith.mulf %37, %398 : vector<2x504xf32>
      %400 = arith.addf %396, %399 : vector<2x504xf32>
      %c8_67 = arith.constant 8 : index
      %401 = memref.load %arg2[%c8_67] : memref<32xf32, #tpu.memory_space<smem>>
      %402 = vector.broadcast %401 : f32 to vector<2x504xf32>
      %403 = arith.addf %400, %402 : vector<2x504xf32>
      %cst_68 = arith.constant 0.000000e+00 : f32
      %404 = vector.broadcast %cst_68 : f32 to vector<2x504xf32>
      %405 = arith.maximumf %403, %404 : vector<2x504xf32>
      %c0_69 = arith.constant 0 : index
      %c4096 = arith.constant 4096 : index
      %406 = vector.load %arg7[%c0_69, %c4096] : memref<2x16384xf32, #tpu.memory_space<vmem>>, vector<2x504xf32>
      tpu.vector_store %arg7[%c0_69, %c4096], %405 {strides = array<i32>} : memref<2x16384xf32, #tpu.memory_space<vmem>>, vector<2x504xf32>,
      %c81 = arith.constant 81 : index
      %407 = memref.load %arg1[%c81] : memref<288xf32, #tpu.memory_space<smem>>
      %408 = vector.broadcast %407 : f32 to vector<2x504xf32>
      %409 = arith.mulf %21, %408 : vector<2x504xf32>
      %c82 = arith.constant 82 : index
      %410 = memref.load %arg1[%c82] : memref<288xf32, #tpu.memory_space<smem>>
      %411 = vector.broadcast %410 : f32 to vector<2x504xf32>
      %412 = arith.mulf %23, %411 : vector<2x504xf32>
      %413 = arith.addf %409, %412 : vector<2x504xf32>
      %c83 = arith.constant 83 : index
      %414 = memref.load %arg1[%c83] : memref<288xf32, #tpu.memory_space<smem>>
      %415 = vector.broadcast %414 : f32 to vector<2x504xf32>
      %416 = arith.mulf %25, %415 : vector<2x504xf32>
      %417 = arith.addf %413, %416 : vector<2x504xf32>
      %c84 = arith.constant 84 : index
      %418 = memref.load %arg1[%c84] : memref<288xf32, #tpu.memory_space<smem>>
      %419 = vector.broadcast %418 : f32 to vector<2x504xf32>
      %420 = arith.mulf %27, %419 : vector<2x504xf32>
      %421 = arith.addf %417, %420 : vector<2x504xf32>
      %c85 = arith.constant 85 : index
      %422 = memref.load %arg1[%c85] : memref<288xf32, #tpu.memory_space<smem>>
      %423 = vector.broadcast %422 : f32 to vector<2x504xf32>
      %424 = arith.mulf %29, %423 : vector<2x504xf32>
      %425 = arith.addf %421, %424 : vector<2x504xf32>
      %c86 = arith.constant 86 : index
      %426 = memref.load %arg1[%c86] : memref<288xf32, #tpu.memory_space<smem>>
      %427 = vector.broadcast %426 : f32 to vector<2x504xf32>
      %428 = arith.mulf %31, %427 : vector<2x504xf32>
      %429 = arith.addf %425, %428 : vector<2x504xf32>
      %c87 = arith.constant 87 : index
      %430 = memref.load %arg1[%c87] : memref<288xf32, #tpu.memory_space<smem>>
      %431 = vector.broadcast %430 : f32 to vector<2x504xf32>
      %432 = arith.mulf %33, %431 : vector<2x504xf32>
      %433 = arith.addf %429, %432 : vector<2x504xf32>
      %c88 = arith.constant 88 : index
      %434 = memref.load %arg1[%c88] : memref<288xf32, #tpu.memory_space<smem>>
      %435 = vector.broadcast %434 : f32 to vector<2x504xf32>
      %436 = arith.mulf %35, %435 : vector<2x504xf32>
      %437 = arith.addf %433, %436 : vector<2x504xf32>
      %c89 = arith.constant 89 : index
      %438 = memref.load %arg1[%c89] : memref<288xf32, #tpu.memory_space<smem>>
      %439 = vector.broadcast %438 : f32 to vector<2x504xf32>
      %440 = arith.mulf %37, %439 : vector<2x504xf32>
      %441 = arith.addf %437, %440 : vector<2x504xf32>
      %c9_70 = arith.constant 9 : index
      %442 = memref.load %arg2[%c9_70] : memref<32xf32, #tpu.memory_space<smem>>
      %443 = vector.broadcast %442 : f32 to vector<2x504xf32>
      %444 = arith.addf %441, %443 : vector<2x504xf32>
      %cst_71 = arith.constant 0.000000e+00 : f32
      %445 = vector.broadcast %cst_71 : f32 to vector<2x504xf32>
      %446 = arith.maximumf %444, %445 : vector<2x504xf32>
      %c0_72 = arith.constant 0 : index
      %c4608 = arith.constant 4608 : index
      %447 = vector.load %arg7[%c0_72, %c4608] : memref<2x16384xf32, #tpu.memory_space<vmem>>, vector<2x504xf32>
      tpu.vector_store %arg7[%c0_72, %c4608], %446 {strides = array<i32>} : memref<2x16384xf32, #tpu.memory_space<vmem>>, vector<2x504xf32>,
      %c90 = arith.constant 90 : index
      %448 = memref.load %arg1[%c90] : memref<288xf32, #tpu.memory_space<smem>>
      %449 = vector.broadcast %448 : f32 to vector<2x504xf32>
      %450 = arith.mulf %21, %449 : vector<2x504xf32>
      %c91 = arith.constant 91 : index
      %451 = memref.load %arg1[%c91] : memref<288xf32, #tpu.memory_space<smem>>
      %452 = vector.broadcast %451 : f32 to vector<2x504xf32>
      %453 = arith.mulf %23, %452 : vector<2x504xf32>
      %454 = arith.addf %450, %453 : vector<2x504xf32>
      %c92 = arith.constant 92 : index
      %455 = memref.load %arg1[%c92] : memref<288xf32, #tpu.memory_space<smem>>
      %456 = vector.broadcast %455 : f32 to vector<2x504xf32>
      %457 = arith.mulf %25, %456 : vector<2x504xf32>
      %458 = arith.addf %454, %457 : vector<2x504xf32>
      %c93 = arith.constant 93 : index
      %459 = memref.load %arg1[%c93] : memref<288xf32, #tpu.memory_space<smem>>
      %460 = vector.broadcast %459 : f32 to vector<2x504xf32>
      %461 = arith.mulf %27, %460 : vector<2x504xf32>
      %462 = arith.addf %458, %461 : vector<2x504xf32>
      %c94 = arith.constant 94 : index
      %463 = memref.load %arg1[%c94] : memref<288xf32, #tpu.memory_space<smem>>
      %464 = vector.broadcast %463 : f32 to vector<2x504xf32>
      %465 = arith.mulf %29, %464 : vector<2x504xf32>
      %466 = arith.addf %462, %465 : vector<2x504xf32>
      %c95 = arith.constant 95 : index
      %467 = memref.load %arg1[%c95] : memref<288xf32, #tpu.memory_space<smem>>
      %468 = vector.broadcast %467 : f32 to vector<2x504xf32>
      %469 = arith.mulf %31, %468 : vector<2x504xf32>
      %470 = arith.addf %466, %469 : vector<2x504xf32>
      %c96 = arith.constant 96 : index
      %471 = memref.load %arg1[%c96] : memref<288xf32, #tpu.memory_space<smem>>
      %472 = vector.broadcast %471 : f32 to vector<2x504xf32>
      %473 = arith.mulf %33, %472 : vector<2x504xf32>
      %474 = arith.addf %470, %473 : vector<2x504xf32>
      %c97 = arith.constant 97 : index
      %475 = memref.load %arg1[%c97] : memref<288xf32, #tpu.memory_space<smem>>
      %476 = vector.broadcast %475 : f32 to vector<2x504xf32>
      %477 = arith.mulf %35, %476 : vector<2x504xf32>
      %478 = arith.addf %474, %477 : vector<2x504xf32>
      %c98 = arith.constant 98 : index
      %479 = memref.load %arg1[%c98] : memref<288xf32, #tpu.memory_space<smem>>
      %480 = vector.broadcast %479 : f32 to vector<2x504xf32>
      %481 = arith.mulf %37, %480 : vector<2x504xf32>
      %482 = arith.addf %478, %481 : vector<2x504xf32>
      %c10_73 = arith.constant 10 : index
      %483 = memref.load %arg2[%c10_73] : memref<32xf32, #tpu.memory_space<smem>>
      %484 = vector.broadcast %483 : f32 to vector<2x504xf32>
      %485 = arith.addf %482, %484 : vector<2x504xf32>
      %cst_74 = arith.constant 0.000000e+00 : f32
      %486 = vector.broadcast %cst_74 : f32 to vector<2x504xf32>
      %487 = arith.maximumf %485, %486 : vector<2x504xf32>
      %c0_75 = arith.constant 0 : index
      %c5120 = arith.constant 5120 : index
      %488 = vector.load %arg7[%c0_75, %c5120] : memref<2x16384xf32, #tpu.memory_space<vmem>>, vector<2x504xf32>
      tpu.vector_store %arg7[%c0_75, %c5120], %487 {strides = array<i32>} : memref<2x16384xf32, #tpu.memory_space<vmem>>, vector<2x504xf32>,
      %c99 = arith.constant 99 : index
      %489 = memref.load %arg1[%c99] : memref<288xf32, #tpu.memory_space<smem>>
      %490 = vector.broadcast %489 : f32 to vector<2x504xf32>
      %491 = arith.mulf %21, %490 : vector<2x504xf32>
      %c100 = arith.constant 100 : index
      %492 = memref.load %arg1[%c100] : memref<288xf32, #tpu.memory_space<smem>>
      %493 = vector.broadcast %492 : f32 to vector<2x504xf32>
      %494 = arith.mulf %23, %493 : vector<2x504xf32>
      %495 = arith.addf %491, %494 : vector<2x504xf32>
      %c101 = arith.constant 101 : index
      %496 = memref.load %arg1[%c101] : memref<288xf32, #tpu.memory_space<smem>>
      %497 = vector.broadcast %496 : f32 to vector<2x504xf32>
      %498 = arith.mulf %25, %497 : vector<2x504xf32>
      %499 = arith.addf %495, %498 : vector<2x504xf32>
      %c102 = arith.constant 102 : index
      %500 = memref.load %arg1[%c102] : memref<288xf32, #tpu.memory_space<smem>>
      %501 = vector.broadcast %500 : f32 to vector<2x504xf32>
      %502 = arith.mulf %27, %501 : vector<2x504xf32>
      %503 = arith.addf %499, %502 : vector<2x504xf32>
      %c103 = arith.constant 103 : index
      %504 = memref.load %arg1[%c103] : memref<288xf32, #tpu.memory_space<smem>>
      %505 = vector.broadcast %504 : f32 to vector<2x504xf32>
      %506 = arith.mulf %29, %505 : vector<2x504xf32>
      %507 = arith.addf %503, %506 : vector<2x504xf32>
      %c104 = arith.constant 104 : index
      %508 = memref.load %arg1[%c104] : memref<288xf32, #tpu.memory_space<smem>>
      %509 = vector.broadcast %508 : f32 to vector<2x504xf32>
      %510 = arith.mulf %31, %509 : vector<2x504xf32>
      %511 = arith.addf %507, %510 : vector<2x504xf32>
      %c105 = arith.constant 105 : index
      %512 = memref.load %arg1[%c105] : memref<288xf32, #tpu.memory_space<smem>>
      %513 = vector.broadcast %512 : f32 to vector<2x504xf32>
      %514 = arith.mulf %33, %513 : vector<2x504xf32>
      %515 = arith.addf %511, %514 : vector<2x504xf32>
      %c106 = arith.constant 106 : index
      %516 = memref.load %arg1[%c106] : memref<288xf32, #tpu.memory_space<smem>>
      %517 = vector.broadcast %516 : f32 to vector<2x504xf32>
      %518 = arith.mulf %35, %517 : vector<2x504xf32>
      %519 = arith.addf %515, %518 : vector<2x504xf32>
      %c107 = arith.constant 107 : index
      %520 = memref.load %arg1[%c107] : memref<288xf32, #tpu.memory_space<smem>>
      %521 = vector.broadcast %520 : f32 to vector<2x504xf32>
      %522 = arith.mulf %37, %521 : vector<2x504xf32>
      %523 = arith.addf %519, %522 : vector<2x504xf32>
      %c11_76 = arith.constant 11 : index
      %524 = memref.load %arg2[%c11_76] : memref<32xf32, #tpu.memory_space<smem>>
      %525 = vector.broadcast %524 : f32 to vector<2x504xf32>
      %526 = arith.addf %523, %525 : vector<2x504xf32>
      %cst_77 = arith.constant 0.000000e+00 : f32
      %527 = vector.broadcast %cst_77 : f32 to vector<2x504xf32>
      %528 = arith.maximumf %526, %527 : vector<2x504xf32>
      %c0_78 = arith.constant 0 : index
      %c5632 = arith.constant 5632 : index
      %529 = vector.load %arg7[%c0_78, %c5632] : memref<2x16384xf32, #tpu.memory_space<vmem>>, vector<2x504xf32>
      tpu.vector_store %arg7[%c0_78, %c5632], %528 {strides = array<i32>} : memref<2x16384xf32, #tpu.memory_space<vmem>>, vector<2x504xf32>,
      %c108 = arith.constant 108 : index
      %530 = memref.load %arg1[%c108] : memref<288xf32, #tpu.memory_space<smem>>
      %531 = vector.broadcast %530 : f32 to vector<2x504xf32>
      %532 = arith.mulf %21, %531 : vector<2x504xf32>
      %c109 = arith.constant 109 : index
      %533 = memref.load %arg1[%c109] : memref<288xf32, #tpu.memory_space<smem>>
      %534 = vector.broadcast %533 : f32 to vector<2x504xf32>
      %535 = arith.mulf %23, %534 : vector<2x504xf32>
      %536 = arith.addf %532, %535 : vector<2x504xf32>
      %c110 = arith.constant 110 : index
      %537 = memref.load %arg1[%c110] : memref<288xf32, #tpu.memory_space<smem>>
      %538 = vector.broadcast %537 : f32 to vector<2x504xf32>
      %539 = arith.mulf %25, %538 : vector<2x504xf32>
      %540 = arith.addf %536, %539 : vector<2x504xf32>
      %c111 = arith.constant 111 : index
      %541 = memref.load %arg1[%c111] : memref<288xf32, #tpu.memory_space<smem>>
      %542 = vector.broadcast %541 : f32 to vector<2x504xf32>
      %543 = arith.mulf %27, %542 : vector<2x504xf32>
      %544 = arith.addf %540, %543 : vector<2x504xf32>
      %c112 = arith.constant 112 : index
      %545 = memref.load %arg1[%c112] : memref<288xf32, #tpu.memory_space<smem>>
      %546 = vector.broadcast %545 : f32 to vector<2x504xf32>
      %547 = arith.mulf %29, %546 : vector<2x504xf32>
      %548 = arith.addf %544, %547 : vector<2x504xf32>
      %c113 = arith.constant 113 : index
      %549 = memref.load %arg1[%c113] : memref<288xf32, #tpu.memory_space<smem>>
      %550 = vector.broadcast %549 : f32 to vector<2x504xf32>
      %551 = arith.mulf %31, %550 : vector<2x504xf32>
      %552 = arith.addf %548, %551 : vector<2x504xf32>
      %c114 = arith.constant 114 : index
      %553 = memref.load %arg1[%c114] : memref<288xf32, #tpu.memory_space<smem>>
      %554 = vector.broadcast %553 : f32 to vector<2x504xf32>
      %555 = arith.mulf %33, %554 : vector<2x504xf32>
      %556 = arith.addf %552, %555 : vector<2x504xf32>
      %c115 = arith.constant 115 : index
      %557 = memref.load %arg1[%c115] : memref<288xf32, #tpu.memory_space<smem>>
      %558 = vector.broadcast %557 : f32 to vector<2x504xf32>
      %559 = arith.mulf %35, %558 : vector<2x504xf32>
      %560 = arith.addf %556, %559 : vector<2x504xf32>
      %c116 = arith.constant 116 : index
      %561 = memref.load %arg1[%c116] : memref<288xf32, #tpu.memory_space<smem>>
      %562 = vector.broadcast %561 : f32 to vector<2x504xf32>
      %563 = arith.mulf %37, %562 : vector<2x504xf32>
      %564 = arith.addf %560, %563 : vector<2x504xf32>
      %c12_79 = arith.constant 12 : index
      %565 = memref.load %arg2[%c12_79] : memref<32xf32, #tpu.memory_space<smem>>
      %566 = vector.broadcast %565 : f32 to vector<2x504xf32>
      %567 = arith.addf %564, %566 : vector<2x504xf32>
      %cst_80 = arith.constant 0.000000e+00 : f32
      %568 = vector.broadcast %cst_80 : f32 to vector<2x504xf32>
      %569 = arith.maximumf %567, %568 : vector<2x504xf32>
      %c0_81 = arith.constant 0 : index
      %c6144 = arith.constant 6144 : index
      %570 = vector.load %arg7[%c0_81, %c6144] : memref<2x16384xf32, #tpu.memory_space<vmem>>, vector<2x504xf32>
      tpu.vector_store %arg7[%c0_81, %c6144], %569 {strides = array<i32>} : memref<2x16384xf32, #tpu.memory_space<vmem>>, vector<2x504xf32>,
      %c117 = arith.constant 117 : index
      %571 = memref.load %arg1[%c117] : memref<288xf32, #tpu.memory_space<smem>>
      %572 = vector.broadcast %571 : f32 to vector<2x504xf32>
      %573 = arith.mulf %21, %572 : vector<2x504xf32>
      %c118 = arith.constant 118 : index
      %574 = memref.load %arg1[%c118] : memref<288xf32, #tpu.memory_space<smem>>
      %575 = vector.broadcast %574 : f32 to vector<2x504xf32>
      %576 = arith.mulf %23, %575 : vector<2x504xf32>
      %577 = arith.addf %573, %576 : vector<2x504xf32>
      %c119 = arith.constant 119 : index
      %578 = memref.load %arg1[%c119] : memref<288xf32, #tpu.memory_space<smem>>
      %579 = vector.broadcast %578 : f32 to vector<2x504xf32>
      %580 = arith.mulf %25, %579 : vector<2x504xf32>
      %581 = arith.addf %577, %580 : vector<2x504xf32>
      %c120 = arith.constant 120 : index
      %582 = memref.load %arg1[%c120] : memref<288xf32, #tpu.memory_space<smem>>
      %583 = vector.broadcast %582 : f32 to vector<2x504xf32>
      %584 = arith.mulf %27, %583 : vector<2x504xf32>
      %585 = arith.addf %581, %584 : vector<2x504xf32>
      %c121 = arith.constant 121 : index
      %586 = memref.load %arg1[%c121] : memref<288xf32, #tpu.memory_space<smem>>
      %587 = vector.broadcast %586 : f32 to vector<2x504xf32>
      %588 = arith.mulf %29, %587 : vector<2x504xf32>
      %589 = arith.addf %585, %588 : vector<2x504xf32>
      %c122 = arith.constant 122 : index
      %590 = memref.load %arg1[%c122] : memref<288xf32, #tpu.memory_space<smem>>
      %591 = vector.broadcast %590 : f32 to vector<2x504xf32>
      %592 = arith.mulf %31, %591 : vector<2x504xf32>
      %593 = arith.addf %589, %592 : vector<2x504xf32>
      %c123 = arith.constant 123 : index
      %594 = memref.load %arg1[%c123] : memref<288xf32, #tpu.memory_space<smem>>
      %595 = vector.broadcast %594 : f32 to vector<2x504xf32>
      %596 = arith.mulf %33, %595 : vector<2x504xf32>
      %597 = arith.addf %593, %596 : vector<2x504xf32>
      %c124 = arith.constant 124 : index
      %598 = memref.load %arg1[%c124] : memref<288xf32, #tpu.memory_space<smem>>
      %599 = vector.broadcast %598 : f32 to vector<2x504xf32>
      %600 = arith.mulf %35, %599 : vector<2x504xf32>
      %601 = arith.addf %597, %600 : vector<2x504xf32>
      %c125 = arith.constant 125 : index
      %602 = memref.load %arg1[%c125] : memref<288xf32, #tpu.memory_space<smem>>
      %603 = vector.broadcast %602 : f32 to vector<2x504xf32>
      %604 = arith.mulf %37, %603 : vector<2x504xf32>
      %605 = arith.addf %601, %604 : vector<2x504xf32>
      %c13_82 = arith.constant 13 : index
      %606 = memref.load %arg2[%c13_82] : memref<32xf32, #tpu.memory_space<smem>>
      %607 = vector.broadcast %606 : f32 to vector<2x504xf32>
      %608 = arith.addf %605, %607 : vector<2x504xf32>
      %cst_83 = arith.constant 0.000000e+00 : f32
      %609 = vector.broadcast %cst_83 : f32 to vector<2x504xf32>
      %610 = arith.maximumf %608, %609 : vector<2x504xf32>
      %c0_84 = arith.constant 0 : index
      %c6656 = arith.constant 6656 : index
      %611 = vector.load %arg7[%c0_84, %c6656] : memref<2x16384xf32, #tpu.memory_space<vmem>>, vector<2x504xf32>
      tpu.vector_store %arg7[%c0_84, %c6656], %610 {strides = array<i32>} : memref<2x16384xf32, #tpu.memory_space<vmem>>, vector<2x504xf32>,
      %c126 = arith.constant 126 : index
      %612 = memref.load %arg1[%c126] : memref<288xf32, #tpu.memory_space<smem>>
      %613 = vector.broadcast %612 : f32 to vector<2x504xf32>
      %614 = arith.mulf %21, %613 : vector<2x504xf32>
      %c127 = arith.constant 127 : index
      %615 = memref.load %arg1[%c127] : memref<288xf32, #tpu.memory_space<smem>>
      %616 = vector.broadcast %615 : f32 to vector<2x504xf32>
      %617 = arith.mulf %23, %616 : vector<2x504xf32>
      %618 = arith.addf %614, %617 : vector<2x504xf32>
      %c128 = arith.constant 128 : index
      %619 = memref.load %arg1[%c128] : memref<288xf32, #tpu.memory_space<smem>>
      %620 = vector.broadcast %619 : f32 to vector<2x504xf32>
      %621 = arith.mulf %25, %620 : vector<2x504xf32>
      %622 = arith.addf %618, %621 : vector<2x504xf32>
      %c129 = arith.constant 129 : index
      %623 = memref.load %arg1[%c129] : memref<288xf32, #tpu.memory_space<smem>>
      %624 = vector.broadcast %623 : f32 to vector<2x504xf32>
      %625 = arith.mulf %27, %624 : vector<2x504xf32>
      %626 = arith.addf %622, %625 : vector<2x504xf32>
      %c130 = arith.constant 130 : index
      %627 = memref.load %arg1[%c130] : memref<288xf32, #tpu.memory_space<smem>>
      %628 = vector.broadcast %627 : f32 to vector<2x504xf32>
      %629 = arith.mulf %29, %628 : vector<2x504xf32>
      %630 = arith.addf %626, %629 : vector<2x504xf32>
      %c131 = arith.constant 131 : index
      %631 = memref.load %arg1[%c131] : memref<288xf32, #tpu.memory_space<smem>>
      %632 = vector.broadcast %631 : f32 to vector<2x504xf32>
      %633 = arith.mulf %31, %632 : vector<2x504xf32>
      %634 = arith.addf %630, %633 : vector<2x504xf32>
      %c132 = arith.constant 132 : index
      %635 = memref.load %arg1[%c132] : memref<288xf32, #tpu.memory_space<smem>>
      %636 = vector.broadcast %635 : f32 to vector<2x504xf32>
      %637 = arith.mulf %33, %636 : vector<2x504xf32>
      %638 = arith.addf %634, %637 : vector<2x504xf32>
      %c133 = arith.constant 133 : index
      %639 = memref.load %arg1[%c133] : memref<288xf32, #tpu.memory_space<smem>>
      %640 = vector.broadcast %639 : f32 to vector<2x504xf32>
      %641 = arith.mulf %35, %640 : vector<2x504xf32>
      %642 = arith.addf %638, %641 : vector<2x504xf32>
      %c134 = arith.constant 134 : index
      %643 = memref.load %arg1[%c134] : memref<288xf32, #tpu.memory_space<smem>>
      %644 = vector.broadcast %643 : f32 to vector<2x504xf32>
      %645 = arith.mulf %37, %644 : vector<2x504xf32>
      %646 = arith.addf %642, %645 : vector<2x504xf32>
      %c14_85 = arith.constant 14 : index
      %647 = memref.load %arg2[%c14_85] : memref<32xf32, #tpu.memory_space<smem>>
      %648 = vector.broadcast %647 : f32 to vector<2x504xf32>
      %649 = arith.addf %646, %648 : vector<2x504xf32>
      %cst_86 = arith.constant 0.000000e+00 : f32
      %650 = vector.broadcast %cst_86 : f32 to vector<2x504xf32>
      %651 = arith.maximumf %649, %650 : vector<2x504xf32>
      %c0_87 = arith.constant 0 : index
      %c7168 = arith.constant 7168 : index
      %652 = vector.load %arg7[%c0_87, %c7168] : memref<2x16384xf32, #tpu.memory_space<vmem>>, vector<2x504xf32>
      tpu.vector_store %arg7[%c0_87, %c7168], %651 {strides = array<i32>} : memref<2x16384xf32, #tpu.memory_space<vmem>>, vector<2x504xf32>,
      %c135 = arith.constant 135 : index
      %653 = memref.load %arg1[%c135] : memref<288xf32, #tpu.memory_space<smem>>
      %654 = vector.broadcast %653 : f32 to vector<2x504xf32>
      %655 = arith.mulf %21, %654 : vector<2x504xf32>
      %c136 = arith.constant 136 : index
      %656 = memref.load %arg1[%c136] : memref<288xf32, #tpu.memory_space<smem>>
      %657 = vector.broadcast %656 : f32 to vector<2x504xf32>
      %658 = arith.mulf %23, %657 : vector<2x504xf32>
      %659 = arith.addf %655, %658 : vector<2x504xf32>
      %c137 = arith.constant 137 : index
      %660 = memref.load %arg1[%c137] : memref<288xf32, #tpu.memory_space<smem>>
      %661 = vector.broadcast %660 : f32 to vector<2x504xf32>
      %662 = arith.mulf %25, %661 : vector<2x504xf32>
      %663 = arith.addf %659, %662 : vector<2x504xf32>
      %c138 = arith.constant 138 : index
      %664 = memref.load %arg1[%c138] : memref<288xf32, #tpu.memory_space<smem>>
      %665 = vector.broadcast %664 : f32 to vector<2x504xf32>
      %666 = arith.mulf %27, %665 : vector<2x504xf32>
      %667 = arith.addf %663, %666 : vector<2x504xf32>
      %c139 = arith.constant 139 : index
      %668 = memref.load %arg1[%c139] : memref<288xf32, #tpu.memory_space<smem>>
      %669 = vector.broadcast %668 : f32 to vector<2x504xf32>
      %670 = arith.mulf %29, %669 : vector<2x504xf32>
      %671 = arith.addf %667, %670 : vector<2x504xf32>
      %c140 = arith.constant 140 : index
      %672 = memref.load %arg1[%c140] : memref<288xf32, #tpu.memory_space<smem>>
      %673 = vector.broadcast %672 : f32 to vector<2x504xf32>
      %674 = arith.mulf %31, %673 : vector<2x504xf32>
      %675 = arith.addf %671, %674 : vector<2x504xf32>
      %c141 = arith.constant 141 : index
      %676 = memref.load %arg1[%c141] : memref<288xf32, #tpu.memory_space<smem>>
      %677 = vector.broadcast %676 : f32 to vector<2x504xf32>
      %678 = arith.mulf %33, %677 : vector<2x504xf32>
      %679 = arith.addf %675, %678 : vector<2x504xf32>
      %c142 = arith.constant 142 : index
      %680 = memref.load %arg1[%c142] : memref<288xf32, #tpu.memory_space<smem>>
      %681 = vector.broadcast %680 : f32 to vector<2x504xf32>
      %682 = arith.mulf %35, %681 : vector<2x504xf32>
      %683 = arith.addf %679, %682 : vector<2x504xf32>
      %c143 = arith.constant 143 : index
      %684 = memref.load %arg1[%c143] : memref<288xf32, #tpu.memory_space<smem>>
      %685 = vector.broadcast %684 : f32 to vector<2x504xf32>
      %686 = arith.mulf %37, %685 : vector<2x504xf32>
      %687 = arith.addf %683, %686 : vector<2x504xf32>
      %c15_88 = arith.constant 15 : index
      %688 = memref.load %arg2[%c15_88] : memref<32xf32, #tpu.memory_space<smem>>
      %689 = vector.broadcast %688 : f32 to vector<2x504xf32>
      %690 = arith.addf %687, %689 : vector<2x504xf32>
      %cst_89 = arith.constant 0.000000e+00 : f32
      %691 = vector.broadcast %cst_89 : f32 to vector<2x504xf32>
      %692 = arith.maximumf %690, %691 : vector<2x504xf32>
      %c0_90 = arith.constant 0 : index
      %c7680 = arith.constant 7680 : index
      %693 = vector.load %arg7[%c0_90, %c7680] : memref<2x16384xf32, #tpu.memory_space<vmem>>, vector<2x504xf32>
      tpu.vector_store %arg7[%c0_90, %c7680], %692 {strides = array<i32>} : memref<2x16384xf32, #tpu.memory_space<vmem>>, vector<2x504xf32>,
      %c144 = arith.constant 144 : index
      %694 = memref.load %arg1[%c144] : memref<288xf32, #tpu.memory_space<smem>>
      %695 = vector.broadcast %694 : f32 to vector<2x504xf32>
      %696 = arith.mulf %21, %695 : vector<2x504xf32>
      %c145 = arith.constant 145 : index
      %697 = memref.load %arg1[%c145] : memref<288xf32, #tpu.memory_space<smem>>
      %698 = vector.broadcast %697 : f32 to vector<2x504xf32>
      %699 = arith.mulf %23, %698 : vector<2x504xf32>
      %700 = arith.addf %696, %699 : vector<2x504xf32>
      %c146 = arith.constant 146 : index
      %701 = memref.load %arg1[%c146] : memref<288xf32, #tpu.memory_space<smem>>
      %702 = vector.broadcast %701 : f32 to vector<2x504xf32>
      %703 = arith.mulf %25, %702 : vector<2x504xf32>
      %704 = arith.addf %700, %703 : vector<2x504xf32>
      %c147 = arith.constant 147 : index
      %705 = memref.load %arg1[%c147] : memref<288xf32, #tpu.memory_space<smem>>
      %706 = vector.broadcast %705 : f32 to vector<2x504xf32>
      %707 = arith.mulf %27, %706 : vector<2x504xf32>
      %708 = arith.addf %704, %707 : vector<2x504xf32>
      %c148 = arith.constant 148 : index
      %709 = memref.load %arg1[%c148] : memref<288xf32, #tpu.memory_space<smem>>
      %710 = vector.broadcast %709 : f32 to vector<2x504xf32>
      %711 = arith.mulf %29, %710 : vector<2x504xf32>
      %712 = arith.addf %708, %711 : vector<2x504xf32>
      %c149 = arith.constant 149 : index
      %713 = memref.load %arg1[%c149] : memref<288xf32, #tpu.memory_space<smem>>
      %714 = vector.broadcast %713 : f32 to vector<2x504xf32>
      %715 = arith.mulf %31, %714 : vector<2x504xf32>
      %716 = arith.addf %712, %715 : vector<2x504xf32>
      %c150 = arith.constant 150 : index
      %717 = memref.load %arg1[%c150] : memref<288xf32, #tpu.memory_space<smem>>
      %718 = vector.broadcast %717 : f32 to vector<2x504xf32>
      %719 = arith.mulf %33, %718 : vector<2x504xf32>
      %720 = arith.addf %716, %719 : vector<2x504xf32>
      %c151 = arith.constant 151 : index
      %721 = memref.load %arg1[%c151] : memref<288xf32, #tpu.memory_space<smem>>
      %722 = vector.broadcast %721 : f32 to vector<2x504xf32>
      %723 = arith.mulf %35, %722 : vector<2x504xf32>
      %724 = arith.addf %720, %723 : vector<2x504xf32>
      %c152 = arith.constant 152 : index
      %725 = memref.load %arg1[%c152] : memref<288xf32, #tpu.memory_space<smem>>
      %726 = vector.broadcast %725 : f32 to vector<2x504xf32>
      %727 = arith.mulf %37, %726 : vector<2x504xf32>
      %728 = arith.addf %724, %727 : vector<2x504xf32>
      %c16_91 = arith.constant 16 : index
      %729 = memref.load %arg2[%c16_91] : memref<32xf32, #tpu.memory_space<smem>>
      %730 = vector.broadcast %729 : f32 to vector<2x504xf32>
      %731 = arith.addf %728, %730 : vector<2x504xf32>
      %cst_92 = arith.constant 0.000000e+00 : f32
      %732 = vector.broadcast %cst_92 : f32 to vector<2x504xf32>
      %733 = arith.maximumf %731, %732 : vector<2x504xf32>
      %c0_93 = arith.constant 0 : index
      %c8192 = arith.constant 8192 : index
      %734 = vector.load %arg7[%c0_93, %c8192] : memref<2x16384xf32, #tpu.memory_space<vmem>>, vector<2x504xf32>
      tpu.vector_store %arg7[%c0_93, %c8192], %733 {strides = array<i32>} : memref<2x16384xf32, #tpu.memory_space<vmem>>, vector<2x504xf32>,
      %c153 = arith.constant 153 : index
      %735 = memref.load %arg1[%c153] : memref<288xf32, #tpu.memory_space<smem>>
      %736 = vector.broadcast %735 : f32 to vector<2x504xf32>
      %737 = arith.mulf %21, %736 : vector<2x504xf32>
      %c154 = arith.constant 154 : index
      %738 = memref.load %arg1[%c154] : memref<288xf32, #tpu.memory_space<smem>>
      %739 = vector.broadcast %738 : f32 to vector<2x504xf32>
      %740 = arith.mulf %23, %739 : vector<2x504xf32>
      %741 = arith.addf %737, %740 : vector<2x504xf32>
      %c155 = arith.constant 155 : index
      %742 = memref.load %arg1[%c155] : memref<288xf32, #tpu.memory_space<smem>>
      %743 = vector.broadcast %742 : f32 to vector<2x504xf32>
      %744 = arith.mulf %25, %743 : vector<2x504xf32>
      %745 = arith.addf %741, %744 : vector<2x504xf32>
      %c156 = arith.constant 156 : index
      %746 = memref.load %arg1[%c156] : memref<288xf32, #tpu.memory_space<smem>>
      %747 = vector.broadcast %746 : f32 to vector<2x504xf32>
      %748 = arith.mulf %27, %747 : vector<2x504xf32>
      %749 = arith.addf %745, %748 : vector<2x504xf32>
      %c157 = arith.constant 157 : index
      %750 = memref.load %arg1[%c157] : memref<288xf32, #tpu.memory_space<smem>>
      %751 = vector.broadcast %750 : f32 to vector<2x504xf32>
      %752 = arith.mulf %29, %751 : vector<2x504xf32>
      %753 = arith.addf %749, %752 : vector<2x504xf32>
      %c158 = arith.constant 158 : index
      %754 = memref.load %arg1[%c158] : memref<288xf32, #tpu.memory_space<smem>>
      %755 = vector.broadcast %754 : f32 to vector<2x504xf32>
      %756 = arith.mulf %31, %755 : vector<2x504xf32>
      %757 = arith.addf %753, %756 : vector<2x504xf32>
      %c159 = arith.constant 159 : index
      %758 = memref.load %arg1[%c159] : memref<288xf32, #tpu.memory_space<smem>>
      %759 = vector.broadcast %758 : f32 to vector<2x504xf32>
      %760 = arith.mulf %33, %759 : vector<2x504xf32>
      %761 = arith.addf %757, %760 : vector<2x504xf32>
      %c160 = arith.constant 160 : index
      %762 = memref.load %arg1[%c160] : memref<288xf32, #tpu.memory_space<smem>>
      %763 = vector.broadcast %762 : f32 to vector<2x504xf32>
      %764 = arith.mulf %35, %763 : vector<2x504xf32>
      %765 = arith.addf %761, %764 : vector<2x504xf32>
      %c161 = arith.constant 161 : index
      %766 = memref.load %arg1[%c161] : memref<288xf32, #tpu.memory_space<smem>>
      %767 = vector.broadcast %766 : f32 to vector<2x504xf32>
      %768 = arith.mulf %37, %767 : vector<2x504xf32>
      %769 = arith.addf %765, %768 : vector<2x504xf32>
      %c17_94 = arith.constant 17 : index
      %770 = memref.load %arg2[%c17_94] : memref<32xf32, #tpu.memory_space<smem>>
      %771 = vector.broadcast %770 : f32 to vector<2x504xf32>
      %772 = arith.addf %769, %771 : vector<2x504xf32>
      %cst_95 = arith.constant 0.000000e+00 : f32
      %773 = vector.broadcast %cst_95 : f32 to vector<2x504xf32>
      %774 = arith.maximumf %772, %773 : vector<2x504xf32>
      %c0_96 = arith.constant 0 : index
      %c8704 = arith.constant 8704 : index
      %775 = vector.load %arg7[%c0_96, %c8704] : memref<2x16384xf32, #tpu.memory_space<vmem>>, vector<2x504xf32>
      tpu.vector_store %arg7[%c0_96, %c8704], %774 {strides = array<i32>} : memref<2x16384xf32, #tpu.memory_space<vmem>>, vector<2x504xf32>,
      %c162 = arith.constant 162 : index
      %776 = memref.load %arg1[%c162] : memref<288xf32, #tpu.memory_space<smem>>
      %777 = vector.broadcast %776 : f32 to vector<2x504xf32>
      %778 = arith.mulf %21, %777 : vector<2x504xf32>
      %c163 = arith.constant 163 : index
      %779 = memref.load %arg1[%c163] : memref<288xf32, #tpu.memory_space<smem>>
      %780 = vector.broadcast %779 : f32 to vector<2x504xf32>
      %781 = arith.mulf %23, %780 : vector<2x504xf32>
      %782 = arith.addf %778, %781 : vector<2x504xf32>
      %c164 = arith.constant 164 : index
      %783 = memref.load %arg1[%c164] : memref<288xf32, #tpu.memory_space<smem>>
      %784 = vector.broadcast %783 : f32 to vector<2x504xf32>
      %785 = arith.mulf %25, %784 : vector<2x504xf32>
      %786 = arith.addf %782, %785 : vector<2x504xf32>
      %c165 = arith.constant 165 : index
      %787 = memref.load %arg1[%c165] : memref<288xf32, #tpu.memory_space<smem>>
      %788 = vector.broadcast %787 : f32 to vector<2x504xf32>
      %789 = arith.mulf %27, %788 : vector<2x504xf32>
      %790 = arith.addf %786, %789 : vector<2x504xf32>
      %c166 = arith.constant 166 : index
      %791 = memref.load %arg1[%c166] : memref<288xf32, #tpu.memory_space<smem>>
      %792 = vector.broadcast %791 : f32 to vector<2x504xf32>
      %793 = arith.mulf %29, %792 : vector<2x504xf32>
      %794 = arith.addf %790, %793 : vector<2x504xf32>
      %c167 = arith.constant 167 : index
      %795 = memref.load %arg1[%c167] : memref<288xf32, #tpu.memory_space<smem>>
      %796 = vector.broadcast %795 : f32 to vector<2x504xf32>
      %797 = arith.mulf %31, %796 : vector<2x504xf32>
      %798 = arith.addf %794, %797 : vector<2x504xf32>
      %c168 = arith.constant 168 : index
      %799 = memref.load %arg1[%c168] : memref<288xf32, #tpu.memory_space<smem>>
      %800 = vector.broadcast %799 : f32 to vector<2x504xf32>
      %801 = arith.mulf %33, %800 : vector<2x504xf32>
      %802 = arith.addf %798, %801 : vector<2x504xf32>
      %c169 = arith.constant 169 : index
      %803 = memref.load %arg1[%c169] : memref<288xf32, #tpu.memory_space<smem>>
      %804 = vector.broadcast %803 : f32 to vector<2x504xf32>
      %805 = arith.mulf %35, %804 : vector<2x504xf32>
      %806 = arith.addf %802, %805 : vector<2x504xf32>
      %c170 = arith.constant 170 : index
      %807 = memref.load %arg1[%c170] : memref<288xf32, #tpu.memory_space<smem>>
      %808 = vector.broadcast %807 : f32 to vector<2x504xf32>
      %809 = arith.mulf %37, %808 : vector<2x504xf32>
      %810 = arith.addf %806, %809 : vector<2x504xf32>
      %c18_97 = arith.constant 18 : index
      %811 = memref.load %arg2[%c18_97] : memref<32xf32, #tpu.memory_space<smem>>
      %812 = vector.broadcast %811 : f32 to vector<2x504xf32>
      %813 = arith.addf %810, %812 : vector<2x504xf32>
      %cst_98 = arith.constant 0.000000e+00 : f32
      %814 = vector.broadcast %cst_98 : f32 to vector<2x504xf32>
      %815 = arith.maximumf %813, %814 : vector<2x504xf32>
      %c0_99 = arith.constant 0 : index
      %c9216 = arith.constant 9216 : index
      %816 = vector.load %arg7[%c0_99, %c9216] : memref<2x16384xf32, #tpu.memory_space<vmem>>, vector<2x504xf32>
      tpu.vector_store %arg7[%c0_99, %c9216], %815 {strides = array<i32>} : memref<2x16384xf32, #tpu.memory_space<vmem>>, vector<2x504xf32>,
      %c171 = arith.constant 171 : index
      %817 = memref.load %arg1[%c171] : memref<288xf32, #tpu.memory_space<smem>>
      %818 = vector.broadcast %817 : f32 to vector<2x504xf32>
      %819 = arith.mulf %21, %818 : vector<2x504xf32>
      %c172 = arith.constant 172 : index
      %820 = memref.load %arg1[%c172] : memref<288xf32, #tpu.memory_space<smem>>
      %821 = vector.broadcast %820 : f32 to vector<2x504xf32>
      %822 = arith.mulf %23, %821 : vector<2x504xf32>
      %823 = arith.addf %819, %822 : vector<2x504xf32>
      %c173 = arith.constant 173 : index
      %824 = memref.load %arg1[%c173] : memref<288xf32, #tpu.memory_space<smem>>
      %825 = vector.broadcast %824 : f32 to vector<2x504xf32>
      %826 = arith.mulf %25, %825 : vector<2x504xf32>
      %827 = arith.addf %823, %826 : vector<2x504xf32>
      %c174 = arith.constant 174 : index
      %828 = memref.load %arg1[%c174] : memref<288xf32, #tpu.memory_space<smem>>
      %829 = vector.broadcast %828 : f32 to vector<2x504xf32>
      %830 = arith.mulf %27, %829 : vector<2x504xf32>
      %831 = arith.addf %827, %830 : vector<2x504xf32>
      %c175 = arith.constant 175 : index
      %832 = memref.load %arg1[%c175] : memref<288xf32, #tpu.memory_space<smem>>
      %833 = vector.broadcast %832 : f32 to vector<2x504xf32>
      %834 = arith.mulf %29, %833 : vector<2x504xf32>
      %835 = arith.addf %831, %834 : vector<2x504xf32>
      %c176 = arith.constant 176 : index
      %836 = memref.load %arg1[%c176] : memref<288xf32, #tpu.memory_space<smem>>
      %837 = vector.broadcast %836 : f32 to vector<2x504xf32>
      %838 = arith.mulf %31, %837 : vector<2x504xf32>
      %839 = arith.addf %835, %838 : vector<2x504xf32>
      %c177 = arith.constant 177 : index
      %840 = memref.load %arg1[%c177] : memref<288xf32, #tpu.memory_space<smem>>
      %841 = vector.broadcast %840 : f32 to vector<2x504xf32>
      %842 = arith.mulf %33, %841 : vector<2x504xf32>
      %843 = arith.addf %839, %842 : vector<2x504xf32>
      %c178 = arith.constant 178 : index
      %844 = memref.load %arg1[%c178] : memref<288xf32, #tpu.memory_space<smem>>
      %845 = vector.broadcast %844 : f32 to vector<2x504xf32>
      %846 = arith.mulf %35, %845 : vector<2x504xf32>
      %847 = arith.addf %843, %846 : vector<2x504xf32>
      %c179 = arith.constant 179 : index
      %848 = memref.load %arg1[%c179] : memref<288xf32, #tpu.memory_space<smem>>
      %849 = vector.broadcast %848 : f32 to vector<2x504xf32>
      %850 = arith.mulf %37, %849 : vector<2x504xf32>
      %851 = arith.addf %847, %850 : vector<2x504xf32>
      %c19_100 = arith.constant 19 : index
      %852 = memref.load %arg2[%c19_100] : memref<32xf32, #tpu.memory_space<smem>>
      %853 = vector.broadcast %852 : f32 to vector<2x504xf32>
      %854 = arith.addf %851, %853 : vector<2x504xf32>
      %cst_101 = arith.constant 0.000000e+00 : f32
      %855 = vector.broadcast %cst_101 : f32 to vector<2x504xf32>
      %856 = arith.maximumf %854, %855 : vector<2x504xf32>
      %c0_102 = arith.constant 0 : index
      %c9728 = arith.constant 9728 : index
      %857 = vector.load %arg7[%c0_102, %c9728] : memref<2x16384xf32, #tpu.memory_space<vmem>>, vector<2x504xf32>
      tpu.vector_store %arg7[%c0_102, %c9728], %856 {strides = array<i32>} : memref<2x16384xf32, #tpu.memory_space<vmem>>, vector<2x504xf32>,
      %c180 = arith.constant 180 : index
      %858 = memref.load %arg1[%c180] : memref<288xf32, #tpu.memory_space<smem>>
      %859 = vector.broadcast %858 : f32 to vector<2x504xf32>
      %860 = arith.mulf %21, %859 : vector<2x504xf32>
      %c181 = arith.constant 181 : index
      %861 = memref.load %arg1[%c181] : memref<288xf32, #tpu.memory_space<smem>>
      %862 = vector.broadcast %861 : f32 to vector<2x504xf32>
      %863 = arith.mulf %23, %862 : vector<2x504xf32>
      %864 = arith.addf %860, %863 : vector<2x504xf32>
      %c182 = arith.constant 182 : index
      %865 = memref.load %arg1[%c182] : memref<288xf32, #tpu.memory_space<smem>>
      %866 = vector.broadcast %865 : f32 to vector<2x504xf32>
      %867 = arith.mulf %25, %866 : vector<2x504xf32>
      %868 = arith.addf %864, %867 : vector<2x504xf32>
      %c183 = arith.constant 183 : index
      %869 = memref.load %arg1[%c183] : memref<288xf32, #tpu.memory_space<smem>>
      %870 = vector.broadcast %869 : f32 to vector<2x504xf32>
      %871 = arith.mulf %27, %870 : vector<2x504xf32>
      %872 = arith.addf %868, %871 : vector<2x504xf32>
      %c184 = arith.constant 184 : index
      %873 = memref.load %arg1[%c184] : memref<288xf32, #tpu.memory_space<smem>>
      %874 = vector.broadcast %873 : f32 to vector<2x504xf32>
      %875 = arith.mulf %29, %874 : vector<2x504xf32>
      %876 = arith.addf %872, %875 : vector<2x504xf32>
      %c185 = arith.constant 185 : index
      %877 = memref.load %arg1[%c185] : memref<288xf32, #tpu.memory_space<smem>>
      %878 = vector.broadcast %877 : f32 to vector<2x504xf32>
      %879 = arith.mulf %31, %878 : vector<2x504xf32>
      %880 = arith.addf %876, %879 : vector<2x504xf32>
      %c186 = arith.constant 186 : index
      %881 = memref.load %arg1[%c186] : memref<288xf32, #tpu.memory_space<smem>>
      %882 = vector.broadcast %881 : f32 to vector<2x504xf32>
      %883 = arith.mulf %33, %882 : vector<2x504xf32>
      %884 = arith.addf %880, %883 : vector<2x504xf32>
      %c187 = arith.constant 187 : index
      %885 = memref.load %arg1[%c187] : memref<288xf32, #tpu.memory_space<smem>>
      %886 = vector.broadcast %885 : f32 to vector<2x504xf32>
      %887 = arith.mulf %35, %886 : vector<2x504xf32>
      %888 = arith.addf %884, %887 : vector<2x504xf32>
      %c188 = arith.constant 188 : index
      %889 = memref.load %arg1[%c188] : memref<288xf32, #tpu.memory_space<smem>>
      %890 = vector.broadcast %889 : f32 to vector<2x504xf32>
      %891 = arith.mulf %37, %890 : vector<2x504xf32>
      %892 = arith.addf %888, %891 : vector<2x504xf32>
      %c20_103 = arith.constant 20 : index
      %893 = memref.load %arg2[%c20_103] : memref<32xf32, #tpu.memory_space<smem>>
      %894 = vector.broadcast %893 : f32 to vector<2x504xf32>
      %895 = arith.addf %892, %894 : vector<2x504xf32>
      %cst_104 = arith.constant 0.000000e+00 : f32
      %896 = vector.broadcast %cst_104 : f32 to vector<2x504xf32>
      %897 = arith.maximumf %895, %896 : vector<2x504xf32>
      %c0_105 = arith.constant 0 : index
      %c10240 = arith.constant 10240 : index
      %898 = vector.load %arg7[%c0_105, %c10240] : memref<2x16384xf32, #tpu.memory_space<vmem>>, vector<2x504xf32>
      tpu.vector_store %arg7[%c0_105, %c10240], %897 {strides = array<i32>} : memref<2x16384xf32, #tpu.memory_space<vmem>>, vector<2x504xf32>,
      %c189 = arith.constant 189 : index
      %899 = memref.load %arg1[%c189] : memref<288xf32, #tpu.memory_space<smem>>
      %900 = vector.broadcast %899 : f32 to vector<2x504xf32>
      %901 = arith.mulf %21, %900 : vector<2x504xf32>
      %c190 = arith.constant 190 : index
      %902 = memref.load %arg1[%c190] : memref<288xf32, #tpu.memory_space<smem>>
      %903 = vector.broadcast %902 : f32 to vector<2x504xf32>
      %904 = arith.mulf %23, %903 : vector<2x504xf32>
      %905 = arith.addf %901, %904 : vector<2x504xf32>
      %c191 = arith.constant 191 : index
      %906 = memref.load %arg1[%c191] : memref<288xf32, #tpu.memory_space<smem>>
      %907 = vector.broadcast %906 : f32 to vector<2x504xf32>
      %908 = arith.mulf %25, %907 : vector<2x504xf32>
      %909 = arith.addf %905, %908 : vector<2x504xf32>
      %c192 = arith.constant 192 : index
      %910 = memref.load %arg1[%c192] : memref<288xf32, #tpu.memory_space<smem>>
      %911 = vector.broadcast %910 : f32 to vector<2x504xf32>
      %912 = arith.mulf %27, %911 : vector<2x504xf32>
      %913 = arith.addf %909, %912 : vector<2x504xf32>
      %c193 = arith.constant 193 : index
      %914 = memref.load %arg1[%c193] : memref<288xf32, #tpu.memory_space<smem>>
      %915 = vector.broadcast %914 : f32 to vector<2x504xf32>
      %916 = arith.mulf %29, %915 : vector<2x504xf32>
      %917 = arith.addf %913, %916 : vector<2x504xf32>
      %c194 = arith.constant 194 : index
      %918 = memref.load %arg1[%c194] : memref<288xf32, #tpu.memory_space<smem>>
      %919 = vector.broadcast %918 : f32 to vector<2x504xf32>
      %920 = arith.mulf %31, %919 : vector<2x504xf32>
      %921 = arith.addf %917, %920 : vector<2x504xf32>
      %c195 = arith.constant 195 : index
      %922 = memref.load %arg1[%c195] : memref<288xf32, #tpu.memory_space<smem>>
      %923 = vector.broadcast %922 : f32 to vector<2x504xf32>
      %924 = arith.mulf %33, %923 : vector<2x504xf32>
      %925 = arith.addf %921, %924 : vector<2x504xf32>
      %c196 = arith.constant 196 : index
      %926 = memref.load %arg1[%c196] : memref<288xf32, #tpu.memory_space<smem>>
      %927 = vector.broadcast %926 : f32 to vector<2x504xf32>
      %928 = arith.mulf %35, %927 : vector<2x504xf32>
      %929 = arith.addf %925, %928 : vector<2x504xf32>
      %c197 = arith.constant 197 : index
      %930 = memref.load %arg1[%c197] : memref<288xf32, #tpu.memory_space<smem>>
      %931 = vector.broadcast %930 : f32 to vector<2x504xf32>
      %932 = arith.mulf %37, %931 : vector<2x504xf32>
      %933 = arith.addf %929, %932 : vector<2x504xf32>
      %c21_106 = arith.constant 21 : index
      %934 = memref.load %arg2[%c21_106] : memref<32xf32, #tpu.memory_space<smem>>
      %935 = vector.broadcast %934 : f32 to vector<2x504xf32>
      %936 = arith.addf %933, %935 : vector<2x504xf32>
      %cst_107 = arith.constant 0.000000e+00 : f32
      %937 = vector.broadcast %cst_107 : f32 to vector<2x504xf32>
      %938 = arith.maximumf %936, %937 : vector<2x504xf32>
      %c0_108 = arith.constant 0 : index
      %c10752 = arith.constant 10752 : index
      %939 = vector.load %arg7[%c0_108, %c10752] : memref<2x16384xf32, #tpu.memory_space<vmem>>, vector<2x504xf32>
      tpu.vector_store %arg7[%c0_108, %c10752], %938 {strides = array<i32>} : memref<2x16384xf32, #tpu.memory_space<vmem>>, vector<2x504xf32>,
      %c198 = arith.constant 198 : index
      %940 = memref.load %arg1[%c198] : memref<288xf32, #tpu.memory_space<smem>>
      %941 = vector.broadcast %940 : f32 to vector<2x504xf32>
      %942 = arith.mulf %21, %941 : vector<2x504xf32>
      %c199 = arith.constant 199 : index
      %943 = memref.load %arg1[%c199] : memref<288xf32, #tpu.memory_space<smem>>
      %944 = vector.broadcast %943 : f32 to vector<2x504xf32>
      %945 = arith.mulf %23, %944 : vector<2x504xf32>
      %946 = arith.addf %942, %945 : vector<2x504xf32>
      %c200 = arith.constant 200 : index
      %947 = memref.load %arg1[%c200] : memref<288xf32, #tpu.memory_space<smem>>
      %948 = vector.broadcast %947 : f32 to vector<2x504xf32>
      %949 = arith.mulf %25, %948 : vector<2x504xf32>
      %950 = arith.addf %946, %949 : vector<2x504xf32>
      %c201 = arith.constant 201 : index
      %951 = memref.load %arg1[%c201] : memref<288xf32, #tpu.memory_space<smem>>
      %952 = vector.broadcast %951 : f32 to vector<2x504xf32>
      %953 = arith.mulf %27, %952 : vector<2x504xf32>
      %954 = arith.addf %950, %953 : vector<2x504xf32>
      %c202 = arith.constant 202 : index
      %955 = memref.load %arg1[%c202] : memref<288xf32, #tpu.memory_space<smem>>
      %956 = vector.broadcast %955 : f32 to vector<2x504xf32>
      %957 = arith.mulf %29, %956 : vector<2x504xf32>
      %958 = arith.addf %954, %957 : vector<2x504xf32>
      %c203 = arith.constant 203 : index
      %959 = memref.load %arg1[%c203] : memref<288xf32, #tpu.memory_space<smem>>
      %960 = vector.broadcast %959 : f32 to vector<2x504xf32>
      %961 = arith.mulf %31, %960 : vector<2x504xf32>
      %962 = arith.addf %958, %961 : vector<2x504xf32>
      %c204 = arith.constant 204 : index
      %963 = memref.load %arg1[%c204] : memref<288xf32, #tpu.memory_space<smem>>
      %964 = vector.broadcast %963 : f32 to vector<2x504xf32>
      %965 = arith.mulf %33, %964 : vector<2x504xf32>
      %966 = arith.addf %962, %965 : vector<2x504xf32>
      %c205 = arith.constant 205 : index
      %967 = memref.load %arg1[%c205] : memref<288xf32, #tpu.memory_space<smem>>
      %968 = vector.broadcast %967 : f32 to vector<2x504xf32>
      %969 = arith.mulf %35, %968 : vector<2x504xf32>
      %970 = arith.addf %966, %969 : vector<2x504xf32>
      %c206 = arith.constant 206 : index
      %971 = memref.load %arg1[%c206] : memref<288xf32, #tpu.memory_space<smem>>
      %972 = vector.broadcast %971 : f32 to vector<2x504xf32>
      %973 = arith.mulf %37, %972 : vector<2x504xf32>
      %974 = arith.addf %970, %973 : vector<2x504xf32>
      %c22_109 = arith.constant 22 : index
      %975 = memref.load %arg2[%c22_109] : memref<32xf32, #tpu.memory_space<smem>>
      %976 = vector.broadcast %975 : f32 to vector<2x504xf32>
      %977 = arith.addf %974, %976 : vector<2x504xf32>
      %cst_110 = arith.constant 0.000000e+00 : f32
      %978 = vector.broadcast %cst_110 : f32 to vector<2x504xf32>
      %979 = arith.maximumf %977, %978 : vector<2x504xf32>
      %c0_111 = arith.constant 0 : index
      %c11264 = arith.constant 11264 : index
      %980 = vector.load %arg7[%c0_111, %c11264] : memref<2x16384xf32, #tpu.memory_space<vmem>>, vector<2x504xf32>
      tpu.vector_store %arg7[%c0_111, %c11264], %979 {strides = array<i32>} : memref<2x16384xf32, #tpu.memory_space<vmem>>, vector<2x504xf32>,
      %c207 = arith.constant 207 : index
      %981 = memref.load %arg1[%c207] : memref<288xf32, #tpu.memory_space<smem>>
      %982 = vector.broadcast %981 : f32 to vector<2x504xf32>
      %983 = arith.mulf %21, %982 : vector<2x504xf32>
      %c208 = arith.constant 208 : index
      %984 = memref.load %arg1[%c208] : memref<288xf32, #tpu.memory_space<smem>>
      %985 = vector.broadcast %984 : f32 to vector<2x504xf32>
      %986 = arith.mulf %23, %985 : vector<2x504xf32>
      %987 = arith.addf %983, %986 : vector<2x504xf32>
      %c209 = arith.constant 209 : index
      %988 = memref.load %arg1[%c209] : memref<288xf32, #tpu.memory_space<smem>>
      %989 = vector.broadcast %988 : f32 to vector<2x504xf32>
      %990 = arith.mulf %25, %989 : vector<2x504xf32>
      %991 = arith.addf %987, %990 : vector<2x504xf32>
      %c210 = arith.constant 210 : index
      %992 = memref.load %arg1[%c210] : memref<288xf32, #tpu.memory_space<smem>>
      %993 = vector.broadcast %992 : f32 to vector<2x504xf32>
      %994 = arith.mulf %27, %993 : vector<2x504xf32>
      %995 = arith.addf %991, %994 : vector<2x504xf32>
      %c211 = arith.constant 211 : index
      %996 = memref.load %arg1[%c211] : memref<288xf32, #tpu.memory_space<smem>>
      %997 = vector.broadcast %996 : f32 to vector<2x504xf32>
      %998 = arith.mulf %29, %997 : vector<2x504xf32>
      %999 = arith.addf %995, %998 : vector<2x504xf32>
      %c212 = arith.constant 212 : index
      %1000 = memref.load %arg1[%c212] : memref<288xf32, #tpu.memory_space<smem>>
      %1001 = vector.broadcast %1000 : f32 to vector<2x504xf32>
      %1002 = arith.mulf %31, %1001 : vector<2x504xf32>
      %1003 = arith.addf %999, %1002 : vector<2x504xf32>
      %c213 = arith.constant 213 : index
      %1004 = memref.load %arg1[%c213] : memref<288xf32, #tpu.memory_space<smem>>
      %1005 = vector.broadcast %1004 : f32 to vector<2x504xf32>
      %1006 = arith.mulf %33, %1005 : vector<2x504xf32>
      %1007 = arith.addf %1003, %1006 : vector<2x504xf32>
      %c214 = arith.constant 214 : index
      %1008 = memref.load %arg1[%c214] : memref<288xf32, #tpu.memory_space<smem>>
      %1009 = vector.broadcast %1008 : f32 to vector<2x504xf32>
      %1010 = arith.mulf %35, %1009 : vector<2x504xf32>
      %1011 = arith.addf %1007, %1010 : vector<2x504xf32>
      %c215 = arith.constant 215 : index
      %1012 = memref.load %arg1[%c215] : memref<288xf32, #tpu.memory_space<smem>>
      %1013 = vector.broadcast %1012 : f32 to vector<2x504xf32>
      %1014 = arith.mulf %37, %1013 : vector<2x504xf32>
      %1015 = arith.addf %1011, %1014 : vector<2x504xf32>
      %c23_112 = arith.constant 23 : index
      %1016 = memref.load %arg2[%c23_112] : memref<32xf32, #tpu.memory_space<smem>>
      %1017 = vector.broadcast %1016 : f32 to vector<2x504xf32>
      %1018 = arith.addf %1015, %1017 : vector<2x504xf32>
      %cst_113 = arith.constant 0.000000e+00 : f32
      %1019 = vector.broadcast %cst_113 : f32 to vector<2x504xf32>
      %1020 = arith.maximumf %1018, %1019 : vector<2x504xf32>
      %c0_114 = arith.constant 0 : index
      %c11776 = arith.constant 11776 : index
      %1021 = vector.load %arg7[%c0_114, %c11776] : memref<2x16384xf32, #tpu.memory_space<vmem>>, vector<2x504xf32>
      tpu.vector_store %arg7[%c0_114, %c11776], %1020 {strides = array<i32>} : memref<2x16384xf32, #tpu.memory_space<vmem>>, vector<2x504xf32>,
      %c216 = arith.constant 216 : index
      %1022 = memref.load %arg1[%c216] : memref<288xf32, #tpu.memory_space<smem>>
      %1023 = vector.broadcast %1022 : f32 to vector<2x504xf32>
      %1024 = arith.mulf %21, %1023 : vector<2x504xf32>
      %c217 = arith.constant 217 : index
      %1025 = memref.load %arg1[%c217] : memref<288xf32, #tpu.memory_space<smem>>
      %1026 = vector.broadcast %1025 : f32 to vector<2x504xf32>
      %1027 = arith.mulf %23, %1026 : vector<2x504xf32>
      %1028 = arith.addf %1024, %1027 : vector<2x504xf32>
      %c218 = arith.constant 218 : index
      %1029 = memref.load %arg1[%c218] : memref<288xf32, #tpu.memory_space<smem>>
      %1030 = vector.broadcast %1029 : f32 to vector<2x504xf32>
      %1031 = arith.mulf %25, %1030 : vector<2x504xf32>
      %1032 = arith.addf %1028, %1031 : vector<2x504xf32>
      %c219 = arith.constant 219 : index
      %1033 = memref.load %arg1[%c219] : memref<288xf32, #tpu.memory_space<smem>>
      %1034 = vector.broadcast %1033 : f32 to vector<2x504xf32>
      %1035 = arith.mulf %27, %1034 : vector<2x504xf32>
      %1036 = arith.addf %1032, %1035 : vector<2x504xf32>
      %c220 = arith.constant 220 : index
      %1037 = memref.load %arg1[%c220] : memref<288xf32, #tpu.memory_space<smem>>
      %1038 = vector.broadcast %1037 : f32 to vector<2x504xf32>
      %1039 = arith.mulf %29, %1038 : vector<2x504xf32>
      %1040 = arith.addf %1036, %1039 : vector<2x504xf32>
      %c221 = arith.constant 221 : index
      %1041 = memref.load %arg1[%c221] : memref<288xf32, #tpu.memory_space<smem>>
      %1042 = vector.broadcast %1041 : f32 to vector<2x504xf32>
      %1043 = arith.mulf %31, %1042 : vector<2x504xf32>
      %1044 = arith.addf %1040, %1043 : vector<2x504xf32>
      %c222 = arith.constant 222 : index
      %1045 = memref.load %arg1[%c222] : memref<288xf32, #tpu.memory_space<smem>>
      %1046 = vector.broadcast %1045 : f32 to vector<2x504xf32>
      %1047 = arith.mulf %33, %1046 : vector<2x504xf32>
      %1048 = arith.addf %1044, %1047 : vector<2x504xf32>
      %c223 = arith.constant 223 : index
      %1049 = memref.load %arg1[%c223] : memref<288xf32, #tpu.memory_space<smem>>
      %1050 = vector.broadcast %1049 : f32 to vector<2x504xf32>
      %1051 = arith.mulf %35, %1050 : vector<2x504xf32>
      %1052 = arith.addf %1048, %1051 : vector<2x504xf32>
      %c224 = arith.constant 224 : index
      %1053 = memref.load %arg1[%c224] : memref<288xf32, #tpu.memory_space<smem>>
      %1054 = vector.broadcast %1053 : f32 to vector<2x504xf32>
      %1055 = arith.mulf %37, %1054 : vector<2x504xf32>
      %1056 = arith.addf %1052, %1055 : vector<2x504xf32>
      %c24_115 = arith.constant 24 : index
      %1057 = memref.load %arg2[%c24_115] : memref<32xf32, #tpu.memory_space<smem>>
      %1058 = vector.broadcast %1057 : f32 to vector<2x504xf32>
      %1059 = arith.addf %1056, %1058 : vector<2x504xf32>
      %cst_116 = arith.constant 0.000000e+00 : f32
      %1060 = vector.broadcast %cst_116 : f32 to vector<2x504xf32>
      %1061 = arith.maximumf %1059, %1060 : vector<2x504xf32>
      %c0_117 = arith.constant 0 : index
      %c12288 = arith.constant 12288 : index
      %1062 = vector.load %arg7[%c0_117, %c12288] : memref<2x16384xf32, #tpu.memory_space<vmem>>, vector<2x504xf32>
      tpu.vector_store %arg7[%c0_117, %c12288], %1061 {strides = array<i32>} : memref<2x16384xf32, #tpu.memory_space<vmem>>, vector<2x504xf32>,
      %c225 = arith.constant 225 : index
      %1063 = memref.load %arg1[%c225] : memref<288xf32, #tpu.memory_space<smem>>
      %1064 = vector.broadcast %1063 : f32 to vector<2x504xf32>
      %1065 = arith.mulf %21, %1064 : vector<2x504xf32>
      %c226 = arith.constant 226 : index
      %1066 = memref.load %arg1[%c226] : memref<288xf32, #tpu.memory_space<smem>>
      %1067 = vector.broadcast %1066 : f32 to vector<2x504xf32>
      %1068 = arith.mulf %23, %1067 : vector<2x504xf32>
      %1069 = arith.addf %1065, %1068 : vector<2x504xf32>
      %c227 = arith.constant 227 : index
      %1070 = memref.load %arg1[%c227] : memref<288xf32, #tpu.memory_space<smem>>
      %1071 = vector.broadcast %1070 : f32 to vector<2x504xf32>
      %1072 = arith.mulf %25, %1071 : vector<2x504xf32>
      %1073 = arith.addf %1069, %1072 : vector<2x504xf32>
      %c228 = arith.constant 228 : index
      %1074 = memref.load %arg1[%c228] : memref<288xf32, #tpu.memory_space<smem>>
      %1075 = vector.broadcast %1074 : f32 to vector<2x504xf32>
      %1076 = arith.mulf %27, %1075 : vector<2x504xf32>
      %1077 = arith.addf %1073, %1076 : vector<2x504xf32>
      %c229 = arith.constant 229 : index
      %1078 = memref.load %arg1[%c229] : memref<288xf32, #tpu.memory_space<smem>>
      %1079 = vector.broadcast %1078 : f32 to vector<2x504xf32>
      %1080 = arith.mulf %29, %1079 : vector<2x504xf32>
      %1081 = arith.addf %1077, %1080 : vector<2x504xf32>
      %c230 = arith.constant 230 : index
      %1082 = memref.load %arg1[%c230] : memref<288xf32, #tpu.memory_space<smem>>
      %1083 = vector.broadcast %1082 : f32 to vector<2x504xf32>
      %1084 = arith.mulf %31, %1083 : vector<2x504xf32>
      %1085 = arith.addf %1081, %1084 : vector<2x504xf32>
      %c231 = arith.constant 231 : index
      %1086 = memref.load %arg1[%c231] : memref<288xf32, #tpu.memory_space<smem>>
      %1087 = vector.broadcast %1086 : f32 to vector<2x504xf32>
      %1088 = arith.mulf %33, %1087 : vector<2x504xf32>
      %1089 = arith.addf %1085, %1088 : vector<2x504xf32>
      %c232 = arith.constant 232 : index
      %1090 = memref.load %arg1[%c232] : memref<288xf32, #tpu.memory_space<smem>>
      %1091 = vector.broadcast %1090 : f32 to vector<2x504xf32>
      %1092 = arith.mulf %35, %1091 : vector<2x504xf32>
      %1093 = arith.addf %1089, %1092 : vector<2x504xf32>
      %c233 = arith.constant 233 : index
      %1094 = memref.load %arg1[%c233] : memref<288xf32, #tpu.memory_space<smem>>
      %1095 = vector.broadcast %1094 : f32 to vector<2x504xf32>
      %1096 = arith.mulf %37, %1095 : vector<2x504xf32>
      %1097 = arith.addf %1093, %1096 : vector<2x504xf32>
      %c25_118 = arith.constant 25 : index
      %1098 = memref.load %arg2[%c25_118] : memref<32xf32, #tpu.memory_space<smem>>
      %1099 = vector.broadcast %1098 : f32 to vector<2x504xf32>
      %1100 = arith.addf %1097, %1099 : vector<2x504xf32>
      %cst_119 = arith.constant 0.000000e+00 : f32
      %1101 = vector.broadcast %cst_119 : f32 to vector<2x504xf32>
      %1102 = arith.maximumf %1100, %1101 : vector<2x504xf32>
      %c0_120 = arith.constant 0 : index
      %c12800 = arith.constant 12800 : index
      %1103 = vector.load %arg7[%c0_120, %c12800] : memref<2x16384xf32, #tpu.memory_space<vmem>>, vector<2x504xf32>
      tpu.vector_store %arg7[%c0_120, %c12800], %1102 {strides = array<i32>} : memref<2x16384xf32, #tpu.memory_space<vmem>>, vector<2x504xf32>,
      %c234 = arith.constant 234 : index
      %1104 = memref.load %arg1[%c234] : memref<288xf32, #tpu.memory_space<smem>>
      %1105 = vector.broadcast %1104 : f32 to vector<2x504xf32>
      %1106 = arith.mulf %21, %1105 : vector<2x504xf32>
      %c235 = arith.constant 235 : index
      %1107 = memref.load %arg1[%c235] : memref<288xf32, #tpu.memory_space<smem>>
      %1108 = vector.broadcast %1107 : f32 to vector<2x504xf32>
      %1109 = arith.mulf %23, %1108 : vector<2x504xf32>
      %1110 = arith.addf %1106, %1109 : vector<2x504xf32>
      %c236 = arith.constant 236 : index
      %1111 = memref.load %arg1[%c236] : memref<288xf32, #tpu.memory_space<smem>>
      %1112 = vector.broadcast %1111 : f32 to vector<2x504xf32>
      %1113 = arith.mulf %25, %1112 : vector<2x504xf32>
      %1114 = arith.addf %1110, %1113 : vector<2x504xf32>
      %c237 = arith.constant 237 : index
      %1115 = memref.load %arg1[%c237] : memref<288xf32, #tpu.memory_space<smem>>
      %1116 = vector.broadcast %1115 : f32 to vector<2x504xf32>
      %1117 = arith.mulf %27, %1116 : vector<2x504xf32>
      %1118 = arith.addf %1114, %1117 : vector<2x504xf32>
      %c238 = arith.constant 238 : index
      %1119 = memref.load %arg1[%c238] : memref<288xf32, #tpu.memory_space<smem>>
      %1120 = vector.broadcast %1119 : f32 to vector<2x504xf32>
      %1121 = arith.mulf %29, %1120 : vector<2x504xf32>
      %1122 = arith.addf %1118, %1121 : vector<2x504xf32>
      %c239 = arith.constant 239 : index
      %1123 = memref.load %arg1[%c239] : memref<288xf32, #tpu.memory_space<smem>>
      %1124 = vector.broadcast %1123 : f32 to vector<2x504xf32>
      %1125 = arith.mulf %31, %1124 : vector<2x504xf32>
      %1126 = arith.addf %1122, %1125 : vector<2x504xf32>
      %c240 = arith.constant 240 : index
      %1127 = memref.load %arg1[%c240] : memref<288xf32, #tpu.memory_space<smem>>
      %1128 = vector.broadcast %1127 : f32 to vector<2x504xf32>
      %1129 = arith.mulf %33, %1128 : vector<2x504xf32>
      %1130 = arith.addf %1126, %1129 : vector<2x504xf32>
      %c241 = arith.constant 241 : index
      %1131 = memref.load %arg1[%c241] : memref<288xf32, #tpu.memory_space<smem>>
      %1132 = vector.broadcast %1131 : f32 to vector<2x504xf32>
      %1133 = arith.mulf %35, %1132 : vector<2x504xf32>
      %1134 = arith.addf %1130, %1133 : vector<2x504xf32>
      %c242 = arith.constant 242 : index
      %1135 = memref.load %arg1[%c242] : memref<288xf32, #tpu.memory_space<smem>>
      %1136 = vector.broadcast %1135 : f32 to vector<2x504xf32>
      %1137 = arith.mulf %37, %1136 : vector<2x504xf32>
      %1138 = arith.addf %1134, %1137 : vector<2x504xf32>
      %c26_121 = arith.constant 26 : index
      %1139 = memref.load %arg2[%c26_121] : memref<32xf32, #tpu.memory_space<smem>>
      %1140 = vector.broadcast %1139 : f32 to vector<2x504xf32>
      %1141 = arith.addf %1138, %1140 : vector<2x504xf32>
      %cst_122 = arith.constant 0.000000e+00 : f32
      %1142 = vector.broadcast %cst_122 : f32 to vector<2x504xf32>
      %1143 = arith.maximumf %1141, %1142 : vector<2x504xf32>
      %c0_123 = arith.constant 0 : index
      %c13312 = arith.constant 13312 : index
      %1144 = vector.load %arg7[%c0_123, %c13312] : memref<2x16384xf32, #tpu.memory_space<vmem>>, vector<2x504xf32>
      tpu.vector_store %arg7[%c0_123, %c13312], %1143 {strides = array<i32>} : memref<2x16384xf32, #tpu.memory_space<vmem>>, vector<2x504xf32>,
      %c243 = arith.constant 243 : index
      %1145 = memref.load %arg1[%c243] : memref<288xf32, #tpu.memory_space<smem>>
      %1146 = vector.broadcast %1145 : f32 to vector<2x504xf32>
      %1147 = arith.mulf %21, %1146 : vector<2x504xf32>
      %c244 = arith.constant 244 : index
      %1148 = memref.load %arg1[%c244] : memref<288xf32, #tpu.memory_space<smem>>
      %1149 = vector.broadcast %1148 : f32 to vector<2x504xf32>
      %1150 = arith.mulf %23, %1149 : vector<2x504xf32>
      %1151 = arith.addf %1147, %1150 : vector<2x504xf32>
      %c245 = arith.constant 245 : index
      %1152 = memref.load %arg1[%c245] : memref<288xf32, #tpu.memory_space<smem>>
      %1153 = vector.broadcast %1152 : f32 to vector<2x504xf32>
      %1154 = arith.mulf %25, %1153 : vector<2x504xf32>
      %1155 = arith.addf %1151, %1154 : vector<2x504xf32>
      %c246 = arith.constant 246 : index
      %1156 = memref.load %arg1[%c246] : memref<288xf32, #tpu.memory_space<smem>>
      %1157 = vector.broadcast %1156 : f32 to vector<2x504xf32>
      %1158 = arith.mulf %27, %1157 : vector<2x504xf32>
      %1159 = arith.addf %1155, %1158 : vector<2x504xf32>
      %c247 = arith.constant 247 : index
      %1160 = memref.load %arg1[%c247] : memref<288xf32, #tpu.memory_space<smem>>
      %1161 = vector.broadcast %1160 : f32 to vector<2x504xf32>
      %1162 = arith.mulf %29, %1161 : vector<2x504xf32>
      %1163 = arith.addf %1159, %1162 : vector<2x504xf32>
      %c248 = arith.constant 248 : index
      %1164 = memref.load %arg1[%c248] : memref<288xf32, #tpu.memory_space<smem>>
      %1165 = vector.broadcast %1164 : f32 to vector<2x504xf32>
      %1166 = arith.mulf %31, %1165 : vector<2x504xf32>
      %1167 = arith.addf %1163, %1166 : vector<2x504xf32>
      %c249 = arith.constant 249 : index
      %1168 = memref.load %arg1[%c249] : memref<288xf32, #tpu.memory_space<smem>>
      %1169 = vector.broadcast %1168 : f32 to vector<2x504xf32>
      %1170 = arith.mulf %33, %1169 : vector<2x504xf32>
      %1171 = arith.addf %1167, %1170 : vector<2x504xf32>
      %c250 = arith.constant 250 : index
      %1172 = memref.load %arg1[%c250] : memref<288xf32, #tpu.memory_space<smem>>
      %1173 = vector.broadcast %1172 : f32 to vector<2x504xf32>
      %1174 = arith.mulf %35, %1173 : vector<2x504xf32>
      %1175 = arith.addf %1171, %1174 : vector<2x504xf32>
      %c251 = arith.constant 251 : index
      %1176 = memref.load %arg1[%c251] : memref<288xf32, #tpu.memory_space<smem>>
      %1177 = vector.broadcast %1176 : f32 to vector<2x504xf32>
      %1178 = arith.mulf %37, %1177 : vector<2x504xf32>
      %1179 = arith.addf %1175, %1178 : vector<2x504xf32>
      %c27_124 = arith.constant 27 : index
      %1180 = memref.load %arg2[%c27_124] : memref<32xf32, #tpu.memory_space<smem>>
      %1181 = vector.broadcast %1180 : f32 to vector<2x504xf32>
      %1182 = arith.addf %1179, %1181 : vector<2x504xf32>
      %cst_125 = arith.constant 0.000000e+00 : f32
      %1183 = vector.broadcast %cst_125 : f32 to vector<2x504xf32>
      %1184 = arith.maximumf %1182, %1183 : vector<2x504xf32>
      %c0_126 = arith.constant 0 : index
      %c13824 = arith.constant 13824 : index
      %1185 = vector.load %arg7[%c0_126, %c13824] : memref<2x16384xf32, #tpu.memory_space<vmem>>, vector<2x504xf32>
      tpu.vector_store %arg7[%c0_126, %c13824], %1184 {strides = array<i32>} : memref<2x16384xf32, #tpu.memory_space<vmem>>, vector<2x504xf32>,
      %c252 = arith.constant 252 : index
      %1186 = memref.load %arg1[%c252] : memref<288xf32, #tpu.memory_space<smem>>
      %1187 = vector.broadcast %1186 : f32 to vector<2x504xf32>
      %1188 = arith.mulf %21, %1187 : vector<2x504xf32>
      %c253 = arith.constant 253 : index
      %1189 = memref.load %arg1[%c253] : memref<288xf32, #tpu.memory_space<smem>>
      %1190 = vector.broadcast %1189 : f32 to vector<2x504xf32>
      %1191 = arith.mulf %23, %1190 : vector<2x504xf32>
      %1192 = arith.addf %1188, %1191 : vector<2x504xf32>
      %c254 = arith.constant 254 : index
      %1193 = memref.load %arg1[%c254] : memref<288xf32, #tpu.memory_space<smem>>
      %1194 = vector.broadcast %1193 : f32 to vector<2x504xf32>
      %1195 = arith.mulf %25, %1194 : vector<2x504xf32>
      %1196 = arith.addf %1192, %1195 : vector<2x504xf32>
      %c255 = arith.constant 255 : index
      %1197 = memref.load %arg1[%c255] : memref<288xf32, #tpu.memory_space<smem>>
      %1198 = vector.broadcast %1197 : f32 to vector<2x504xf32>
      %1199 = arith.mulf %27, %1198 : vector<2x504xf32>
      %1200 = arith.addf %1196, %1199 : vector<2x504xf32>
      %c256 = arith.constant 256 : index
      %1201 = memref.load %arg1[%c256] : memref<288xf32, #tpu.memory_space<smem>>
      %1202 = vector.broadcast %1201 : f32 to vector<2x504xf32>
      %1203 = arith.mulf %29, %1202 : vector<2x504xf32>
      %1204 = arith.addf %1200, %1203 : vector<2x504xf32>
      %c257 = arith.constant 257 : index
      %1205 = memref.load %arg1[%c257] : memref<288xf32, #tpu.memory_space<smem>>
      %1206 = vector.broadcast %1205 : f32 to vector<2x504xf32>
      %1207 = arith.mulf %31, %1206 : vector<2x504xf32>
      %1208 = arith.addf %1204, %1207 : vector<2x504xf32>
      %c258 = arith.constant 258 : index
      %1209 = memref.load %arg1[%c258] : memref<288xf32, #tpu.memory_space<smem>>
      %1210 = vector.broadcast %1209 : f32 to vector<2x504xf32>
      %1211 = arith.mulf %33, %1210 : vector<2x504xf32>
      %1212 = arith.addf %1208, %1211 : vector<2x504xf32>
      %c259 = arith.constant 259 : index
      %1213 = memref.load %arg1[%c259] : memref<288xf32, #tpu.memory_space<smem>>
      %1214 = vector.broadcast %1213 : f32 to vector<2x504xf32>
      %1215 = arith.mulf %35, %1214 : vector<2x504xf32>
      %1216 = arith.addf %1212, %1215 : vector<2x504xf32>
      %c260 = arith.constant 260 : index
      %1217 = memref.load %arg1[%c260] : memref<288xf32, #tpu.memory_space<smem>>
      %1218 = vector.broadcast %1217 : f32 to vector<2x504xf32>
      %1219 = arith.mulf %37, %1218 : vector<2x504xf32>
      %1220 = arith.addf %1216, %1219 : vector<2x504xf32>
      %c28_127 = arith.constant 28 : index
      %1221 = memref.load %arg2[%c28_127] : memref<32xf32, #tpu.memory_space<smem>>
      %1222 = vector.broadcast %1221 : f32 to vector<2x504xf32>
      %1223 = arith.addf %1220, %1222 : vector<2x504xf32>
      %cst_128 = arith.constant 0.000000e+00 : f32
      %1224 = vector.broadcast %cst_128 : f32 to vector<2x504xf32>
      %1225 = arith.maximumf %1223, %1224 : vector<2x504xf32>
      %c0_129 = arith.constant 0 : index
      %c14336 = arith.constant 14336 : index
      %1226 = vector.load %arg7[%c0_129, %c14336] : memref<2x16384xf32, #tpu.memory_space<vmem>>, vector<2x504xf32>
      tpu.vector_store %arg7[%c0_129, %c14336], %1225 {strides = array<i32>} : memref<2x16384xf32, #tpu.memory_space<vmem>>, vector<2x504xf32>,
      %c261 = arith.constant 261 : index
      %1227 = memref.load %arg1[%c261] : memref<288xf32, #tpu.memory_space<smem>>
      %1228 = vector.broadcast %1227 : f32 to vector<2x504xf32>
      %1229 = arith.mulf %21, %1228 : vector<2x504xf32>
      %c262 = arith.constant 262 : index
      %1230 = memref.load %arg1[%c262] : memref<288xf32, #tpu.memory_space<smem>>
      %1231 = vector.broadcast %1230 : f32 to vector<2x504xf32>
      %1232 = arith.mulf %23, %1231 : vector<2x504xf32>
      %1233 = arith.addf %1229, %1232 : vector<2x504xf32>
      %c263 = arith.constant 263 : index
      %1234 = memref.load %arg1[%c263] : memref<288xf32, #tpu.memory_space<smem>>
      %1235 = vector.broadcast %1234 : f32 to vector<2x504xf32>
      %1236 = arith.mulf %25, %1235 : vector<2x504xf32>
      %1237 = arith.addf %1233, %1236 : vector<2x504xf32>
      %c264 = arith.constant 264 : index
      %1238 = memref.load %arg1[%c264] : memref<288xf32, #tpu.memory_space<smem>>
      %1239 = vector.broadcast %1238 : f32 to vector<2x504xf32>
      %1240 = arith.mulf %27, %1239 : vector<2x504xf32>
      %1241 = arith.addf %1237, %1240 : vector<2x504xf32>
      %c265 = arith.constant 265 : index
      %1242 = memref.load %arg1[%c265] : memref<288xf32, #tpu.memory_space<smem>>
      %1243 = vector.broadcast %1242 : f32 to vector<2x504xf32>
      %1244 = arith.mulf %29, %1243 : vector<2x504xf32>
      %1245 = arith.addf %1241, %1244 : vector<2x504xf32>
      %c266 = arith.constant 266 : index
      %1246 = memref.load %arg1[%c266] : memref<288xf32, #tpu.memory_space<smem>>
      %1247 = vector.broadcast %1246 : f32 to vector<2x504xf32>
      %1248 = arith.mulf %31, %1247 : vector<2x504xf32>
      %1249 = arith.addf %1245, %1248 : vector<2x504xf32>
      %c267 = arith.constant 267 : index
      %1250 = memref.load %arg1[%c267] : memref<288xf32, #tpu.memory_space<smem>>
      %1251 = vector.broadcast %1250 : f32 to vector<2x504xf32>
      %1252 = arith.mulf %33, %1251 : vector<2x504xf32>
      %1253 = arith.addf %1249, %1252 : vector<2x504xf32>
      %c268 = arith.constant 268 : index
      %1254 = memref.load %arg1[%c268] : memref<288xf32, #tpu.memory_space<smem>>
      %1255 = vector.broadcast %1254 : f32 to vector<2x504xf32>
      %1256 = arith.mulf %35, %1255 : vector<2x504xf32>
      %1257 = arith.addf %1253, %1256 : vector<2x504xf32>
      %c269 = arith.constant 269 : index
      %1258 = memref.load %arg1[%c269] : memref<288xf32, #tpu.memory_space<smem>>
      %1259 = vector.broadcast %1258 : f32 to vector<2x504xf32>
      %1260 = arith.mulf %37, %1259 : vector<2x504xf32>
      %1261 = arith.addf %1257, %1260 : vector<2x504xf32>
      %c29_130 = arith.constant 29 : index
      %1262 = memref.load %arg2[%c29_130] : memref<32xf32, #tpu.memory_space<smem>>
      %1263 = vector.broadcast %1262 : f32 to vector<2x504xf32>
      %1264 = arith.addf %1261, %1263 : vector<2x504xf32>
      %cst_131 = arith.constant 0.000000e+00 : f32
      %1265 = vector.broadcast %cst_131 : f32 to vector<2x504xf32>
      %1266 = arith.maximumf %1264, %1265 : vector<2x504xf32>
      %c0_132 = arith.constant 0 : index
      %c14848 = arith.constant 14848 : index
      %1267 = vector.load %arg7[%c0_132, %c14848] : memref<2x16384xf32, #tpu.memory_space<vmem>>, vector<2x504xf32>
      tpu.vector_store %arg7[%c0_132, %c14848], %1266 {strides = array<i32>} : memref<2x16384xf32, #tpu.memory_space<vmem>>, vector<2x504xf32>,
      %c270 = arith.constant 270 : index
      %1268 = memref.load %arg1[%c270] : memref<288xf32, #tpu.memory_space<smem>>
      %1269 = vector.broadcast %1268 : f32 to vector<2x504xf32>
      %1270 = arith.mulf %21, %1269 : vector<2x504xf32>
      %c271 = arith.constant 271 : index
      %1271 = memref.load %arg1[%c271] : memref<288xf32, #tpu.memory_space<smem>>
      %1272 = vector.broadcast %1271 : f32 to vector<2x504xf32>
      %1273 = arith.mulf %23, %1272 : vector<2x504xf32>
      %1274 = arith.addf %1270, %1273 : vector<2x504xf32>
      %c272 = arith.constant 272 : index
      %1275 = memref.load %arg1[%c272] : memref<288xf32, #tpu.memory_space<smem>>
      %1276 = vector.broadcast %1275 : f32 to vector<2x504xf32>
      %1277 = arith.mulf %25, %1276 : vector<2x504xf32>
      %1278 = arith.addf %1274, %1277 : vector<2x504xf32>
      %c273 = arith.constant 273 : index
      %1279 = memref.load %arg1[%c273] : memref<288xf32, #tpu.memory_space<smem>>
      %1280 = vector.broadcast %1279 : f32 to vector<2x504xf32>
      %1281 = arith.mulf %27, %1280 : vector<2x504xf32>
      %1282 = arith.addf %1278, %1281 : vector<2x504xf32>
      %c274 = arith.constant 274 : index
      %1283 = memref.load %arg1[%c274] : memref<288xf32, #tpu.memory_space<smem>>
      %1284 = vector.broadcast %1283 : f32 to vector<2x504xf32>
      %1285 = arith.mulf %29, %1284 : vector<2x504xf32>
      %1286 = arith.addf %1282, %1285 : vector<2x504xf32>
      %c275 = arith.constant 275 : index
      %1287 = memref.load %arg1[%c275] : memref<288xf32, #tpu.memory_space<smem>>
      %1288 = vector.broadcast %1287 : f32 to vector<2x504xf32>
      %1289 = arith.mulf %31, %1288 : vector<2x504xf32>
      %1290 = arith.addf %1286, %1289 : vector<2x504xf32>
      %c276 = arith.constant 276 : index
      %1291 = memref.load %arg1[%c276] : memref<288xf32, #tpu.memory_space<smem>>
      %1292 = vector.broadcast %1291 : f32 to vector<2x504xf32>
      %1293 = arith.mulf %33, %1292 : vector<2x504xf32>
      %1294 = arith.addf %1290, %1293 : vector<2x504xf32>
      %c277 = arith.constant 277 : index
      %1295 = memref.load %arg1[%c277] : memref<288xf32, #tpu.memory_space<smem>>
      %1296 = vector.broadcast %1295 : f32 to vector<2x504xf32>
      %1297 = arith.mulf %35, %1296 : vector<2x504xf32>
      %1298 = arith.addf %1294, %1297 : vector<2x504xf32>
      %c278 = arith.constant 278 : index
      %1299 = memref.load %arg1[%c278] : memref<288xf32, #tpu.memory_space<smem>>
      %1300 = vector.broadcast %1299 : f32 to vector<2x504xf32>
      %1301 = arith.mulf %37, %1300 : vector<2x504xf32>
      %1302 = arith.addf %1298, %1301 : vector<2x504xf32>
      %c30_133 = arith.constant 30 : index
      %1303 = memref.load %arg2[%c30_133] : memref<32xf32, #tpu.memory_space<smem>>
      %1304 = vector.broadcast %1303 : f32 to vector<2x504xf32>
      %1305 = arith.addf %1302, %1304 : vector<2x504xf32>
      %cst_134 = arith.constant 0.000000e+00 : f32
      %1306 = vector.broadcast %cst_134 : f32 to vector<2x504xf32>
      %1307 = arith.maximumf %1305, %1306 : vector<2x504xf32>
      %c0_135 = arith.constant 0 : index
      %c15360 = arith.constant 15360 : index
      %1308 = vector.load %arg7[%c0_135, %c15360] : memref<2x16384xf32, #tpu.memory_space<vmem>>, vector<2x504xf32>
      tpu.vector_store %arg7[%c0_135, %c15360], %1307 {strides = array<i32>} : memref<2x16384xf32, #tpu.memory_space<vmem>>, vector<2x504xf32>,
      %c279 = arith.constant 279 : index
      %1309 = memref.load %arg1[%c279] : memref<288xf32, #tpu.memory_space<smem>>
      %1310 = vector.broadcast %1309 : f32 to vector<2x504xf32>
      %1311 = arith.mulf %21, %1310 : vector<2x504xf32>
      %c280 = arith.constant 280 : index
      %1312 = memref.load %arg1[%c280] : memref<288xf32, #tpu.memory_space<smem>>
      %1313 = vector.broadcast %1312 : f32 to vector<2x504xf32>
      %1314 = arith.mulf %23, %1313 : vector<2x504xf32>
      %1315 = arith.addf %1311, %1314 : vector<2x504xf32>
      %c281 = arith.constant 281 : index
      %1316 = memref.load %arg1[%c281] : memref<288xf32, #tpu.memory_space<smem>>
      %1317 = vector.broadcast %1316 : f32 to vector<2x504xf32>
      %1318 = arith.mulf %25, %1317 : vector<2x504xf32>
      %1319 = arith.addf %1315, %1318 : vector<2x504xf32>
      %c282 = arith.constant 282 : index
      %1320 = memref.load %arg1[%c282] : memref<288xf32, #tpu.memory_space<smem>>
      %1321 = vector.broadcast %1320 : f32 to vector<2x504xf32>
      %1322 = arith.mulf %27, %1321 : vector<2x504xf32>
      %1323 = arith.addf %1319, %1322 : vector<2x504xf32>
      %c283 = arith.constant 283 : index
      %1324 = memref.load %arg1[%c283] : memref<288xf32, #tpu.memory_space<smem>>
      %1325 = vector.broadcast %1324 : f32 to vector<2x504xf32>
      %1326 = arith.mulf %29, %1325 : vector<2x504xf32>
      %1327 = arith.addf %1323, %1326 : vector<2x504xf32>
      %c284 = arith.constant 284 : index
      %1328 = memref.load %arg1[%c284] : memref<288xf32, #tpu.memory_space<smem>>
      %1329 = vector.broadcast %1328 : f32 to vector<2x504xf32>
      %1330 = arith.mulf %31, %1329 : vector<2x504xf32>
      %1331 = arith.addf %1327, %1330 : vector<2x504xf32>
      %c285 = arith.constant 285 : index
      %1332 = memref.load %arg1[%c285] : memref<288xf32, #tpu.memory_space<smem>>
      %1333 = vector.broadcast %1332 : f32 to vector<2x504xf32>
      %1334 = arith.mulf %33, %1333 : vector<2x504xf32>
      %1335 = arith.addf %1331, %1334 : vector<2x504xf32>
      %c286 = arith.constant 286 : index
      %1336 = memref.load %arg1[%c286] : memref<288xf32, #tpu.memory_space<smem>>
      %1337 = vector.broadcast %1336 : f32 to vector<2x504xf32>
      %1338 = arith.mulf %35, %1337 : vector<2x504xf32>
      %1339 = arith.addf %1335, %1338 : vector<2x504xf32>
      %c287 = arith.constant 287 : index
      %1340 = memref.load %arg1[%c287] : memref<288xf32, #tpu.memory_space<smem>>
      %1341 = vector.broadcast %1340 : f32 to vector<2x504xf32>
      %1342 = arith.mulf %37, %1341 : vector<2x504xf32>
      %1343 = arith.addf %1339, %1342 : vector<2x504xf32>
      %c31_136 = arith.constant 31 : index
      %1344 = memref.load %arg2[%c31_136] : memref<32xf32, #tpu.memory_space<smem>>
      %1345 = vector.broadcast %1344 : f32 to vector<2x504xf32>
      %1346 = arith.addf %1343, %1345 : vector<2x504xf32>
      %cst_137 = arith.constant 0.000000e+00 : f32
      %1347 = vector.broadcast %cst_137 : f32 to vector<2x504xf32>
      %1348 = arith.maximumf %1346, %1347 : vector<2x504xf32>
      %c0_138 = arith.constant 0 : index
      %c15872 = arith.constant 15872 : index
      %1349 = vector.load %arg7[%c0_138, %c15872] : memref<2x16384xf32, #tpu.memory_space<vmem>>, vector<2x504xf32>
      tpu.vector_store %arg7[%c0_138, %c15872], %1348 {strides = array<i32>} : memref<2x16384xf32, #tpu.memory_space<vmem>>, vector<2x504xf32>,
    } else {
    }
    %c8192_i32 = arith.constant 8192 : i32
    %3 = arith.muli %arg0, %c8192_i32 : i32
    %4 = tpu.assume_multiple %3, 128 : i32
    %c0 = arith.constant 0 : index
    %5 = arith.index_cast %4 : i32 to index
    %6 = vector.load %arg7[%c0, %5] : memref<2x16384xf32, #tpu.memory_space<vmem>>, vector<2x8192xf32>
    %7 = arith.truncf %6 : vector<2x8192xf32> to vector<2x8192xbf16>
    %c0_1 = arith.constant 0 : index
    %c0_2 = arith.constant 0 : index
    %8 = vector.load %arg6[%c0_1, %c0_2] : memref<2x300xf32, #tpu.memory_space<vmem>>, vector<2x300xf32>
    %c0_3 = arith.constant 0 : index
    %c0_4 = arith.constant 0 : index
    %9 = vector.load %arg4[%c0_3, %c0_4] : memref<8192x300xbf16, #tpu.memory_space<vmem>>, vector<8192x300xbf16>
    %cst = arith.constant dense<0.000000e+00> : vector<2x300xf32>
    %10 = tpu.matmul %7, %9, %cst {dimension_numbers = #tpu.dot_dimension_numbers<[1], [0], [0], [1], [0, 0, 1, 1], [], []>} : vector<2x8192xbf16>, vector<8192x300xbf16>, vector<2x300xf32> -> vector<2x300xf32>
    %11 = arith.addf %8, %10 : vector<2x300xf32>
    %c0_5 = arith.constant 0 : index
    %c0_6 = arith.constant 0 : index
    %12 = vector.load %arg6[%c0_5, %c0_6] : memref<2x300xf32, #tpu.memory_space<vmem>>, vector<2x300xf32>
    tpu.vector_store %arg6[%c0_5, %c0_6], %11 {strides = array<i32>} : memref<2x300xf32, #tpu.memory_space<vmem>>, vector<2x300xf32>,
    %c1_i32 = arith.constant 1 : i32
    %13 = arith.cmpi eq, %arg0, %c1_i32 : i32
    %14 = arith.extui %13 : i1 to i32
    %c0_i32_7 = arith.constant 0 : i32
    %15 = arith.cmpi ne, %14, %c0_i32_7 : i32
    scf.if %15 {
      %c0_8 = arith.constant 0 : index
      %c0_9 = arith.constant 0 : index
      %16 = vector.load %arg6[%c0_8, %c0_9] : memref<2x300xf32, #tpu.memory_space<vmem>>, vector<2x300xf32>
      %c0_10 = arith.constant 0 : index
      %c0_11 = arith.constant 0 : index
      %17 = vector.load %arg5[%c0_10, %c0_11] : memref<1x300xf32, #tpu.memory_space<vmem>>, vector<1x300xf32>
      %18 = vector.broadcast %17 : vector<1x300xf32> to vector<2x300xf32>
      %19 = arith.addf %16, %18 : vector<2x300xf32>
      %cst_12 = arith.constant 0.000000e+00 : f32
      %20 = vector.broadcast %cst_12 : f32 to vector<2x300xf32>
      %21 = arith.maximumf %19, %20 : vector<2x300xf32>
      %c0_13 = arith.constant 0 : index
      %c0_14 = arith.constant 0 : index
      %22 = vector.load %arg6[%c0_13, %c0_14] : memref<2x300xf32, #tpu.memory_space<vmem>>, vector<2x300xf32>
      tpu.vector_store %arg6[%c0_13, %c0_14], %21 {strides = array<i32>} : memref<2x300xf32, #tpu.memory_space<vmem>>, vector<2x300xf32>,
    } else {
    }
    return
  }
  func.func @transform_0(%arg0: i32) -> i32 {
    %c0_i32 = arith.constant 0 : i32
    %c0_i32_0 = arith.constant 0 : i32
    return %c0_i32 : i32
  }
  func.func @transform_1(%arg0: i32) -> i32 {
    %c0_i32 = arith.constant 0 : i32
    %c0_i32_0 = arith.constant 0 : i32
    return %c0_i32 : i32
  }
  func.func @transform_2(%arg0: i32) -> (i32, i32, i32) {
    %c0_i32 = arith.constant 0 : i32
    %c0_i32_0 = arith.constant 0 : i32
    %c0_i32_1 = arith.constant 0 : i32
    %c0_i32_2 = arith.constant 0 : i32
    return %c0_i32, %c0_i32_0, %c0_i32_1 : i32, i32, i32
  }
  func.func @transform_3(%arg0: i32) -> (i32, i32) {
    %c0_i32 = arith.constant 0 : i32
    %c0_i32_0 = arith.constant 0 : i32
    return %arg0, %c0_i32 : i32, i32
  }
  func.func @transform_4(%arg0: i32) -> (i32, i32) {
    %c0_i32 = arith.constant 0 : i32
    %c0_i32_0 = arith.constant 0 : i32
    %c0_i32_1 = arith.constant 0 : i32
    return %c0_i32, %c0_i32_0 : i32, i32
  }
  func.func @transform_5(%arg0: i32) -> (i32, i32) {
    %c0_i32 = arith.constant 0 : i32
    %c0_i32_0 = arith.constant 0 : i32
    %c0_i32_1 = arith.constant 0 : i32
    return %c0_i32, %c0_i32_0 : i32, i32
  }
}

</mosaic_0001>

<bundles_post_ra>
// kernel: conve_forward.1
= control target key start
LH: loop header
LB: loop body
LE: loop exit
PB: predicated region body
PF: predicated region fallthrough
CT: control target
= control target key end

     0   :  { %10 = vsyncpa [#allocation5], 0  ;;  %s23131_s0 = inlined_call_operand.vmem [shape: f32[288], index: 0, kind: input, shape index: {}]   ;;  %s23132_s1 = inlined_call_operand.vmem [shape: f32[32], index: 1, kind: input, shape index: {}]   ;;  %s23133_s2 = inlined_call_operand.vmem [shape: f32[9,2,504], index: 2, kind: input, shape index: {}]   ;;  %s23134_s3 = inlined_call_operand.vmem [shape: bf16[16384,300], index: 3, kind: input, shape index: {}]   ;;  %s23135_s4 = inlined_call_operand.vmem [shape: f32[1,300], index: 4, kind: input, shape index: {}]   ;;  %s23136_s5 = inlined_call_operand.hbm [shape: f32[2,300], index: 5, kind: output, shape index: {}]  }
   0x1   :  { %11 = vsyncpa [#allocation7], 0 }
   0x2   :  { %12 = vsyncpa [#allocation4], 0  ;;  %s19807_s18 = smov 0  }
   0x3 LB: > { %s19813_s19 = sadd.s32 4294967295, %s19770_s18   ;;  %p14994_p0 = scmp.ge.s32.totalorder %s19770_s18, 1  ;;  %s19770_s18 = sphi %s19807_s18, %s18_s18  }
   0x4   : > { %p154_p1 = scmp.lt.s32.totalorder %s19770_s18, 3  ;;  %s167_s22 = sshll.u32 %s23131_s0, 4  ;;  %s168_s22 = int_to_ptr.vmem [resolvable:$true] %s167_s22 }
   0x5   : > { %p23137_p4 = scmp.eq.s32.totalorder %s19813_s19, 0  ;;  %s178_s26 = sshll.u32 %s23132_s1, 4  ;;  %s179_s26 = int_to_ptr.vmem [resolvable:$true] %s178_s26 }
   0x6   : > { %p19821_p3 = pnand %p14994_p0, %p154_p1  ;;  %s19698_s28 = scalar_lea.vmem %s168_s22, 48 }
   0x7   : > { %p19699_p7 = scmp.ne.s32.totalorder %s168_s22, %s19698_s28  ;;  %s19705_s29 = scalar_lea.vmem %s168_s22, 64 }
   0x8   : > { %s23163_s23 = scalar_select %p19821_p3, 1, 0 }
   0x9   : > { %p17590_p5 = pneg %p19821_p3  ;;  %p19706_p11 = scmp.lt.s32.totalorder %s168_s22, %s168_s22 }
   0xa   : > { %p19707_p12 = scmp.lt.s32.totalorder %s19705_s29, %s19698_s28 }
   0xb   : > { %p19833_p6 = pnand %p23137_p4, %p17590_p5 }
   0xc   : > { %p19708_p13 = por %p19707_p12, %p19706_p11 }
   0xd   : > { %p19700_p8 = pneg %p19833_p6 }
   0xf   : > { %p19701_p9 = pnand %p19700_p8, %p19699_p7 }
  0x11   : > { %p19702_p10 = pneg %p19701_p9 }
  0x13   : > { %p19709_p0 = pnand %p19708_p13, %p19702_p10 }
  0x15   : > { %19712 = shalt.err (!%p19709_p0)
}
  0x16   : > { %s19772_s30 = smov [#allocation3]   ;;  %s19713_s6 = scalar_lea.vmem %s179_s26, 16 }
  0x17   : > { %17593 = dma.vmem_to_smem (!%p19833_p6), %s168_s22, 48, %s19772_s30, [#allocation5]  }
  0x18   : > { %p19714_p1 = scmp.ne.s32.totalorder %s179_s26, %s19713_s6  ;;  %p19721_p4 = scmp.lt.s32.totalorder %s179_s26, %s179_s26 }
  0x19   : > { %p19722_p7 = scmp.lt.s32.totalorder %s19713_s6, %s19713_s6 }
  0x1a   : > { %p19716_p5 = pnand %p19714_p1, %p19700_p8 }
  0x1b   : > { %p19723_p9 = por %p19722_p7, %p19721_p4 }
  0x1c   : > { %p19717_p2 = pneg %p19716_p5 }
  0x1e   : > { %p19724_p3 = pnand %p19723_p9, %p19717_p2 }
  0x20   : > { %19727 = shalt.err (!%p19724_p3)
}
  0x21   : > { %s19773_s7 = smov [#allocation6]   ;;  %p23165_p10 = scmp.ne.s32.totalorder %s23163_s23, 0 }
  0x22   : > { %17596 = dma.vmem_to_smem (!%p19833_p6), %s179_s26, 16, %s19773_s7, [#allocation7]  }
  0x23   : > { %207 = sbr.rel (%p23165_p10) target bundleno = 2168 (0x878), region = 40 }
  0x28   : > { %p23166_p11 = scmp.eq.s32.totalorder %s19813_s19, 0 }
  0x2a   : > { %19757 = dma.done.wait (%p23166_p11), [#allocation5], 48   ;;  %p23167_p12 = pmov %p23166_p11 }
  0x2b   : > { %p23168_p8 = pmov %p23166_p11 }
  0x2c   : > { %19759 = vsyncadd (%p23167_p12), [#allocation5], 4294967248 }
  0x2d   : > { %19761 = dma.done.wait (%p23168_p8), [#allocation7], 16   ;;  %p23169_p4 = pmov %p23168_p8 }
  0x2f   : > { %19763 = vsyncadd (%p23169_p4), [#allocation7], 4294967280 }
  0x30   : > { %217 = sfence }
  0x31   : > { %s15001_s8 = sshll.u32 %s19813_s19, 10  ;;  %p23170_p3 = scmp.ne.s32.totalorder %s19813_s19, 0 }
  0x32   : > { %p237_p2 = scmp.lt.s32.totalorder %s15001_s8, 2047  ;;  %s303_s13 = sld [smem:[#allocation3]] (!%p23170_p3) }
  0x33   : > { %247 = sbr.rel (%p23170_p3) target bundleno = 392 (0x188), region = 52  ;;  %s15012_s14 = sld [smem:[#allocation3 + $0x1]] (!%p23170_p3) }
  0x34   : > { %s23221_s8 = smov (!%p237_p2, %s15001_s8), 2047  ;;  %s15013_s15 = sld [smem:[#allocation3 + $0x2]] (!%p23170_p3) }
  0x35   : > { %s17577_s9 = smul.u32 12, %s23221_s8  ;;  %s15014_s16 = sld [smem:[#allocation3 + $0x3]] (!%p23170_p3) }
  0x36   : > { %s15015_s21 = sld [smem:[#allocation3 + $0x4]] (!%p23170_p3) }
  0x37   : > { %s19863_s12 = scalar_lea.vmem %s23134_s3, %s17577_s9  ;;  %s15016_s24 = sld [smem:[#allocation3 + $0x5]] (!%p23170_p3) }
  0x38   : > { %vm248_vm0 = vcmask 1041408   ;;  %vm249_vm1 = vcmask 1043458   ;;  %vm251_vm2 = vcmask 357380   ;;  %v19774_v0 = vmov 0.0   ;;  %v19879_v2 = vld [vmem:[%s23133_s2] sm:$0xff]  ;;  %v19884_v3 = vld [vmem:[%s23133_s2 + $0x8] sm:$0xff] }
  0x39   : > { %254 = vst [vmem:[#allocation2] sm:$0xff] %v19774_v0  ;;  %255 = vst [vmem:[#allocation2 + $0x8] sm:$0xff] %v19774_v0  ;;  %v19889_v4 = vld [vmem:[%s23133_s2 + $0x10] sm:$0xff]  ;;  %v304_v5 = vstv %s303_s13  ;;  %s19891_s27 = sld [smem:[#allocation3 + $0x6]]  ;;  %v19896_v6 = vld [vmem:[%s23133_s2 + $0x18] sm:$0xff]  ;;  %v307_v8 = vstv %s15012_s14  ;;  %vm342_vm5 = vcmask 1045508  }
  0x3a   : > { %256 = vst [vmem:[#allocation2 + $0x10] sm:$0xff] %v19774_v0  ;;  %257 = vst [vmem:[#allocation2 + $0x18] sm:$0xff] %v19774_v0  ;;  %v305_v7 = vmul.f32 %v304_v5, %v19879_v2  ;;  %s19899_s30 = sld [smem:[#allocation3 + $0x7]]  ;;  %v308_v9 = vmul.f32 %v19884_v3, %v307_v8  ;;  %v311_v10 = vstv %s15013_s15  ;;  %v19907_v11 = vld [vmem:[%s23133_s2 + $0x20] sm:$0xff]  ;;  %v19916_v17 = vld [vmem:[%s23133_s2 + $0x28] sm:$0xff]  ;;  %vm344_vm6 = vcmask 982022  }
  0x3b   : > { %258 = vst [vmem:[#allocation2 + $0x20] sm:$0xff] %v19774_v0  ;;  %259 = vst [vmem:[#allocation2 + $0x28] sm:$0xff] %v19774_v0  ;;  %s19902_s6 = sld [smem:[#allocation3 + $0x8]]  ;;  %v312_v12 = vmul.f32 %v19889_v4, %v311_v10  ;;  %v315_v13 = vstv %s15014_s16  ;;  %v19922_v21 = vld [vmem:[%s23133_s2 + $0x30] sm:$0xff]  ;;  %v19931_v25 = vld [vmem:[%s23133_s2 + $0x38] sm:$0xff] }
  0x3c   : > { %260 = vst [vmem:[#allocation2 + $0x30] sm:$0xff] %v19774_v0  ;;  %261 = vst [vmem:[#allocation2 + $0x38] sm:$0xff] %v19774_v0  ;;  %s19910_s9 = sld [smem:[#allocation6]]  ;;  %v309_v14 = vadd.f32 %v308_v9, %v305_v7  ;;  %v316_v15 = vmul.f32 %v19896_v6, %v315_v13  ;;  %v319_v16 = vstv %s15015_s21  ;;  %v19939_v27 = vld [vmem:[%s23133_s2 + $0x40] sm:$0xff] }
  0x3d   : > { %262 = vst [vmem:[#allocation2 + $0x40] sm:$0xff] %v19774_v0  ;;  %263 = vst [vmem:[#allocation2 + $0x48] sm:$0xff] %v19774_v0  ;;  %s15020_s10 = sld [smem:[#allocation3 + $0x9]]  ;;  %v323_v18 = vstv %s15016_s24  ;;  %v320_v20 = vmul.f32 %v19907_v11, %v319_v16 }
  0x3e   : > { %264 = vst [vmem:[#allocation2 + $0x50] sm:$0xff] %v19774_v0  ;;  %265 = vst [vmem:[#allocation2 + $0x58] sm:$0xff] %v19774_v0  ;;  %s15021_s14 = sld [smem:[#allocation3 + $0xa]]  ;;  %v313_v19 = vadd.f32 %v312_v12, %v309_v14  ;;  %v324_v24 = vmul.f32 %v19916_v17, %v323_v18 }
  0x3f   : > { %266 = vst [vmem:[#allocation2 + $0x60] sm:$0xff] %v19774_v0  ;;  %267 = vst [vmem:[#allocation2 + $0x68] sm:$0xff] %v19774_v0  ;;  %s15022_s15 = sld [smem:[#allocation3 + $0xb]]  ;;  %v327_v22 = vstv %s19891_s27 }
  0x40   : > { %268 = vst [vmem:[#allocation2 + $0x70] sm:$0xff] %v19774_v0  ;;  %269 = vst [vmem:[#allocation2 + $0x78] sm:$0xff] %v19774_v0  ;;  %s15023_s20 = sld [smem:[#allocation3 + $0xc]]  ;;  %v317_v23 = vadd.f32 %v316_v15, %v313_v19  ;;  %v331_v26 = vstv %s19899_s30  ;;  %v328_v29 = vmul.f32 %v19922_v21, %v327_v22 }
  0x41   : > { %270 = vst [vmem:[#allocation2 + $0x80] sm:$0xff] %v19774_v0  ;;  %271 = vst [vmem:[#allocation2 + $0x88] sm:$0xff] %v19774_v0  ;;  %s19926_s21 = sld [smem:[#allocation3 + $0xd]]  ;;  %v335_v30 = vstv %s19902_s6  ;;  %v332_v35 = vmul.f32 %v19931_v25, %v331_v26 }
  0x42   : > { %272 = vst [vmem:[#allocation2 + $0x90] sm:$0xff] %v19774_v0  ;;  %273 = vst [vmem:[#allocation2 + $0x98] sm:$0xff] %v19774_v0  ;;  %s19934_s24 = sld [smem:[#allocation3 + $0xe]]  ;;  %v321_v28 = vadd.f32 %v320_v20, %v317_v23  ;;  %v336_v38 = vmul.f32 %v19939_v27, %v335_v30  ;;  %v339_v50 = vstv %s19910_s9 }
  0x43   : > { %274 = vst [vmem:[#allocation2 + $0xa0] sm:$0xff] %v19774_v0  ;;  %275 = vst [vmem:[#allocation2 + $0xa8] sm:$0xff] %v19774_v0  ;;  %v348_v31 = vstv %s15020_s10  ;;  %s19943_s27 = sld [smem:[#allocation3 + $0xf]] }
  0x44   : > { %276 = vst [vmem:[#allocation2 + $0xb0] sm:$0xff] %v19774_v0  ;;  %277 = vst [vmem:[#allocation2 + $0xb8] sm:$0xff] %v19774_v0  ;;  %v349_v32 = vmul.f32 %v348_v31, %v19879_v2  ;;  %v351_v33 = vstv %s15021_s14  ;;  %s19946_s28 = sld [smem:[#allocation3 + $0x10]]  ;;  %v325_v34 = vadd.f32 %v324_v24, %v321_v28 }
  0x45   : > { %278 = vst [vmem:[#allocation2 + $0xc0] sm:$0xff] %v19774_v0  ;;  %279 = vst [vmem:[#allocation2 + $0xc8] sm:$0xff] %v19774_v0  ;;  %v352_v36 = vmul.f32 %v19884_v3, %v351_v33  ;;  %v355_v37 = vstv %s15022_s15  ;;  %s19950_s29 = sld [smem:[#allocation3 + $0x11]] }
  0x46   : > { %280 = vst [vmem:[#allocation2 + $0xd0] sm:$0xff] %v19774_v0  ;;  %281 = vst [vmem:[#allocation2 + $0xd8] sm:$0xff] %v19774_v0  ;;  %v356_v39 = vmul.f32 %v19889_v4, %v355_v37  ;;  %v359_v40 = vstv %s15023_s20  ;;  %s19954_s30 = sld [smem:[#allocation6 + $0x1]]  ;;  %v329_v41 = vadd.f32 %v328_v29, %v325_v34 }
  0x47   : > { %282 = vst [vmem:[#allocation2 + $0xe0] sm:$0xff] %v19774_v0  ;;  %283 = vst [vmem:[#allocation2 + $0xe8] sm:$0xff] %v19774_v0  ;;  %v353_v42 = vadd.f32 %v352_v36, %v349_v32  ;;  %v360_v43 = vmul.f32 %v19896_v6, %v359_v40  ;;  %v363_v44 = vstv %s19926_s21  ;;  %s15030_s6 = sld [smem:[#allocation3 + $0x12]] }
  0x48   : > { %284 = vst [vmem:[#allocation2 + $0xf0] sm:$0xff] %v19774_v0  ;;  %285 = vst [vmem:[#allocation2 + $0xf8] sm:$0xff] %v19774_v0  ;;  %v367_v45 = vstv %s19934_s24  ;;  %s15031_s7 = sld [smem:[#allocation3 + $0x13]]  ;;  %v333_v46 = vadd.f32 %v332_v35, %v329_v41  ;;  %v364_v48 = vmul.f32 %v19907_v11, %v363_v44 }
  0x49   : > { %vm19869_vm3 = vmor %vm249_vm1, %vm248_vm0  ;;  %v357_v47 = vadd.f32 %v356_v39, %v353_v42  ;;  %v371_v49 = vstv %s19943_s27  ;;  %s15032_s8 = sld [smem:[#allocation3 + $0x14]]  ;;  %v368_v53 = vmul.f32 %v19916_v17, %v367_v45 }
  0x4a   : > { %vm252_vm4 = vmor %vm251_vm2, %vm19869_vm3  ;;  %s19962_s10 = sld [smem:[#allocation3 + $0x15]]  ;;  %v337_v51 = vadd.f32 %v336_v38, %v333_v46  ;;  %v375_v54 = vstv %s19946_s28  ;;  %v372_v55 = vmul.f32 %v19922_v21, %v371_v49 }
  0x4b   : > { %253 = vst.msk [vmem:[#allocation8] sm:$0x3f] %vm252_vm4, %v19774_v0  ;;  %vm343_vm7 = vmor %vm342_vm5, %vm19869_vm3  ;;  %v361_v52 = vadd.f32 %v360_v43, %v357_v47  ;;  %s19968_s11 = sld [smem:[#allocation3 + $0x16]]  ;;  %v379_v58 = vstv %s19950_s29  ;;  %v376_v61 = vmul.f32 %v19931_v25, %v375_v54 }
  0x4c   : > { %s19971_s13 = sld [smem:[#allocation3 + $0x17]]  ;;  %v340_v56 = vadd.f32 %v339_v50, %v337_v51  ;;  %vm19977_vm8 = vmor %vm344_vm6, %vm343_vm7  ;;  %v380_v8 = vmul.f32 %v19939_v27, %v379_v58  ;;  %v383_v23 = vstv %s19954_s30 }
  0x4d   : > { %v365_v57 = vadd.f32 %v364_v48, %v361_v52  ;;  %v388_v59 = vstv %s15030_s6  ;;  %s19974_s9 = sld [smem:[#allocation3 + $0x18]] }
  0x4e   : > { %v389_v62 = vmul.f32 %v388_v59, %v19879_v2  ;;  %v391_v63 = vstv %s15031_s7  ;;  %s19983_s14 = sld [smem:[#allocation3 + $0x19]]  ;;  %v341_v0 = vmax.f32 %v340_v56, 0.0 }
  0x4f   : > { %v369_v1 = vadd.f32 %v368_v53, %v365_v57  ;;  %v392_v5 = vmul.f32 %v19884_v3, %v391_v63  ;;  %v395_v7 = vstv %s15032_s8  ;;  %s19986_s15 = sld [smem:[#allocation3 + $0x1a]] }
  0x50   : > { %v396_v9 = vmul.f32 %v19889_v4, %v395_v7  ;;  %v399_v10 = vstv %s19962_s10  ;;  %s19991_s16 = sld [smem:[#allocation6 + $0x2]]  ;;  %346 = vst.msk [vmem:[#allocation2] sm:$0xff] %vm19977_vm8, %v341_v0 }
  0x51   : > { %v373_v12 = vadd.f32 %v372_v55, %v369_v1  ;;  %v393_v13 = vadd.f32 %v392_v5, %v389_v62  ;;  %v400_v14 = vmul.f32 %v19896_v6, %v399_v10  ;;  %v403_v15 = vstv %s19968_s11  ;;  %s15040_s17 = sld [smem:[#allocation3 + $0x1b]] }
  0x52   : > { %v407_v16 = vstv %s19971_s13  ;;  %s15041_s20 = sld [smem:[#allocation3 + $0x1c]]  ;;  %v404_v20 = vmul.f32 %v19907_v11, %v403_v15 }
  0x53   : > { %v377_v18 = vadd.f32 %v376_v61, %v373_v12  ;;  %v397_v19 = vadd.f32 %v396_v9, %v393_v13  ;;  %v411_v22 = vstv %s19974_s9  ;;  %s15042_s21 = sld [smem:[#allocation3 + $0x1d]]  ;;  %v408_v28 = vmul.f32 %v19916_v17, %v407_v16 }
  0x54   : > { %s15043_s22 = sld [smem:[#allocation3 + $0x1e]]  ;;  %v415_v29 = vstv %s19983_s14  ;;  %v412_v30 = vmul.f32 %v19922_v21, %v411_v22 }
  0x55   : > { %v381_v24 = vadd.f32 %v380_v8, %v377_v18  ;;  %v401_v26 = vadd.f32 %v400_v14, %v397_v19  ;;  %s20003_s23 = sld [smem:[#allocation3 + $0x1f]]  ;;  %v419_v33 = vstv %s19986_s15  ;;  %v416_v35 = vmul.f32 %v19931_v25, %v415_v29 }
  0x56   : > { %s20006_s24 = sld [smem:[#allocation3 + $0x20]]  ;;  %v420_v42 = vmul.f32 %v19939_v27, %v419_v33  ;;  %v423_v54 = vstv %s19991_s16 }
  0x57   : > { %v384_v31 = vadd.f32 %v383_v23, %v381_v24  ;;  %v405_v32 = vadd.f32 %v404_v20, %v401_v26  ;;  %v428_v34 = vstv %s15040_s17  ;;  %s20009_s25 = sld [smem:[#allocation3 + $0x21]] }
  0x58   : > { %v429_v36 = vmul.f32 %v428_v34, %v19879_v2  ;;  %v431_v37 = vstv %s15041_s20  ;;  %s20013_s26 = sld [smem:[#allocation3 + $0x22]] }
  0x59   : > { %v385_v38 = vmax.f32 %v384_v31, 0.0  ;;  %v409_v39 = vadd.f32 %v408_v28, %v405_v32  ;;  %v432_v40 = vmul.f32 %v19884_v3, %v431_v37  ;;  %v435_v41 = vstv %s15042_s21  ;;  %s20016_s27 = sld [smem:[#allocation3 + $0x23]] }
  0x5a   : > { %v436_v43 = vmul.f32 %v19889_v4, %v435_v41  ;;  %v439_v44 = vstv %s15043_s22  ;;  %s20020_s28 = sld [smem:[#allocation6 + $0x3]] }
  0x5b   : > { %386 = vst.msk [vmem:[#allocation2 + $0x8] sm:$0xff] %vm19977_vm8, %v385_v38  ;;  %v413_v45 = vadd.f32 %v412_v30, %v409_v39  ;;  %v433_v46 = vadd.f32 %v432_v40, %v429_v36  ;;  %v440_v47 = vmul.f32 %v19896_v6, %v439_v44  ;;  %v443_v48 = vstv %s20003_s23  ;;  %s15050_s29 = sld [smem:[#allocation3 + $0x24]] }
  0x5c   : > { %v447_v49 = vstv %s20006_s24  ;;  %s15051_s30 = sld [smem:[#allocation3 + $0x25]]  ;;  %v444_v52 = vmul.f32 %v19907_v11, %v443_v48 }
  0x5d   : > { %v417_v50 = vadd.f32 %v416_v35, %v413_v45  ;;  %v437_v51 = vadd.f32 %v436_v43, %v433_v46  ;;  %v451_v53 = vstv %s20009_s25  ;;  %s15052_s6 = sld [smem:[#allocation3 + $0x26]]  ;;  %v448_v57 = vmul.f32 %v19916_v17, %v447_v49 }
  0x5e   : > { %s15053_s7 = sld [smem:[#allocation3 + $0x27]]  ;;  %v455_v58 = vstv %s20013_s26  ;;  %v452_v59 = vmul.f32 %v19922_v21, %v451_v53 }
  0x5f   : > { %v421_v55 = vadd.f32 %v420_v42, %v417_v50  ;;  %v441_v56 = vadd.f32 %v440_v47, %v437_v51  ;;  %s20032_s8 = sld [smem:[#allocation3 + $0x28]]  ;;  %v459_v63 = vstv %s20016_s27  ;;  %v456_v1 = vmul.f32 %v19931_v25, %v455_v58 }
  0x60   : > { %s20035_s10 = sld [smem:[#allocation3 + $0x29]]  ;;  %v460_v13 = vmul.f32 %v19939_v27, %v459_v63  ;;  %v463_v29 = vstv %s20020_s28 }
  0x61   : > { %v424_v61 = vadd.f32 %v423_v54, %v421_v55  ;;  %v445_v62 = vadd.f32 %v444_v52, %v441_v56  ;;  %v468_v0 = vstv %s15050_s29  ;;  %s20038_s11 = sld [smem:[#allocation3 + $0x2a]] }
  0x62   : > { %v469_v5 = vmul.f32 %v468_v0, %v19879_v2  ;;  %v471_v7 = vstv %s15051_s30  ;;  %s20042_s13 = sld [smem:[#allocation3 + $0x2b]] }
  0x63   : > { %v425_v8 = vmax.f32 %v424_v61, 0.0  ;;  %v449_v9 = vadd.f32 %v448_v57, %v445_v62  ;;  %v472_v10 = vmul.f32 %v19884_v3, %v471_v7  ;;  %v475_v12 = vstv %s15052_s6  ;;  %s20045_s9 = sld [smem:[#allocation3 + $0x2c]] }
  0x64   : > { %v476_v14 = vmul.f32 %v19889_v4, %v475_v12  ;;  %v479_v15 = vstv %s15053_s7  ;;  %s20049_s14 = sld [smem:[#allocation6 + $0x4]] }
  0x65   : > { %426 = vst.msk [vmem:[#allocation2 + $0x10] sm:$0xff] %vm19977_vm8, %v425_v8  ;;  %v453_v16 = vadd.f32 %v452_v59, %v449_v9  ;;  %v473_v18 = vadd.f32 %v472_v10, %v469_v5  ;;  %v480_v19 = vmul.f32 %v19896_v6, %v479_v15  ;;  %v483_v20 = vstv %s20032_s8  ;;  %s15060_s15 = sld [smem:[#allocation3 + $0x2d]] }
  0x66   : > { %v487_v22 = vstv %s20035_s10  ;;  %s15061_s16 = sld [smem:[#allocation3 + $0x2e]]  ;;  %v484_v26 = vmul.f32 %v19907_v11, %v483_v20 }
  0x67   : > { %v457_v23 = vadd.f32 %v456_v1, %v453_v16  ;;  %v477_v24 = vadd.f32 %v476_v14, %v473_v18  ;;  %v491_v28 = vstv %s20038_s11  ;;  %s15062_s17 = sld [smem:[#allocation3 + $0x2f]]  ;;  %v488_v32 = vmul.f32 %v19916_v17, %v487_v22 }
  0x68   : > { %s15063_s20 = sld [smem:[#allocation3 + $0x30]]  ;;  %v495_v33 = vstv %s20042_s13  ;;  %v492_v34 = vmul.f32 %v19922_v21, %v491_v28 }
  0x69   : > { %v461_v30 = vadd.f32 %v460_v13, %v457_v23  ;;  %v481_v31 = vadd.f32 %v480_v19, %v477_v24  ;;  %s20061_s21 = sld [smem:[#allocation3 + $0x31]]  ;;  %v499_v37 = vstv %s20045_s9  ;;  %v496_v39 = vmul.f32 %v19931_v25, %v495_v33 }
  0x6a   : > { %s20064_s22 = sld [smem:[#allocation3 + $0x32]]  ;;  %v500_v46 = vmul.f32 %v19939_v27, %v499_v37  ;;  %v503_v58 = vstv %s20049_s14 }
  0x6b   : > { %v464_v35 = vadd.f32 %v463_v29, %v461_v30  ;;  %v485_v36 = vadd.f32 %v484_v26, %v481_v31  ;;  %v508_v38 = vstv %s15060_s15  ;;  %s20067_s23 = sld [smem:[#allocation3 + $0x33]] }
  0x6c   : > { %v509_v40 = vmul.f32 %v508_v38, %v19879_v2  ;;  %v511_v41 = vstv %s15061_s16  ;;  %s20071_s24 = sld [smem:[#allocation3 + $0x34]] }
  0x6d   : > { %v465_v42 = vmax.f32 %v464_v35, 0.0  ;;  %v489_v43 = vadd.f32 %v488_v32, %v485_v36  ;;  %v512_v44 = vmul.f32 %v19884_v3, %v511_v41  ;;  %v515_v45 = vstv %s15062_s17  ;;  %s20074_s25 = sld [smem:[#allocation3 + $0x35]] }
  0x6e   : > { %v516_v47 = vmul.f32 %v19889_v4, %v515_v45  ;;  %v519_v48 = vstv %s15063_s20  ;;  %s20078_s26 = sld [smem:[#allocation6 + $0x5]] }
  0x6f   : > { %466 = vst.msk [vmem:[#allocation2 + $0x18] sm:$0xff] %vm19977_vm8, %v465_v42  ;;  %v493_v49 = vadd.f32 %v492_v34, %v489_v43  ;;  %v513_v50 = vadd.f32 %v512_v44, %v509_v40  ;;  %v520_v51 = vmul.f32 %v19896_v6, %v519_v48  ;;  %v523_v52 = vstv %s20061_s21  ;;  %s15070_s27 = sld [smem:[#allocation3 + $0x36]] }
  0x70   : > { %v527_v53 = vstv %s20064_s22  ;;  %s15071_s28 = sld [smem:[#allocation3 + $0x37]]  ;;  %v524_v56 = vmul.f32 %v19907_v11, %v523_v52 }
  0x71   : > { %v497_v54 = vadd.f32 %v496_v39, %v493_v49  ;;  %v517_v55 = vadd.f32 %v516_v47, %v513_v50  ;;  %v531_v57 = vstv %s20067_s23  ;;  %s15072_s29 = sld [smem:[#allocation3 + $0x38]]  ;;  %v528_v62 = vmul.f32 %v19916_v17, %v527_v53 }
  0x72   : > { %s15073_s30 = sld [smem:[#allocation3 + $0x39]]  ;;  %v535_v63 = vstv %s20071_s24  ;;  %v532_v0 = vmul.f32 %v19922_v21, %v531_v57 }
  0x73   : > { %v501_v59 = vadd.f32 %v500_v46, %v497_v54  ;;  %v521_v61 = vadd.f32 %v520_v51, %v517_v55  ;;  %s20090_s6 = sld [smem:[#allocation3 + $0x3a]]  ;;  %v539_v7 = vstv %s20074_s25  ;;  %v536_v9 = vmul.f32 %v19931_v25, %v535_v63 }
  0x74   : > { %s20093_s7 = sld [smem:[#allocation3 + $0x3b]]  ;;  %v540_v18 = vmul.f32 %v19939_v27, %v539_v7  ;;  %v543_v33 = vstv %s20078_s26 }
  0x75   : > { %v504_v1 = vadd.f32 %v503_v58, %v501_v59  ;;  %v525_v5 = vadd.f32 %v524_v56, %v521_v61  ;;  %v548_v8 = vstv %s15070_s27  ;;  %s20096_s8 = sld [smem:[#allocation3 + $0x3c]] }
  0x76   : > { %v549_v10 = vmul.f32 %v548_v8, %v19879_v2  ;;  %v551_v12 = vstv %s15071_s28  ;;  %s20100_s10 = sld [smem:[#allocation3 + $0x3d]] }
  0x77   : > { %v505_v13 = vmax.f32 %v504_v1, 0.0  ;;  %v529_v14 = vadd.f32 %v528_v62, %v525_v5  ;;  %v552_v15 = vmul.f32 %v19884_v3, %v551_v12  ;;  %v555_v16 = vstv %s15072_s29  ;;  %s20103_s11 = sld [smem:[#allocation3 + $0x3e]] }
  0x78   : > { %v556_v19 = vmul.f32 %v19889_v4, %v555_v16  ;;  %v559_v20 = vstv %s15073_s30  ;;  %s20107_s13 = sld [smem:[#allocation6 + $0x6]] }
  0x79   : > { %506 = vst.msk [vmem:[#allocation2 + $0x20] sm:$0xff] %vm19977_vm8, %v505_v13  ;;  %v533_v22 = vadd.f32 %v532_v0, %v529_v14  ;;  %v553_v23 = vadd.f32 %v552_v15, %v549_v10  ;;  %v560_v24 = vmul.f32 %v19896_v6, %v559_v20  ;;  %v563_v26 = vstv %s20090_s6  ;;  %s15080_s9 = sld [smem:[#allocation3 + $0x3f]] }
  0x7a   : > { %v567_v28 = vstv %s20093_s7  ;;  %s15081_s14 = sld [smem:[#allocation3 + $0x40]]  ;;  %v564_v31 = vmul.f32 %v19907_v11, %v563_v26 }
  0x7b   : > { %v537_v29 = vadd.f32 %v536_v9, %v533_v22  ;;  %v557_v30 = vadd.f32 %v556_v19, %v553_v23  ;;  %v571_v32 = vstv %s20096_s8  ;;  %s15082_s15 = sld [smem:[#allocation3 + $0x41]]  ;;  %v568_v36 = vmul.f32 %v19916_v17, %v567_v28 }
  0x7c   : > { %s15083_s16 = sld [smem:[#allocation3 + $0x42]]  ;;  %v575_v37 = vstv %s20100_s10  ;;  %v572_v38 = vmul.f32 %v19922_v21, %v571_v32 }
  0x7d   : > { %v541_v34 = vadd.f32 %v540_v18, %v537_v29  ;;  %v561_v35 = vadd.f32 %v560_v24, %v557_v30  ;;  %s20119_s17 = sld [smem:[#allocation3 + $0x43]]  ;;  %v579_v41 = vstv %s20103_s11  ;;  %v576_v43 = vmul.f32 %v19931_v25, %v575_v37 }
  0x7e   : > { %s20122_s20 = sld [smem:[#allocation3 + $0x44]]  ;;  %v580_v50 = vmul.f32 %v19939_v27, %v579_v41  ;;  %v583_v63 = vstv %s20107_s13 }
  0x7f   : > { %v544_v39 = vadd.f32 %v543_v33, %v541_v34  ;;  %v565_v40 = vadd.f32 %v564_v31, %v561_v35  ;;  %v588_v42 = vstv %s15080_s9  ;;  %s20125_s21 = sld [smem:[#allocation3 + $0x45]] }
  0x80   : > { %v589_v44 = vmul.f32 %v588_v42, %v19879_v2  ;;  %v591_v45 = vstv %s15081_s14  ;;  %s20129_s22 = sld [smem:[#allocation3 + $0x46]] }
  0x81   : > { %v545_v46 = vmax.f32 %v544_v39, 0.0  ;;  %v569_v47 = vadd.f32 %v568_v36, %v565_v40  ;;  %v592_v48 = vmul.f32 %v19884_v3, %v591_v45  ;;  %v595_v49 = vstv %s15082_s15  ;;  %s20132_s23 = sld [smem:[#allocation3 + $0x47]] }
  0x82   : > { %v596_v51 = vmul.f32 %v19889_v4, %v595_v49  ;;  %v599_v52 = vstv %s15083_s16  ;;  %s20136_s24 = sld [smem:[#allocation6 + $0x7]] }
  0x83   : > { %546 = vst.msk [vmem:[#allocation2 + $0x28] sm:$0xff] %vm19977_vm8, %v545_v46  ;;  %v573_v53 = vadd.f32 %v572_v38, %v569_v47  ;;  %v593_v54 = vadd.f32 %v592_v48, %v589_v44  ;;  %v600_v55 = vmul.f32 %v19896_v6, %v599_v52  ;;  %v603_v56 = vstv %s20119_s17  ;;  %s15090_s25 = sld [smem:[#allocation3 + $0x48]] }
  0x84   : > { %v607_v57 = vstv %s20122_s20  ;;  %s15091_s26 = sld [smem:[#allocation3 + $0x49]]  ;;  %v604_v61 = vmul.f32 %v19907_v11, %v603_v56 }
  0x85   : > { %v577_v58 = vadd.f32 %v576_v43, %v573_v53  ;;  %v597_v59 = vadd.f32 %v596_v51, %v593_v54  ;;  %v611_v62 = vstv %s20125_s21  ;;  %s15092_s27 = sld [smem:[#allocation3 + $0x4a]]  ;;  %v608_v5 = vmul.f32 %v19916_v17, %v607_v57 }
  0x86   : > { %s15093_s28 = sld [smem:[#allocation3 + $0x4b]]  ;;  %v615_v7 = vstv %s20129_s22  ;;  %v612_v8 = vmul.f32 %v19922_v21, %v611_v62 }
  0x87   : > { %v581_v0 = vadd.f32 %v580_v50, %v577_v58  ;;  %v601_v1 = vadd.f32 %v600_v55, %v597_v59  ;;  %s20148_s29 = sld [smem:[#allocation3 + $0x4c]]  ;;  %v619_v12 = vstv %s20132_s23  ;;  %v616_v14 = vmul.f32 %v19931_v25, %v615_v7 }
  0x88   : > { %s20151_s30 = sld [smem:[#allocation3 + $0x4d]]  ;;  %v620_v23 = vmul.f32 %v19939_v27, %v619_v12  ;;  %v623_v37 = vstv %s20136_s24 }
  0x89   : > { %v584_v9 = vadd.f32 %v583_v63, %v581_v0  ;;  %v605_v10 = vadd.f32 %v604_v61, %v601_v1  ;;  %v628_v13 = vstv %s15090_s25  ;;  %s20154_s6 = sld [smem:[#allocation3 + $0x4e]] }
  0x8a   : > { %v629_v15 = vmul.f32 %v628_v13, %v19879_v2  ;;  %v631_v16 = vstv %s15091_s26  ;;  %s20158_s7 = sld [smem:[#allocation3 + $0x4f]] }
  0x8b   : > { %v585_v18 = vmax.f32 %v584_v9, 0.0  ;;  %v609_v19 = vadd.f32 %v608_v5, %v605_v10  ;;  %v632_v20 = vmul.f32 %v19884_v3, %v631_v16  ;;  %v635_v22 = vstv %s15092_s27  ;;  %s20161_s8 = sld [smem:[#allocation3 + $0x50]] }
  0x8c   : > { %v636_v24 = vmul.f32 %v19889_v4, %v635_v22  ;;  %v639_v26 = vstv %s15093_s28  ;;  %s20165_s10 = sld [smem:[#allocation6 + $0x8]] }
  0x8d   : > { %586 = vst.msk [vmem:[#allocation2 + $0x30] sm:$0xff] %vm19977_vm8, %v585_v18  ;;  %v613_v28 = vadd.f32 %v612_v8, %v609_v19  ;;  %v633_v29 = vadd.f32 %v632_v20, %v629_v15  ;;  %v640_v30 = vmul.f32 %v19896_v6, %v639_v26  ;;  %v643_v31 = vstv %s20148_s29  ;;  %s15100_s11 = sld [smem:[#allocation3 + $0x51]] }
  0x8e   : > { %v647_v32 = vstv %s20151_s30  ;;  %s15101_s13 = sld [smem:[#allocation3 + $0x52]]  ;;  %v644_v35 = vmul.f32 %v19907_v11, %v643_v31 }
  0x8f   : > { %v617_v33 = vadd.f32 %v616_v14, %v613_v28  ;;  %v637_v34 = vadd.f32 %v636_v24, %v633_v29  ;;  %v651_v36 = vstv %s20154_s6  ;;  %s15102_s9 = sld [smem:[#allocation3 + $0x53]]  ;;  %v648_v40 = vmul.f32 %v19916_v17, %v647_v32 }
  0x90   : > { %s15103_s14 = sld [smem:[#allocation3 + $0x54]]  ;;  %v655_v41 = vstv %s20158_s7  ;;  %v652_v42 = vmul.f32 %v19922_v21, %v651_v36 }
  0x91   : > { %v621_v38 = vadd.f32 %v620_v23, %v617_v33  ;;  %v641_v39 = vadd.f32 %v640_v30, %v637_v34  ;;  %s20177_s15 = sld [smem:[#allocation3 + $0x55]]  ;;  %v659_v45 = vstv %s20161_s8  ;;  %v656_v47 = vmul.f32 %v19931_v25, %v655_v41 }
  0x92   : > { %s20180_s16 = sld [smem:[#allocation3 + $0x56]]  ;;  %v660_v54 = vmul.f32 %v19939_v27, %v659_v45  ;;  %v663_v7 = vstv %s20165_s10 }
  0x93   : > { %v624_v43 = vadd.f32 %v623_v37, %v621_v38  ;;  %v645_v44 = vadd.f32 %v644_v35, %v641_v39  ;;  %v668_v46 = vstv %s15100_s11  ;;  %s20183_s17 = sld [smem:[#allocation3 + $0x57]] }
  0x94   : > { %v669_v48 = vmul.f32 %v668_v46, %v19879_v2  ;;  %v671_v49 = vstv %s15101_s13  ;;  %s20187_s20 = sld [smem:[#allocation3 + $0x58]] }
  0x95   : > { %v625_v50 = vmax.f32 %v624_v43, 0.0  ;;  %v649_v51 = vadd.f32 %v648_v40, %v645_v44  ;;  %v672_v52 = vmul.f32 %v19884_v3, %v671_v49  ;;  %v675_v53 = vstv %s15102_s9  ;;  %s20190_s21 = sld [smem:[#allocation3 + $0x59]] }
  0x96   : > { %v676_v55 = vmul.f32 %v19889_v4, %v675_v53  ;;  %v679_v56 = vstv %s15103_s14  ;;  %s20194_s22 = sld [smem:[#allocation6 + $0x9]] }
  0x97   : > { %626 = vst.msk [vmem:[#allocation2 + $0x38] sm:$0xff] %vm19977_vm8, %v625_v50  ;;  %v653_v57 = vadd.f32 %v652_v42, %v649_v51  ;;  %v673_v58 = vadd.f32 %v672_v52, %v669_v48  ;;  %v680_v59 = vmul.f32 %v19896_v6, %v679_v56  ;;  %v683_v61 = vstv %s20177_s15  ;;  %s15110_s23 = sld [smem:[#allocation3 + $0x5a]] }
  0x98   : > { %v687_v62 = vstv %s20180_s16  ;;  %s15111_s24 = sld [smem:[#allocation3 + $0x5b]]  ;;  %v684_v1 = vmul.f32 %v19907_v11, %v683_v61 }
  0x99   : > { %v657_v63 = vadd.f32 %v656_v47, %v653_v57  ;;  %v677_v0 = vadd.f32 %v676_v55, %v673_v58  ;;  %v691_v5 = vstv %s20183_s17  ;;  %s15112_s25 = sld [smem:[#allocation3 + $0x5c]]  ;;  %v688_v10 = vmul.f32 %v19916_v17, %v687_v62 }
  0x9a   : > { %s15113_s26 = sld [smem:[#allocation3 + $0x5d]]  ;;  %v695_v12 = vstv %s20187_s20  ;;  %v692_v13 = vmul.f32 %v19922_v21, %v691_v5 }
  0x9b   : > { %v661_v8 = vadd.f32 %v660_v54, %v657_v63  ;;  %v681_v9 = vadd.f32 %v680_v59, %v677_v0  ;;  %s20206_s27 = sld [smem:[#allocation3 + $0x5e]]  ;;  %v699_v16 = vstv %s20190_s21  ;;  %v696_v19 = vmul.f32 %v19931_v25, %v695_v12 }
  0x9c   : > { %s20209_s28 = sld [smem:[#allocation3 + $0x5f]]  ;;  %v700_v29 = vmul.f32 %v19939_v27, %v699_v16  ;;  %v703_v41 = vstv %s20194_s22 }
  0x9d   : > { %v664_v14 = vadd.f32 %v663_v7, %v661_v8  ;;  %v685_v15 = vadd.f32 %v684_v1, %v681_v9  ;;  %v708_v18 = vstv %s15110_s23  ;;  %s20212_s29 = sld [smem:[#allocation3 + $0x60]] }
  0x9e   : > { %v709_v20 = vmul.f32 %v708_v18, %v19879_v2  ;;  %v711_v22 = vstv %s15111_s24  ;;  %s20216_s30 = sld [smem:[#allocation3 + $0x61]] }
  0x9f   : > { %v665_v23 = vmax.f32 %v664_v14, 0.0  ;;  %v689_v24 = vadd.f32 %v688_v10, %v685_v15  ;;  %v712_v26 = vmul.f32 %v19884_v3, %v711_v22  ;;  %v715_v28 = vstv %s15112_s25  ;;  %s20219_s6 = sld [smem:[#allocation3 + $0x62]] }
  0xa0   : > { %v716_v30 = vmul.f32 %v19889_v4, %v715_v28  ;;  %v719_v31 = vstv %s15113_s26  ;;  %s20223_s7 = sld [smem:[#allocation6 + $0xa]] }
  0xa1   : > { %666 = vst.msk [vmem:[#allocation2 + $0x40] sm:$0xff] %vm19977_vm8, %v665_v23  ;;  %v693_v32 = vadd.f32 %v692_v13, %v689_v24  ;;  %v713_v33 = vadd.f32 %v712_v26, %v709_v20  ;;  %v720_v34 = vmul.f32 %v19896_v6, %v719_v31  ;;  %v723_v35 = vstv %s20206_s27  ;;  %s15120_s8 = sld [smem:[#allocation3 + $0x63]] }
  0xa2   : > { %v727_v36 = vstv %s20209_s28  ;;  %s15121_s10 = sld [smem:[#allocation3 + $0x64]]  ;;  %v724_v39 = vmul.f32 %v19907_v11, %v723_v35 }
  0xa3   : > { %v697_v37 = vadd.f32 %v696_v19, %v693_v32  ;;  %v717_v38 = vadd.f32 %v716_v30, %v713_v33  ;;  %v731_v40 = vstv %s20212_s29  ;;  %s15122_s11 = sld [smem:[#allocation3 + $0x65]]  ;;  %v728_v44 = vmul.f32 %v19916_v17, %v727_v36 }
  0xa4   : > { %s15123_s13 = sld [smem:[#allocation3 + $0x66]]  ;;  %v735_v45 = vstv %s20216_s30  ;;  %v732_v46 = vmul.f32 %v19922_v21, %v731_v40 }
  0xa5   : > { %v701_v42 = vadd.f32 %v700_v29, %v697_v37  ;;  %v721_v43 = vadd.f32 %v720_v34, %v717_v38  ;;  %s20235_s9 = sld [smem:[#allocation3 + $0x67]]  ;;  %v739_v49 = vstv %s20219_s6  ;;  %v736_v51 = vmul.f32 %v19931_v25, %v735_v45 }
  0xa6   : > { %s20238_s14 = sld [smem:[#allocation3 + $0x68]]  ;;  %v740_v58 = vmul.f32 %v19939_v27, %v739_v49  ;;  %v743_v12 = vstv %s20223_s7 }
  0xa7   : > { %v704_v47 = vadd.f32 %v703_v41, %v701_v42  ;;  %v725_v48 = vadd.f32 %v724_v39, %v721_v43  ;;  %v748_v50 = vstv %s15120_s8  ;;  %s20241_s15 = sld [smem:[#allocation3 + $0x69]] }
  0xa8   : > { %v749_v52 = vmul.f32 %v748_v50, %v19879_v2  ;;  %v751_v53 = vstv %s15121_s10  ;;  %s20245_s16 = sld [smem:[#allocation3 + $0x6a]] }
  0xa9   : > { %v705_v54 = vmax.f32 %v704_v47, 0.0  ;;  %v729_v55 = vadd.f32 %v728_v44, %v725_v48  ;;  %v752_v56 = vmul.f32 %v19884_v3, %v751_v53  ;;  %v755_v57 = vstv %s15122_s11  ;;  %s20248_s17 = sld [smem:[#allocation3 + $0x6b]] }
  0xaa   : > { %v756_v59 = vmul.f32 %v19889_v4, %v755_v57  ;;  %v759_v61 = vstv %s15123_s13  ;;  %s20252_s20 = sld [smem:[#allocation6 + $0xb]]  ;;  %v20324_v57 = vld [vmem:[%s23133_s2 + $0x10] sm:$0xff] }
  0xab   : > { %706 = vst.msk [vmem:[#allocation2 + $0x48] sm:$0xff] %vm19977_vm8, %v705_v54  ;;  %v733_v62 = vadd.f32 %v732_v46, %v729_v55  ;;  %v753_v63 = vadd.f32 %v752_v56, %v749_v52  ;;  %v760_v0 = vmul.f32 %v19896_v6, %v759_v61  ;;  %v763_v1 = vstv %s20235_s9  ;;  %s15130_s21 = sld [smem:[#allocation3 + $0x6c]]  ;;  %v20315_v54 = vld [vmem:[%s23133_s2 + $0x8] sm:$0xff] }
  0xac   : > { %v767_v5 = vstv %s20238_s14  ;;  %s15131_s22 = sld [smem:[#allocation3 + $0x6d]]  ;;  %v764_v9 = vmul.f32 %v19907_v11, %v763_v1 }
  0xad   : > { %v737_v7 = vadd.f32 %v736_v51, %v733_v62  ;;  %v757_v8 = vadd.f32 %v756_v59, %v753_v63  ;;  %v771_v10 = vstv %s20241_s15  ;;  %s15132_s23 = sld [smem:[#allocation3 + $0x6e]]  ;;  %v768_v15 = vmul.f32 %v19916_v17, %v767_v5 }
  0xae   : > { %s15133_s24 = sld [smem:[#allocation3 + $0x6f]]  ;;  %v775_v16 = vstv %s20245_s16  ;;  %v772_v18 = vmul.f32 %v19922_v21, %v771_v10 }
  0xaf   : > { %v741_v13 = vadd.f32 %v740_v58, %v737_v7  ;;  %v761_v14 = vadd.f32 %v760_v0, %v757_v8  ;;  %s20264_s25 = sld [smem:[#allocation3 + $0x70]]  ;;  %v779_v22 = vstv %s20248_s17  ;;  %v776_v24 = vmul.f32 %v19931_v25, %v775_v16  ;;  %v20343_v8 = vld [vmem:[%s23133_s2 + $0x20] sm:$0xff] }
  0xb0   : > { %s20267_s26 = sld [smem:[#allocation3 + $0x71]]  ;;  %v780_v33 = vmul.f32 %v19939_v27, %v779_v22  ;;  %v783_v42 = vstv %s20252_s20 }
  0xb1   : > { %v744_v19 = vadd.f32 %v743_v12, %v741_v13  ;;  %v765_v20 = vadd.f32 %v764_v9, %v761_v14  ;;  %v788_v23 = vstv %s15130_s21  ;;  %s20270_s27 = sld [smem:[#allocation3 + $0x72]] }
  0xb2   : > { %v789_v26 = vmul.f32 %v788_v23, %v19879_v2  ;;  %v791_v28 = vstv %s15131_s22  ;;  %s20274_s28 = sld [smem:[#allocation3 + $0x73]] }
  0xb3   : > { %v745_v29 = vmax.f32 %v744_v19, 0.0  ;;  %v769_v30 = vadd.f32 %v768_v15, %v765_v20  ;;  %v792_v31 = vmul.f32 %v19884_v3, %v791_v28  ;;  %v795_v32 = vstv %s15132_s23  ;;  %s20277_s29 = sld [smem:[#allocation3 + $0x74]]  ;;  %v20353_v15 = vld [vmem:[%s23133_s2 + $0x28] sm:$0xff]  ;;  %v20362_v19 = vld [vmem:[%s23133_s2 + $0x30] sm:$0xff]  ;;  %v20373_v28 = vld [vmem:[%s23133_s2 + $0x38] sm:$0xff] }
  0xb4   : > { %v796_v34 = vmul.f32 %v19889_v4, %v795_v32  ;;  %v799_v35 = vstv %s15133_s24  ;;  %s20281_s30 = sld [smem:[#allocation6 + $0xc]] }
  0xb5   : > { %746 = vst.msk [vmem:[#allocation2 + $0x50] sm:$0xff] %vm19977_vm8, %v745_v29  ;;  %v773_v2 = vadd.f32 %v772_v18, %v769_v30  ;;  %v793_v36 = vadd.f32 %v792_v31, %v789_v26  ;;  %v800_v3 = vmul.f32 %v19896_v6, %v799_v35  ;;  %v803_v37 = vstv %s20264_s25  ;;  %s15140_s6 = sld [smem:[#allocation3 + $0x75]] }
  0xb6   : > { %v807_v38 = vstv %s20267_s26  ;;  %s15141_s7 = sld [smem:[#allocation3 + $0x76]]  ;;  %v804_v4 = vmul.f32 %v19907_v11, %v803_v37 }
  0xb7   : > { %v777_v39 = vadd.f32 %v776_v24, %v773_v2  ;;  %v797_v40 = vadd.f32 %v796_v34, %v793_v36  ;;  %v811_v41 = vstv %s20270_s27  ;;  %s15142_s8 = sld [smem:[#allocation3 + $0x77]]  ;;  %v808_v45 = vmul.f32 %v19916_v17, %v807_v38  ;;  %v20307_v17 = vld [vmem:[%s23133_s2] sm:$0xff] }
  0xb8   : > { %s20291_s10 = sld [smem:[#allocation3 + $0x78]]  ;;  %v815_v46 = vstv %s20274_s28  ;;  %v812_v6 = vmul.f32 %v19922_v21, %v811_v41  ;;  %v20385_v2 = vld [vmem:[%s23133_s2 + $0x40] sm:$0xff] }
  0xb9   : > { %v781_v43 = vadd.f32 %v780_v33, %v777_v39  ;;  %v801_v44 = vadd.f32 %v800_v3, %v797_v40  ;;  %s20295_s11 = sld [smem:[#allocation3 + $0x79]]  ;;  %v819_v49 = vstv %s20277_s29  ;;  %v816_v50 = vmul.f32 %v19931_v25, %v815_v46 }
  0xba   : > { %s20298_s13 = sld [smem:[#allocation3 + $0x7a]]  ;;  %v820_v56 = vmul.f32 %v19939_v27, %v819_v49  ;;  %v20335_v27 = vld [vmem:[%s23133_s2 + $0x18] sm:$0xff]  ;;  %v823_v12 = vstv %s20281_s30 }
  0xbb   : > { %v784_v47 = vadd.f32 %v783_v42, %v781_v43  ;;  %v805_v48 = vadd.f32 %v804_v4, %v801_v44  ;;  %v828_v11 = vstv %s15140_s6  ;;  %s20301_s9 = sld [smem:[#allocation3 + $0x7b]] }
  0xbc   : > { %v829_v51 = vmul.f32 %v20307_v17, %v828_v11  ;;  %v831_v52 = vstv %s15141_s7  ;;  %s20310_s16 = sld [smem:[#allocation3 + $0x7c]] }
  0xbd   : > { %v785_v21 = vmax.f32 %v784_v47, 0.0  ;;  %v809_v53 = vadd.f32 %v808_v45, %v805_v48  ;;  %v832_v25 = vmul.f32 %v20315_v54, %v831_v52  ;;  %v835_v55 = vstv %s15142_s8  ;;  %s20318_s21 = sld [smem:[#allocation3 + $0x7d]] }
  0xbe   : > { %v836_v58 = vmul.f32 %v20324_v57, %v835_v55  ;;  %v839_v59 = vstv %s20291_s10  ;;  %s20328_s24 = sld [smem:[#allocation6 + $0xd]] }
  0xbf   : > { %786 = vst.msk [vmem:[#allocation2 + $0x58] sm:$0xff] %vm19977_vm8, %v785_v21  ;;  %v813_v61 = vadd.f32 %v812_v6, %v809_v53  ;;  %v833_v62 = vadd.f32 %v832_v25, %v829_v51  ;;  %v840_v63 = vmul.f32 %v20335_v27, %v839_v59  ;;  %v843_v0 = vstv %s20295_s11  ;;  %s15150_s27 = sld [smem:[#allocation3 + $0x7e]] }
  0xc0   : > { %v847_v1 = vstv %s20298_s13  ;;  %s15151_s28 = sld [smem:[#allocation3 + $0x7f]]  ;;  %v844_v9 = vmul.f32 %v20343_v8, %v843_v0 }
  0xc1   : > { %v817_v5 = vadd.f32 %v816_v50, %v813_v61  ;;  %v837_v7 = vadd.f32 %v836_v58, %v833_v62  ;;  %v851_v10 = vstv %s20301_s9  ;;  %s15152_s7 = sld [smem:[#allocation3 + $0x80]]  ;;  %v848_v16 = vmul.f32 %v20353_v15, %v847_v1 }
  0xc2   : > { %s20348_s8 = sld [smem:[#allocation3 + $0x81]]  ;;  %v855_v18 = vstv %s20310_s16  ;;  %v852_v20 = vmul.f32 %v20362_v19, %v851_v10 }
  0xc3   : > { %v821_v13 = vadd.f32 %v820_v56, %v817_v5  ;;  %v841_v14 = vadd.f32 %v840_v63, %v837_v7  ;;  %s20357_s13 = sld [smem:[#allocation3 + $0x82]]  ;;  %v859_v24 = vstv %s20318_s21  ;;  %v856_v29 = vmul.f32 %v20373_v28, %v855_v18 }
  0xc4   : > { %s20365_s30 = sld [smem:[#allocation3 + $0x83]]  ;;  %v860_v36 = vmul.f32 %v20385_v2, %v859_v24  ;;  %v863_v46 = vstv %s20328_s24 }
  0xc5   : > { %v824_v22 = vadd.f32 %v823_v12, %v821_v13  ;;  %v845_v23 = vadd.f32 %v844_v9, %v841_v14  ;;  %v868_v26 = vstv %s15150_s27  ;;  %s20368_s9 = sld [smem:[#allocation3 + $0x84]] }
  0xc6   : > { %v869_v30 = vmul.f32 %v20307_v17, %v868_v26  ;;  %v871_v31 = vstv %s15151_s28  ;;  %s20377_s20 = sld [smem:[#allocation3 + $0x85]] }
  0xc7   : > { %v825_v32 = vmax.f32 %v824_v22, 0.0  ;;  %v849_v33 = vadd.f32 %v848_v16, %v845_v23  ;;  %v872_v34 = vmul.f32 %v20315_v54, %v871_v31  ;;  %v875_v35 = vstv %s15152_s7  ;;  %s20380_s21 = sld [smem:[#allocation3 + $0x86]] }
  0xc8   : > { %v876_v3 = vmul.f32 %v20324_v57, %v875_v35  ;;  %v879_v37 = vstv %s20348_s8  ;;  %s20390_s25 = sld [smem:[#allocation6 + $0xe]] }
  0xc9   : > { %826 = vst.msk [vmem:[#allocation2 + $0x60] sm:$0xff] %vm19977_vm8, %v825_v32  ;;  %v853_v38 = vadd.f32 %v852_v20, %v849_v33  ;;  %v873_v39 = vadd.f32 %v872_v34, %v869_v30  ;;  %v880_v40 = vmul.f32 %v20335_v27, %v879_v37  ;;  %v883_v4 = vstv %s20357_s13  ;;  %s15160_s26 = sld [smem:[#allocation3 + $0x87]] }
  0xca   : > { %v887_v41 = vstv %s20365_s30  ;;  %s15161_s27 = sld [smem:[#allocation3 + $0x88]]  ;;  %v884_v44 = vmul.f32 %v20343_v8, %v883_v4 }
  0xcb   : > { %v857_v42 = vadd.f32 %v856_v29, %v853_v38  ;;  %v877_v43 = vadd.f32 %v876_v3, %v873_v39  ;;  %v891_v45 = vstv %s20368_s9  ;;  %s15162_s28 = sld [smem:[#allocation3 + $0x89]]  ;;  %v888_v48 = vmul.f32 %v20353_v15, %v887_v41 }
  0xcc   : > { %s15163_s29 = sld [smem:[#allocation3 + $0x8a]]  ;;  %v895_v49 = vstv %s20377_s20  ;;  %v892_v11 = vmul.f32 %v20362_v19, %v891_v45 }
  0xcd   : > { %v861_v6 = vadd.f32 %v860_v36, %v857_v42  ;;  %v881_v47 = vadd.f32 %v880_v40, %v877_v43  ;;  %s20402_s6 = sld [smem:[#allocation3 + $0x8b]]  ;;  %v899_v52 = vstv %s20380_s21  ;;  %v896_v53 = vmul.f32 %v20373_v28, %v895_v49 }
  0xce   : > { %s20405_s7 = sld [smem:[#allocation3 + $0x8c]]  ;;  %v900_v62 = vmul.f32 %v20385_v2, %v899_v52  ;;  %v903_v18 = vstv %s20390_s25 }
  0xcf   : > { %v864_v50 = vadd.f32 %v863_v46, %v861_v6  ;;  %v885_v51 = vadd.f32 %v884_v44, %v881_v47  ;;  %v908_v21 = vstv %s15160_s26  ;;  %s20408_s8 = sld [smem:[#allocation3 + $0x8d]] }
  0xd0   : > { %v909_v25 = vmul.f32 %v20307_v17, %v908_v21  ;;  %v911_v55 = vstv %s15161_s27  ;;  %s20412_s24 = sld [smem:[#allocation3 + $0x8e]] }
  0xd1   : > { %v865_v56 = vmax.f32 %v864_v50, 0.0  ;;  %v889_v58 = vadd.f32 %v888_v48, %v885_v51  ;;  %v912_v59 = vmul.f32 %v20315_v54, %v911_v55  ;;  %v915_v61 = vstv %s15162_s28  ;;  %s20415_s10 = sld [smem:[#allocation3 + $0x8f]] }
  0xd2   : > { %v916_v63 = vmul.f32 %v20324_v57, %v915_v61  ;;  %v919_v0 = vstv %s15163_s29  ;;  %s20419_s11 = sld [smem:[#allocation6 + $0xf]] }
  0xd3   : > { %866 = vst.msk [vmem:[#allocation2 + $0x68] sm:$0xff] %vm19977_vm8, %v865_v56  ;;  %v893_v1 = vadd.f32 %v892_v11, %v889_v58  ;;  %v913_v5 = vadd.f32 %v912_v59, %v909_v25  ;;  %v920_v7 = vmul.f32 %v20335_v27, %v919_v0  ;;  %v923_v9 = vstv %s20402_s6  ;;  %s15170_s13 = sld [smem:[#allocation3 + $0x90]] }
  0xd4   : > { %v927_v10 = vstv %s20405_s7  ;;  %s15171_s14 = sld [smem:[#allocation3 + $0x91]]  ;;  %v924_v14 = vmul.f32 %v20343_v8, %v923_v9 }
  0xd5   : > { %v897_v12 = vadd.f32 %v896_v53, %v893_v1  ;;  %v917_v13 = vadd.f32 %v916_v63, %v913_v5  ;;  %v931_v16 = vstv %s20408_s8  ;;  %s15172_s15 = sld [smem:[#allocation3 + $0x92]]  ;;  %v928_v23 = vmul.f32 %v20353_v15, %v927_v10 }
  0xd6   : > { %s15173_s30 = sld [smem:[#allocation3 + $0x93]]  ;;  %v935_v24 = vstv %s20412_s24  ;;  %v932_v26 = vmul.f32 %v20362_v19, %v931_v16 }
  0xd7   : > { %v901_v20 = vadd.f32 %v900_v62, %v897_v12  ;;  %v921_v22 = vadd.f32 %v920_v7, %v917_v13  ;;  %s20431_s9 = sld [smem:[#allocation3 + $0x94]]  ;;  %v939_v31 = vstv %s20415_s10  ;;  %v936_v33 = vmul.f32 %v20373_v28, %v935_v24 }
  0xd8   : > { %s20434_s17 = sld [smem:[#allocation3 + $0x95]]  ;;  %v940_v39 = vmul.f32 %v20385_v2, %v939_v31  ;;  %v943_v49 = vstv %s20419_s11 }
  0xd9   : > { %v904_v29 = vadd.f32 %v903_v18, %v901_v20  ;;  %v925_v30 = vadd.f32 %v924_v14, %v921_v22  ;;  %v948_v32 = vstv %s15170_s13  ;;  %s20437_s16 = sld [smem:[#allocation3 + $0x96]] }
  0xda   : > { %v949_v34 = vmul.f32 %v20307_v17, %v948_v32  ;;  %v951_v35 = vstv %s15171_s14  ;;  %s20441_s20 = sld [smem:[#allocation3 + $0x97]] }
  0xdb   : > { %v905_v36 = vmax.f32 %v904_v29, 0.0  ;;  %v929_v3 = vadd.f32 %v928_v23, %v925_v30  ;;  %v952_v37 = vmul.f32 %v20315_v54, %v951_v35  ;;  %v955_v38 = vstv %s15172_s15  ;;  %s20444_s21 = sld [smem:[#allocation3 + $0x98]] }
  0xdc   : > { %v956_v40 = vmul.f32 %v20324_v57, %v955_v38  ;;  %v959_v4 = vstv %s15173_s30  ;;  %s20448_s22 = sld [smem:[#allocation6 + $0x10]] }
  0xdd   : > { %906 = vst.msk [vmem:[#allocation2 + $0x70] sm:$0xff] %vm19977_vm8, %v905_v36  ;;  %v933_v41 = vadd.f32 %v932_v26, %v929_v3  ;;  %v953_v42 = vadd.f32 %v952_v37, %v949_v34  ;;  %v960_v43 = vmul.f32 %v20335_v27, %v959_v4  ;;  %v963_v44 = vstv %s20431_s9  ;;  %s15180_s23 = sld [smem:[#allocation3 + $0x99]] }
  0xde   : > { %v967_v45 = vstv %s20434_s17  ;;  %s15181_s25 = sld [smem:[#allocation3 + $0x9a]]  ;;  %v964_v47 = vmul.f32 %v20343_v8, %v963_v44 }
  0xdf   : > { %v937_v46 = vadd.f32 %v936_v33, %v933_v41  ;;  %v957_v6 = vadd.f32 %v956_v40, %v953_v42  ;;  %v971_v48 = vstv %s20437_s16  ;;  %s15182_s26 = sld [smem:[#allocation3 + $0x9b]]  ;;  %v968_v51 = vmul.f32 %v20353_v15, %v967_v45 }
  0xe0   : > { %s15183_s27 = sld [smem:[#allocation3 + $0x9c]]  ;;  %v975_v52 = vstv %s20441_s20  ;;  %v972_v21 = vmul.f32 %v20362_v19, %v971_v48 }
  0xe1   : > { %v941_v11 = vadd.f32 %v940_v39, %v937_v46  ;;  %v961_v50 = vadd.f32 %v960_v43, %v957_v6  ;;  %s20460_s28 = sld [smem:[#allocation3 + $0x9d]]  ;;  %v979_v55 = vstv %s20444_s21  ;;  %v976_v58 = vmul.f32 %v20373_v28, %v975_v52 }
  0xe2   : > { %s20463_s29 = sld [smem:[#allocation3 + $0x9e]]  ;;  %v980_v5 = vmul.f32 %v20385_v2, %v979_v55  ;;  %v983_v24 = vstv %s20448_s22 }
  0xe3   : > { %v944_v53 = vadd.f32 %v943_v49, %v941_v11  ;;  %v965_v25 = vadd.f32 %v964_v47, %v961_v50  ;;  %v988_v56 = vstv %s15180_s23  ;;  %s20466_s6 = sld [smem:[#allocation3 + $0x9f]] }
  0xe4   : > { %v989_v59 = vmul.f32 %v20307_v17, %v988_v56  ;;  %v991_v61 = vstv %s15181_s25  ;;  %s20470_s7 = sld [smem:[#allocation3 + $0xa0]] }
  0xe5   : > { %v945_v62 = vmax.f32 %v944_v53, 0.0  ;;  %v969_v63 = vadd.f32 %v968_v51, %v965_v25  ;;  %v992_v0 = vmul.f32 %v20315_v54, %v991_v61  ;;  %v995_v1 = vstv %s15182_s26  ;;  %s20473_s8 = sld [smem:[#allocation3 + $0xa1]] }
  0xe6   : > { %v996_v7 = vmul.f32 %v20324_v57, %v995_v1  ;;  %v999_v9 = vstv %s15183_s27  ;;  %s20477_s24 = sld [smem:[#allocation6 + $0x11]] }
  0xe7   : > { %946 = vst.msk [vmem:[#allocation2 + $0x78] sm:$0xff] %vm19977_vm8, %v945_v62  ;;  %v973_v10 = vadd.f32 %v972_v21, %v969_v63  ;;  %v993_v12 = vadd.f32 %v992_v0, %v989_v59  ;;  %v1000_v13 = vmul.f32 %v20335_v27, %v999_v9  ;;  %v1003_v14 = vstv %s20460_s28  ;;  %s15190_s10 = sld [smem:[#allocation3 + $0xa2]] }
  0xe8   : > { %v1007_v16 = vstv %s20463_s29  ;;  %s15191_s11 = sld [smem:[#allocation3 + $0xa3]]  ;;  %v1004_v22 = vmul.f32 %v20343_v8, %v1003_v14 }
  0xe9   : > { %v977_v18 = vadd.f32 %v976_v58, %v973_v10  ;;  %v997_v20 = vadd.f32 %v996_v7, %v993_v12  ;;  %v1011_v23 = vstv %s20466_s6  ;;  %s15192_s13 = sld [smem:[#allocation3 + $0xa4]]  ;;  %v1008_v30 = vmul.f32 %v20353_v15, %v1007_v16 }
  0xea   : > { %s15193_s14 = sld [smem:[#allocation3 + $0xa5]]  ;;  %v1015_v31 = vstv %s20470_s7  ;;  %v1012_v32 = vmul.f32 %v20362_v19, %v1011_v23 }
  0xeb   : > { %v981_v26 = vadd.f32 %v980_v5, %v977_v18  ;;  %v1001_v29 = vadd.f32 %v1000_v13, %v997_v20  ;;  %s20489_s15 = sld [smem:[#allocation3 + $0xa6]]  ;;  %v1019_v35 = vstv %s20473_s8  ;;  %v1016_v3 = vmul.f32 %v20373_v28, %v1015_v31 }
  0xec   : > { %s20492_s30 = sld [smem:[#allocation3 + $0xa7]]  ;;  %v1020_v42 = vmul.f32 %v20385_v2, %v1019_v35  ;;  %v1023_v52 = vstv %s20477_s24 }
  0xed   : > { %v984_v33 = vadd.f32 %v983_v24, %v981_v26  ;;  %v1005_v34 = vadd.f32 %v1004_v22, %v1001_v29  ;;  %v1028_v36 = vstv %s15190_s10  ;;  %s20495_s9 = sld [smem:[#allocation3 + $0xa8]] }
  0xee   : > { %v1029_v37 = vmul.f32 %v20307_v17, %v1028_v36  ;;  %v1031_v38 = vstv %s15191_s11  ;;  %s20499_s17 = sld [smem:[#allocation3 + $0xa9]] }
  0xef   : > { %v985_v39 = vmax.f32 %v984_v33, 0.0  ;;  %v1009_v40 = vadd.f32 %v1008_v30, %v1005_v34  ;;  %v1032_v4 = vmul.f32 %v20315_v54, %v1031_v38  ;;  %v1035_v41 = vstv %s15192_s13  ;;  %s20502_s16 = sld [smem:[#allocation3 + $0xaa]] }
  0xf0   : > { %v1036_v43 = vmul.f32 %v20324_v57, %v1035_v41  ;;  %v1039_v44 = vstv %s15193_s14  ;;  %s20506_s20 = sld [smem:[#allocation6 + $0x12]] }
  0xf1   : > { %986 = vst.msk [vmem:[#allocation2 + $0x80] sm:$0xff] %vm19977_vm8, %v985_v39  ;;  %v1013_v45 = vadd.f32 %v1012_v32, %v1009_v40  ;;  %v1033_v46 = vadd.f32 %v1032_v4, %v1029_v37  ;;  %v1040_v6 = vmul.f32 %v20335_v27, %v1039_v44  ;;  %v1043_v47 = vstv %s20489_s15  ;;  %s15200_s21 = sld [smem:[#allocation3 + $0xab]] }
  0xf2   : > { %v1047_v48 = vstv %s20492_s30  ;;  %s15201_s22 = sld [smem:[#allocation3 + $0xac]]  ;;  %v1044_v50 = vmul.f32 %v20343_v8, %v1043_v47 }
  0xf3   : > { %v1017_v49 = vadd.f32 %v1016_v3, %v1013_v45  ;;  %v1037_v11 = vadd.f32 %v1036_v43, %v1033_v46  ;;  %v1051_v51 = vstv %s20495_s9  ;;  %s15202_s23 = sld [smem:[#allocation3 + $0xad]]  ;;  %v1048_v25 = vmul.f32 %v20353_v15, %v1047_v48 }
  0xf4   : > { %s15203_s25 = sld [smem:[#allocation3 + $0xae]]  ;;  %v1055_v55 = vstv %s20499_s17  ;;  %v1052_v56 = vmul.f32 %v20362_v19, %v1051_v51 }
  0xf5   : > { %v1021_v21 = vadd.f32 %v1020_v42, %v1017_v49  ;;  %v1041_v53 = vadd.f32 %v1040_v6, %v1037_v11  ;;  %s20518_s26 = sld [smem:[#allocation3 + $0xaf]]  ;;  %v1059_v61 = vstv %s20502_s16  ;;  %v1056_v63 = vmul.f32 %v20373_v28, %v1055_v55 }
  0xf6   : > { %s20521_s27 = sld [smem:[#allocation3 + $0xb0]]  ;;  %v1060_v12 = vmul.f32 %v20385_v2, %v1059_v61  ;;  %v1063_v31 = vstv %s20506_s20 }
  0xf7   : > { %v1024_v58 = vadd.f32 %v1023_v52, %v1021_v21  ;;  %v1045_v59 = vadd.f32 %v1044_v50, %v1041_v53  ;;  %v1068_v62 = vstv %s15200_s21  ;;  %s20524_s28 = sld [smem:[#allocation3 + $0xb1]] }
  0xf8   : > { %v1069_v0 = vmul.f32 %v20307_v17, %v1068_v62  ;;  %v1071_v1 = vstv %s15201_s22  ;;  %s20528_s29 = sld [smem:[#allocation3 + $0xb2]] }
  0xf9   : > { %v1025_v5 = vmax.f32 %v1024_v58, 0.0  ;;  %v1049_v7 = vadd.f32 %v1048_v25, %v1045_v59  ;;  %v1072_v9 = vmul.f32 %v20315_v54, %v1071_v1  ;;  %v1075_v10 = vstv %s15202_s23  ;;  %s20531_s6 = sld [smem:[#allocation3 + $0xb3]] }
  0xfa   : > { %v1076_v13 = vmul.f32 %v20324_v57, %v1075_v10  ;;  %v1079_v14 = vstv %s15203_s25  ;;  %s20535_s7 = sld [smem:[#allocation6 + $0x13]] }
  0xfb   : > { %1026 = vst.msk [vmem:[#allocation2 + $0x88] sm:$0xff] %vm19977_vm8, %v1025_v5  ;;  %v1053_v16 = vadd.f32 %v1052_v56, %v1049_v7  ;;  %v1073_v18 = vadd.f32 %v1072_v9, %v1069_v0  ;;  %v1080_v20 = vmul.f32 %v20335_v27, %v1079_v14  ;;  %v1083_v22 = vstv %s20518_s26  ;;  %s15210_s8 = sld [smem:[#allocation3 + $0xb4]] }
  0xfc   : > { %v1087_v23 = vstv %s20521_s27  ;;  %s15211_s24 = sld [smem:[#allocation3 + $0xb5]]  ;;  %v1084_v29 = vmul.f32 %v20343_v8, %v1083_v22 }
  0xfd   : > { %v1057_v24 = vadd.f32 %v1056_v63, %v1053_v16  ;;  %v1077_v26 = vadd.f32 %v1076_v13, %v1073_v18  ;;  %v1091_v30 = vstv %s20524_s28  ;;  %s15212_s10 = sld [smem:[#allocation3 + $0xb6]]  ;;  %v1088_v34 = vmul.f32 %v20353_v15, %v1087_v23 }
  0xfe   : > { %s15213_s11 = sld [smem:[#allocation3 + $0xb7]]  ;;  %v1095_v35 = vstv %s20528_s29  ;;  %v1092_v36 = vmul.f32 %v20362_v19, %v1091_v30 }
  0xff   : > { %v1061_v32 = vadd.f32 %v1060_v12, %v1057_v24  ;;  %v1081_v33 = vadd.f32 %v1080_v20, %v1077_v26  ;;  %s20547_s13 = sld [smem:[#allocation3 + $0xb8]]  ;;  %v1099_v38 = vstv %s20531_s6  ;;  %v1096_v40 = vmul.f32 %v20373_v28, %v1095_v35 }
 0x100   : > { %s20550_s14 = sld [smem:[#allocation3 + $0xb9]]  ;;  %v1100_v46 = vmul.f32 %v20385_v2, %v1099_v38  ;;  %v1103_v55 = vstv %s20535_s7 }
 0x101   : > { %v1064_v3 = vadd.f32 %v1063_v31, %v1061_v32  ;;  %v1085_v37 = vadd.f32 %v1084_v29, %v1081_v33  ;;  %v1108_v39 = vstv %s15210_s8  ;;  %s20553_s15 = sld [smem:[#allocation3 + $0xba]] }
 0x102   : > { %v1109_v4 = vmul.f32 %v20307_v17, %v1108_v39  ;;  %v1111_v41 = vstv %s15211_s24  ;;  %s20557_s30 = sld [smem:[#allocation3 + $0xbb]] }
 0x103   : > { %v1065_v42 = vmax.f32 %v1064_v3, 0.0  ;;  %v1089_v43 = vadd.f32 %v1088_v34, %v1085_v37  ;;  %v1112_v44 = vmul.f32 %v20315_v54, %v1111_v41  ;;  %v1115_v45 = vstv %s15212_s10  ;;  %s20560_s9 = sld [smem:[#allocation3 + $0xbc]] }
 0x104   : > { %v1116_v6 = vmul.f32 %v20324_v57, %v1115_v45  ;;  %v1119_v47 = vstv %s15213_s11  ;;  %s20564_s17 = sld [smem:[#allocation6 + $0x14]] }
 0x105   : > { %1066 = vst.msk [vmem:[#allocation2 + $0x90] sm:$0xff] %vm19977_vm8, %v1065_v42  ;;  %v1093_v48 = vadd.f32 %v1092_v36, %v1089_v43  ;;  %v1113_v49 = vadd.f32 %v1112_v44, %v1109_v4  ;;  %v1120_v11 = vmul.f32 %v20335_v27, %v1119_v47  ;;  %v1123_v50 = vstv %s20547_s13  ;;  %s15220_s16 = sld [smem:[#allocation3 + $0xbd]] }
 0x106   : > { %v1127_v51 = vstv %s20550_s14  ;;  %s15221_s20 = sld [smem:[#allocation3 + $0xbe]]  ;;  %v1124_v53 = vmul.f32 %v20343_v8, %v1123_v50 }
 0x107   : > { %v1097_v52 = vadd.f32 %v1096_v40, %v1093_v48  ;;  %v1117_v21 = vadd.f32 %v1116_v6, %v1113_v49  ;;  %v1131_v25 = vstv %s20553_s15  ;;  %s15222_s21 = sld [smem:[#allocation3 + $0xbf]]  ;;  %v1128_v59 = vmul.f32 %v20353_v15, %v1127_v51 }
 0x108   : > { %s15223_s22 = sld [smem:[#allocation3 + $0xc0]]  ;;  %v1135_v61 = vstv %s20557_s30  ;;  %v1132_v62 = vmul.f32 %v20362_v19, %v1131_v25 }
 0x109   : > { %v1101_v56 = vadd.f32 %v1100_v46, %v1097_v52  ;;  %v1121_v58 = vadd.f32 %v1120_v11, %v1117_v21  ;;  %s20576_s23 = sld [smem:[#allocation3 + $0xc1]]  ;;  %v1139_v1 = vstv %s20560_s9  ;;  %v1136_v7 = vmul.f32 %v20373_v28, %v1135_v61 }
 0x10a   : > { %s20579_s25 = sld [smem:[#allocation3 + $0xc2]]  ;;  %v1140_v18 = vmul.f32 %v20385_v2, %v1139_v1  ;;  %v1143_v35 = vstv %s20564_s17 }
 0x10b   : > { %v1104_v63 = vadd.f32 %v1103_v55, %v1101_v56  ;;  %v1125_v0 = vadd.f32 %v1124_v53, %v1121_v58  ;;  %v1148_v5 = vstv %s15220_s16  ;;  %s20582_s26 = sld [smem:[#allocation3 + $0xc3]] }
 0x10c   : > { %v1149_v9 = vmul.f32 %v20307_v17, %v1148_v5  ;;  %v1151_v10 = vstv %s15221_s20  ;;  %s20586_s27 = sld [smem:[#allocation3 + $0xc4]] }
 0x10d   : > { %v1105_v12 = vmax.f32 %v1104_v63, 0.0  ;;  %v1129_v13 = vadd.f32 %v1128_v59, %v1125_v0  ;;  %v1152_v14 = vmul.f32 %v20315_v54, %v1151_v10  ;;  %v1155_v16 = vstv %s15222_s21  ;;  %s20589_s28 = sld [smem:[#allocation3 + $0xc5]] }
 0x10e   : > { %v1156_v20 = vmul.f32 %v20324_v57, %v1155_v16  ;;  %v1159_v22 = vstv %s15223_s22  ;;  %s20593_s29 = sld [smem:[#allocation6 + $0x15]] }
 0x10f   : > { %1106 = vst.msk [vmem:[#allocation2 + $0x98] sm:$0xff] %vm19977_vm8, %v1105_v12  ;;  %v1133_v23 = vadd.f32 %v1132_v62, %v1129_v13  ;;  %v1153_v24 = vadd.f32 %v1152_v14, %v1149_v9  ;;  %v1160_v26 = vmul.f32 %v20335_v27, %v1159_v22  ;;  %v1163_v29 = vstv %s20576_s23  ;;  %s15230_s6 = sld [smem:[#allocation3 + $0xc6]] }
 0x110   : > { %v1167_v30 = vstv %s20579_s25  ;;  %s15231_s7 = sld [smem:[#allocation3 + $0xc7]]  ;;  %v1164_v33 = vmul.f32 %v20343_v8, %v1163_v29 }
 0x111   : > { %v1137_v31 = vadd.f32 %v1136_v7, %v1133_v23  ;;  %v1157_v32 = vadd.f32 %v1156_v20, %v1153_v24  ;;  %v1171_v34 = vstv %s20582_s26  ;;  %s15232_s8 = sld [smem:[#allocation3 + $0xc8]]  ;;  %v1168_v37 = vmul.f32 %v20353_v15, %v1167_v30 }
 0x112   : > { %s15233_s24 = sld [smem:[#allocation3 + $0xc9]]  ;;  %v1175_v38 = vstv %s20586_s27  ;;  %v1172_v39 = vmul.f32 %v20362_v19, %v1171_v34 }
 0x113   : > { %v1141_v36 = vadd.f32 %v1140_v18, %v1137_v31  ;;  %v1161_v3 = vadd.f32 %v1160_v26, %v1157_v32  ;;  %s20605_s10 = sld [smem:[#allocation3 + $0xca]]  ;;  %v1179_v41 = vstv %s20589_s28  ;;  %v1176_v43 = vmul.f32 %v20373_v28, %v1175_v38 }
 0x114   : > { %s20608_s11 = sld [smem:[#allocation3 + $0xcb]]  ;;  %v1180_v49 = vmul.f32 %v20385_v2, %v1179_v41  ;;  %v1183_v61 = vstv %s20593_s29 }
 0x115   : > { %v1144_v40 = vadd.f32 %v1143_v35, %v1141_v36  ;;  %v1165_v4 = vadd.f32 %v1164_v33, %v1161_v3  ;;  %v1188_v42 = vstv %s15230_s6  ;;  %s20611_s13 = sld [smem:[#allocation3 + $0xcc]] }
 0x116   : > { %v1189_v44 = vmul.f32 %v20307_v17, %v1188_v42  ;;  %v1191_v45 = vstv %s15231_s7  ;;  %s20615_s14 = sld [smem:[#allocation3 + $0xcd]] }
 0x117   : > { %v1145_v46 = vmax.f32 %v1144_v40, 0.0  ;;  %v1169_v6 = vadd.f32 %v1168_v37, %v1165_v4  ;;  %v1192_v47 = vmul.f32 %v20315_v54, %v1191_v45  ;;  %v1195_v48 = vstv %s15232_s8  ;;  %s20618_s15 = sld [smem:[#allocation3 + $0xce]] }
 0x118   : > { %v1196_v11 = vmul.f32 %v20324_v57, %v1195_v48  ;;  %v1199_v50 = vstv %s15233_s24  ;;  %s20622_s30 = sld [smem:[#allocation6 + $0x16]] }
 0x119   : > { %1146 = vst.msk [vmem:[#allocation2 + $0xa0] sm:$0xff] %vm19977_vm8, %v1145_v46  ;;  %v1173_v51 = vadd.f32 %v1172_v39, %v1169_v6  ;;  %v1193_v52 = vadd.f32 %v1192_v47, %v1189_v44  ;;  %v1200_v21 = vmul.f32 %v20335_v27, %v1199_v50  ;;  %v1203_v53 = vstv %s20605_s10  ;;  %s15240_s9 = sld [smem:[#allocation3 + $0xcf]] }
 0x11a   : > { %v1207_v25 = vstv %s20608_s11  ;;  %s15241_s17 = sld [smem:[#allocation3 + $0xd0]]  ;;  %v1204_v58 = vmul.f32 %v20343_v8, %v1203_v53 }
 0x11b   : > { %v1177_v55 = vadd.f32 %v1176_v43, %v1173_v51  ;;  %v1197_v56 = vadd.f32 %v1196_v11, %v1193_v52  ;;  %v1211_v59 = vstv %s20611_s13  ;;  %s15242_s16 = sld [smem:[#allocation3 + $0xd1]]  ;;  %v1208_v0 = vmul.f32 %v20353_v15, %v1207_v25 }
 0x11c   : > { %s15243_s20 = sld [smem:[#allocation3 + $0xd2]]  ;;  %v1215_v1 = vstv %s20615_s14  ;;  %v1212_v5 = vmul.f32 %v20362_v19, %v1211_v59 }
 0x11d   : > { %v1181_v62 = vadd.f32 %v1180_v49, %v1177_v55  ;;  %v1201_v63 = vadd.f32 %v1200_v21, %v1197_v56  ;;  %s20634_s21 = sld [smem:[#allocation3 + $0xd3]]  ;;  %v1219_v10 = vstv %s20618_s15  ;;  %v1216_v13 = vmul.f32 %v20373_v28, %v1215_v1 }
 0x11e   : > { %s20637_s22 = sld [smem:[#allocation3 + $0xd4]]  ;;  %v1220_v24 = vmul.f32 %v20385_v2, %v1219_v10  ;;  %v1223_v38 = vstv %s20622_s30 }
 0x11f   : > { %v1184_v7 = vadd.f32 %v1183_v61, %v1181_v62  ;;  %v1205_v9 = vadd.f32 %v1204_v58, %v1201_v63  ;;  %v1228_v12 = vstv %s15240_s9  ;;  %s20640_s23 = sld [smem:[#allocation3 + $0xd5]] }
 0x120   : > { %v1229_v14 = vmul.f32 %v20307_v17, %v1228_v12  ;;  %v1231_v16 = vstv %s15241_s17  ;;  %s20644_s25 = sld [smem:[#allocation3 + $0xd6]] }
 0x121   : > { %v1185_v18 = vmax.f32 %v1184_v7, 0.0  ;;  %v1209_v20 = vadd.f32 %v1208_v0, %v1205_v9  ;;  %v1232_v22 = vmul.f32 %v20315_v54, %v1231_v16  ;;  %v1235_v23 = vstv %s15242_s16  ;;  %s20647_s26 = sld [smem:[#allocation3 + $0xd7]] }
 0x122   : > { %v1236_v26 = vmul.f32 %v20324_v57, %v1235_v23  ;;  %v1239_v29 = vstv %s15243_s20  ;;  %s20651_s27 = sld [smem:[#allocation6 + $0x17]] }
 0x123   : > { %1186 = vst.msk [vmem:[#allocation2 + $0xa8] sm:$0xff] %vm19977_vm8, %v1185_v18  ;;  %v1213_v30 = vadd.f32 %v1212_v5, %v1209_v20  ;;  %v1233_v31 = vadd.f32 %v1232_v22, %v1229_v14  ;;  %v1240_v32 = vmul.f32 %v20335_v27, %v1239_v29  ;;  %v1243_v33 = vstv %s20634_s21  ;;  %s15250_s28 = sld [smem:[#allocation3 + $0xd8]] }
 0x124   : > { %v1247_v34 = vstv %s20637_s22  ;;  %s15251_s29 = sld [smem:[#allocation3 + $0xd9]]  ;;  %v1244_v3 = vmul.f32 %v20343_v8, %v1243_v33 }
 0x125   : > { %v1217_v35 = vadd.f32 %v1216_v13, %v1213_v30  ;;  %v1237_v36 = vadd.f32 %v1236_v26, %v1233_v31  ;;  %v1251_v37 = vstv %s20640_s23  ;;  %s15252_s6 = sld [smem:[#allocation3 + $0xda]]  ;;  %v1248_v4 = vmul.f32 %v20353_v15, %v1247_v34 }
 0x126   : > { %s15253_s7 = sld [smem:[#allocation3 + $0xdb]]  ;;  %v1255_v41 = vstv %s20644_s25  ;;  %v1252_v42 = vmul.f32 %v20362_v19, %v1251_v37 }
 0x127   : > { %v1221_v39 = vadd.f32 %v1220_v24, %v1217_v35  ;;  %v1241_v40 = vadd.f32 %v1240_v32, %v1237_v36  ;;  %s20663_s8 = sld [smem:[#allocation3 + $0xdc]]  ;;  %v1259_v45 = vstv %s20647_s26  ;;  %v1256_v6 = vmul.f32 %v20373_v28, %v1255_v41 }
 0x128   : > { %s20666_s24 = sld [smem:[#allocation3 + $0xdd]]  ;;  %v1260_v52 = vmul.f32 %v20385_v2, %v1259_v45  ;;  %v1263_v1 = vstv %s20651_s27 }
 0x129   : > { %v1224_v43 = vadd.f32 %v1223_v38, %v1221_v39  ;;  %v1245_v44 = vadd.f32 %v1244_v3, %v1241_v40  ;;  %v1268_v46 = vstv %s15250_s28  ;;  %s20669_s10 = sld [smem:[#allocation3 + $0xde]] }
 0x12a   : > { %v1269_v47 = vmul.f32 %v20307_v17, %v1268_v46  ;;  %v1271_v48 = vstv %s15251_s29  ;;  %s20673_s11 = sld [smem:[#allocation3 + $0xdf]] }
 0x12b   : > { %v1225_v49 = vmax.f32 %v1224_v43, 0.0  ;;  %v1249_v11 = vadd.f32 %v1248_v4, %v1245_v44  ;;  %v1272_v50 = vmul.f32 %v20315_v54, %v1271_v48  ;;  %v1275_v51 = vstv %s15252_s6  ;;  %s20676_s13 = sld [smem:[#allocation3 + $0xe0]] }
 0x12c   : > { %v1276_v21 = vmul.f32 %v20324_v57, %v1275_v51  ;;  %v1279_v53 = vstv %s15253_s7  ;;  %s20680_s14 = sld [smem:[#allocation6 + $0x18]]  ;;  %v20752_v51 = vld [vmem:[%s23133_s2 + $0x10] sm:$0xff] }
 0x12d   : > { %1226 = vst.msk [vmem:[#allocation2 + $0xb0] sm:$0xff] %vm19977_vm8, %v1225_v49  ;;  %v1253_v25 = vadd.f32 %v1252_v42, %v1249_v11  ;;  %v1273_v55 = vadd.f32 %v1272_v50, %v1269_v47  ;;  %v1280_v56 = vmul.f32 %v20335_v27, %v1279_v53  ;;  %v1283_v58 = vstv %s20663_s8  ;;  %s15260_s15 = sld [smem:[#allocation3 + $0xe1]]  ;;  %v20743_v49 = vld [vmem:[%s23133_s2 + $0x8] sm:$0xff] }
 0x12e   : > { %v1287_v59 = vstv %s20666_s24  ;;  %s15261_s30 = sld [smem:[#allocation3 + $0xe2]]  ;;  %v1284_v63 = vmul.f32 %v20343_v8, %v1283_v58 }
 0x12f   : > { %v1257_v61 = vadd.f32 %v1256_v6, %v1253_v25  ;;  %v1277_v62 = vadd.f32 %v1276_v21, %v1273_v55  ;;  %v1291_v0 = vstv %s20669_s10  ;;  %s15262_s9 = sld [smem:[#allocation3 + $0xe3]]  ;;  %v1288_v9 = vmul.f32 %v20353_v15, %v1287_v59 }
 0x130   : > { %s15263_s17 = sld [smem:[#allocation3 + $0xe4]]  ;;  %v1295_v10 = vstv %s20673_s11  ;;  %v1292_v12 = vmul.f32 %v20362_v19, %v1291_v0 }
 0x131   : > { %v1261_v5 = vadd.f32 %v1260_v52, %v1257_v61  ;;  %v1281_v7 = vadd.f32 %v1280_v56, %v1277_v62  ;;  %s20692_s16 = sld [smem:[#allocation3 + $0xe5]]  ;;  %v1299_v16 = vstv %s20676_s13  ;;  %v1296_v20 = vmul.f32 %v20373_v28, %v1295_v10  ;;  %v20771_v62 = vld [vmem:[%s23133_s2 + $0x20] sm:$0xff] }
 0x132   : > { %s20695_s20 = sld [smem:[#allocation3 + $0xe6]]  ;;  %v1300_v31 = vmul.f32 %v20385_v2, %v1299_v16  ;;  %v1303_v39 = vstv %s20680_s14 }
 0x133   : > { %v1264_v13 = vadd.f32 %v1263_v1, %v1261_v5  ;;  %v1285_v14 = vadd.f32 %v1284_v63, %v1281_v7  ;;  %v1308_v18 = vstv %s15260_s15  ;;  %s20698_s21 = sld [smem:[#allocation3 + $0xe7]] }
 0x134   : > { %v1309_v22 = vmul.f32 %v20307_v17, %v1308_v18  ;;  %v1311_v23 = vstv %s15261_s30  ;;  %s20702_s22 = sld [smem:[#allocation3 + $0xe8]] }
 0x135   : > { %v1265_v24 = vmax.f32 %v1264_v13, 0.0  ;;  %v1289_v26 = vadd.f32 %v1288_v9, %v1285_v14  ;;  %v1312_v29 = vmul.f32 %v20315_v54, %v1311_v23  ;;  %v1315_v30 = vstv %s15262_s9  ;;  %s20705_s23 = sld [smem:[#allocation3 + $0xe9]]  ;;  %v20781_v9 = vld [vmem:[%s23133_s2 + $0x28] sm:$0xff]  ;;  %v20790_v13 = vld [vmem:[%s23133_s2 + $0x30] sm:$0xff]  ;;  %v20801_v23 = vld [vmem:[%s23133_s2 + $0x38] sm:$0xff] }
 0x136   : > { %v1316_v32 = vmul.f32 %v20324_v57, %v1315_v30  ;;  %v1319_v33 = vstv %s15263_s17  ;;  %s20709_s25 = sld [smem:[#allocation6 + $0x19]] }
 0x137   : > { %1266 = vst.msk [vmem:[#allocation2 + $0xb8] sm:$0xff] %vm19977_vm8, %v1265_v24  ;;  %v1293_v17 = vadd.f32 %v1292_v12, %v1289_v26  ;;  %v1313_v34 = vadd.f32 %v1312_v29, %v1309_v22  ;;  %v1320_v54 = vmul.f32 %v20335_v27, %v1319_v33  ;;  %v1323_v35 = vstv %s20692_s16  ;;  %s15270_s26 = sld [smem:[#allocation3 + $0xea]] }
 0x138   : > { %v1327_v36 = vstv %s20695_s20  ;;  %s15271_s27 = sld [smem:[#allocation3 + $0xeb]]  ;;  %v1324_v57 = vmul.f32 %v20343_v8, %v1323_v35 }
 0x139   : > { %v1297_v3 = vadd.f32 %v1296_v20, %v1293_v17  ;;  %v1317_v37 = vadd.f32 %v1316_v32, %v1313_v34  ;;  %v1331_v38 = vstv %s20698_s21  ;;  %s15272_s28 = sld [smem:[#allocation3 + $0xec]]  ;;  %v1328_v41 = vmul.f32 %v20353_v15, %v1327_v36  ;;  %v20735_v15 = vld [vmem:[%s23133_s2] sm:$0xff] }
 0x13a   : > { %s20719_s29 = sld [smem:[#allocation3 + $0xed]]  ;;  %v1335_v42 = vstv %s20702_s22  ;;  %v1332_v27 = vmul.f32 %v20362_v19, %v1331_v38  ;;  %v20813_v17 = vld [vmem:[%s23133_s2 + $0x40] sm:$0xff] }
 0x13b   : > { %v1301_v40 = vadd.f32 %v1300_v31, %v1297_v3  ;;  %v1321_v4 = vadd.f32 %v1320_v54, %v1317_v37  ;;  %s20723_s6 = sld [smem:[#allocation3 + $0xee]]  ;;  %v1339_v45 = vstv %s20705_s23  ;;  %v1336_v46 = vmul.f32 %v20373_v28, %v1335_v42 }
 0x13c   : > { %s20726_s7 = sld [smem:[#allocation3 + $0xef]]  ;;  %v1340_v50 = vmul.f32 %v20385_v2, %v1339_v45  ;;  %v20763_v2 = vld [vmem:[%s23133_s2 + $0x18] sm:$0xff]  ;;  %v1343_v1 = vstv %s20709_s25 }
 0x13d   : > { %v1304_v43 = vadd.f32 %v1303_v39, %v1301_v40  ;;  %v1325_v44 = vadd.f32 %v1324_v57, %v1321_v4  ;;  %v1348_v8 = vstv %s15270_s26  ;;  %s20729_s8 = sld [smem:[#allocation3 + $0xf0]] }
 0x13e   : > { %v1349_v6 = vmul.f32 %v20735_v15, %v1348_v8  ;;  %v1351_v47 = vstv %s15271_s27  ;;  %s20738_s11 = sld [smem:[#allocation3 + $0xf1]] }
 0x13f   : > { %v1305_v19 = vmax.f32 %v1304_v43, 0.0  ;;  %v1329_v48 = vadd.f32 %v1328_v41, %v1325_v44  ;;  %v1352_v28 = vmul.f32 %v20743_v49, %v1351_v47  ;;  %v1355_v11 = vstv %s15272_s28  ;;  %s20746_s15 = sld [smem:[#allocation3 + $0xf2]] }
 0x140   : > { %v1356_v52 = vmul.f32 %v20752_v51, %v1355_v11  ;;  %v1359_v21 = vstv %s20719_s29  ;;  %s20756_s17 = sld [smem:[#allocation6 + $0x1a]] }
 0x141   : > { %1306 = vst.msk [vmem:[#allocation2 + $0xc0] sm:$0xff] %vm19977_vm8, %v1305_v19  ;;  %v1333_v53 = vadd.f32 %v1332_v27, %v1329_v48  ;;  %v1353_v25 = vadd.f32 %v1352_v28, %v1349_v6  ;;  %v1360_v55 = vmul.f32 %v20763_v2, %v1359_v21  ;;  %v1363_v56 = vstv %s20723_s6  ;;  %s15280_s21 = sld [smem:[#allocation3 + $0xf3]] }
 0x142   : > { %v1367_v58 = vstv %s20726_s7  ;;  %s15281_s22 = sld [smem:[#allocation3 + $0xf4]]  ;;  %v1364_v63 = vmul.f32 %v20771_v62, %v1363_v56 }
 0x143   : > { %v1337_v59 = vadd.f32 %v1336_v46, %v1333_v53  ;;  %v1357_v61 = vadd.f32 %v1356_v52, %v1353_v25  ;;  %v1371_v0 = vstv %s20729_s8  ;;  %s15282_s27 = sld [smem:[#allocation3 + $0xf5]]  ;;  %v1368_v10 = vmul.f32 %v20781_v9, %v1367_v58 }
 0x144   : > { %s20776_s28 = sld [smem:[#allocation3 + $0xf6]]  ;;  %v1375_v12 = vstv %s20738_s11  ;;  %v1372_v14 = vmul.f32 %v20790_v13, %v1371_v0 }
 0x145   : > { %v1341_v5 = vadd.f32 %v1340_v50, %v1337_v59  ;;  %v1361_v7 = vadd.f32 %v1360_v55, %v1357_v61  ;;  %s20785_s7 = sld [smem:[#allocation3 + $0xf7]]  ;;  %v1379_v20 = vstv %s20746_s15  ;;  %v1376_v24 = vmul.f32 %v20801_v23, %v1375_v12 }
 0x146   : > { %s20793_s25 = sld [smem:[#allocation3 + $0xf8]]  ;;  %v1380_v34 = vmul.f32 %v20813_v17, %v1379_v20  ;;  %v1383_v42 = vstv %s20756_s17 }
 0x147   : > { %v1344_v16 = vadd.f32 %v1343_v1, %v1341_v5  ;;  %v1365_v18 = vadd.f32 %v1364_v63, %v1361_v7  ;;  %v1388_v22 = vstv %s15280_s21  ;;  %s20796_s8 = sld [smem:[#allocation3 + $0xf9]] }
 0x148   : > { %v1389_v26 = vmul.f32 %v20735_v15, %v1388_v22  ;;  %v1391_v29 = vstv %s15281_s22  ;;  %s20805_s14 = sld [smem:[#allocation3 + $0xfa]] }
 0x149   : > { %v1345_v30 = vmax.f32 %v1344_v16, 0.0  ;;  %v1369_v31 = vadd.f32 %v1368_v10, %v1365_v18  ;;  %v1392_v32 = vmul.f32 %v20743_v49, %v1391_v29  ;;  %v1395_v33 = vstv %s15282_s27  ;;  %s20808_s15 = sld [smem:[#allocation3 + $0xfb]] }
 0x14a   : > { %v1396_v54 = vmul.f32 %v20752_v51, %v1395_v33  ;;  %v1399_v35 = vstv %s20776_s28  ;;  %s20818_s16 = sld [smem:[#allocation6 + $0x1b]] }
 0x14b   : > { %1346 = vst.msk [vmem:[#allocation2 + $0xc8] sm:$0xff] %vm19977_vm8, %v1345_v30  ;;  %v1373_v36 = vadd.f32 %v1372_v14, %v1369_v31  ;;  %v1393_v3 = vadd.f32 %v1392_v32, %v1389_v26  ;;  %v1400_v37 = vmul.f32 %v20763_v2, %v1399_v35  ;;  %v1403_v57 = vstv %s20785_s7  ;;  %s15290_s20 = sld [smem:[#allocation3 + $0xfc]] }
 0x14c   : > { %v1407_v38 = vstv %s20793_s25  ;;  %s15291_s21 = sld [smem:[#allocation3 + $0xfd]]  ;;  %v1404_v4 = vmul.f32 %v20771_v62, %v1403_v57 }
 0x14d   : > { %v1377_v39 = vadd.f32 %v1376_v24, %v1373_v36  ;;  %v1397_v40 = vadd.f32 %v1396_v54, %v1393_v3  ;;  %v1411_v41 = vstv %s20796_s8  ;;  %s15292_s22 = sld [smem:[#allocation3 + $0xfe]]  ;;  %v1408_v44 = vmul.f32 %v20781_v9, %v1407_v38 }
 0x14e   : > { %s15293_s23 = sld [smem:[#allocation3 + $0xff]]  ;;  %v1415_v45 = vstv %s20805_s14  ;;  %v1412_v8 = vmul.f32 %v20790_v13, %v1411_v41 }
 0x14f   : > { %v1381_v27 = vadd.f32 %v1380_v34, %v1377_v39  ;;  %v1401_v43 = vadd.f32 %v1400_v37, %v1397_v40  ;;  %s20830_s26 = sld [smem:[#allocation3 + $0x100]]  ;;  %v1419_v47 = vstv %s20808_s15  ;;  %v1416_v48 = vmul.f32 %v20801_v23, %v1415_v45 }
 0x150   : > { %s20833_s27 = sld [smem:[#allocation3 + $0x101]]  ;;  %v1420_v25 = vmul.f32 %v20813_v17, %v1419_v47  ;;  %v1423_v12 = vstv %s20818_s16 }
 0x151   : > { %v1384_v46 = vadd.f32 %v1383_v42, %v1381_v27  ;;  %v1405_v6 = vadd.f32 %v1404_v4, %v1401_v43  ;;  %v1428_v19 = vstv %s15290_s20  ;;  %s20836_s28 = sld [smem:[#allocation3 + $0x102]] }
 0x152   : > { %v1429_v28 = vmul.f32 %v20735_v15, %v1428_v19  ;;  %v1431_v11 = vstv %s15291_s21  ;;  %s20840_s17 = sld [smem:[#allocation3 + $0x103]] }
 0x153   : > { %v1385_v50 = vmax.f32 %v1384_v46, 0.0  ;;  %v1409_v52 = vadd.f32 %v1408_v44, %v1405_v6  ;;  %v1432_v21 = vmul.f32 %v20743_v49, %v1431_v11  ;;  %v1435_v53 = vstv %s15292_s22  ;;  %s20843_s29 = sld [smem:[#allocation3 + $0x104]] }
 0x154   : > { %v1436_v55 = vmul.f32 %v20752_v51, %v1435_v53  ;;  %v1439_v56 = vstv %s15293_s23  ;;  %s20847_s6 = sld [smem:[#allocation6 + $0x1c]] }
 0x155   : > { %1386 = vst.msk [vmem:[#allocation2 + $0xd0] sm:$0xff] %vm19977_vm8, %v1385_v50  ;;  %v1413_v58 = vadd.f32 %v1412_v8, %v1409_v52  ;;  %v1433_v59 = vadd.f32 %v1432_v21, %v1429_v28  ;;  %v1440_v61 = vmul.f32 %v20763_v2, %v1439_v56  ;;  %v1443_v63 = vstv %s20830_s26  ;;  %s15300_s7 = sld [smem:[#allocation3 + $0x105]] }
 0x156   : > { %v1447_v0 = vstv %s20833_s27  ;;  %s15301_s24 = sld [smem:[#allocation3 + $0x106]]  ;;  %v1444_v7 = vmul.f32 %v20771_v62, %v1443_v63 }
 0x157   : > { %v1417_v1 = vadd.f32 %v1416_v48, %v1413_v58  ;;  %v1437_v5 = vadd.f32 %v1436_v55, %v1433_v59  ;;  %v1451_v10 = vstv %s20836_s28  ;;  %s15302_s10 = sld [smem:[#allocation3 + $0x107]]  ;;  %v1448_v18 = vmul.f32 %v20781_v9, %v1447_v0 }
 0x158   : > { %s15303_s25 = sld [smem:[#allocation3 + $0x108]]  ;;  %v1455_v20 = vstv %s20840_s17  ;;  %v1452_v22 = vmul.f32 %v20790_v13, %v1451_v10 }
 0x159   : > { %v1421_v14 = vadd.f32 %v1420_v25, %v1417_v1  ;;  %v1441_v16 = vadd.f32 %v1440_v61, %v1437_v5  ;;  %s20859_s8 = sld [smem:[#allocation3 + $0x109]]  ;;  %v1459_v29 = vstv %s20843_s29  ;;  %v1456_v31 = vmul.f32 %v20801_v23, %v1455_v20 }
 0x15a   : > { %s20862_s13 = sld [smem:[#allocation3 + $0x10a]]  ;;  %v1460_v3 = vmul.f32 %v20813_v17, %v1459_v29  ;;  %v1463_v45 = vstv %s20847_s6 }
 0x15b   : > { %v1424_v24 = vadd.f32 %v1423_v12, %v1421_v14  ;;  %v1445_v26 = vadd.f32 %v1444_v7, %v1441_v16  ;;  %v1468_v30 = vstv %s15300_s7  ;;  %s20865_s11 = sld [smem:[#allocation3 + $0x10b]] }
 0x15c   : > { %v1469_v32 = vmul.f32 %v20735_v15, %v1468_v30  ;;  %v1471_v33 = vstv %s15301_s24  ;;  %s20869_s14 = sld [smem:[#allocation3 + $0x10c]] }
 0x15d   : > { %v1425_v34 = vmax.f32 %v1424_v24, 0.0  ;;  %v1449_v54 = vadd.f32 %v1448_v18, %v1445_v26  ;;  %v1472_v35 = vmul.f32 %v20743_v49, %v1471_v33  ;;  %v1475_v36 = vstv %s15302_s10  ;;  %s20872_s15 = sld [smem:[#allocation3 + $0x10d]] }
 0x15e   : > { %v1476_v37 = vmul.f32 %v20752_v51, %v1475_v36  ;;  %v1479_v57 = vstv %s15303_s25  ;;  %s20876_s30 = sld [smem:[#allocation6 + $0x1d]] }
 0x15f   : > { %1426 = vst.msk [vmem:[#allocation2 + $0xd8] sm:$0xff] %vm19977_vm8, %v1425_v34  ;;  %v1453_v38 = vadd.f32 %v1452_v22, %v1449_v54  ;;  %v1473_v39 = vadd.f32 %v1472_v35, %v1469_v32  ;;  %v1480_v40 = vmul.f32 %v20763_v2, %v1479_v57  ;;  %v1483_v4 = vstv %s20859_s8  ;;  %s15310_s9 = sld [smem:[#allocation3 + $0x10e]] }
 0x160   : > { %v1487_v41 = vstv %s20862_s13  ;;  %s15311_s16 = sld [smem:[#allocation3 + $0x10f]]  ;;  %v1484_v43 = vmul.f32 %v20771_v62, %v1483_v4 }
 0x161   : > { %v1457_v42 = vadd.f32 %v1456_v31, %v1453_v38  ;;  %v1477_v27 = vadd.f32 %v1476_v37, %v1473_v39  ;;  %v1491_v44 = vstv %s20865_s11  ;;  %s15312_s20 = sld [smem:[#allocation3 + $0x110]]  ;;  %v1488_v6 = vmul.f32 %v20781_v9, %v1487_v41 }
 0x162   : > { %s15313_s21 = sld [smem:[#allocation3 + $0x111]]  ;;  %v1495_v47 = vstv %s20869_s14  ;;  %v1492_v19 = vmul.f32 %v20790_v13, %v1491_v44 }
 0x163   : > { %v1461_v8 = vadd.f32 %v1460_v3, %v1457_v42  ;;  %v1481_v46 = vadd.f32 %v1480_v40, %v1477_v27  ;;  %s20888_s22 = sld [smem:[#allocation3 + $0x112]]  ;;  %v1499_v11 = vstv %s20872_s15  ;;  %v1496_v52 = vmul.f32 %v20801_v23, %v1495_v47 }
 0x164   : > { %s20891_s23 = sld [smem:[#allocation3 + $0x113]]  ;;  %v1500_v59 = vmul.f32 %v20813_v17, %v1499_v11  ;;  %v1503_v20 = vstv %s20876_s30 }
 0x165   : > { %v1464_v48 = vadd.f32 %v1463_v45, %v1461_v8  ;;  %v1485_v28 = vadd.f32 %v1484_v43, %v1481_v46  ;;  %v1508_v50 = vstv %s15310_s9  ;;  %s20894_s26 = sld [smem:[#allocation3 + $0x114]] }
 0x166   : > { %v1509_v21 = vmul.f32 %v20735_v15, %v1508_v50  ;;  %v1511_v53 = vstv %s15311_s16  ;;  %s20898_s27 = sld [smem:[#allocation3 + $0x115]] }
 0x167   : > { %v1465_v25 = vmax.f32 %v1464_v48, 0.0  ;;  %v1489_v55 = vadd.f32 %v1488_v6, %v1485_v28  ;;  %v1512_v56 = vmul.f32 %v20743_v49, %v1511_v53  ;;  %v1515_v58 = vstv %s15312_s20  ;;  %s20901_s28 = sld [smem:[#allocation3 + $0x116]] }
 0x168   : > { %v1516_v61 = vmul.f32 %v20752_v51, %v1515_v58  ;;  %v1519_v63 = vstv %s15313_s21  ;;  %s20905_s17 = sld [smem:[#allocation6 + $0x1e]] }
 0x169   : > { %1466 = vst.msk [vmem:[#allocation2 + $0xe0] sm:$0xff] %vm19977_vm8, %v1465_v25  ;;  %v1493_v0 = vadd.f32 %v1492_v19, %v1489_v55  ;;  %v1513_v1 = vadd.f32 %v1512_v56, %v1509_v21  ;;  %v1520_v5 = vmul.f32 %v20763_v2, %v1519_v63  ;;  %v1523_v7 = vstv %s20888_s22  ;;  %s15320_s29 = sld [smem:[#allocation3 + $0x117]] }
 0x16a   : > { %v1527_v10 = vstv %s20891_s23  ;;  %s15321_s6 = sld [smem:[#allocation3 + $0x118]]  ;;  %v1524_v16 = vmul.f32 %v20771_v62, %v1523_v7 }
 0x16b   : > { %v1497_v12 = vadd.f32 %v1496_v52, %v1493_v0  ;;  %v1517_v14 = vadd.f32 %v1516_v61, %v1513_v1  ;;  %v1531_v18 = vstv %s20894_s26  ;;  %s15322_s7 = sld [smem:[#allocation3 + $0x119]]  ;;  %v1528_v26 = vmul.f32 %v20781_v9, %v1527_v10 }
 0x16c   : > { %s15323_s24 = sld [smem:[#allocation3 + $0x11a]]  ;;  %v1535_v29 = vstv %s20898_s27  ;;  %v1532_v30 = vmul.f32 %v20790_v13, %v1531_v18 }
 0x16d   : > { %v1501_v22 = vadd.f32 %v1500_v59, %v1497_v12  ;;  %v1521_v24 = vadd.f32 %v1520_v5, %v1517_v14  ;;  %s15324_s10 = sld [smem:[#allocation3 + $0x11b]]  ;;  %v1539_v33 = vstv %s20901_s28  ;;  %v1536_v54 = vmul.f32 %v20801_v23, %v1535_v29 }
 0x16e   : > { %s20918_s25 = sld [smem:[#allocation3 + $0x11c]]  ;;  %v1540_v39 = vmul.f32 %v20813_v17, %v1539_v33  ;;  %v1543_v8 = vstv %s20905_s17 }
 0x16f   : > { %v1504_v31 = vadd.f32 %v1503_v20, %v1501_v22  ;;  %v1525_v32 = vadd.f32 %v1524_v16, %v1521_v24  ;;  %v1548_v34 = vstv %s15320_s29  ;;  %s20921_s8 = sld [smem:[#allocation3 + $0x11d]] }
 0x170   : > { %v1549_v35 = vmul.f32 %v20735_v15, %v1548_v34  ;;  %v1551_v36 = vstv %s15321_s6  ;;  %s20925_s13 = sld [smem:[#allocation3 + $0x11e]] }
 0x171   : > { %v1505_v3 = vmax.f32 %v1504_v31, 0.0  ;;  %v1529_v37 = vadd.f32 %v1528_v26, %v1525_v32  ;;  %v1552_v57 = vmul.f32 %v20743_v49, %v1551_v36  ;;  %v1555_v38 = vstv %s15322_s7  ;;  %s15328_s11 = sld [smem:[#allocation3 + $0x11f]] }
 0x172   : > { %v1556_v40 = vmul.f32 %v20752_v51, %v1555_v38  ;;  %v1559_v4 = vstv %s15323_s24  ;;  %s15329_s14 = sld [smem:[#allocation6 + $0x1f]] }
 0x173   : > { %1506 = vst.msk [vmem:[#allocation2 + $0xe8] sm:$0xff] %vm19977_vm8, %v1505_v3  ;;  %v1533_v15 = vadd.f32 %v1532_v30, %v1529_v37  ;;  %v1553_v41 = vadd.f32 %v1552_v57, %v1549_v35  ;;  %v1560_v42 = vmul.f32 %v20763_v2, %v1559_v4  ;;  %v1563_v27 = vstv %s15324_s10 }
 0x174   : > { %v1567_v43 = vstv %s20918_s25  ;;  %v1564_v45 = vmul.f32 %v20771_v62, %v1563_v27 }
 0x175   : > { %v1537_v44 = vadd.f32 %v1536_v54, %v1533_v15  ;;  %v1557_v49 = vadd.f32 %v1556_v40, %v1553_v41  ;;  %v1571_v46 = vstv %s20921_s8  ;;  %v1568_v47 = vmul.f32 %v20781_v9, %v1567_v43 }
 0x176   : > { %v1575_v19 = vstv %s20925_s13  ;;  %v1572_v11 = vmul.f32 %v20790_v13, %v1571_v46 }
 0x177   : > { %v1541_v6 = vadd.f32 %v1540_v39, %v1537_v44  ;;  %v1561_v51 = vadd.f32 %v1560_v42, %v1557_v49  ;;  %v1579_v50 = vstv %s15328_s11  ;;  %v1576_v21 = vmul.f32 %v20801_v23, %v1575_v19 }
 0x178   : > { %v1580_v53 = vmul.f32 %v20813_v17, %v1579_v50  ;;  %v1583_v55 = vstv %s15329_s14 }
 0x179   : > { %v1544_v48 = vadd.f32 %v1543_v8, %v1541_v6  ;;  %v1565_v28 = vadd.f32 %v1564_v45, %v1561_v51 }
 0x17b   : > { %v1545_v2 = vmax.f32 %v1544_v48, 0.0  ;;  %v1569_v52 = vadd.f32 %v1568_v47, %v1565_v28 }
 0x17d   : > { %1546 = vst.msk [vmem:[#allocation2 + $0xf0] sm:$0xff] %vm19977_vm8, %v1545_v2  ;;  %v1573_v62 = vadd.f32 %v1572_v11, %v1569_v52 }
 0x17f   : > { %v1577_v25 = vadd.f32 %v1576_v21, %v1573_v62 }
 0x181   : > { %v1581_v9 = vadd.f32 %v1580_v53, %v1577_v25 }
 0x183   : > { %v1584_v56 = vadd.f32 %v1583_v55, %v1581_v9 }
 0x185   : > { %v1585_v58 = vmax.f32 %v1584_v56, 0.0 }
 0x187   : > { %1586 = vst.msk [vmem:[#allocation2 + $0xf8] sm:$0xff] %vm19977_vm8, %v1585_v58 }
 0x188 PF: > { %v17634_v13 = vld [vmem:[%s19863_s12 + $0xac] ss:$12 sps:$4 sm:$0xff]   ;;  %v17638_v17 = vld [vmem:[%s19863_s12 + $0xa8] ss:$12 sps:$4 sm:$0xff]   ;;  %v17644_v63 = vld [vmem:[%s19863_s12 + $0x90] ss:$12 sps:$4 sm:$0xff]   ;;  %v1628_v42 = vlaneseq }
 0x189   : > { %v17636_v23 = vld [vmem:[%s19863_s12 + $0x22c] ss:$12 sps:$4 sm:$0xff]   ;;  %12265 = vmatprep.subr.bf16.mxu0 %v17634_v13  ;;  %v17639_v59 = vld [vmem:[%s19863_s12 + $0x228] ss:$12 sps:$4 sm:$0xff]   ;;  %v17645_v0 = vld [vmem:[%s19863_s12 + $0x210] ss:$12 sps:$4 sm:$0xff]  }
 0x18a   : > { %12306 = vmatprep.subr.bf16.mxu1 %v17636_v23  ;;  %v17640_v60 = vld [vmem:[%s19863_s12 + $0x94] ss:$12 sps:$4 sm:$0xff]   ;;  %12266 = vmatpush1.bf16.msra.mxu0 %v17638_v17  ;;  %v17646_v1 = vld [vmem:[%s19863_s12 + $0x7c] ss:$12 sps:$4 sm:$0xff]   ;;  %v17650_v7 = vld [vmem:[%s19863_s12 + $0x78] ss:$12 sps:$4 sm:$0xff]  }
 0x18b   : > { %12307 = vmatpush1.bf16.msra.mxu1 %v17639_v59  ;;  %v17642_v61 = vld [vmem:[%s19863_s12 + $0x214] ss:$12 sps:$4 sm:$0xff]   ;;  %12267 = vmatprep.subr.bf16.mxu0 %v17640_v60  ;;  %v17648_v5 = vld [vmem:[%s19863_s12 + $0x1fc] ss:$12 sps:$4 sm:$0xff]   ;;  %v17651_v10 = vld [vmem:[%s19863_s12 + $0x1f8] ss:$12 sps:$4 sm:$0xff]  }
 0x18c   : > { %12308 = vmatprep.subr.bf16.mxu1 %v17642_v61  ;;  %v17652_v12 = vld [vmem:[%s19863_s12 + $0x64] ss:$12 sps:$4 sm:$0xff]   ;;  %v17656_v16 = vld [vmem:[%s19863_s12 + $0x60] ss:$12 sps:$4 sm:$0xff]   ;;  %v17662_v24 = vld [vmem:[%s19863_s12 + $0x48] ss:$12 sps:$4 sm:$0xff]  }
 0x18d   : > { %v17654_v14 = vld [vmem:[%s19863_s12 + $0x1e4] ss:$12 sps:$4 sm:$0xff]   ;;  %v17657_v18 = vld [vmem:[%s19863_s12 + $0x1e0] ss:$12 sps:$4 sm:$0xff]   ;;  %v17663_v26 = vld [vmem:[%s19863_s12 + $0x1c8] ss:$12 sps:$4 sm:$0xff]  }
 0x18e   : > { %12268 = vmatpush1.bf16.msra.mxu0 %v17644_v63  ;;  %v17658_v20 = vld [vmem:[%s19863_s12 + $0x4c] ss:$12 sps:$4 sm:$0xff]   ;;  %v17664_v29 = vld [vmem:[%s19863_s12 + $0x34] ss:$12 sps:$4 sm:$0xff]   ;;  %v17668_v31 = vld [vmem:[%s19863_s12 + $0x30] ss:$12 sps:$4 sm:$0xff]  }
 0x18f   : > { %12309 = vmatpush1.bf16.msra.mxu1 %v17645_v0  ;;  %12269 = vmatprep.subr.bf16.mxu0 %v17646_v1  ;;  %v17660_v22 = vld [vmem:[%s19863_s12 + $0x1cc] ss:$12 sps:$4 sm:$0xff]   ;;  %v17666_v30 = vld [vmem:[%s19863_s12 + $0x1b4] ss:$12 sps:$4 sm:$0xff]   ;;  %v17669_v32 = vld [vmem:[%s19863_s12 + $0x1b0] ss:$12 sps:$4 sm:$0xff]  }
 0x190   : > { %12310 = vmatprep.subr.bf16.mxu1 %v17648_v5  ;;  %v17670_v33 = vld [vmem:[%s19863_s12 + $0x1c] ss:$12 sps:$4 sm:$0xff]   ;;  %v17674_v54 = vld [vmem:[%s19863_s12 + $0x18] ss:$12 sps:$4 sm:$0xff]   ;;  %v17680_v37 = vld [vmem:[%s19863_s12] ss:$12 sps:$4 sm:$0xff]  }
 0x191   : > { %v17672_v34 = vld [vmem:[%s19863_s12 + $0x19c] ss:$12 sps:$4 sm:$0xff]   ;;  %v17675_v35 = vld [vmem:[%s19863_s12 + $0x198] ss:$12 sps:$4 sm:$0xff]   ;;  %v17681_v57 = vld [vmem:[%s19863_s12 + $0x180] ss:$12 sps:$4 sm:$0xff]  }
 0x192   : > { %12270 = vmatpush1.bf16.msra.mxu0 %v17650_v7  ;;  %v17676_v36 = vld [vmem:[%s19863_s12 + $0x4] ss:$12 sps:$4 sm:$0xff]   ;;  %v17682_v38 = vld [vmem:[%s19863_s12 + $0x16c] ss:$12 sps:$4 sm:$0xff]   ;;  %s15330_s15 = sshll.u32 %s19813_s19, 13  ;;  %v20986_v45 = vshrl.u32 %v1628_v42, 7 }
 0x193   : > { %12311 = vmatpush1.bf16.msra.mxu1 %v17651_v10  ;;  %12271 = vmatprep.subr.bf16.mxu0 %v17652_v12  ;;  %v17678_v3 = vld [vmem:[%s19863_s12 + $0x184] ss:$12 sps:$4 sm:$0xff]   ;;  %v17684_v39 = vld [vmem:[%s19863_s12 + $0x2ec] ss:$12 sps:$4 sm:$0xff]   ;;  %v17686_v40 = vld [vmem:[%s19863_s12 + $0x168] ss:$12 sps:$4 sm:$0xff]  }
 0x194   : > { %12312 = vmatprep.subr.bf16.mxu1 %v17654_v14  ;;  %v17687_v4 = vld [vmem:[%s19863_s12 + $0x2e8] ss:$12 sps:$4 sm:$0xff]   ;;  %v19775_v15 = vmov 1983009808   ;;  %s1588_s30 = sshra.s32 %s15330_s15, 7  ;;  %23175 = vst [vmem:[#allocation12_spill] sm:$0xff] %v20986_v45 }
 0x195   : > { %v1626_v41 = vunpack.c.l.s4 %v19775_v15  ;;  %v17688_v27 = vld [vmem:[%s19863_s12 + $0x154] ss:$12 sps:$4 sm:$0xff]   ;;  %v17692_v44 = vld [vmem:[%s19863_s12 + $0x150] ss:$12 sps:$4 sm:$0xff]   ;;  %s15331_s9 = sshll.u32 %s1588_s30, 1  ;;  %vm14878_vm9 = vcmask 1041408  }
 0x196   : > { %12272 = vmatpush1.bf16.msra.mxu0 %v17656_v16  ;;  %v17690_v43 = vld [vmem:[%s19863_s12 + $0x2d4] ss:$12 sps:$4 sm:$0xff]   ;;  %v17693_v8 = vld [vmem:[%s19863_s12 + $0x2d0] ss:$12 sps:$4 sm:$0xff]   ;;  %v17698_v51 = vld [vmem:[%s19863_s12 + $0x138] ss:$12 sps:$4 sm:$0xff]  }
 0x197   : > { %12313 = vmatpush1.bf16.msra.mxu1 %v17657_v18  ;;  %12273 = vmatprep.subr.bf16.mxu0 %v17658_v20  ;;  %v1627_v49 = vunpack.c.0.s8 %v1626_v41  ;;  %v17694_v46 = vld [vmem:[%s19863_s12 + $0x13c] ss:$12 sps:$4 sm:$0xff]   ;;  %v17699_v47 = vld [vmem:[%s19863_s12 + $0x2b8] ss:$12 sps:$4 sm:$0xff]   ;;  %s20998_s16 = scalar_lea.vmem [#allocation2], %s15331_s9  ;;  %vm14879_vm10 = vcmask 1043458  }
 0x198   : > { %12314 = vmatprep.subr.bf16.mxu1 %v17660_v22  ;;  %v17696_v6 = vld [vmem:[%s19863_s12 + $0x2bc] ss:$12 sps:$4 sm:$0xff]   ;;  %v17700_v48 = vld [vmem:[%s19863_s12 + $0x124] ss:$12 sps:$4 sm:$0xff]   ;;  %v17704_v50 = vld [vmem:[%s19863_s12 + $0x120] ss:$12 sps:$4 sm:$0xff]  }
 0x199   : > { %v20994_v19 = vsub.s32 %v1627_v49, %v20986_v45  ;;  %v17702_v28 = vld [vmem:[%s19863_s12 + $0x2a4] ss:$12 sps:$4 sm:$0xff]   ;;  %v17705_v21 = vld [vmem:[%s19863_s12 + $0x2a0] ss:$12 sps:$4 sm:$0xff]   ;;  %v17710_v9 = vld [vmem:[%s19863_s12 + $0x108] ss:$12 sps:$4 sm:$0xff]  }
 0x19a   : > { %12274 = vmatpush1.bf16.msra.mxu0 %v17662_v24  ;;  %v1592_v11 = vld [vmem:[%s20998_s16] sm:$0xff]  ;;  %v17706_v62 = vld [vmem:[%s19863_s12 + $0x10c] ss:$12 sps:$4 sm:$0xff]   ;;  %v17711_v13 = vld [vmem:[%s19863_s12 + $0x288] ss:$12 sps:$4 sm:$0xff]   ;;  %vm14881_vm12 = vcmask 357380  }
 0x19b   : > { %12315 = vmatpush1.bf16.msra.mxu1 %v17663_v26  ;;  %12275 = vmatprep.subr.bf16.mxu0 %v17664_v29  ;;  %23176 = vst [vmem:[#allocation13_spill] sm:$0xff] %v20994_v19  ;;  %v1631_v2 = vrot.slane %v1592_v11, %v20994_v19  ;;  %v1624_v52 = vcombine.high %v1592_v11, %v1592_v11  ;;  %v17708_v53 = vld [vmem:[%s19863_s12 + $0x28c] ss:$12 sps:$4 sm:$0xff]   ;;  %v17712_v23 = vld [vmem:[%s19863_s12 + $0xf4] ss:$12 sps:$4 sm:$0xff]   ;;  %vm14880_vm11 = vmor %vm14879_vm10, %vm14878_vm9  ;;  %p16868_p6 = scmp.ne.s32.totalorder %s19813_s19, 1 }
 0x19c   : > { %12316 = vmatprep.subr.bf16.mxu1 %v17666_v30  ;;  %v17714_v17 = vld [vmem:[%s19863_s12 + $0x274] ss:$12 sps:$4 sm:$0xff]   ;;  %v17716_v60 = vld [vmem:[%s19863_s12 + $0xf0] ss:$12 sps:$4 sm:$0xff]   ;;  %v17722_v1 = vld [vmem:[%s19863_s12 + $0xd8] ss:$12 sps:$4 sm:$0xff]  }
 0x19d   : > { %v1639_v25 = vcombine.high %v1631_v2, %v1631_v2  ;;  %v1638_v55 = vrot.slane %v1624_v52, %v20994_v19  ;;  %v17717_v61 = vld [vmem:[%s19863_s12 + $0x270] ss:$12 sps:$4 sm:$0xff]   ;;  %v17723_v5 = vld [vmem:[%s19863_s12 + $0x258] ss:$12 sps:$4 sm:$0xff]   ;;  %v17728_v12 = vld [vmem:[%s19863_s12 + $0xc0] ss:$12 sps:$4 sm:$0xff]   ;;  %v21029_v20 = vpack.c.bf16 %v1631_v2, %v1631_v2 }
 0x19e   : > { %12276 = vmatpush1.bf16.msra.mxu0 %v17668_v31  ;;  %v17718_v63 = vld [vmem:[%s19863_s12 + $0xdc] ss:$12 sps:$4 sm:$0xff]   ;;  %v17724_v7 = vld [vmem:[%s19863_s12 + $0xc4] ss:$12 sps:$4 sm:$0xff]   ;;  %v17729_v14 = vld [vmem:[%s19863_s12 + $0x240] ss:$12 sps:$4 sm:$0xff]  }
 0x19f   : > { %12317 = vmatpush1.bf16.msra.mxu1 %v17669_v32  ;;  %12277 = vmatprep.subr.bf16.mxu0 %v17670_v33  ;;  %v21008_v56 = vpack.c.bf16 %v1639_v25, %v1639_v25  ;;  %v1640_v58 = vcombine.high %v1638_v55, %v1638_v55  ;;  %v17720_v0 = vld [vmem:[%s19863_s12 + $0x25c] ss:$12 sps:$4 sm:$0xff]   ;;  %v17726_v10 = vld [vmem:[%s19863_s12 + $0x244] ss:$12 sps:$4 sm:$0xff]   ;;  %v17733_v16 = vld [vmem:[%s19863_s12 + $0x3ac] ss:$12 sps:$4 sm:$0xff]   ;;  %v21031_v22 = vpack.c.bf16 %v1638_v55, %v1638_v55 }
 0x1a0   : > { %12318 = vmatprep.subr.bf16.mxu1 %v17672_v34  ;;  %v17736_v18 = vld [vmem:[%s19863_s12 + $0x52c] ss:$12 sps:$4 sm:$0xff]   ;;  %v17731_v24 = vld [vmem:[%s19863_s12 + $0x3a8] ss:$12 sps:$4 sm:$0xff]   ;;  %v17737_v31 = vld [vmem:[%s19863_s12 + $0x390] ss:$12 sps:$4 sm:$0xff]  }
 0x1a1   : > { %v21013_v59 = vpack.c.bf16 %v1640_v58, %v1640_v58  ;;  %12297 = vmatprep.mubr.bf16.mxu0 %v21008_v56  ;;  %v17734_v26 = vld [vmem:[%s19863_s12 + $0x528] ss:$12 sps:$4 sm:$0xff]   ;;  %v17740_v32 = vld [vmem:[%s19863_s12 + $0x510] ss:$12 sps:$4 sm:$0xff]   ;;  %v17773_v52 = vld [vmem:[%s19863_s12 + $0x300] ss:$12 sps:$4 sm:$0xff]  }
 0x1a2   : > { %12278 = vmatpush1.bf16.msra.mxu0 %v17674_v54  ;;  %v17739_v29 = vld [vmem:[%s19863_s12 + $0x394] ss:$12 sps:$4 sm:$0xff]   ;;  %v17745_v33 = vld [vmem:[%s19863_s12 + $0x37c] ss:$12 sps:$4 sm:$0xff]   ;;  %v17743_v54 = vld [vmem:[%s19863_s12 + $0x378] ss:$12 sps:$4 sm:$0xff]  }
 0x1a3   : > { %12319 = vmatpush1.bf16.msra.mxu1 %v17675_v35  ;;  %12279 = vmatprep.subr.bf16.mxu0 %v17676_v36  ;;  %v17742_v30 = vld [vmem:[%s19863_s12 + $0x514] ss:$12 sps:$4 sm:$0xff]   ;;  %v17748_v34 = vld [vmem:[%s19863_s12 + $0x4fc] ss:$12 sps:$4 sm:$0xff]   ;;  %v17746_v35 = vld [vmem:[%s19863_s12 + $0x4f8] ss:$12 sps:$4 sm:$0xff]  }
 0x1a4   : > { %12320 = vmatprep.subr.bf16.mxu1 %v17678_v3  ;;  %12338 = vmatprep.mubr.bf16.mxu1 %v21013_v59  ;;  %v17751_v36 = vld [vmem:[%s19863_s12 + $0x364] ss:$12 sps:$4 sm:$0xff]   ;;  %v17763_v15 = vld [vmem:[%s19863_s12 + $0x334] ss:$12 sps:$4 sm:$0xff]   ;;  %v1593_v49 = vld [vmem:[%s20998_s16 + $0x8] sm:$0xff] }
 0x1a5   : > { %v17754_v3 = vld [vmem:[%s19863_s12 + $0x4e4] ss:$12 sps:$4 sm:$0xff]   ;;  %v17766_v41 = vld [vmem:[%s19863_s12 + $0x4b4] ss:$12 sps:$4 sm:$0xff]   ;;  %v17784_v25 = vld [vmem:[%s19863_s12 + $0x5ec] ss:$12 sps:$4 sm:$0xff]  }
 0x1a6   : > { %12280 = vmatpush1.bf16.msra.mxu0 %v17680_v37  ;;  %v17749_v37 = vld [vmem:[%s19863_s12 + $0x360] ss:$12 sps:$4 sm:$0xff]   ;;  %v17761_v42 = vld [vmem:[%s19863_s12 + $0x330] ss:$12 sps:$4 sm:$0xff]   ;;  %v17779_v55 = vld [vmem:[%s19863_s12 + $0x468] ss:$12 sps:$4 sm:$0xff]  }
 0x1a7   : > { %12321 = vmatpush1.bf16.msra.mxu1 %v17681_v57  ;;  %12281 = vmatprep.subr.bf16.mxu0 %v17682_v38  ;;  %v17752_v57 = vld [vmem:[%s19863_s12 + $0x4e0] ss:$12 sps:$4 sm:$0xff]   ;;  %v17778_v11 = vld [vmem:[%s19863_s12 + $0x484] ss:$12 sps:$4 sm:$0xff]   ;;  %vm23099_vm13 = vmor %vm14881_vm12, %vm14880_vm11 }
 0x1a8   : > { %12322 = vmatprep.subr.bf16.mxu1 %v17684_v39  ;;  %v17757_v38 = vld [vmem:[%s19863_s12 + $0x34c] ss:$12 sps:$4 sm:$0xff]   ;;  %v17787_v58 = vld [vmem:[%s19863_s12 + $0x454] ss:$12 sps:$4 sm:$0xff]  }
 0x1a9   : > { %v17760_v39 = vld [vmem:[%s19863_s12 + $0x4cc] ss:$12 sps:$4 sm:$0xff]  }
 0x1aa   : > { %12282 = vmatpush2.bf16.msra.mxu0 %v17686_v40  ;;  %v17755_v40 = vld [vmem:[%s19863_s12 + $0x348] ss:$12 sps:$4 sm:$0xff]   ;;  %v18619_v45 = vld [vmem:[%s19863_s12 + $0x1ff8] ss:$12 sps:$4 sm:$0xff]  }
 0x1ab   : > { %12323 = vmatpush2.bf16.msra.mxu1 %v17687_v4  ;;  %12283 = vmatprep.subr.bf16.mxu0 %v17688_v27  ;;  %v17758_v4 = vld [vmem:[%s19863_s12 + $0x4c8] ss:$12 sps:$4 sm:$0xff]   ;;  %v17764_v27 = vld [vmem:[%s19863_s12 + $0x4b0] ss:$12 sps:$4 sm:$0xff]  }
 0x1ac   : > { %12324 = vmatprep.subr.bf16.mxu1 %v17690_v43  ;;  %v17769_v43 = vld [vmem:[%s19863_s12 + $0x31c] ss:$12 sps:$4 sm:$0xff]  }
 0x1ae   : > { %12284 = vmatpush2.bf16.msra.mxu0 %v17692_v44  ;;  %v17772_v44 = vld [vmem:[%s19863_s12 + $0x49c] ss:$12 sps:$4 sm:$0xff]  }
 0x1af   : > { %12325 = vmatpush2.bf16.msra.mxu1 %v17693_v8  ;;  %12285 = vmatprep.subr.bf16.mxu0 %v17694_v46  ;;  %v21061_v8 = vrot.slane %v1593_v49, %v20994_v19  ;;  %v1641_v46 = vcombine.high %v1593_v49, %v1593_v49 }
 0x1b0   : > { %12326 = vmatprep.subr.bf16.mxu1 %v17696_v6  ;;  %v17767_v6 = vld [vmem:[%s19863_s12 + $0x318] ss:$12 sps:$4 sm:$0xff]  }
 0x1b2   : > { %12286 = vmatpush2.bf16.msra.mxu0 %v17698_v51  ;;  %v17770_v51 = vld [vmem:[%s19863_s12 + $0x498] ss:$12 sps:$4 sm:$0xff]  }
 0x1b3   : > { %12327 = vmatpush2.bf16.msra.mxu1 %v17699_v47  ;;  %12287 = vmatprep.subr.bf16.mxu0 %v17700_v48  ;;  %v1656_v47 = vcombine.high %v21061_v8, %v21061_v8  ;;  %v21068_v48 = vrot.slane %v1641_v46, %v20994_v19  ;;  %v17837_v46 = vld [vmem:[%s19863_s12 + $0x810] ss:$12 sps:$4 sm:$0xff]  }
 0x1b4   : > { %12328 = vmatprep.subr.bf16.mxu1 %v17702_v28  ;;  %v17775_v28 = vld [vmem:[%s19863_s12 + $0x304] ss:$12 sps:$4 sm:$0xff]  }
 0x1b5   : > { %v1657_v2 = vcombine.high %v21068_v48, %v21068_v48 }
 0x1b6   : > { %12288 = vmatpush2.bf16.msra.mxu0 %v17704_v50  ;;  %v21072_v50 = vpack.c.bf16 %v1656_v47, %v1656_v47 }
 0x1b7   : > { %12329 = vmatpush2.bf16.msra.mxu1 %v17705_v21  ;;  %12289 = vmatprep.subr.bf16.mxu0 %v17706_v62  ;;  %v17776_v21 = vld [vmem:[%s19863_s12 + $0x480] ss:$12 sps:$4 sm:$0xff]   ;;  %v21078_v62 = vpack.c.bf16 %v1657_v2, %v1657_v2  ;;  %v17843_v2 = vld [vmem:[%s19863_s12 + $0x7f8] ss:$12 sps:$4 sm:$0xff]  }
 0x1b8   : > { %12330 = vmatprep.subr.bf16.mxu1 %v17708_v53  ;;  %v17781_v53 = vld [vmem:[%s19863_s12 + $0x46c] ss:$12 sps:$4 sm:$0xff]  }
 0x1ba   : > { %12290 = vmatpush2.bf16.msra.mxu0 %v17710_v9  ;;  %v17782_v9 = vld [vmem:[%s19863_s12 + $0x5e8] ss:$12 sps:$4 sm:$0xff]  }
 0x1bb   : > { %12331 = vmatpush2.bf16.msra.mxu1 %v17711_v13  ;;  %12291 = vmatprep.subr.bf16.mxu0 %v17712_v23  ;;  %v17790_v13 = vld [vmem:[%s19863_s12 + $0x5d4] ss:$12 sps:$4 sm:$0xff]   ;;  %v17785_v23 = vld [vmem:[%s19863_s12 + $0x450] ss:$12 sps:$4 sm:$0xff]  }
 0x1bc   : > { %12332 = vmatprep.subr.bf16.mxu1 %v17714_v17  ;;  %v17788_v17 = vld [vmem:[%s19863_s12 + $0x5d0] ss:$12 sps:$4 sm:$0xff]  }
 0x1be   : > { %12292 = vmatpush2.bf16.msra.mxu0 %v17716_v60  ;;  %v17793_v60 = vld [vmem:[%s19863_s12 + $0x43c] ss:$12 sps:$4 sm:$0xff]  }
 0x1bf   : > { %12333 = vmatpush2.bf16.msra.mxu1 %v17717_v61  ;;  %12293 = vmatprep.subr.bf16.mxu0 %v17718_v63  ;;  %v17796_v61 = vld [vmem:[%s19863_s12 + $0x5bc] ss:$12 sps:$4 sm:$0xff]   ;;  %v17791_v63 = vld [vmem:[%s19863_s12 + $0x438] ss:$12 sps:$4 sm:$0xff]  }
 0x1c0   : > { %12334 = vmatprep.subr.bf16.mxu1 %v17720_v0  ;;  %v17794_v0 = vld [vmem:[%s19863_s12 + $0x5b8] ss:$12 sps:$4 sm:$0xff]  }
 0x1c2   : > { %12294 = vmatpush2.bf16.msra.mxu0 %v17722_v1  ;;  %v17799_v1 = vld [vmem:[%s19863_s12 + $0x424] ss:$12 sps:$4 sm:$0xff]  }
 0x1c3   : > { %12335 = vmatpush2.bf16.msra.mxu1 %v17723_v5  ;;  %12295 = vmatprep.subr.bf16.mxu0 %v17724_v7  ;;  %v17802_v5 = vld [vmem:[%s19863_s12 + $0x5a4] ss:$12 sps:$4 sm:$0xff]   ;;  %v17797_v7 = vld [vmem:[%s19863_s12 + $0x420] ss:$12 sps:$4 sm:$0xff]  }
 0x1c4   : > { %12336 = vmatprep.subr.bf16.mxu1 %v17726_v10  ;;  %v17800_v10 = vld [vmem:[%s19863_s12 + $0x5a0] ss:$12 sps:$4 sm:$0xff]  }
 0x1c6   : > { %12296 = vmatpush2.bf16.msra.mxu0 %v17728_v12  ;;  %v17805_v12 = vld [vmem:[%s19863_s12 + $0x40c] ss:$12 sps:$4 sm:$0xff]  }
 0x1c7   : > { %12337 = vmatpush2.bf16.msra.mxu1 %v17729_v14  ;;  %12347 = vmatprep.subr.bf16.mxu0 %v17733_v16  ;;  %v17808_v14 = vld [vmem:[%s19863_s12 + $0x58c] ss:$12 sps:$4 sm:$0xff]   ;;  %v17803_v16 = vld [vmem:[%s19863_s12 + $0x408] ss:$12 sps:$4 sm:$0xff]  }
 0x1c8   : > { %12388 = vmatprep.subr.bf16.mxu1 %v17736_v18  ;;  %v17806_v18 = vld [vmem:[%s19863_s12 + $0x588] ss:$12 sps:$4 sm:$0xff]  }
 0x1c9   : > { %12298 = vmatmul.mubr.bf16.vlgmr.msra.gmra.mxu0 %v21029_v20 }
 0x1ca   : > { %12339 = vmatmul.mubr.bf16.vlgmr.msra.gmra.mxu1 %v21031_v22  ;;  %12348 = vmatpush1.bf16.msra.mxu0 %v17731_v24  ;;  %v17811_v24 = vld [vmem:[%s19863_s12 + $0x3f4] ss:$12 sps:$4 sm:$0xff]  }
 0x1cb   : > { %12389 = vmatpush1.bf16.msra.mxu1 %v17734_v26  ;;  %12349 = vmatprep.subr.bf16.mxu0 %v17739_v29  ;;  %v17814_v26 = vld [vmem:[%s19863_s12 + $0x574] ss:$12 sps:$4 sm:$0xff]   ;;  %v17809_v29 = vld [vmem:[%s19863_s12 + $0x3f0] ss:$12 sps:$4 sm:$0xff]  }
 0x1cc   : > { %12390 = vmatprep.subr.bf16.mxu1 %v17742_v30  ;;  %12379 = vmatprep.mubr.bf16.mxu0 %v21072_v50  ;;  %v17812_v30 = vld [vmem:[%s19863_s12 + $0x570] ss:$12 sps:$4 sm:$0xff]  }
 0x1cd   : > { %12420 = vmatprep.mubr.bf16.mxu1 %v21078_v62 }
 0x1ce   : > { %12350 = vmatpush1.bf16.msra.mxu0 %v17737_v31  ;;  %v17817_v31 = vld [vmem:[%s19863_s12 + $0x3dc] ss:$12 sps:$4 sm:$0xff]  }
 0x1cf   : > { %12391 = vmatpush1.bf16.msra.mxu1 %v17740_v32  ;;  %12351 = vmatprep.subr.bf16.mxu0 %v17745_v33  ;;  %v17820_v32 = vld [vmem:[%s19863_s12 + $0x55c] ss:$12 sps:$4 sm:$0xff]   ;;  %v17815_v33 = vld [vmem:[%s19863_s12 + $0x3d8] ss:$12 sps:$4 sm:$0xff]  }
 0x1d0   : > { %12392 = vmatprep.subr.bf16.mxu1 %v17748_v34  ;;  %v17818_v34 = vld [vmem:[%s19863_s12 + $0x558] ss:$12 sps:$4 sm:$0xff]  }
 0x1d2   : > { %12352 = vmatpush1.bf16.msra.mxu0 %v17743_v54  ;;  %v17823_v54 = vld [vmem:[%s19863_s12 + $0x3c4] ss:$12 sps:$4 sm:$0xff]  }
 0x1d3   : > { %12393 = vmatpush1.bf16.msra.mxu1 %v17746_v35  ;;  %12353 = vmatprep.subr.bf16.mxu0 %v17751_v36  ;;  %v17826_v35 = vld [vmem:[%s19863_s12 + $0x544] ss:$12 sps:$4 sm:$0xff]   ;;  %v17821_v36 = vld [vmem:[%s19863_s12 + $0x3c0] ss:$12 sps:$4 sm:$0xff]  }
 0x1d4   : > { %12394 = vmatprep.subr.bf16.mxu1 %v17754_v3  ;;  %v17824_v3 = vld [vmem:[%s19863_s12 + $0x540] ss:$12 sps:$4 sm:$0xff]  }
 0x1d6   : > { %12354 = vmatpush1.bf16.msra.mxu0 %v17749_v37  ;;  %v17830_v37 = vld [vmem:[%s19863_s12 + $0x6ac] ss:$12 sps:$4 sm:$0xff]  }
 0x1d7   : > { %12395 = vmatpush1.bf16.msra.mxu1 %v17752_v57  ;;  %12355 = vmatprep.subr.bf16.mxu0 %v17757_v38  ;;  %v17833_v57 = vld [vmem:[%s19863_s12 + $0x82c] ss:$12 sps:$4 sm:$0xff]   ;;  %v21118_v38 = vpack.c.bf16 %v21061_v8, %v21061_v8 }
 0x1d8   : > { %12396 = vmatprep.subr.bf16.mxu1 %v17760_v39  ;;  %v21122_v39 = vpack.c.bf16 %v21068_v48, %v21068_v48 }
 0x1da   : > { %12356 = vmatpush1.bf16.msra.mxu0 %v17755_v40  ;;  %v17828_v40 = vld [vmem:[%s19863_s12 + $0x6a8] ss:$12 sps:$4 sm:$0xff]  }
 0x1db   : > { %12397 = vmatpush1.bf16.msra.mxu1 %v17758_v4  ;;  %12357 = vmatprep.subr.bf16.mxu0 %v17763_v15  ;;  %v17831_v4 = vld [vmem:[%s19863_s12 + $0x828] ss:$12 sps:$4 sm:$0xff]  }
 0x1dc   : > { %12398 = vmatprep.subr.bf16.mxu1 %v17766_v41  ;;  %v17836_v15 = vld [vmem:[%s19863_s12 + $0x694] ss:$12 sps:$4 sm:$0xff]  }
 0x1dd   : > { %v1594_v41 = vld [vmem:[%s20998_s16 + $0x10] sm:$0xff] }
 0x1de   : > { %12358 = vmatpush1.bf16.msra.mxu0 %v17761_v42  ;;  %v17839_v42 = vld [vmem:[%s19863_s12 + $0x814] ss:$12 sps:$4 sm:$0xff]  }
 0x1df   : > { %12399 = vmatpush1.bf16.msra.mxu1 %v17764_v27  ;;  %12359 = vmatprep.subr.bf16.mxu0 %v17769_v43  ;;  %v21130_v27 = vrot.slane %v1594_v41, %v20994_v19  ;;  %v1658_v43 = vcombine.high %v1594_v41, %v1594_v41  ;;  %v17903_v41 = vld [vmem:[%s19863_s12 + $0x888] ss:$12 sps:$4 sm:$0xff]  }
 0x1e0   : > { %12400 = vmatprep.subr.bf16.mxu1 %v17772_v44  ;;  %v17834_v44 = vld [vmem:[%s19863_s12 + $0x690] ss:$12 sps:$4 sm:$0xff]  }
 0x1e1   : > { %v1673_v49 = vcombine.high %v21130_v27, %v21130_v27  ;;  %v21138_v8 = vrot.slane %v1658_v43, %v20994_v19  ;;  %v17911_v43 = vld [vmem:[%s19863_s12 + $0x874] ss:$12 sps:$4 sm:$0xff]  }
 0x1e2   : > { %12360 = vmatpush1.bf16.msra.mxu0 %v17767_v6  ;;  %v17842_v6 = vld [vmem:[%s19863_s12 + $0x67c] ss:$12 sps:$4 sm:$0xff]  }
 0x1e3   : > { %12401 = vmatpush1.bf16.msra.mxu1 %v17770_v51  ;;  %12361 = vmatprep.subr.bf16.mxu0 %v17775_v28  ;;  %v17845_v51 = vld [vmem:[%s19863_s12 + $0x7fc] ss:$12 sps:$4 sm:$0xff]   ;;  %v21143_v47 = vpack.c.bf16 %v1673_v49, %v1673_v49  ;;  %v1674_v48 = vcombine.high %v21138_v8, %v21138_v8  ;;  %v17840_v28 = vld [vmem:[%s19863_s12 + $0x678] ss:$12 sps:$4 sm:$0xff]  }
 0x1e4   : > { %12402 = vmatprep.subr.bf16.mxu1 %v17778_v11  ;;  %v17909_v49 = vld [vmem:[%s19863_s12 + $0x870] ss:$12 sps:$4 sm:$0xff]  }
 0x1e5   : > { %v21149_v11 = vpack.c.bf16 %v1674_v48, %v1674_v48 }
 0x1e6   : > { %12362 = vmatpush1.bf16.msra.mxu0 %v17773_v52  ;;  %v17848_v52 = vld [vmem:[%s19863_s12 + $0x664] ss:$12 sps:$4 sm:$0xff]  }
 0x1e7   : > { %12403 = vmatpush1.bf16.msra.mxu1 %v17776_v21  ;;  %12363 = vmatprep.subr.bf16.mxu0 %v17781_v53  ;;  %v17851_v21 = vld [vmem:[%s19863_s12 + $0x7e4] ss:$12 sps:$4 sm:$0xff]   ;;  %v17846_v53 = vld [vmem:[%s19863_s12 + $0x660] ss:$12 sps:$4 sm:$0xff]  }
 0x1e8   : > { %12404 = vmatprep.subr.bf16.mxu1 %v17784_v25  ;;  %v17849_v25 = vld [vmem:[%s19863_s12 + $0x7e0] ss:$12 sps:$4 sm:$0xff]  }
 0x1ea   : > { %12364 = vmatpush2.bf16.msra.mxu0 %v17779_v55  ;;  %v17854_v55 = vld [vmem:[%s19863_s12 + $0x64c] ss:$12 sps:$4 sm:$0xff]  }
 0x1eb   : > { %12405 = vmatpush2.bf16.msra.mxu1 %v17782_v9  ;;  %12365 = vmatprep.subr.bf16.mxu0 %v17787_v58  ;;  %v17857_v9 = vld [vmem:[%s19863_s12 + $0x7cc] ss:$12 sps:$4 sm:$0xff]   ;;  %v17852_v58 = vld [vmem:[%s19863_s12 + $0x648] ss:$12 sps:$4 sm:$0xff]  }
 0x1ec   : > { %12406 = vmatprep.subr.bf16.mxu1 %v17790_v13  ;;  %v17855_v13 = vld [vmem:[%s19863_s12 + $0x7c8] ss:$12 sps:$4 sm:$0xff]  }
 0x1ee   : > { %12366 = vmatpush2.bf16.msra.mxu0 %v17785_v23  ;;  %v17860_v23 = vld [vmem:[%s19863_s12 + $0x634] ss:$12 sps:$4 sm:$0xff]  }
 0x1ef   : > { %12407 = vmatpush2.bf16.msra.mxu1 %v17788_v17  ;;  %12367 = vmatprep.subr.bf16.mxu0 %v17793_v60  ;;  %v17863_v17 = vld [vmem:[%s19863_s12 + $0x7b4] ss:$12 sps:$4 sm:$0xff]   ;;  %v17858_v60 = vld [vmem:[%s19863_s12 + $0x630] ss:$12 sps:$4 sm:$0xff]  }
 0x1f0   : > { %12408 = vmatprep.subr.bf16.mxu1 %v17796_v61  ;;  %v17861_v61 = vld [vmem:[%s19863_s12 + $0x7b0] ss:$12 sps:$4 sm:$0xff]  }
 0x1f2   : > { %12368 = vmatpush2.bf16.msra.mxu0 %v17791_v63  ;;  %v17866_v63 = vld [vmem:[%s19863_s12 + $0x61c] ss:$12 sps:$4 sm:$0xff]  }
 0x1f3   : > { %12409 = vmatpush2.bf16.msra.mxu1 %v17794_v0  ;;  %12369 = vmatprep.subr.bf16.mxu0 %v17799_v1  ;;  %v17869_v0 = vld [vmem:[%s19863_s12 + $0x79c] ss:$12 sps:$4 sm:$0xff]   ;;  %v17864_v1 = vld [vmem:[%s19863_s12 + $0x618] ss:$12 sps:$4 sm:$0xff]  }
 0x1f4   : > { %12410 = vmatprep.subr.bf16.mxu1 %v17802_v5  ;;  %v17867_v5 = vld [vmem:[%s19863_s12 + $0x798] ss:$12 sps:$4 sm:$0xff]  }
 0x1f6   : > { %12370 = vmatpush2.bf16.msra.mxu0 %v17797_v7  ;;  %v17872_v7 = vld [vmem:[%s19863_s12 + $0x604] ss:$12 sps:$4 sm:$0xff]  }
 0x1f7   : > { %12411 = vmatpush2.bf16.msra.mxu1 %v17800_v10  ;;  %12371 = vmatprep.subr.bf16.mxu0 %v17805_v12  ;;  %v17875_v10 = vld [vmem:[%s19863_s12 + $0x784] ss:$12 sps:$4 sm:$0xff]   ;;  %v17870_v12 = vld [vmem:[%s19863_s12 + $0x600] ss:$12 sps:$4 sm:$0xff]  }
 0x1f8   : > { %12412 = vmatprep.subr.bf16.mxu1 %v17808_v14  ;;  %v17873_v14 = vld [vmem:[%s19863_s12 + $0x780] ss:$12 sps:$4 sm:$0xff]  }
 0x1fa   : > { %12372 = vmatpush2.bf16.msra.mxu0 %v17803_v16  ;;  %v17878_v16 = vld [vmem:[%s19863_s12 + $0x76c] ss:$12 sps:$4 sm:$0xff]  }
 0x1fb   : > { %12413 = vmatpush2.bf16.msra.mxu1 %v17806_v18  ;;  %12373 = vmatprep.subr.bf16.mxu0 %v17811_v24  ;;  %v17881_v18 = vld [vmem:[%s19863_s12 + $0x8ec] ss:$12 sps:$4 sm:$0xff]   ;;  %v17876_v24 = vld [vmem:[%s19863_s12 + $0x768] ss:$12 sps:$4 sm:$0xff]  }
 0x1fc   : > { %12414 = vmatprep.subr.bf16.mxu1 %v17814_v26  ;;  %v17879_v26 = vld [vmem:[%s19863_s12 + $0x8e8] ss:$12 sps:$4 sm:$0xff]  }
 0x1fe   : > { %12374 = vmatpush2.bf16.msra.mxu0 %v17809_v29  ;;  %v17884_v29 = vld [vmem:[%s19863_s12 + $0x754] ss:$12 sps:$4 sm:$0xff]  }
 0x1ff   : > { %12415 = vmatpush2.bf16.msra.mxu1 %v17812_v30  ;;  %12375 = vmatprep.subr.bf16.mxu0 %v17817_v31  ;;  %v17887_v30 = vld [vmem:[%s19863_s12 + $0x8d4] ss:$12 sps:$4 sm:$0xff]   ;;  %v17882_v31 = vld [vmem:[%s19863_s12 + $0x750] ss:$12 sps:$4 sm:$0xff]  }
 0x200   : > { %12416 = vmatprep.subr.bf16.mxu1 %v17820_v32  ;;  %v17885_v32 = vld [vmem:[%s19863_s12 + $0x8d0] ss:$12 sps:$4 sm:$0xff]  }
 0x202   : > { %12376 = vmatpush2.bf16.msra.mxu0 %v17815_v33  ;;  %v17890_v33 = vld [vmem:[%s19863_s12 + $0x73c] ss:$12 sps:$4 sm:$0xff]  }
 0x203   : > { %12417 = vmatpush2.bf16.msra.mxu1 %v17818_v34  ;;  %12377 = vmatprep.subr.bf16.mxu0 %v17823_v54  ;;  %v17893_v34 = vld [vmem:[%s19863_s12 + $0x8bc] ss:$12 sps:$4 sm:$0xff]   ;;  %v17888_v54 = vld [vmem:[%s19863_s12 + $0x738] ss:$12 sps:$4 sm:$0xff]  }
 0x204   : > { %12418 = vmatprep.subr.bf16.mxu1 %v17826_v35  ;;  %v17891_v35 = vld [vmem:[%s19863_s12 + $0x8b8] ss:$12 sps:$4 sm:$0xff]  }
 0x206   : > { %12378 = vmatpush2.bf16.msra.mxu0 %v17821_v36  ;;  %v17896_v36 = vld [vmem:[%s19863_s12 + $0x724] ss:$12 sps:$4 sm:$0xff]  }
 0x207   : > { %12419 = vmatpush2.bf16.msra.mxu1 %v17824_v3  ;;  %12429 = vmatprep.subr.bf16.mxu0 %v17830_v37  ;;  %v17899_v3 = vld [vmem:[%s19863_s12 + $0x8a4] ss:$12 sps:$4 sm:$0xff]   ;;  %v17894_v37 = vld [vmem:[%s19863_s12 + $0x720] ss:$12 sps:$4 sm:$0xff]  }
 0x208   : > { %12470 = vmatprep.subr.bf16.mxu1 %v17833_v57  ;;  %v17897_v57 = vld [vmem:[%s19863_s12 + $0x8a0] ss:$12 sps:$4 sm:$0xff]  }
 0x209   : > { %12380 = vmatmul.mubr.bf16.vlgmr.msra.gmra.mxu0 %v21118_v38 }
 0x20a   : > { %12421 = vmatmul.mubr.bf16.vlgmr.msra.gmra.mxu1 %v21122_v39  ;;  %12430 = vmatpush1.bf16.msra.mxu0 %v17828_v40  ;;  %v17902_v40 = vld [vmem:[%s19863_s12 + $0x70c] ss:$12 sps:$4 sm:$0xff]  }
 0x20b   : > { %12471 = vmatpush1.bf16.msra.mxu1 %v17831_v4  ;;  %12431 = vmatprep.subr.bf16.mxu0 %v17836_v15  ;;  %v17905_v4 = vld [vmem:[%s19863_s12 + $0x88c] ss:$12 sps:$4 sm:$0xff]   ;;  %v17900_v15 = vld [vmem:[%s19863_s12 + $0x708] ss:$12 sps:$4 sm:$0xff]  }
 0x20c   : > { %12472 = vmatprep.subr.bf16.mxu1 %v17839_v42  ;;  %12461 = vmatprep.mubr.bf16.mxu0 %v21143_v47  ;;  %v17908_v42 = vld [vmem:[%s19863_s12 + $0x6f4] ss:$12 sps:$4 sm:$0xff]  }
 0x20d   : > { %12502 = vmatprep.mubr.bf16.mxu1 %v21149_v11 }
 0x20e   : > { %12432 = vmatpush1.bf16.msra.mxu0 %v17834_v44  ;;  %v17906_v44 = vld [vmem:[%s19863_s12 + $0x6f0] ss:$12 sps:$4 sm:$0xff]  }
 0x20f   : > { %12473 = vmatpush1.bf16.msra.mxu1 %v17837_v46  ;;  %12433 = vmatprep.subr.bf16.mxu0 %v17842_v6  ;;  %v1595_v46 = vld [vmem:[%s20998_s16 + $0x18] sm:$0xff] }
 0x210   : > { %12474 = vmatprep.subr.bf16.mxu1 %v17845_v51  ;;  %v17914_v6 = vld [vmem:[%s19863_s12 + $0x6dc] ss:$12 sps:$4 sm:$0xff]   ;;  %v1675_v48 = vcombine.high %v1595_v46, %v1595_v46 }
 0x211   : > { %v17917_v51 = vld [vmem:[%s19863_s12 + $0x85c] ss:$12 sps:$4 sm:$0xff]  }
 0x212   : > { %12434 = vmatpush1.bf16.msra.mxu0 %v17840_v28  ;;  %v17912_v28 = vld [vmem:[%s19863_s12 + $0x6d8] ss:$12 sps:$4 sm:$0xff]  }
 0x213   : > { %12475 = vmatpush1.bf16.msra.mxu1 %v17843_v2  ;;  %12435 = vmatprep.subr.bf16.mxu0 %v17848_v52  ;;  %v17915_v2 = vld [vmem:[%s19863_s12 + $0x858] ss:$12 sps:$4 sm:$0xff]  }
 0x214   : > { %12476 = vmatprep.subr.bf16.mxu1 %v17851_v21  ;;  %v17920_v52 = vld [vmem:[%s19863_s12 + $0x6c4] ss:$12 sps:$4 sm:$0xff]  }
 0x215   : > { %v17923_v21 = vld [vmem:[%s19863_s12 + $0x844] ss:$12 sps:$4 sm:$0xff]  }
 0x216   : > { %12436 = vmatpush1.bf16.msra.mxu0 %v17846_v53  ;;  %v21205_v53 = vrot.slane %v1595_v46, %v20994_v19  ;;  %v17973_v46 = vld [vmem:[%s19863_s12 + $0xa68] ss:$12 sps:$4 sm:$0xff]  }
 0x217   : > { %12477 = vmatpush1.bf16.msra.mxu1 %v17849_v25  ;;  %12437 = vmatprep.subr.bf16.mxu0 %v17854_v55  ;;  %v21208_v25 = vrot.slane %v1675_v48, %v20994_v19  ;;  %v17918_v55 = vld [vmem:[%s19863_s12 + $0x6c0] ss:$12 sps:$4 sm:$0xff]  }
 0x218   : > { %12478 = vmatprep.subr.bf16.mxu1 %v17857_v9  ;;  %v17921_v9 = vld [vmem:[%s19863_s12 + $0x840] ss:$12 sps:$4 sm:$0xff]  }
 0x219   : > { %v17984_v48 = vld [vmem:[%s19863_s12 + $0xbd4] ss:$12 sps:$4 sm:$0xff]  }
 0x21a   : > { %12438 = vmatpush1.bf16.msra.mxu0 %v17852_v58  ;;  %v17927_v58 = vld [vmem:[%s19863_s12 + $0x9ac] ss:$12 sps:$4 sm:$0xff]  }
 0x21b   : > { %12479 = vmatpush1.bf16.msra.mxu1 %v17855_v13  ;;  %12439 = vmatprep.subr.bf16.mxu0 %v17860_v23  ;;  %v17930_v13 = vld [vmem:[%s19863_s12 + $0xb2c] ss:$12 sps:$4 sm:$0xff]   ;;  %v1690_v23 = vcombine.high %v21205_v53, %v21205_v53 }
 0x21c   : > { %12480 = vmatprep.subr.bf16.mxu1 %v17863_v17  ;;  %v1691_v17 = vcombine.high %v21208_v25, %v21208_v25 }
 0x21e   : > { %12440 = vmatpush1.bf16.msra.mxu0 %v17858_v60  ;;  %v21220_v60 = vpack.c.bf16 %v21130_v27, %v21130_v27  ;;  %v21232_v27 = vpack.c.bf16 %v1691_v17, %v1691_v17  ;;  %v17994_v17 = vld [vmem:[%s19863_s12 + $0xba0] ss:$12 sps:$4 sm:$0xff]  }
 0x21f   : > { %12481 = vmatpush1.bf16.msra.mxu1 %v17861_v61  ;;  %12441 = vmatprep.subr.bf16.mxu0 %v17866_v63  ;;  %v21224_v61 = vpack.c.bf16 %v21138_v8, %v21138_v8  ;;  %v17925_v63 = vld [vmem:[%s19863_s12 + $0x9a8] ss:$12 sps:$4 sm:$0xff]   ;;  %v17931_v8 = vld [vmem:[%s19863_s12 + $0x990] ss:$12 sps:$4 sm:$0xff]  }
 0x220   : > { %12482 = vmatprep.subr.bf16.mxu1 %v17869_v0  ;;  %v17928_v0 = vld [vmem:[%s19863_s12 + $0xb28] ss:$12 sps:$4 sm:$0xff]  }
 0x222   : > { %12442 = vmatpush1.bf16.msra.mxu0 %v17864_v1  ;;  %v17933_v1 = vld [vmem:[%s19863_s12 + $0x994] ss:$12 sps:$4 sm:$0xff]  }
 0x223   : > { %12483 = vmatpush1.bf16.msra.mxu1 %v17867_v5  ;;  %12443 = vmatprep.subr.bf16.mxu0 %v17872_v7  ;;  %v17936_v5 = vld [vmem:[%s19863_s12 + $0xb14] ss:$12 sps:$4 sm:$0xff]   ;;  %v21230_v7 = vpack.c.bf16 %v1690_v23, %v1690_v23 }
 0x224   : > { %12484 = vmatprep.subr.bf16.mxu1 %v17875_v10  ;;  %v17934_v10 = vld [vmem:[%s19863_s12 + $0xb10] ss:$12 sps:$4 sm:$0xff]   ;;  %v17991_v23 = vld [vmem:[%s19863_s12 + $0xa20] ss:$12 sps:$4 sm:$0xff]  }
 0x226   : > { %12444 = vmatpush1.bf16.msra.mxu0 %v17870_v12  ;;  %v17939_v12 = vld [vmem:[%s19863_s12 + $0x97c] ss:$12 sps:$4 sm:$0xff]  }
 0x227   : > { %12485 = vmatpush1.bf16.msra.mxu1 %v17873_v14  ;;  %12445 = vmatprep.subr.bf16.mxu0 %v17878_v16  ;;  %v17942_v14 = vld [vmem:[%s19863_s12 + $0xafc] ss:$12 sps:$4 sm:$0xff]   ;;  %v17937_v16 = vld [vmem:[%s19863_s12 + $0x978] ss:$12 sps:$4 sm:$0xff]  }
 0x228   : > { %12486 = vmatprep.subr.bf16.mxu1 %v17881_v18  ;;  %v17940_v18 = vld [vmem:[%s19863_s12 + $0xaf8] ss:$12 sps:$4 sm:$0xff]  }
 0x22a   : > { %12446 = vmatpush2.bf16.msra.mxu0 %v17876_v24  ;;  %v17945_v24 = vld [vmem:[%s19863_s12 + $0x964] ss:$12 sps:$4 sm:$0xff]  }
 0x22b   : > { %12487 = vmatpush2.bf16.msra.mxu1 %v17879_v26  ;;  %12447 = vmatprep.subr.bf16.mxu0 %v17884_v29  ;;  %v17948_v26 = vld [vmem:[%s19863_s12 + $0xae4] ss:$12 sps:$4 sm:$0xff]   ;;  %v17943_v29 = vld [vmem:[%s19863_s12 + $0x960] ss:$12 sps:$4 sm:$0xff]  }
 0x22c   : > { %12488 = vmatprep.subr.bf16.mxu1 %v17887_v30  ;;  %v17946_v30 = vld [vmem:[%s19863_s12 + $0xae0] ss:$12 sps:$4 sm:$0xff]  }
 0x22e   : > { %12448 = vmatpush2.bf16.msra.mxu0 %v17882_v31  ;;  %v17951_v31 = vld [vmem:[%s19863_s12 + $0x94c] ss:$12 sps:$4 sm:$0xff]  }
 0x22f   : > { %12489 = vmatpush2.bf16.msra.mxu1 %v17885_v32  ;;  %12449 = vmatprep.subr.bf16.mxu0 %v17890_v33  ;;  %v17954_v32 = vld [vmem:[%s19863_s12 + $0xacc] ss:$12 sps:$4 sm:$0xff]   ;;  %v17949_v33 = vld [vmem:[%s19863_s12 + $0x948] ss:$12 sps:$4 sm:$0xff]  }
 0x230   : > { %12490 = vmatprep.subr.bf16.mxu1 %v17893_v34  ;;  %v17952_v34 = vld [vmem:[%s19863_s12 + $0xac8] ss:$12 sps:$4 sm:$0xff]  }
 0x232   : > { %12450 = vmatpush2.bf16.msra.mxu0 %v17888_v54  ;;  %v17957_v54 = vld [vmem:[%s19863_s12 + $0x934] ss:$12 sps:$4 sm:$0xff]  }
 0x233   : > { %12491 = vmatpush2.bf16.msra.mxu1 %v17891_v35  ;;  %12451 = vmatprep.subr.bf16.mxu0 %v17896_v36  ;;  %v17960_v35 = vld [vmem:[%s19863_s12 + $0xab4] ss:$12 sps:$4 sm:$0xff]   ;;  %v17955_v36 = vld [vmem:[%s19863_s12 + $0x930] ss:$12 sps:$4 sm:$0xff]  }
 0x234   : > { %12492 = vmatprep.subr.bf16.mxu1 %v17899_v3  ;;  %v17958_v3 = vld [vmem:[%s19863_s12 + $0xab0] ss:$12 sps:$4 sm:$0xff]  }
 0x236   : > { %12452 = vmatpush2.bf16.msra.mxu0 %v17894_v37  ;;  %v17963_v37 = vld [vmem:[%s19863_s12 + $0x91c] ss:$12 sps:$4 sm:$0xff]  }
 0x237   : > { %12493 = vmatpush2.bf16.msra.mxu1 %v17897_v57  ;;  %12453 = vmatprep.subr.bf16.mxu0 %v17902_v40  ;;  %v17966_v57 = vld [vmem:[%s19863_s12 + $0xa9c] ss:$12 sps:$4 sm:$0xff]   ;;  %v17961_v40 = vld [vmem:[%s19863_s12 + $0x918] ss:$12 sps:$4 sm:$0xff]  }
 0x238   : > { %12494 = vmatprep.subr.bf16.mxu1 %v17905_v4  ;;  %v17964_v4 = vld [vmem:[%s19863_s12 + $0xa98] ss:$12 sps:$4 sm:$0xff]  }
 0x23a   : > { %12454 = vmatpush2.bf16.msra.mxu0 %v17900_v15  ;;  %v17969_v15 = vld [vmem:[%s19863_s12 + $0x904] ss:$12 sps:$4 sm:$0xff]  }
 0x23b   : > { %12495 = vmatpush2.bf16.msra.mxu1 %v17903_v41  ;;  %12455 = vmatprep.subr.bf16.mxu0 %v17908_v42  ;;  %v17972_v41 = vld [vmem:[%s19863_s12 + $0xa84] ss:$12 sps:$4 sm:$0xff]   ;;  %v17967_v42 = vld [vmem:[%s19863_s12 + $0x900] ss:$12 sps:$4 sm:$0xff]  }
 0x23c   : > { %12496 = vmatprep.subr.bf16.mxu1 %v17911_v43  ;;  %v17970_v43 = vld [vmem:[%s19863_s12 + $0xa80] ss:$12 sps:$4 sm:$0xff]  }
 0x23e   : > { %12456 = vmatpush2.bf16.msra.mxu0 %v17906_v44  ;;  %v17975_v44 = vld [vmem:[%s19863_s12 + $0xa6c] ss:$12 sps:$4 sm:$0xff]  }
 0x23f   : > { %12497 = vmatpush2.bf16.msra.mxu1 %v17909_v49  ;;  %12457 = vmatprep.subr.bf16.mxu0 %v17914_v6  ;;  %v17978_v49 = vld [vmem:[%s19863_s12 + $0xbec] ss:$12 sps:$4 sm:$0xff]   ;;  %v17976_v6 = vld [vmem:[%s19863_s12 + $0xbe8] ss:$12 sps:$4 sm:$0xff]  }
 0x240   : > { %12498 = vmatprep.subr.bf16.mxu1 %v17917_v51  ;;  %v17981_v51 = vld [vmem:[%s19863_s12 + $0xa54] ss:$12 sps:$4 sm:$0xff]  }
 0x242   : > { %12458 = vmatpush2.bf16.msra.mxu0 %v17912_v28  ;;  %v17979_v28 = vld [vmem:[%s19863_s12 + $0xa50] ss:$12 sps:$4 sm:$0xff]  }
 0x243   : > { %12499 = vmatpush2.bf16.msra.mxu1 %v17915_v2  ;;  %12459 = vmatprep.subr.bf16.mxu0 %v17920_v52  ;;  %v17982_v2 = vld [vmem:[%s19863_s12 + $0xbd0] ss:$12 sps:$4 sm:$0xff]  }
 0x244   : > { %12500 = vmatprep.subr.bf16.mxu1 %v17923_v21  ;;  %v17987_v52 = vld [vmem:[%s19863_s12 + $0xa3c] ss:$12 sps:$4 sm:$0xff]  }
 0x245   : > { %v17990_v21 = vld [vmem:[%s19863_s12 + $0xbbc] ss:$12 sps:$4 sm:$0xff]  }
 0x246   : > { %12460 = vmatpush2.bf16.msra.mxu0 %v17918_v55  ;;  %v17985_v55 = vld [vmem:[%s19863_s12 + $0xa38] ss:$12 sps:$4 sm:$0xff]  }
 0x247   : > { %12501 = vmatpush2.bf16.msra.mxu1 %v17921_v9  ;;  %12511 = vmatprep.subr.bf16.mxu0 %v17927_v58  ;;  %v17988_v9 = vld [vmem:[%s19863_s12 + $0xbb8] ss:$12 sps:$4 sm:$0xff]  }
 0x248   : > { %12552 = vmatprep.subr.bf16.mxu1 %v17930_v13  ;;  %v17993_v58 = vld [vmem:[%s19863_s12 + $0xa24] ss:$12 sps:$4 sm:$0xff]  }
 0x249   : > { %12462 = vmatmul.mubr.bf16.vlgmr.msra.gmra.mxu0 %v21220_v60  ;;  %v17996_v13 = vld [vmem:[%s19863_s12 + $0xba4] ss:$12 sps:$4 sm:$0xff]  }
 0x24a   : > { %12503 = vmatmul.mubr.bf16.vlgmr.msra.gmra.mxu1 %v21224_v61  ;;  %12512 = vmatpush1.bf16.msra.mxu0 %v17925_v63  ;;  %v17999_v63 = vld [vmem:[%s19863_s12 + $0xa0c] ss:$12 sps:$4 sm:$0xff]  }
 0x24b   : > { %12553 = vmatpush1.bf16.msra.mxu1 %v17928_v0  ;;  %12513 = vmatprep.subr.bf16.mxu0 %v17933_v1  ;;  %v18002_v0 = vld [vmem:[%s19863_s12 + $0xb8c] ss:$12 sps:$4 sm:$0xff]   ;;  %v17997_v1 = vld [vmem:[%s19863_s12 + $0xa08] ss:$12 sps:$4 sm:$0xff]  }
 0x24c   : > { %12554 = vmatprep.subr.bf16.mxu1 %v17936_v5  ;;  %12543 = vmatprep.mubr.bf16.mxu0 %v21230_v7  ;;  %v18000_v5 = vld [vmem:[%s19863_s12 + $0xb88] ss:$12 sps:$4 sm:$0xff]  }
 0x24d   : > { %12584 = vmatprep.mubr.bf16.mxu1 %v21232_v27 }
 0x24e   : > { %12514 = vmatpush1.bf16.msra.mxu0 %v17931_v8  ;;  %v18005_v8 = vld [vmem:[%s19863_s12 + $0x9f4] ss:$12 sps:$4 sm:$0xff]  }
 0x24f   : > { %12555 = vmatpush1.bf16.msra.mxu1 %v17934_v10  ;;  %12515 = vmatprep.subr.bf16.mxu0 %v17939_v12  ;;  %v18008_v10 = vld [vmem:[%s19863_s12 + $0xb74] ss:$12 sps:$4 sm:$0xff]   ;;  %v18003_v12 = vld [vmem:[%s19863_s12 + $0x9f0] ss:$12 sps:$4 sm:$0xff]  }
 0x250   : > { %12556 = vmatprep.subr.bf16.mxu1 %v17942_v14  ;;  %v1596_v14 = vld [vmem:[%s20998_s16 + $0x20] sm:$0xff] }
 0x252   : > { %12516 = vmatpush1.bf16.msra.mxu0 %v17937_v16  ;;  %v18006_v16 = vld [vmem:[%s19863_s12 + $0xb70] ss:$12 sps:$4 sm:$0xff]  }
 0x253   : > { %12557 = vmatpush1.bf16.msra.mxu1 %v17940_v18  ;;  %12517 = vmatprep.subr.bf16.mxu0 %v17945_v24  ;;  %v18011_v18 = vld [vmem:[%s19863_s12 + $0x9dc] ss:$12 sps:$4 sm:$0xff]  }
 0x254   : > { %12558 = vmatprep.subr.bf16.mxu1 %v17948_v26  ;;  %v18014_v24 = vld [vmem:[%s19863_s12 + $0xb5c] ss:$12 sps:$4 sm:$0xff]   ;;  %v1692_v26 = vcombine.high %v1596_v14, %v1596_v14 }
 0x256   : > { %12518 = vmatpush1.bf16.msra.mxu0 %v17943_v29  ;;  %v18009_v29 = vld [vmem:[%s19863_s12 + $0x9d8] ss:$12 sps:$4 sm:$0xff]  }
 0x257   : > { %12559 = vmatpush1.bf16.msra.mxu1 %v17946_v30  ;;  %12519 = vmatprep.subr.bf16.mxu0 %v17951_v31  ;;  %v18012_v30 = vld [vmem:[%s19863_s12 + $0xb58] ss:$12 sps:$4 sm:$0xff]  }
 0x258   : > { %12560 = vmatprep.subr.bf16.mxu1 %v17954_v32  ;;  %v18017_v31 = vld [vmem:[%s19863_s12 + $0x9c4] ss:$12 sps:$4 sm:$0xff]  }
 0x259   : > { %v18020_v32 = vld [vmem:[%s19863_s12 + $0xb44] ss:$12 sps:$4 sm:$0xff]  }
 0x25a   : > { %12520 = vmatpush1.bf16.msra.mxu0 %v17949_v33  ;;  %v21296_v33 = vrot.slane %v1596_v14, %v20994_v19  ;;  %v18049_v14 = vld [vmem:[%s19863_s12 + $0xdc8] ss:$12 sps:$4 sm:$0xff]  }
 0x25b   : > { %12561 = vmatpush1.bf16.msra.mxu1 %v17952_v34  ;;  %12521 = vmatprep.subr.bf16.mxu0 %v17957_v54  ;;  %v21299_v34 = vrot.slane %v1692_v26, %v20994_v19  ;;  %v18015_v54 = vld [vmem:[%s19863_s12 + $0x9c0] ss:$12 sps:$4 sm:$0xff]   ;;  %v18055_v26 = vld [vmem:[%s19863_s12 + $0xdb0] ss:$12 sps:$4 sm:$0xff]  }
 0x25c   : > { %12562 = vmatprep.subr.bf16.mxu1 %v17960_v35  ;;  %v18018_v35 = vld [vmem:[%s19863_s12 + $0xb40] ss:$12 sps:$4 sm:$0xff]  }
 0x25e   : > { %12522 = vmatpush1.bf16.msra.mxu0 %v17955_v36  ;;  %v18024_v36 = vld [vmem:[%s19863_s12 + $0xcac] ss:$12 sps:$4 sm:$0xff]  }
 0x25f   : > { %12563 = vmatpush1.bf16.msra.mxu1 %v17958_v3  ;;  %12523 = vmatprep.subr.bf16.mxu0 %v17963_v37  ;;  %v18027_v3 = vld [vmem:[%s19863_s12 + $0xe2c] ss:$12 sps:$4 sm:$0xff]   ;;  %v1707_v37 = vcombine.high %v21296_v33, %v21296_v33 }
 0x260   : > { %12564 = vmatprep.subr.bf16.mxu1 %v17966_v57  ;;  %v1708_v57 = vcombine.high %v21299_v34, %v21299_v34 }
 0x262   : > { %12524 = vmatpush1.bf16.msra.mxu0 %v17961_v40  ;;  %v21311_v40 = vpack.c.bf16 %v21205_v53, %v21205_v53  ;;  %v21323_v53 = vpack.c.bf16 %v1708_v57, %v1708_v57  ;;  %v18075_v57 = vld [vmem:[%s19863_s12 + $0xeec] ss:$12 sps:$4 sm:$0xff]  }
 0x263   : > { %12565 = vmatpush1.bf16.msra.mxu1 %v17964_v4  ;;  %12525 = vmatprep.subr.bf16.mxu0 %v17969_v15  ;;  %v21315_v4 = vpack.c.bf16 %v21208_v25, %v21208_v25  ;;  %v18022_v15 = vld [vmem:[%s19863_s12 + $0xca8] ss:$12 sps:$4 sm:$0xff]   ;;  %v18028_v25 = vld [vmem:[%s19863_s12 + $0xc90] ss:$12 sps:$4 sm:$0xff]  }
 0x264   : > { %12566 = vmatprep.subr.bf16.mxu1 %v17972_v41  ;;  %v18025_v41 = vld [vmem:[%s19863_s12 + $0xe28] ss:$12 sps:$4 sm:$0xff]  }
 0x266   : > { %12526 = vmatpush1.bf16.msra.mxu0 %v17967_v42  ;;  %v18030_v42 = vld [vmem:[%s19863_s12 + $0xc94] ss:$12 sps:$4 sm:$0xff]  }
 0x267   : > { %12567 = vmatpush1.bf16.msra.mxu1 %v17970_v43  ;;  %12527 = vmatprep.subr.bf16.mxu0 %v17975_v44  ;;  %v18033_v43 = vld [vmem:[%s19863_s12 + $0xe14] ss:$12 sps:$4 sm:$0xff]   ;;  %v21321_v44 = vpack.c.bf16 %v1707_v37, %v1707_v37  ;;  %v18072_v37 = vld [vmem:[%s19863_s12 + $0xd6c] ss:$12 sps:$4 sm:$0xff]  }
 0x268   : > { %12568 = vmatprep.subr.bf16.mxu1 %v17978_v49 }
 0x26a   : > { %12528 = vmatpush2.bf16.msra.mxu0 %v17973_v46 }
 0x26b   : > { %12569 = vmatpush2.bf16.msra.mxu1 %v17976_v6  ;;  %12529 = vmatprep.subr.bf16.mxu0 %v17981_v51  ;;  %v18031_v51 = vld [vmem:[%s19863_s12 + $0xe10] ss:$12 sps:$4 sm:$0xff]  }
 0x26c   : > { %12570 = vmatprep.subr.bf16.mxu1 %v17984_v48  ;;  %v18036_v48 = vld [vmem:[%s19863_s12 + $0xc7c] ss:$12 sps:$4 sm:$0xff]  }
 0x26e   : > { %12530 = vmatpush2.bf16.msra.mxu0 %v17979_v28 }
 0x26f   : > { %12571 = vmatpush2.bf16.msra.mxu1 %v17982_v2  ;;  %12531 = vmatprep.subr.bf16.mxu0 %v17987_v52  ;;  %v18039_v52 = vld [vmem:[%s19863_s12 + $0xdfc] ss:$12 sps:$4 sm:$0xff]  }
 0x270   : > { %12572 = vmatprep.subr.bf16.mxu1 %v17990_v21 }
 0x272   : > { %12532 = vmatpush2.bf16.msra.mxu0 %v17985_v55  ;;  %v18034_v55 = vld [vmem:[%s19863_s12 + $0xc78] ss:$12 sps:$4 sm:$0xff]  }
 0x273   : > { %12573 = vmatpush2.bf16.msra.mxu1 %v17988_v9  ;;  %12533 = vmatprep.subr.bf16.mxu0 %v17993_v58 }
 0x274   : > { %12574 = vmatprep.subr.bf16.mxu1 %v17996_v13  ;;  %v18037_v13 = vld [vmem:[%s19863_s12 + $0xdf8] ss:$12 sps:$4 sm:$0xff]  }
 0x276   : > { %12534 = vmatpush2.bf16.msra.mxu0 %v17991_v23 }
 0x277   : > { %12575 = vmatpush2.bf16.msra.mxu1 %v17994_v17  ;;  %12535 = vmatprep.subr.bf16.mxu0 %v17999_v63  ;;  %v18042_v63 = vld [vmem:[%s19863_s12 + $0xc64] ss:$12 sps:$4 sm:$0xff]  }
 0x278   : > { %12576 = vmatprep.subr.bf16.mxu1 %v18002_v0  ;;  %v18045_v0 = vld [vmem:[%s19863_s12 + $0xde4] ss:$12 sps:$4 sm:$0xff]  }
 0x27a   : > { %12536 = vmatpush2.bf16.msra.mxu0 %v17997_v1  ;;  %v18040_v1 = vld [vmem:[%s19863_s12 + $0xc60] ss:$12 sps:$4 sm:$0xff]  }
 0x27b   : > { %12577 = vmatpush2.bf16.msra.mxu1 %v18000_v5  ;;  %12537 = vmatprep.subr.bf16.mxu0 %v18005_v8  ;;  %v18043_v5 = vld [vmem:[%s19863_s12 + $0xde0] ss:$12 sps:$4 sm:$0xff]  }
 0x27c   : > { %12578 = vmatprep.subr.bf16.mxu1 %v18008_v10  ;;  %v18048_v8 = vld [vmem:[%s19863_s12 + $0xc4c] ss:$12 sps:$4 sm:$0xff]  }
 0x27d   : > { %v18051_v10 = vld [vmem:[%s19863_s12 + $0xdcc] ss:$12 sps:$4 sm:$0xff]  }
 0x27e   : > { %12538 = vmatpush2.bf16.msra.mxu0 %v18003_v12  ;;  %v18046_v12 = vld [vmem:[%s19863_s12 + $0xc48] ss:$12 sps:$4 sm:$0xff]  }
 0x27f   : > { %12579 = vmatpush2.bf16.msra.mxu1 %v18006_v16  ;;  %12539 = vmatprep.subr.bf16.mxu0 %v18011_v18  ;;  %v18054_v16 = vld [vmem:[%s19863_s12 + $0xc34] ss:$12 sps:$4 sm:$0xff]  }
 0x280   : > { %12580 = vmatprep.subr.bf16.mxu1 %v18014_v24  ;;  %v18057_v18 = vld [vmem:[%s19863_s12 + $0xdb4] ss:$12 sps:$4 sm:$0xff]   ;;  %v18052_v24 = vld [vmem:[%s19863_s12 + $0xc30] ss:$12 sps:$4 sm:$0xff]  }
 0x282   : > { %12540 = vmatpush2.bf16.msra.mxu0 %v18009_v29  ;;  %v18060_v29 = vld [vmem:[%s19863_s12 + $0xc1c] ss:$12 sps:$4 sm:$0xff]  }
 0x283   : > { %12581 = vmatpush2.bf16.msra.mxu1 %v18012_v30  ;;  %12541 = vmatprep.subr.bf16.mxu0 %v18017_v31  ;;  %v18063_v30 = vld [vmem:[%s19863_s12 + $0xd9c] ss:$12 sps:$4 sm:$0xff]   ;;  %v18058_v31 = vld [vmem:[%s19863_s12 + $0xc18] ss:$12 sps:$4 sm:$0xff]  }
 0x284   : > { %12582 = vmatprep.subr.bf16.mxu1 %v18020_v32  ;;  %v18061_v32 = vld [vmem:[%s19863_s12 + $0xd98] ss:$12 sps:$4 sm:$0xff]  }
 0x286   : > { %12542 = vmatpush2.bf16.msra.mxu0 %v18015_v54  ;;  %v18066_v54 = vld [vmem:[%s19863_s12 + $0xc04] ss:$12 sps:$4 sm:$0xff]  }
 0x287   : > { %12583 = vmatpush2.bf16.msra.mxu1 %v18018_v35  ;;  %12593 = vmatprep.subr.bf16.mxu0 %v18024_v36  ;;  %v18069_v35 = vld [vmem:[%s19863_s12 + $0xd84] ss:$12 sps:$4 sm:$0xff]   ;;  %v18064_v36 = vld [vmem:[%s19863_s12 + $0xc00] ss:$12 sps:$4 sm:$0xff]  }
 0x288   : > { %12634 = vmatprep.subr.bf16.mxu1 %v18027_v3  ;;  %v18067_v3 = vld [vmem:[%s19863_s12 + $0xd80] ss:$12 sps:$4 sm:$0xff]  }
 0x289   : > { %v12299_v49 = vpop.f32.mrf.mxu0  ;;  %12544 = vmatmul.mubr.bf16.vlgmr.msra.gmra.mxu0 %v21311_v40 }
 0x28a   : > { %v12340_v46 = vpop.f32.mrf.mxu1  ;;  %12585 = vmatmul.mubr.bf16.vlgmr.msra.gmra.mxu1 %v21315_v4  ;;  %12594 = vmatpush1.bf16.msra.mxu0 %v18022_v15  ;;  %v18070_v15 = vld [vmem:[%s19863_s12 + $0xd68] ss:$12 sps:$4 sm:$0xff]  }
 0x28b   : > { %v21328_v6 = vadd.f32 %v12340_v46, %v12299_v49  ;;  %12635 = vmatpush1.bf16.msra.mxu1 %v18025_v41  ;;  %v12301_v28 = vpop.f32.mrf.mxu0  ;;  %12595 = vmatprep.subr.bf16.mxu0 %v18030_v42  ;;  %v18073_v41 = vld [vmem:[%s19863_s12 + $0xee8] ss:$12 sps:$4 sm:$0xff]   ;;  %v18076_v49 = vld [vmem:[%s19863_s12 + $0xd50] ss:$12 sps:$4 sm:$0xff]  }
 0x28c   : > { %v12342_v2 = vpop.f32.mrf.mxu1  ;;  %12636 = vmatprep.subr.bf16.mxu1 %v18033_v43  ;;  %12625 = vmatprep.mubr.bf16.mxu0 %v21321_v44  ;;  %v18078_v42 = vld [vmem:[%s19863_s12 + $0xd54] ss:$12 sps:$4 sm:$0xff]   ;;  %v18079_v46 = vld [vmem:[%s19863_s12 + $0xed0] ss:$12 sps:$4 sm:$0xff]  }
 0x28d   : > { %v21333_v21 = vadd.f32 %v12342_v2, %v12301_v28  ;;  %12666 = vmatprep.mubr.bf16.mxu1 %v21323_v53  ;;  %v12303_v9 = vpop.f32.mrf.mxu0  ;;  %v18081_v43 = vld [vmem:[%s19863_s12 + $0xed4] ss:$12 sps:$4 sm:$0xff]   ;;  %v18085_v28 = vld [vmem:[%s19863_s12 + $0xeb8] ss:$12 sps:$4 sm:$0xff]  }
 0x28e   : > { %v12344_v58 = vpop.f32.mrf.mxu1  ;;  %12596 = vmatpush1.bf16.msra.mxu0 %v18028_v25  ;;  %v18084_v25 = vld [vmem:[%s19863_s12 + $0xd3c] ss:$12 sps:$4 sm:$0xff]   ;;  %v18090_v2 = vld [vmem:[%s19863_s12 + $0xd24] ss:$12 sps:$4 sm:$0xff]   ;;  %v18091_v9 = vld [vmem:[%s19863_s12 + $0xea0] ss:$12 sps:$4 sm:$0xff]  }
 0x28f   : > { %12637 = vmatpush1.bf16.msra.mxu1 %v18031_v51  ;;  %v12304_v23 = vpop.f32.mrf.mxu0  ;;  %12597 = vmatprep.subr.bf16.mxu0 %v18036_v48  ;;  %v18087_v51 = vld [vmem:[%s19863_s12 + $0xebc] ss:$12 sps:$4 sm:$0xff]   ;;  %v18082_v48 = vld [vmem:[%s19863_s12 + $0xd38] ss:$12 sps:$4 sm:$0xff]  }
 0x290   : > { %v12345_v17 = vpop.f32.mrf.mxu1  ;;  %12638 = vmatprep.subr.bf16.mxu1 %v18039_v52  ;;  %v18093_v52 = vld [vmem:[%s19863_s12 + $0xea4] ss:$12 sps:$4 sm:$0xff]   ;;  %v18096_v58 = vld [vmem:[%s19863_s12 + $0xd0c] ss:$12 sps:$4 sm:$0xff]   ;;  %v18094_v23 = vld [vmem:[%s19863_s12 + $0xd08] ss:$12 sps:$4 sm:$0xff]  }
 0x291   : > { %v18097_v17 = vld [vmem:[%s19863_s12 + $0xe88] ss:$12 sps:$4 sm:$0xff]  }
 0x292   : > { %12598 = vmatpush1.bf16.msra.mxu0 %v18034_v55  ;;  %v18088_v55 = vld [vmem:[%s19863_s12 + $0xd20] ss:$12 sps:$4 sm:$0xff]  }
 0x293   : > { %12639 = vmatpush1.bf16.msra.mxu1 %v18037_v13  ;;  %12599 = vmatprep.subr.bf16.mxu0 %v18042_v63  ;;  %v18099_v13 = vld [vmem:[%s19863_s12 + $0xe8c] ss:$12 sps:$4 sm:$0xff]   ;;  %v18102_v63 = vld [vmem:[%s19863_s12 + $0xcf4] ss:$12 sps:$4 sm:$0xff]  }
 0x294   : > { %12640 = vmatprep.subr.bf16.mxu1 %v18045_v0  ;;  %v18105_v0 = vld [vmem:[%s19863_s12 + $0xe74] ss:$12 sps:$4 sm:$0xff]  }
 0x296   : > { %12600 = vmatpush1.bf16.msra.mxu0 %v18040_v1  ;;  %v1597_v1 = vld [vmem:[%s20998_s16 + $0x28] sm:$0xff] }
 0x297   : > { %12641 = vmatpush1.bf16.msra.mxu1 %v18043_v5  ;;  %12601 = vmatprep.subr.bf16.mxu0 %v18048_v8  ;;  %v18100_v5 = vld [vmem:[%s19863_s12 + $0xcf0] ss:$12 sps:$4 sm:$0xff]  }
 0x298   : > { %12642 = vmatprep.subr.bf16.mxu1 %v18051_v10  ;;  %v18103_v8 = vld [vmem:[%s19863_s12 + $0xe70] ss:$12 sps:$4 sm:$0xff]  }
 0x299   : > { %v18108_v10 = vld [vmem:[%s19863_s12 + $0xcdc] ss:$12 sps:$4 sm:$0xff]  }
 0x29a   : > { %12602 = vmatpush1.bf16.msra.mxu0 %v18046_v12  ;;  %v18111_v12 = vld [vmem:[%s19863_s12 + $0xe5c] ss:$12 sps:$4 sm:$0xff]  }
 0x29b   : > { %12643 = vmatpush1.bf16.msra.mxu1 %v18049_v14  ;;  %12603 = vmatprep.subr.bf16.mxu0 %v18054_v16  ;;  %v1709_v14 = vcombine.high %v1597_v1, %v1597_v1  ;;  %v18106_v16 = vld [vmem:[%s19863_s12 + $0xcd8] ss:$12 sps:$4 sm:$0xff]  }
 0x29c   : > { %12644 = vmatprep.subr.bf16.mxu1 %v18057_v18  ;;  %v18109_v18 = vld [vmem:[%s19863_s12 + $0xe58] ss:$12 sps:$4 sm:$0xff]  }
 0x29e   : > { %12604 = vmatpush1.bf16.msra.mxu0 %v18052_v24  ;;  %v18114_v24 = vld [vmem:[%s19863_s12 + $0xcc4] ss:$12 sps:$4 sm:$0xff]  }
 0x29f   : > { %12645 = vmatpush1.bf16.msra.mxu1 %v18055_v26  ;;  %12605 = vmatprep.subr.bf16.mxu0 %v18060_v29  ;;  %v18117_v26 = vld [vmem:[%s19863_s12 + $0xe44] ss:$12 sps:$4 sm:$0xff]   ;;  %v21391_v29 = vrot.slane %v1597_v1, %v20994_v19 }
 0x2a0   : > { %12646 = vmatprep.subr.bf16.mxu1 %v18063_v30  ;;  %v21394_v30 = vrot.slane %v1709_v14, %v20994_v19  ;;  %v18148_v14 = vld [vmem:[%s19863_s12 + $0x10cc] ss:$12 sps:$4 sm:$0xff]  }
 0x2a2   : > { %12606 = vmatpush1.bf16.msra.mxu0 %v18058_v31  ;;  %v18112_v31 = vld [vmem:[%s19863_s12 + $0xcc0] ss:$12 sps:$4 sm:$0xff]  }
 0x2a3   : > { %12647 = vmatpush1.bf16.msra.mxu1 %v18061_v32  ;;  %12607 = vmatprep.subr.bf16.mxu0 %v18066_v54  ;;  %v18115_v32 = vld [vmem:[%s19863_s12 + $0xe40] ss:$12 sps:$4 sm:$0xff]  }
 0x2a4   : > { %12648 = vmatprep.subr.bf16.mxu1 %v18069_v35  ;;  %v18121_v54 = vld [vmem:[%s19863_s12 + $0xfac] ss:$12 sps:$4 sm:$0xff]  }
 0x2a5   : > { %v18124_v35 = vld [vmem:[%s19863_s12 + $0x112c] ss:$12 sps:$4 sm:$0xff]  }
 0x2a6   : > { %12608 = vmatpush1.bf16.msra.mxu0 %v18064_v36  ;;  %v18119_v36 = vld [vmem:[%s19863_s12 + $0xfa8] ss:$12 sps:$4 sm:$0xff]  }
 0x2a7   : > { %12649 = vmatpush1.bf16.msra.mxu1 %v18067_v3  ;;  %12609 = vmatprep.subr.bf16.mxu0 %v18072_v37  ;;  %v18122_v3 = vld [vmem:[%s19863_s12 + $0x1128] ss:$12 sps:$4 sm:$0xff]   ;;  %v1724_v37 = vcombine.high %v21391_v29, %v21391_v29 }
 0x2a8   : > { %12650 = vmatprep.subr.bf16.mxu1 %v18075_v57  ;;  %v1725_v57 = vcombine.high %v21394_v30, %v21394_v30 }
 0x2aa   : > { %12610 = vmatpush2.bf16.msra.mxu0 %v18070_v15  ;;  %v21408_v15 = vpack.c.bf16 %v21296_v33, %v21296_v33 }
 0x2ab   : > { %12651 = vmatpush2.bf16.msra.mxu1 %v18073_v41  ;;  %12611 = vmatprep.subr.bf16.mxu0 %v18078_v42  ;;  %v21412_v41 = vpack.c.bf16 %v21299_v34, %v21299_v34  ;;  %v18127_v42 = vld [vmem:[%s19863_s12 + $0xf94] ss:$12 sps:$4 sm:$0xff]  }
 0x2ac   : > { %12652 = vmatprep.subr.bf16.mxu1 %v18081_v43  ;;  %v18130_v43 = vld [vmem:[%s19863_s12 + $0x1114] ss:$12 sps:$4 sm:$0xff]  }
 0x2ae   : > { %12612 = vmatpush2.bf16.msra.mxu0 %v18076_v49  ;;  %v18125_v49 = vld [vmem:[%s19863_s12 + $0xf90] ss:$12 sps:$4 sm:$0xff]  }
 0x2af   : > { %12653 = vmatpush2.bf16.msra.mxu1 %v18079_v46  ;;  %12613 = vmatprep.subr.bf16.mxu0 %v18084_v25  ;;  %v18128_v46 = vld [vmem:[%s19863_s12 + $0x1110] ss:$12 sps:$4 sm:$0xff]   ;;  %v21418_v25 = vpack.c.bf16 %v1724_v37, %v1724_v37 }
 0x2b0   : > { %12654 = vmatprep.subr.bf16.mxu1 %v18087_v51  ;;  %v21420_v51 = vpack.c.bf16 %v1725_v57, %v1725_v57  ;;  %v18163_v37 = vld [vmem:[%s19863_s12 + $0xf04] ss:$12 sps:$4 sm:$0xff]  }
 0x2b1   : > { %v18166_v57 = vld [vmem:[%s19863_s12 + $0x1084] ss:$12 sps:$4 sm:$0xff]  }
 0x2b2   : > { %12614 = vmatpush2.bf16.msra.mxu0 %v18082_v48 }
 0x2b3   : > { %12655 = vmatpush2.bf16.msra.mxu1 %v18085_v28  ;;  %12615 = vmatprep.subr.bf16.mxu0 %v18090_v2 }
 0x2b4   : > { %12656 = vmatprep.subr.bf16.mxu1 %v18093_v52  ;;  %v18133_v52 = vld [vmem:[%s19863_s12 + $0xf7c] ss:$12 sps:$4 sm:$0xff]  }
 0x2b6   : > { %12616 = vmatpush2.bf16.msra.mxu0 %v18088_v55  ;;  %v18136_v55 = vld [vmem:[%s19863_s12 + $0x10fc] ss:$12 sps:$4 sm:$0xff]  }
 0x2b7   : > { %12657 = vmatpush2.bf16.msra.mxu1 %v18091_v9  ;;  %12617 = vmatprep.subr.bf16.mxu0 %v18096_v58 }
 0x2b8   : > { %12658 = vmatprep.subr.bf16.mxu1 %v18099_v13  ;;  %v18131_v13 = vld [vmem:[%s19863_s12 + $0xf78] ss:$12 sps:$4 sm:$0xff]  }
 0x2ba   : > { %12618 = vmatpush2.bf16.msra.mxu0 %v18094_v23  ;;  %v18134_v23 = vld [vmem:[%s19863_s12 + $0x10f8] ss:$12 sps:$4 sm:$0xff]  }
 0x2bb   : > { %12659 = vmatpush2.bf16.msra.mxu1 %v18097_v17  ;;  %12619 = vmatprep.subr.bf16.mxu0 %v18102_v63 }
 0x2bc   : > { %12660 = vmatprep.subr.bf16.mxu1 %v18105_v0 }
 0x2be   : > { %12620 = vmatpush2.bf16.msra.mxu0 %v18100_v5  ;;  %v18142_v5 = vld [vmem:[%s19863_s12 + $0x10e4] ss:$12 sps:$4 sm:$0xff]  }
 0x2bf   : > { %12661 = vmatpush2.bf16.msra.mxu1 %v18103_v8  ;;  %12621 = vmatprep.subr.bf16.mxu0 %v18108_v10  ;;  %v18137_v8 = vld [vmem:[%s19863_s12 + $0xf60] ss:$12 sps:$4 sm:$0xff]  }
 0x2c0   : > { %12662 = vmatprep.subr.bf16.mxu1 %v18111_v12  ;;  %v18140_v10 = vld [vmem:[%s19863_s12 + $0x10e0] ss:$12 sps:$4 sm:$0xff]  }
 0x2c1   : > { %v18145_v12 = vld [vmem:[%s19863_s12 + $0xf4c] ss:$12 sps:$4 sm:$0xff]  }
 0x2c2   : > { %12622 = vmatpush2.bf16.msra.mxu0 %v18106_v16  ;;  %v18143_v16 = vld [vmem:[%s19863_s12 + $0xf48] ss:$12 sps:$4 sm:$0xff]  }
 0x2c3   : > { %12663 = vmatpush2.bf16.msra.mxu1 %v18109_v18  ;;  %12623 = vmatprep.subr.bf16.mxu0 %v18114_v24  ;;  %v18146_v18 = vld [vmem:[%s19863_s12 + $0x10c8] ss:$12 sps:$4 sm:$0xff]  }
 0x2c4   : > { %12664 = vmatprep.subr.bf16.mxu1 %v18117_v26  ;;  %v18151_v24 = vld [vmem:[%s19863_s12 + $0xf34] ss:$12 sps:$4 sm:$0xff]  }
 0x2c5   : > { %v18154_v26 = vld [vmem:[%s19863_s12 + $0x10b4] ss:$12 sps:$4 sm:$0xff]  }
 0x2c6   : > { %12624 = vmatpush2.bf16.msra.mxu0 %v18112_v31  ;;  %v18149_v31 = vld [vmem:[%s19863_s12 + $0xf30] ss:$12 sps:$4 sm:$0xff]  }
 0x2c7   : > { %12665 = vmatpush2.bf16.msra.mxu1 %v18115_v32  ;;  %12675 = vmatprep.subr.bf16.mxu0 %v18121_v54  ;;  %v18152_v32 = vld [vmem:[%s19863_s12 + $0x10b0] ss:$12 sps:$4 sm:$0xff]  }
 0x2c8   : > { %12716 = vmatprep.subr.bf16.mxu1 %v18124_v35  ;;  %v18157_v54 = vld [vmem:[%s19863_s12 + $0xf1c] ss:$12 sps:$4 sm:$0xff]  }
 0x2c9   : > { %v12381_v33 = vpop.f32.mrf.mxu0  ;;  %12626 = vmatmul.mubr.bf16.vlgmr.msra.gmra.mxu0 %v21408_v15  ;;  %v18160_v35 = vld [vmem:[%s19863_s12 + $0x109c] ss:$12 sps:$4 sm:$0xff]  }
 0x2ca   : > { %v12422_v48 = vpop.f32.mrf.mxu1  ;;  %12667 = vmatmul.mubr.bf16.vlgmr.msra.gmra.mxu1 %v21412_v41  ;;  %v12382_v34 = vadd.f32 %v12381_v33, %v21328_v6  ;;  %12676 = vmatpush1.bf16.msra.mxu0 %v18119_v36  ;;  %v18155_v36 = vld [vmem:[%s19863_s12 + $0xf18] ss:$12 sps:$4 sm:$0xff]   ;;  %v18167_v33 = vld [vmem:[%s19863_s12 + $0x1068] ss:$12 sps:$4 sm:$0xff]  }
 0x2cb   : > { %12717 = vmatpush1.bf16.msra.mxu1 %v18122_v3  ;;  %v12383_v28 = vpop.f32.mrf.mxu0  ;;  %12677 = vmatprep.subr.bf16.mxu0 %v18127_v42  ;;  %v18158_v3 = vld [vmem:[%s19863_s12 + $0x1098] ss:$12 sps:$4 sm:$0xff]   ;;  %v18161_v42 = vld [vmem:[%s19863_s12 + $0xf00] ss:$12 sps:$4 sm:$0xff]  }
 0x2cc   : > { %v12424_v2 = vpop.f32.mrf.mxu1  ;;  %12718 = vmatprep.subr.bf16.mxu1 %v18130_v43  ;;  %v21427_v9 = vadd.f32 %v12422_v48, %v12382_v34  ;;  %v12384_v58 = vadd.f32 %v12383_v28, %v21333_v21  ;;  %12707 = vmatprep.mubr.bf16.mxu0 %v21418_v25  ;;  %v18139_v21 = vld [vmem:[%s19863_s12 + $0xf64] ss:$12 sps:$4 sm:$0xff]   ;;  %v18164_v43 = vld [vmem:[%s19863_s12 + $0x1080] ss:$12 sps:$4 sm:$0xff]   ;;  %v18170_v48 = vld [vmem:[%s19863_s12 + $0x11e8] ss:$12 sps:$4 sm:$0xff]  }
 0x2cd   : > { %12748 = vmatprep.mubr.bf16.mxu1 %v21420_v51  ;;  %v12385_v6 = vpop.f32.mrf.mxu0  ;;  %v18175_v34 = vld [vmem:[%s19863_s12 + $0x1054] ss:$12 sps:$4 sm:$0xff]  }
 0x2ce   : > { %v12426_v17 = vpop.f32.mrf.mxu1  ;;  %v21434_v63 = vadd.f32 %v12424_v2, %v12384_v58  ;;  %12678 = vmatpush1.bf16.msra.mxu0 %v18125_v49  ;;  %v18169_v49 = vld [vmem:[%s19863_s12 + $0x106c] ss:$12 sps:$4 sm:$0xff]   ;;  %v18178_v28 = vld [vmem:[%s19863_s12 + $0x11d4] ss:$12 sps:$4 sm:$0xff]   ;;  %v18173_v2 = vld [vmem:[%s19863_s12 + $0x1050] ss:$12 sps:$4 sm:$0xff]  }
 0x2cf   : > { %12719 = vmatpush1.bf16.msra.mxu1 %v18128_v46  ;;  %v12386_v0 = vpop.f32.mrf.mxu0  ;;  %12679 = vmatprep.subr.bf16.mxu0 %v18133_v52  ;;  %v18172_v46 = vld [vmem:[%s19863_s12 + $0x11ec] ss:$12 sps:$4 sm:$0xff]   ;;  %v18176_v52 = vld [vmem:[%s19863_s12 + $0x11d0] ss:$12 sps:$4 sm:$0xff]  }
 0x2d0   : > { %v12427_v1 = vpop.f32.mrf.mxu1  ;;  %12720 = vmatprep.subr.bf16.mxu1 %v18136_v55  ;;  %v18181_v55 = vld [vmem:[%s19863_s12 + $0x103c] ss:$12 sps:$4 sm:$0xff]   ;;  %v18187_v6 = vld [vmem:[%s19863_s12 + $0x1024] ss:$12 sps:$4 sm:$0xff]   ;;  %v18185_v0 = vld [vmem:[%s19863_s12 + $0x1020] ss:$12 sps:$4 sm:$0xff]  }
 0x2d1   : > { %v18184_v58 = vld [vmem:[%s19863_s12 + $0x11bc] ss:$12 sps:$4 sm:$0xff]   ;;  %v18190_v17 = vld [vmem:[%s19863_s12 + $0x11a4] ss:$12 sps:$4 sm:$0xff]   ;;  %v18188_v1 = vld [vmem:[%s19863_s12 + $0x11a0] ss:$12 sps:$4 sm:$0xff]  }
 0x2d2   : > { %12680 = vmatpush1.bf16.msra.mxu0 %v18131_v13  ;;  %v18179_v13 = vld [vmem:[%s19863_s12 + $0x1038] ss:$12 sps:$4 sm:$0xff]  }
 0x2d3   : > { %12721 = vmatpush1.bf16.msra.mxu1 %v18134_v23  ;;  %12681 = vmatprep.subr.bf16.mxu0 %v18139_v21  ;;  %v18182_v23 = vld [vmem:[%s19863_s12 + $0x11b8] ss:$12 sps:$4 sm:$0xff]  }
 0x2d4   : > { %12722 = vmatprep.subr.bf16.mxu1 %v18142_v5  ;;  %v18193_v21 = vld [vmem:[%s19863_s12 + $0x100c] ss:$12 sps:$4 sm:$0xff]  }
 0x2d5   : > { %v18196_v5 = vld [vmem:[%s19863_s12 + $0x118c] ss:$12 sps:$4 sm:$0xff]  }
 0x2d6   : > { %12682 = vmatpush1.bf16.msra.mxu0 %v18137_v8  ;;  %v18191_v8 = vld [vmem:[%s19863_s12 + $0x1008] ss:$12 sps:$4 sm:$0xff]  }
 0x2d7   : > { %12723 = vmatpush1.bf16.msra.mxu1 %v18140_v10  ;;  %12683 = vmatprep.subr.bf16.mxu0 %v18145_v12  ;;  %v18194_v10 = vld [vmem:[%s19863_s12 + $0x1188] ss:$12 sps:$4 sm:$0xff]  }
 0x2d8   : > { %12724 = vmatprep.subr.bf16.mxu1 %v18148_v14  ;;  %v18199_v12 = vld [vmem:[%s19863_s12 + $0xff4] ss:$12 sps:$4 sm:$0xff]  }
 0x2d9   : > { %v18202_v14 = vld [vmem:[%s19863_s12 + $0x1174] ss:$12 sps:$4 sm:$0xff]  }
 0x2da   : > { %12684 = vmatpush1.bf16.msra.mxu0 %v18143_v16  ;;  %v1598_v16 = vld [vmem:[%s20998_s16 + $0x30] sm:$0xff] }
 0x2db   : > { %12725 = vmatpush1.bf16.msra.mxu1 %v18146_v18  ;;  %12685 = vmatprep.subr.bf16.mxu0 %v18151_v24  ;;  %v18197_v18 = vld [vmem:[%s19863_s12 + $0xff0] ss:$12 sps:$4 sm:$0xff]  }
 0x2dc   : > { %12726 = vmatprep.subr.bf16.mxu1 %v18154_v26  ;;  %v18200_v24 = vld [vmem:[%s19863_s12 + $0x1170] ss:$12 sps:$4 sm:$0xff]  }
 0x2dd   : > { %v18205_v26 = vld [vmem:[%s19863_s12 + $0xfdc] ss:$12 sps:$4 sm:$0xff]  }
 0x2de   : > { %12686 = vmatpush1.bf16.msra.mxu0 %v18149_v31  ;;  %v18208_v31 = vld [vmem:[%s19863_s12 + $0x115c] ss:$12 sps:$4 sm:$0xff]  }
 0x2df   : > { %12727 = vmatpush1.bf16.msra.mxu1 %v18152_v32  ;;  %12687 = vmatprep.subr.bf16.mxu0 %v18157_v54  ;;  %v1726_v32 = vcombine.high %v1598_v16, %v1598_v16  ;;  %v18203_v54 = vld [vmem:[%s19863_s12 + $0xfd8] ss:$12 sps:$4 sm:$0xff]  }
 0x2e0   : > { %12728 = vmatprep.subr.bf16.mxu1 %v18160_v35  ;;  %v18206_v35 = vld [vmem:[%s19863_s12 + $0x1158] ss:$12 sps:$4 sm:$0xff]  }
 0x2e2   : > { %12688 = vmatpush1.bf16.msra.mxu0 %v18155_v36  ;;  %v18211_v36 = vld [vmem:[%s19863_s12 + $0xfc4] ss:$12 sps:$4 sm:$0xff]  }
 0x2e3   : > { %12729 = vmatpush1.bf16.msra.mxu1 %v18158_v3  ;;  %12689 = vmatprep.subr.bf16.mxu0 %v18163_v37  ;;  %v18214_v3 = vld [vmem:[%s19863_s12 + $0x1144] ss:$12 sps:$4 sm:$0xff]   ;;  %v21488_v37 = vrot.slane %v1598_v16, %v20994_v19 }
 0x2e4   : > { %12730 = vmatprep.subr.bf16.mxu1 %v18166_v57  ;;  %v21491_v57 = vrot.slane %v1726_v32, %v20994_v19  ;;  %v18231_v16 = vld [vmem:[%s19863_s12 + $0x13f8] ss:$12 sps:$4 sm:$0xff]  }
 0x2e5   : > { %v18239_v32 = vld [vmem:[%s19863_s12 + $0x13e4] ss:$12 sps:$4 sm:$0xff]  }
 0x2e6   : > { %12690 = vmatpush1.bf16.msra.mxu0 %v18161_v42  ;;  %v18209_v42 = vld [vmem:[%s19863_s12 + $0xfc0] ss:$12 sps:$4 sm:$0xff]  }
 0x2e7   : > { %12731 = vmatpush1.bf16.msra.mxu1 %v18164_v43  ;;  %12691 = vmatprep.subr.bf16.mxu0 %v18169_v49  ;;  %v18212_v43 = vld [vmem:[%s19863_s12 + $0x1140] ss:$12 sps:$4 sm:$0xff]  }
 0x2e8   : > { %12732 = vmatprep.subr.bf16.mxu1 %v18172_v46  ;;  %v18218_v49 = vld [vmem:[%s19863_s12 + $0x12ac] ss:$12 sps:$4 sm:$0xff]  }
 0x2e9   : > { %v18221_v46 = vld [vmem:[%s19863_s12 + $0x142c] ss:$12 sps:$4 sm:$0xff]  }
 0x2ea   : > { %12692 = vmatpush2.bf16.msra.mxu0 %v18167_v33  ;;  %v18216_v33 = vld [vmem:[%s19863_s12 + $0x12a8] ss:$12 sps:$4 sm:$0xff]  }
 0x2eb   : > { %12733 = vmatpush2.bf16.msra.mxu1 %v18170_v48  ;;  %12693 = vmatprep.subr.bf16.mxu0 %v18175_v34  ;;  %v18219_v48 = vld [vmem:[%s19863_s12 + $0x1428] ss:$12 sps:$4 sm:$0xff]   ;;  %v1741_v34 = vcombine.high %v21488_v37, %v21488_v37 }
 0x2ec   : > { %12734 = vmatprep.subr.bf16.mxu1 %v18178_v28  ;;  %v1742_v28 = vcombine.high %v21491_v57, %v21491_v57 }
 0x2ee   : > { %12694 = vmatpush2.bf16.msra.mxu0 %v18173_v2  ;;  %v21505_v2 = vpack.c.bf16 %v21391_v29, %v21391_v29 }
 0x2ef   : > { %12735 = vmatpush2.bf16.msra.mxu1 %v18176_v52  ;;  %12695 = vmatprep.subr.bf16.mxu0 %v18181_v55  ;;  %v21509_v52 = vpack.c.bf16 %v21394_v30, %v21394_v30  ;;  %v18224_v55 = vld [vmem:[%s19863_s12 + $0x1294] ss:$12 sps:$4 sm:$0xff]  }
 0x2f0   : > { %12736 = vmatprep.subr.bf16.mxu1 %v18184_v58  ;;  %v18227_v58 = vld [vmem:[%s19863_s12 + $0x1414] ss:$12 sps:$4 sm:$0xff]  }
 0x2f2   : > { %12696 = vmatpush2.bf16.msra.mxu0 %v18179_v13  ;;  %v18222_v13 = vld [vmem:[%s19863_s12 + $0x1290] ss:$12 sps:$4 sm:$0xff]  }
 0x2f3   : > { %12737 = vmatpush2.bf16.msra.mxu1 %v18182_v23  ;;  %12697 = vmatprep.subr.bf16.mxu0 %v18187_v6  ;;  %v18225_v23 = vld [vmem:[%s19863_s12 + $0x1410] ss:$12 sps:$4 sm:$0xff]   ;;  %v21515_v6 = vpack.c.bf16 %v1741_v34, %v1741_v34 }
 0x2f4   : > { %12738 = vmatprep.subr.bf16.mxu1 %v18190_v17  ;;  %v21517_v17 = vpack.c.bf16 %v1742_v28, %v1742_v28  ;;  %v18254_v34 = vld [vmem:[%s19863_s12 + $0x121c] ss:$12 sps:$4 sm:$0xff]  }
 0x2f5   : > { %v18257_v28 = vld [vmem:[%s19863_s12 + $0x139c] ss:$12 sps:$4 sm:$0xff]  }
 0x2f6   : > { %12698 = vmatpush2.bf16.msra.mxu0 %v18185_v0 }
 0x2f7   : > { %12739 = vmatpush2.bf16.msra.mxu1 %v18188_v1  ;;  %12699 = vmatprep.subr.bf16.mxu0 %v18193_v21 }
 0x2f8   : > { %12740 = vmatprep.subr.bf16.mxu1 %v18196_v5  ;;  %v18230_v5 = vld [vmem:[%s19863_s12 + $0x127c] ss:$12 sps:$4 sm:$0xff]  }
 0x2fa   : > { %12700 = vmatpush2.bf16.msra.mxu0 %v18191_v8  ;;  %v18233_v8 = vld [vmem:[%s19863_s12 + $0x13fc] ss:$12 sps:$4 sm:$0xff]  }
 0x2fb   : > { %12741 = vmatpush2.bf16.msra.mxu1 %v18194_v10  ;;  %12701 = vmatprep.subr.bf16.mxu0 %v18199_v12 }
 0x2fc   : > { %12742 = vmatprep.subr.bf16.mxu1 %v18202_v14  ;;  %v18228_v14 = vld [vmem:[%s19863_s12 + $0x1278] ss:$12 sps:$4 sm:$0xff]  }
 0x2fe   : > { %12702 = vmatpush2.bf16.msra.mxu0 %v18197_v18 }
 0x2ff   : > { %12743 = vmatpush2.bf16.msra.mxu1 %v18200_v24  ;;  %12703 = vmatprep.subr.bf16.mxu0 %v18205_v26 }
 0x300   : > { %12744 = vmatprep.subr.bf16.mxu1 %v18208_v31 }
 0x302   : > { %12704 = vmatpush2.bf16.msra.mxu0 %v18203_v54  ;;  %v18234_v54 = vld [vmem:[%s19863_s12 + $0x1260] ss:$12 sps:$4 sm:$0xff]  }
 0x303   : > { %12745 = vmatpush2.bf16.msra.mxu1 %v18206_v35  ;;  %12705 = vmatprep.subr.bf16.mxu0 %v18211_v36  ;;  %v18237_v35 = vld [vmem:[%s19863_s12 + $0x13e0] ss:$12 sps:$4 sm:$0xff]  }
 0x304   : > { %12746 = vmatprep.subr.bf16.mxu1 %v18214_v3  ;;  %v18242_v36 = vld [vmem:[%s19863_s12 + $0x124c] ss:$12 sps:$4 sm:$0xff]  }
 0x305   : > { %v18245_v3 = vld [vmem:[%s19863_s12 + $0x13cc] ss:$12 sps:$4 sm:$0xff]  }
 0x306   : > { %12706 = vmatpush2.bf16.msra.mxu0 %v18209_v42  ;;  %v18240_v42 = vld [vmem:[%s19863_s12 + $0x1248] ss:$12 sps:$4 sm:$0xff]  }
 0x307   : > { %12747 = vmatpush2.bf16.msra.mxu1 %v18212_v43  ;;  %12757 = vmatprep.subr.bf16.mxu0 %v18218_v49  ;;  %v18243_v43 = vld [vmem:[%s19863_s12 + $0x13c8] ss:$12 sps:$4 sm:$0xff]  }
 0x308   : > { %12798 = vmatprep.subr.bf16.mxu1 %v18221_v46  ;;  %v18248_v49 = vld [vmem:[%s19863_s12 + $0x1234] ss:$12 sps:$4 sm:$0xff]  }
 0x309   : > { %v12463_v29 = vpop.f32.mrf.mxu0  ;;  %12708 = vmatmul.mubr.bf16.vlgmr.msra.gmra.mxu0 %v21505_v2  ;;  %v18251_v46 = vld [vmem:[%s19863_s12 + $0x13b4] ss:$12 sps:$4 sm:$0xff]  }
 0x30a   : > { %v12504_v0 = vpop.f32.mrf.mxu1  ;;  %12749 = vmatmul.mubr.bf16.vlgmr.msra.gmra.mxu1 %v21509_v52  ;;  %v12464_v30 = vadd.f32 %v12463_v29, %v21427_v9  ;;  %12758 = vmatpush1.bf16.msra.mxu0 %v18216_v33  ;;  %v18246_v33 = vld [vmem:[%s19863_s12 + $0x1230] ss:$12 sps:$4 sm:$0xff]   ;;  %v18258_v29 = vld [vmem:[%s19863_s12 + $0x1200] ss:$12 sps:$4 sm:$0xff]  }
 0x30b   : > { %12799 = vmatpush1.bf16.msra.mxu1 %v18219_v48  ;;  %v12465_v1 = vpop.f32.mrf.mxu0  ;;  %12759 = vmatprep.subr.bf16.mxu0 %v18224_v55  ;;  %v18249_v48 = vld [vmem:[%s19863_s12 + $0x13b0] ss:$12 sps:$4 sm:$0xff]   ;;  %v18252_v55 = vld [vmem:[%s19863_s12 + $0x1218] ss:$12 sps:$4 sm:$0xff]  }
 0x30c   : > { %v12506_v21 = vpop.f32.mrf.mxu1  ;;  %12800 = vmatprep.subr.bf16.mxu1 %v18227_v58  ;;  %v21524_v10 = vadd.f32 %v12504_v0, %v12464_v30  ;;  %v12466_v12 = vadd.f32 %v12465_v1, %v21434_v63  ;;  %12789 = vmatprep.mubr.bf16.mxu0 %v21515_v6  ;;  %v18236_v63 = vld [vmem:[%s19863_s12 + $0x1264] ss:$12 sps:$4 sm:$0xff]   ;;  %v18261_v0 = vld [vmem:[%s19863_s12 + $0x1380] ss:$12 sps:$4 sm:$0xff]  }
 0x30d   : > { %12830 = vmatprep.mubr.bf16.mxu1 %v21517_v17  ;;  %v12467_v9 = vpop.f32.mrf.mxu0  ;;  %v18255_v58 = vld [vmem:[%s19863_s12 + $0x1398] ss:$12 sps:$4 sm:$0xff]  }
 0x30e   : > { %v12508_v18 = vpop.f32.mrf.mxu1  ;;  %v21531_v24 = vadd.f32 %v12506_v21, %v12466_v12  ;;  %12760 = vmatpush1.bf16.msra.mxu0 %v18222_v13  ;;  %v18260_v13 = vld [vmem:[%s19863_s12 + $0x1204] ss:$12 sps:$4 sm:$0xff]   ;;  %v18266_v30 = vld [vmem:[%s19863_s12 + $0x136c] ss:$12 sps:$4 sm:$0xff]   ;;  %v18264_v21 = vld [vmem:[%s19863_s12 + $0x1368] ss:$12 sps:$4 sm:$0xff]  }
 0x30f   : > { %12801 = vmatpush1.bf16.msra.mxu1 %v18225_v23  ;;  %v12468_v26 = vpop.f32.mrf.mxu0  ;;  %12761 = vmatprep.subr.bf16.mxu0 %v18230_v5  ;;  %v18263_v23 = vld [vmem:[%s19863_s12 + $0x1384] ss:$12 sps:$4 sm:$0xff]   ;;  %v18269_v1 = vld [vmem:[%s19863_s12 + $0x14ec] ss:$12 sps:$4 sm:$0xff]   ;;  %v18267_v5 = vld [vmem:[%s19863_s12 + $0x14e8] ss:$12 sps:$4 sm:$0xff]  }
 0x310   : > { %v12509_v31 = vpop.f32.mrf.mxu1  ;;  %12802 = vmatprep.subr.bf16.mxu1 %v18233_v8  ;;  %v18272_v8 = vld [vmem:[%s19863_s12 + $0x1354] ss:$12 sps:$4 sm:$0xff]   ;;  %v18278_v9 = vld [vmem:[%s19863_s12 + $0x133c] ss:$12 sps:$4 sm:$0xff]   ;;  %v18276_v26 = vld [vmem:[%s19863_s12 + $0x1338] ss:$12 sps:$4 sm:$0xff]  }
 0x311   : > { %v18275_v12 = vld [vmem:[%s19863_s12 + $0x14d4] ss:$12 sps:$4 sm:$0xff]   ;;  %v18281_v18 = vld [vmem:[%s19863_s12 + $0x14bc] ss:$12 sps:$4 sm:$0xff]   ;;  %v18279_v31 = vld [vmem:[%s19863_s12 + $0x14b8] ss:$12 sps:$4 sm:$0xff]  }
 0x312   : > { %12762 = vmatpush1.bf16.msra.mxu0 %v18228_v14  ;;  %v18270_v14 = vld [vmem:[%s19863_s12 + $0x1350] ss:$12 sps:$4 sm:$0xff]  }
 0x313   : > { %12803 = vmatpush1.bf16.msra.mxu1 %v18231_v16  ;;  %12763 = vmatprep.subr.bf16.mxu0 %v18236_v63  ;;  %v18273_v16 = vld [vmem:[%s19863_s12 + $0x14d0] ss:$12 sps:$4 sm:$0xff]  }
 0x314   : > { %12804 = vmatprep.subr.bf16.mxu1 %v18239_v32  ;;  %v18284_v63 = vld [vmem:[%s19863_s12 + $0x1324] ss:$12 sps:$4 sm:$0xff]  }
 0x315   : > { %v18287_v32 = vld [vmem:[%s19863_s12 + $0x14a4] ss:$12 sps:$4 sm:$0xff]  }
 0x316   : > { %12764 = vmatpush1.bf16.msra.mxu0 %v18234_v54  ;;  %v18282_v54 = vld [vmem:[%s19863_s12 + $0x1320] ss:$12 sps:$4 sm:$0xff]  }
 0x317   : > { %12805 = vmatpush1.bf16.msra.mxu1 %v18237_v35  ;;  %12765 = vmatprep.subr.bf16.mxu0 %v18242_v36  ;;  %v18285_v35 = vld [vmem:[%s19863_s12 + $0x14a0] ss:$12 sps:$4 sm:$0xff]  }
 0x318   : > { %12806 = vmatprep.subr.bf16.mxu1 %v18245_v3  ;;  %v18290_v36 = vld [vmem:[%s19863_s12 + $0x130c] ss:$12 sps:$4 sm:$0xff]  }
 0x319   : > { %v18293_v3 = vld [vmem:[%s19863_s12 + $0x148c] ss:$12 sps:$4 sm:$0xff]  }
 0x31a   : > { %12766 = vmatpush1.bf16.msra.mxu0 %v18240_v42  ;;  %v18288_v42 = vld [vmem:[%s19863_s12 + $0x1308] ss:$12 sps:$4 sm:$0xff]  }
 0x31b   : > { %12807 = vmatpush1.bf16.msra.mxu1 %v18243_v43  ;;  %12767 = vmatprep.subr.bf16.mxu0 %v18248_v49  ;;  %v18291_v43 = vld [vmem:[%s19863_s12 + $0x1488] ss:$12 sps:$4 sm:$0xff]  }
 0x31c   : > { %12808 = vmatprep.subr.bf16.mxu1 %v18251_v46  ;;  %v18296_v49 = vld [vmem:[%s19863_s12 + $0x12f4] ss:$12 sps:$4 sm:$0xff]  }
 0x31d   : > { %v18299_v46 = vld [vmem:[%s19863_s12 + $0x1474] ss:$12 sps:$4 sm:$0xff]  }
 0x31e   : > { %12768 = vmatpush1.bf16.msra.mxu0 %v18246_v33  ;;  %v1599_v33 = vld [vmem:[%s20998_s16 + $0x38] sm:$0xff] }
 0x31f   : > { %12809 = vmatpush1.bf16.msra.mxu1 %v18249_v48  ;;  %12769 = vmatprep.subr.bf16.mxu0 %v18254_v34  ;;  %v18294_v48 = vld [vmem:[%s19863_s12 + $0x12f0] ss:$12 sps:$4 sm:$0xff]  }
 0x320   : > { %12810 = vmatprep.subr.bf16.mxu1 %v18257_v28  ;;  %v18297_v34 = vld [vmem:[%s19863_s12 + $0x1470] ss:$12 sps:$4 sm:$0xff]  }
 0x321   : > { %v18302_v28 = vld [vmem:[%s19863_s12 + $0x12dc] ss:$12 sps:$4 sm:$0xff]  }
 0x322   : > { %12770 = vmatpush1.bf16.msra.mxu0 %v18252_v55  ;;  %v18305_v55 = vld [vmem:[%s19863_s12 + $0x145c] ss:$12 sps:$4 sm:$0xff]  }
 0x323   : > { %12811 = vmatpush1.bf16.msra.mxu1 %v18255_v58  ;;  %12771 = vmatprep.subr.bf16.mxu0 %v18260_v13  ;;  %v1743_v58 = vcombine.high %v1599_v33, %v1599_v33  ;;  %v18300_v13 = vld [vmem:[%s19863_s12 + $0x12d8] ss:$12 sps:$4 sm:$0xff]  }
 0x324   : > { %12812 = vmatprep.subr.bf16.mxu1 %v18263_v23  ;;  %v18303_v23 = vld [vmem:[%s19863_s12 + $0x1458] ss:$12 sps:$4 sm:$0xff]  }
 0x326   : > { %12772 = vmatpush1.bf16.msra.mxu0 %v18258_v29  ;;  %v18308_v29 = vld [vmem:[%s19863_s12 + $0x12c4] ss:$12 sps:$4 sm:$0xff]  }
 0x327   : > { %12813 = vmatpush1.bf16.msra.mxu1 %v18261_v0  ;;  %12773 = vmatprep.subr.bf16.mxu0 %v18266_v30  ;;  %v18311_v0 = vld [vmem:[%s19863_s12 + $0x1444] ss:$12 sps:$4 sm:$0xff]   ;;  %v21585_v30 = vrot.slane %v1599_v33, %v20994_v19  ;;  %v18330_v33 = vld [vmem:[%s19863_s12 + $0x16fc] ss:$12 sps:$4 sm:$0xff]  }
 0x328   : > { %12814 = vmatprep.subr.bf16.mxu1 %v18269_v1  ;;  %v21588_v1 = vrot.slane %v1743_v58, %v20994_v19 }
 0x32a   : > { %12774 = vmatpush2.bf16.msra.mxu0 %v18264_v21  ;;  %v18306_v21 = vld [vmem:[%s19863_s12 + $0x12c0] ss:$12 sps:$4 sm:$0xff]  }
 0x32b   : > { %12815 = vmatpush2.bf16.msra.mxu1 %v18267_v5  ;;  %12775 = vmatprep.subr.bf16.mxu0 %v18272_v8  ;;  %v18309_v5 = vld [vmem:[%s19863_s12 + $0x1440] ss:$12 sps:$4 sm:$0xff]  }
 0x32c   : > { %12816 = vmatprep.subr.bf16.mxu1 %v18275_v12  ;;  %v18315_v8 = vld [vmem:[%s19863_s12 + $0x15ac] ss:$12 sps:$4 sm:$0xff]  }
 0x32d   : > { %v18318_v12 = vld [vmem:[%s19863_s12 + $0x172c] ss:$12 sps:$4 sm:$0xff]  }
 0x32e   : > { %12776 = vmatpush2.bf16.msra.mxu0 %v18270_v14  ;;  %v18313_v14 = vld [vmem:[%s19863_s12 + $0x15a8] ss:$12 sps:$4 sm:$0xff]  }
 0x32f   : > { %12817 = vmatpush2.bf16.msra.mxu1 %v18273_v16  ;;  %12777 = vmatprep.subr.bf16.mxu0 %v18278_v9  ;;  %v18316_v16 = vld [vmem:[%s19863_s12 + $0x1728] ss:$12 sps:$4 sm:$0xff]   ;;  %v1758_v9 = vcombine.high %v21585_v30, %v21585_v30 }
 0x330   : > { %12818 = vmatprep.subr.bf16.mxu1 %v18281_v18  ;;  %v1759_v18 = vcombine.high %v21588_v1, %v21588_v1 }
 0x332   : > { %12778 = vmatpush2.bf16.msra.mxu0 %v18276_v26  ;;  %v21602_v26 = vpack.c.bf16 %v21488_v37, %v21488_v37 }
 0x333   : > { %12819 = vmatpush2.bf16.msra.mxu1 %v18279_v31  ;;  %12779 = vmatprep.subr.bf16.mxu0 %v18284_v63  ;;  %v21606_v31 = vpack.c.bf16 %v21491_v57, %v21491_v57  ;;  %v18321_v63 = vld [vmem:[%s19863_s12 + $0x1594] ss:$12 sps:$4 sm:$0xff]  }
 0x334   : > { %12820 = vmatprep.subr.bf16.mxu1 %v18287_v32  ;;  %v18324_v32 = vld [vmem:[%s19863_s12 + $0x1714] ss:$12 sps:$4 sm:$0xff]  }
 0x336   : > { %12780 = vmatpush2.bf16.msra.mxu0 %v18282_v54  ;;  %v18319_v54 = vld [vmem:[%s19863_s12 + $0x1590] ss:$12 sps:$4 sm:$0xff]  }
 0x337   : > { %12821 = vmatpush2.bf16.msra.mxu1 %v18285_v35  ;;  %12781 = vmatprep.subr.bf16.mxu0 %v18290_v36  ;;  %v18322_v35 = vld [vmem:[%s19863_s12 + $0x1710] ss:$12 sps:$4 sm:$0xff]   ;;  %v21612_v36 = vpack.c.bf16 %v1758_v9, %v1758_v9  ;;  %v18345_v9 = vld [vmem:[%s19863_s12 + $0x1534] ss:$12 sps:$4 sm:$0xff]  }
 0x338   : > { %12822 = vmatprep.subr.bf16.mxu1 %v18293_v3  ;;  %v21614_v3 = vpack.c.bf16 %v1759_v18, %v1759_v18  ;;  %v18348_v18 = vld [vmem:[%s19863_s12 + $0x16b4] ss:$12 sps:$4 sm:$0xff]  }
 0x33a   : > { %12782 = vmatpush2.bf16.msra.mxu0 %v18288_v42 }
 0x33b   : > { %12823 = vmatpush2.bf16.msra.mxu1 %v18291_v43  ;;  %12783 = vmatprep.subr.bf16.mxu0 %v18296_v49 }
 0x33c   : > { %12824 = vmatprep.subr.bf16.mxu1 %v18299_v46  ;;  %v18327_v46 = vld [vmem:[%s19863_s12 + $0x157c] ss:$12 sps:$4 sm:$0xff]  }
 0x33e   : > { %12784 = vmatpush2.bf16.msra.mxu0 %v18294_v48 }
 0x33f   : > { %12825 = vmatpush2.bf16.msra.mxu1 %v18297_v34  ;;  %12785 = vmatprep.subr.bf16.mxu0 %v18302_v28  ;;  %v18325_v28 = vld [vmem:[%s19863_s12 + $0x1578] ss:$12 sps:$4 sm:$0xff]  }
 0x340   : > { %12826 = vmatprep.subr.bf16.mxu1 %v18305_v55  ;;  %v18328_v55 = vld [vmem:[%s19863_s12 + $0x16f8] ss:$12 sps:$4 sm:$0xff]  }
 0x342   : > { %12786 = vmatpush2.bf16.msra.mxu0 %v18300_v13 }
 0x343   : > { %12827 = vmatpush2.bf16.msra.mxu1 %v18303_v23  ;;  %12787 = vmatprep.subr.bf16.mxu0 %v18308_v29 }
 0x344   : > { %12828 = vmatprep.subr.bf16.mxu1 %v18311_v0  ;;  %v18336_v0 = vld [vmem:[%s19863_s12 + $0x16e4] ss:$12 sps:$4 sm:$0xff]  }
 0x346   : > { %12788 = vmatpush2.bf16.msra.mxu0 %v18306_v21  ;;  %v18331_v21 = vld [vmem:[%s19863_s12 + $0x1560] ss:$12 sps:$4 sm:$0xff]  }
 0x347   : > { %12829 = vmatpush2.bf16.msra.mxu1 %v18309_v5  ;;  %12839 = vmatprep.subr.bf16.mxu0 %v18315_v8  ;;  %v18334_v5 = vld [vmem:[%s19863_s12 + $0x16e0] ss:$12 sps:$4 sm:$0xff]  }
 0x348   : > { %12880 = vmatprep.subr.bf16.mxu1 %v18318_v12  ;;  %v18339_v8 = vld [vmem:[%s19863_s12 + $0x154c] ss:$12 sps:$4 sm:$0xff]  }
 0x349   : > { %v12545_v37 = vpop.f32.mrf.mxu0  ;;  %12790 = vmatmul.mubr.bf16.vlgmr.msra.gmra.mxu0 %v21602_v26  ;;  %v18342_v12 = vld [vmem:[%s19863_s12 + $0x16cc] ss:$12 sps:$4 sm:$0xff]  }
 0x34a   : > { %v12586_v42 = vpop.f32.mrf.mxu1  ;;  %12831 = vmatmul.mubr.bf16.vlgmr.msra.gmra.mxu1 %v21606_v31  ;;  %v12546_v57 = vadd.f32 %v12545_v37, %v21524_v10  ;;  %12840 = vmatpush1.bf16.msra.mxu0 %v18313_v14  ;;  %v18337_v14 = vld [vmem:[%s19863_s12 + $0x1548] ss:$12 sps:$4 sm:$0xff]   ;;  %v18349_v37 = vld [vmem:[%s19863_s12 + $0x1518] ss:$12 sps:$4 sm:$0xff]  }
 0x34b   : > { %12881 = vmatpush1.bf16.msra.mxu1 %v18316_v16  ;;  %v12547_v43 = vpop.f32.mrf.mxu0  ;;  %12841 = vmatprep.subr.bf16.mxu0 %v18321_v63  ;;  %v18340_v16 = vld [vmem:[%s19863_s12 + $0x16c8] ss:$12 sps:$4 sm:$0xff]   ;;  %v18343_v63 = vld [vmem:[%s19863_s12 + $0x1530] ss:$12 sps:$4 sm:$0xff]  }
 0x34c   : > { %v12588_v49 = vpop.f32.mrf.mxu1  ;;  %12882 = vmatprep.subr.bf16.mxu1 %v18324_v32  ;;  %v21621_v48 = vadd.f32 %v12586_v42, %v12546_v57  ;;  %v12548_v34 = vadd.f32 %v12547_v43, %v21531_v24  ;;  %12871 = vmatprep.mubr.bf16.mxu0 %v21612_v36  ;;  %v18333_v24 = vld [vmem:[%s19863_s12 + $0x1564] ss:$12 sps:$4 sm:$0xff]  }
 0x34d   : > { %12912 = vmatprep.mubr.bf16.mxu1 %v21614_v3  ;;  %v12549_v10 = vpop.f32.mrf.mxu0  ;;  %v18346_v32 = vld [vmem:[%s19863_s12 + $0x16b0] ss:$12 sps:$4 sm:$0xff]   ;;  %v18352_v42 = vld [vmem:[%s19863_s12 + $0x1698] ss:$12 sps:$4 sm:$0xff]  }
 0x34e   : > { %v12590_v58 = vpop.f32.mrf.mxu1  ;;  %v21628_v13 = vadd.f32 %v12588_v49, %v12548_v34  ;;  %12842 = vmatpush1.bf16.msra.mxu0 %v18319_v54  ;;  %v18351_v54 = vld [vmem:[%s19863_s12 + $0x151c] ss:$12 sps:$4 sm:$0xff]   ;;  %v18357_v57 = vld [vmem:[%s19863_s12 + $0x1504] ss:$12 sps:$4 sm:$0xff]   ;;  %v18355_v49 = vld [vmem:[%s19863_s12 + $0x1500] ss:$12 sps:$4 sm:$0xff]  }
 0x34f   : > { %12883 = vmatpush1.bf16.msra.mxu1 %v18322_v35  ;;  %v12550_v23 = vpop.f32.mrf.mxu0  ;;  %12843 = vmatprep.subr.bf16.mxu0 %v18327_v46  ;;  %v18354_v35 = vld [vmem:[%s19863_s12 + $0x169c] ss:$12 sps:$4 sm:$0xff]   ;;  %v18360_v43 = vld [vmem:[%s19863_s12 + $0x1684] ss:$12 sps:$4 sm:$0xff]   ;;  %v18358_v46 = vld [vmem:[%s19863_s12 + $0x1680] ss:$12 sps:$4 sm:$0xff]  }
 0x350   : > { %v12591_v29 = vpop.f32.mrf.mxu1  ;;  %12884 = vmatprep.subr.bf16.mxu1 %v18330_v33  ;;  %v18363_v33 = vld [vmem:[%s19863_s12 + $0x166c] ss:$12 sps:$4 sm:$0xff]   ;;  %v18369_v10 = vld [vmem:[%s19863_s12 + $0x1654] ss:$12 sps:$4 sm:$0xff]   ;;  %v18367_v23 = vld [vmem:[%s19863_s12 + $0x1650] ss:$12 sps:$4 sm:$0xff]  }
 0x351   : > { %v18366_v34 = vld [vmem:[%s19863_s12 + $0x17ec] ss:$12 sps:$4 sm:$0xff]   ;;  %v18372_v58 = vld [vmem:[%s19863_s12 + $0x17d4] ss:$12 sps:$4 sm:$0xff]   ;;  %v18370_v29 = vld [vmem:[%s19863_s12 + $0x17d0] ss:$12 sps:$4 sm:$0xff]  }
 0x352   : > { %12844 = vmatpush1.bf16.msra.mxu0 %v18325_v28  ;;  %v18361_v28 = vld [vmem:[%s19863_s12 + $0x1668] ss:$12 sps:$4 sm:$0xff]  }
 0x353   : > { %12885 = vmatpush1.bf16.msra.mxu1 %v18328_v55  ;;  %12845 = vmatprep.subr.bf16.mxu0 %v18333_v24  ;;  %v18364_v55 = vld [vmem:[%s19863_s12 + $0x17e8] ss:$12 sps:$4 sm:$0xff]  }
 0x354   : > { %12886 = vmatprep.subr.bf16.mxu1 %v18336_v0  ;;  %v18375_v24 = vld [vmem:[%s19863_s12 + $0x163c] ss:$12 sps:$4 sm:$0xff]  }
 0x355   : > { %v18378_v0 = vld [vmem:[%s19863_s12 + $0x17bc] ss:$12 sps:$4 sm:$0xff]  }
 0x356   : > { %12846 = vmatpush1.bf16.msra.mxu0 %v18331_v21  ;;  %v18373_v21 = vld [vmem:[%s19863_s12 + $0x1638] ss:$12 sps:$4 sm:$0xff]  }
 0x357   : > { %12887 = vmatpush1.bf16.msra.mxu1 %v18334_v5  ;;  %12847 = vmatprep.subr.bf16.mxu0 %v18339_v8  ;;  %v18376_v5 = vld [vmem:[%s19863_s12 + $0x17b8] ss:$12 sps:$4 sm:$0xff]  }
 0x358   : > { %12888 = vmatprep.subr.bf16.mxu1 %v18342_v12  ;;  %v18381_v8 = vld [vmem:[%s19863_s12 + $0x1624] ss:$12 sps:$4 sm:$0xff]  }
 0x359   : > { %v18384_v12 = vld [vmem:[%s19863_s12 + $0x17a4] ss:$12 sps:$4 sm:$0xff]  }
 0x35a   : > { %12848 = vmatpush1.bf16.msra.mxu0 %v18337_v14  ;;  %v18379_v14 = vld [vmem:[%s19863_s12 + $0x1620] ss:$12 sps:$4 sm:$0xff]  }
 0x35b   : > { %12889 = vmatpush1.bf16.msra.mxu1 %v18340_v16  ;;  %12849 = vmatprep.subr.bf16.mxu0 %v18345_v9  ;;  %v18382_v16 = vld [vmem:[%s19863_s12 + $0x17a0] ss:$12 sps:$4 sm:$0xff]  }
 0x35c   : > { %12890 = vmatprep.subr.bf16.mxu1 %v18348_v18  ;;  %v18387_v9 = vld [vmem:[%s19863_s12 + $0x160c] ss:$12 sps:$4 sm:$0xff]  }
 0x35d   : > { %v18390_v18 = vld [vmem:[%s19863_s12 + $0x178c] ss:$12 sps:$4 sm:$0xff]  }
 0x35e   : > { %12850 = vmatpush1.bf16.msra.mxu0 %v18343_v63  ;;  %v18385_v63 = vld [vmem:[%s19863_s12 + $0x1608] ss:$12 sps:$4 sm:$0xff]  }
 0x35f   : > { %12891 = vmatpush1.bf16.msra.mxu1 %v18346_v32  ;;  %12851 = vmatprep.subr.bf16.mxu0 %v18351_v54  ;;  %v18388_v32 = vld [vmem:[%s19863_s12 + $0x1788] ss:$12 sps:$4 sm:$0xff]  }
 0x360   : > { %12892 = vmatprep.subr.bf16.mxu1 %v18354_v35  ;;  %v18393_v54 = vld [vmem:[%s19863_s12 + $0x15f4] ss:$12 sps:$4 sm:$0xff]  }
 0x361   : > { %v18396_v35 = vld [vmem:[%s19863_s12 + $0x1774] ss:$12 sps:$4 sm:$0xff]  }
 0x362   : > { %12852 = vmatpush1.bf16.msra.mxu0 %v18349_v37  ;;  %v1600_v37 = vld [vmem:[%s20998_s16 + $0x40] sm:$0xff] }
 0x363   : > { %12893 = vmatpush1.bf16.msra.mxu1 %v18352_v42  ;;  %12853 = vmatprep.subr.bf16.mxu0 %v18357_v57  ;;  %v18391_v42 = vld [vmem:[%s19863_s12 + $0x15f0] ss:$12 sps:$4 sm:$0xff]  }
 0x364   : > { %12894 = vmatprep.subr.bf16.mxu1 %v18360_v43  ;;  %v18394_v57 = vld [vmem:[%s19863_s12 + $0x1770] ss:$12 sps:$4 sm:$0xff]  }
 0x365   : > { %v18399_v43 = vld [vmem:[%s19863_s12 + $0x15dc] ss:$12 sps:$4 sm:$0xff]  }
 0x366   : > { %12854 = vmatpush1.bf16.msra.mxu0 %v18355_v49  ;;  %v18402_v49 = vld [vmem:[%s19863_s12 + $0x175c] ss:$12 sps:$4 sm:$0xff]  }
 0x367   : > { %12895 = vmatpush1.bf16.msra.mxu1 %v18358_v46  ;;  %12855 = vmatprep.subr.bf16.mxu0 %v18363_v33  ;;  %v1760_v46 = vcombine.high %v1600_v37, %v1600_v37  ;;  %v18397_v33 = vld [vmem:[%s19863_s12 + $0x15d8] ss:$12 sps:$4 sm:$0xff]  }
 0x368   : > { %12896 = vmatprep.subr.bf16.mxu1 %v18366_v34  ;;  %v18400_v34 = vld [vmem:[%s19863_s12 + $0x1758] ss:$12 sps:$4 sm:$0xff]  }
 0x36a   : > { %12856 = vmatpush2.bf16.msra.mxu0 %v18361_v28  ;;  %v18405_v28 = vld [vmem:[%s19863_s12 + $0x15c4] ss:$12 sps:$4 sm:$0xff]  }
 0x36b   : > { %12897 = vmatpush2.bf16.msra.mxu1 %v18364_v55  ;;  %12857 = vmatprep.subr.bf16.mxu0 %v18369_v10  ;;  %v18408_v55 = vld [vmem:[%s19863_s12 + $0x1744] ss:$12 sps:$4 sm:$0xff]   ;;  %v21682_v10 = vrot.slane %v1600_v37, %v20994_v19 }
 0x36c   : > { %12898 = vmatprep.subr.bf16.mxu1 %v18372_v58  ;;  %v21685_v58 = vrot.slane %v1760_v46, %v20994_v19 }
 0x36e   : > { %12858 = vmatpush2.bf16.msra.mxu0 %v18367_v23  ;;  %v18403_v23 = vld [vmem:[%s19863_s12 + $0x15c0] ss:$12 sps:$4 sm:$0xff]  }
 0x36f   : > { %12899 = vmatpush2.bf16.msra.mxu1 %v18370_v29  ;;  %12859 = vmatprep.subr.bf16.mxu0 %v18375_v24  ;;  %v18406_v29 = vld [vmem:[%s19863_s12 + $0x1740] ss:$12 sps:$4 sm:$0xff]  }
 0x370   : > { %12900 = vmatprep.subr.bf16.mxu1 %v18378_v0  ;;  %v18412_v24 = vld [vmem:[%s19863_s12 + $0x18ac] ss:$12 sps:$4 sm:$0xff]  }
 0x371   : > { %v18415_v0 = vld [vmem:[%s19863_s12 + $0x1a2c] ss:$12 sps:$4 sm:$0xff]  }
 0x372   : > { %12860 = vmatpush2.bf16.msra.mxu0 %v18373_v21  ;;  %v18410_v21 = vld [vmem:[%s19863_s12 + $0x18a8] ss:$12 sps:$4 sm:$0xff]  }
 0x373   : > { %12901 = vmatpush2.bf16.msra.mxu1 %v18376_v5  ;;  %12861 = vmatprep.subr.bf16.mxu0 %v18381_v8  ;;  %v18413_v5 = vld [vmem:[%s19863_s12 + $0x1a28] ss:$12 sps:$4 sm:$0xff]   ;;  %v1775_v8 = vcombine.high %v21682_v10, %v21682_v10 }
 0x374   : > { %12902 = vmatprep.subr.bf16.mxu1 %v18384_v12  ;;  %v1776_v12 = vcombine.high %v21685_v58, %v21685_v58 }
 0x376   : > { %12862 = vmatpush2.bf16.msra.mxu0 %v18379_v14  ;;  %v21699_v14 = vpack.c.bf16 %v21585_v30, %v21585_v30 }
 0x377   : > { %12903 = vmatpush2.bf16.msra.mxu1 %v18382_v16  ;;  %12863 = vmatprep.subr.bf16.mxu0 %v18387_v9  ;;  %v21703_v16 = vpack.c.bf16 %v21588_v1, %v21588_v1  ;;  %v18418_v9 = vld [vmem:[%s19863_s12 + $0x1894] ss:$12 sps:$4 sm:$0xff]  }
 0x378   : > { %12904 = vmatprep.subr.bf16.mxu1 %v18390_v18  ;;  %v18421_v18 = vld [vmem:[%s19863_s12 + $0x1a14] ss:$12 sps:$4 sm:$0xff]  }
 0x37a   : > { %12864 = vmatpush2.bf16.msra.mxu0 %v18385_v63  ;;  %v18416_v63 = vld [vmem:[%s19863_s12 + $0x1890] ss:$12 sps:$4 sm:$0xff]  }
 0x37b   : > { %12905 = vmatpush2.bf16.msra.mxu1 %v18388_v32  ;;  %12865 = vmatprep.subr.bf16.mxu0 %v18393_v54  ;;  %v18419_v32 = vld [vmem:[%s19863_s12 + $0x1a10] ss:$12 sps:$4 sm:$0xff]   ;;  %v21709_v54 = vpack.c.bf16 %v1775_v8, %v1775_v8  ;;  %v18436_v8 = vld [vmem:[%s19863_s12 + $0x184c] ss:$12 sps:$4 sm:$0xff]  }
 0x37c   : > { %12906 = vmatprep.subr.bf16.mxu1 %v18396_v35  ;;  %v21711_v35 = vpack.c.bf16 %v1776_v12, %v1776_v12  ;;  %v18439_v12 = vld [vmem:[%s19863_s12 + $0x19cc] ss:$12 sps:$4 sm:$0xff]  }
 0x37e   : > { %12866 = vmatpush2.bf16.msra.mxu0 %v18391_v42 }
 0x37f   : > { %12907 = vmatpush2.bf16.msra.mxu1 %v18394_v57  ;;  %12867 = vmatprep.subr.bf16.mxu0 %v18399_v43  ;;  %v18424_v43 = vld [vmem:[%s19863_s12 + $0x187c] ss:$12 sps:$4 sm:$0xff]  }
 0x380   : > { %12908 = vmatprep.subr.bf16.mxu1 %v18402_v49  ;;  %v18427_v49 = vld [vmem:[%s19863_s12 + $0x19fc] ss:$12 sps:$4 sm:$0xff]  }
 0x382   : > { %12868 = vmatpush2.bf16.msra.mxu0 %v18397_v33 }
 0x383   : > { %12909 = vmatpush2.bf16.msra.mxu1 %v18400_v34  ;;  %12869 = vmatprep.subr.bf16.mxu0 %v18405_v28  ;;  %v18422_v34 = vld [vmem:[%s19863_s12 + $0x1878] ss:$12 sps:$4 sm:$0xff]  }
 0x384   : > { %12910 = vmatprep.subr.bf16.mxu1 %v18408_v55  ;;  %v18425_v28 = vld [vmem:[%s19863_s12 + $0x19f8] ss:$12 sps:$4 sm:$0xff]  }
 0x386   : > { %12870 = vmatpush2.bf16.msra.mxu0 %v18403_v23 }
 0x387   : > { %12911 = vmatpush2.bf16.msra.mxu1 %v18406_v29  ;;  %12921 = vmatprep.subr.bf16.mxu0 %v18412_v24 }
 0x388   : > { %12962 = vmatprep.subr.bf16.mxu1 %v18415_v0  ;;  %v18433_v0 = vld [vmem:[%s19863_s12 + $0x19e4] ss:$12 sps:$4 sm:$0xff]  }
 0x389   : > { %v12627_v30 = vpop.f32.mrf.mxu0  ;;  %12872 = vmatmul.mubr.bf16.vlgmr.msra.gmra.mxu0 %v21699_v14 }
 0x38a   : > { %v12668_v37 = vpop.f32.mrf.mxu1  ;;  %12913 = vmatmul.mubr.bf16.vlgmr.msra.gmra.mxu1 %v21703_v16  ;;  %v12628_v1 = vadd.f32 %v12627_v30, %v21621_v48  ;;  %12922 = vmatpush1.bf16.msra.mxu0 %v18410_v21  ;;  %v18428_v21 = vld [vmem:[%s19863_s12 + $0x1860] ss:$12 sps:$4 sm:$0xff]   ;;  %v18440_v30 = vld [vmem:[%s19863_s12 + $0x1830] ss:$12 sps:$4 sm:$0xff]  }
 0x38b   : > { %12963 = vmatpush1.bf16.msra.mxu1 %v18413_v5  ;;  %v12629_v42 = vpop.f32.mrf.mxu0  ;;  %12923 = vmatprep.subr.bf16.mxu0 %v18418_v9  ;;  %v18431_v5 = vld [vmem:[%s19863_s12 + $0x19e0] ss:$12 sps:$4 sm:$0xff]   ;;  %v18434_v9 = vld [vmem:[%s19863_s12 + $0x1848] ss:$12 sps:$4 sm:$0xff]  }
 0x38c   : > { %v12670_v57 = vpop.f32.mrf.mxu1  ;;  %12964 = vmatprep.subr.bf16.mxu1 %v18421_v18  ;;  %v21718_v46 = vadd.f32 %v12668_v37, %v12628_v1  ;;  %v12630_v33 = vadd.f32 %v12629_v42, %v21628_v13  ;;  %12953 = vmatprep.mubr.bf16.mxu0 %v21709_v54  ;;  %v18430_v13 = vld [vmem:[%s19863_s12 + $0x1864] ss:$12 sps:$4 sm:$0xff]   ;;  %v18437_v18 = vld [vmem:[%s19863_s12 + $0x19c8] ss:$12 sps:$4 sm:$0xff]  }
 0x38d   : > { %12994 = vmatprep.mubr.bf16.mxu1 %v21711_v35  ;;  %v12631_v48 = vpop.f32.mrf.mxu0  ;;  %v18443_v37 = vld [vmem:[%s19863_s12 + $0x19b0] ss:$12 sps:$4 sm:$0xff]  }
 0x38e   : > { %v12672_v55 = vpop.f32.mrf.mxu1  ;;  %v21725_v23 = vadd.f32 %v12670_v57, %v12630_v33  ;;  %12924 = vmatpush1.bf16.msra.mxu0 %v18416_v63  ;;  %v18442_v63 = vld [vmem:[%s19863_s12 + $0x1834] ss:$12 sps:$4 sm:$0xff]   ;;  %v18448_v1 = vld [vmem:[%s19863_s12 + $0x181c] ss:$12 sps:$4 sm:$0xff]   ;;  %v18446_v57 = vld [vmem:[%s19863_s12 + $0x1818] ss:$12 sps:$4 sm:$0xff]  }
 0x38f   : > { %12965 = vmatpush1.bf16.msra.mxu1 %v18419_v32  ;;  %v12632_v29 = vpop.f32.mrf.mxu0  ;;  %12925 = vmatprep.subr.bf16.mxu0 %v18424_v43  ;;  %v18445_v32 = vld [vmem:[%s19863_s12 + $0x19b4] ss:$12 sps:$4 sm:$0xff]   ;;  %v18451_v42 = vld [vmem:[%s19863_s12 + $0x199c] ss:$12 sps:$4 sm:$0xff]   ;;  %v18449_v43 = vld [vmem:[%s19863_s12 + $0x1998] ss:$12 sps:$4 sm:$0xff]  }
 0x390   : > { %v12673_v24 = vpop.f32.mrf.mxu1  ;;  %12966 = vmatprep.subr.bf16.mxu1 %v18427_v49  ;;  %v18454_v49 = vld [vmem:[%s19863_s12 + $0x1804] ss:$12 sps:$4 sm:$0xff]   ;;  %v18460_v48 = vld [vmem:[%s19863_s12 + $0x196c] ss:$12 sps:$4 sm:$0xff]   ;;  %v18458_v29 = vld [vmem:[%s19863_s12 + $0x1968] ss:$12 sps:$4 sm:$0xff]  }
 0x391   : > { %v18457_v33 = vld [vmem:[%s19863_s12 + $0x1984] ss:$12 sps:$4 sm:$0xff]   ;;  %v18463_v55 = vld [vmem:[%s19863_s12 + $0x1aec] ss:$12 sps:$4 sm:$0xff]   ;;  %v18461_v24 = vld [vmem:[%s19863_s12 + $0x1ae8] ss:$12 sps:$4 sm:$0xff]  }
 0x392   : > { %12926 = vmatpush1.bf16.msra.mxu0 %v18422_v34  ;;  %v18452_v34 = vld [vmem:[%s19863_s12 + $0x1800] ss:$12 sps:$4 sm:$0xff]  }
 0x393   : > { %12967 = vmatpush1.bf16.msra.mxu1 %v18425_v28  ;;  %12927 = vmatprep.subr.bf16.mxu0 %v18430_v13  ;;  %v18455_v28 = vld [vmem:[%s19863_s12 + $0x1980] ss:$12 sps:$4 sm:$0xff]  }
 0x394   : > { %12968 = vmatprep.subr.bf16.mxu1 %v18433_v0  ;;  %v18466_v13 = vld [vmem:[%s19863_s12 + $0x1954] ss:$12 sps:$4 sm:$0xff]  }
 0x395   : > { %v18469_v0 = vld [vmem:[%s19863_s12 + $0x1ad4] ss:$12 sps:$4 sm:$0xff]  }
 0x396   : > { %12928 = vmatpush1.bf16.msra.mxu0 %v18428_v21  ;;  %v18464_v21 = vld [vmem:[%s19863_s12 + $0x1950] ss:$12 sps:$4 sm:$0xff]  }
 0x397   : > { %12969 = vmatpush1.bf16.msra.mxu1 %v18431_v5  ;;  %12929 = vmatprep.subr.bf16.mxu0 %v18436_v8  ;;  %v18467_v5 = vld [vmem:[%s19863_s12 + $0x1ad0] ss:$12 sps:$4 sm:$0xff]  }
 0x398   : > { %12970 = vmatprep.subr.bf16.mxu1 %v18439_v12  ;;  %v18472_v8 = vld [vmem:[%s19863_s12 + $0x193c] ss:$12 sps:$4 sm:$0xff]  }
 0x399   : > { %v18475_v12 = vld [vmem:[%s19863_s12 + $0x1abc] ss:$12 sps:$4 sm:$0xff]  }
 0x39a   : > { %12930 = vmatpush1.bf16.msra.mxu0 %v18434_v9  ;;  %v18470_v9 = vld [vmem:[%s19863_s12 + $0x1938] ss:$12 sps:$4 sm:$0xff]  }
 0x39b   : > { %12971 = vmatpush1.bf16.msra.mxu1 %v18437_v18  ;;  %12931 = vmatprep.subr.bf16.mxu0 %v18442_v63  ;;  %v18473_v18 = vld [vmem:[%s19863_s12 + $0x1ab8] ss:$12 sps:$4 sm:$0xff]  }
 0x39c   : > { %12972 = vmatprep.subr.bf16.mxu1 %v18445_v32  ;;  %v18478_v63 = vld [vmem:[%s19863_s12 + $0x1924] ss:$12 sps:$4 sm:$0xff]  }
 0x39d   : > { %v18481_v32 = vld [vmem:[%s19863_s12 + $0x1aa4] ss:$12 sps:$4 sm:$0xff]  }
 0x39e   : > { %12932 = vmatpush1.bf16.msra.mxu0 %v18440_v30  ;;  %v18476_v30 = vld [vmem:[%s19863_s12 + $0x1920] ss:$12 sps:$4 sm:$0xff]  }
 0x39f   : > { %12973 = vmatpush1.bf16.msra.mxu1 %v18443_v37  ;;  %12933 = vmatprep.subr.bf16.mxu0 %v18448_v1  ;;  %v18479_v37 = vld [vmem:[%s19863_s12 + $0x1aa0] ss:$12 sps:$4 sm:$0xff]  }
 0x3a0   : > { %12974 = vmatprep.subr.bf16.mxu1 %v18451_v42  ;;  %v18484_v1 = vld [vmem:[%s19863_s12 + $0x190c] ss:$12 sps:$4 sm:$0xff]  }
 0x3a1   : > { %v18487_v42 = vld [vmem:[%s19863_s12 + $0x1a8c] ss:$12 sps:$4 sm:$0xff]  }
 0x3a2   : > { %12934 = vmatpush1.bf16.msra.mxu0 %v18446_v57  ;;  %v18482_v57 = vld [vmem:[%s19863_s12 + $0x1908] ss:$12 sps:$4 sm:$0xff]  }
 0x3a3   : > { %12975 = vmatpush1.bf16.msra.mxu1 %v18449_v43  ;;  %12935 = vmatprep.subr.bf16.mxu0 %v18454_v49  ;;  %v18485_v43 = vld [vmem:[%s19863_s12 + $0x1a88] ss:$12 sps:$4 sm:$0xff]  }
 0x3a4   : > { %12976 = vmatprep.subr.bf16.mxu1 %v18457_v33  ;;  %v18490_v49 = vld [vmem:[%s19863_s12 + $0x18f4] ss:$12 sps:$4 sm:$0xff]  }
 0x3a5   : > { %v18493_v33 = vld [vmem:[%s19863_s12 + $0x1a74] ss:$12 sps:$4 sm:$0xff]  }
 0x3a6   : > { %12936 = vmatpush1.bf16.msra.mxu0 %v18452_v34  ;;  %v1601_v34 = vld [vmem:[%s20998_s16 + $0x48] sm:$0xff] }
 0x3a7   : > { %12977 = vmatpush1.bf16.msra.mxu1 %v18455_v28  ;;  %12937 = vmatprep.subr.bf16.mxu0 %v18460_v48  ;;  %v18488_v28 = vld [vmem:[%s19863_s12 + $0x18f0] ss:$12 sps:$4 sm:$0xff]  }
 0x3a8   : > { %12978 = vmatprep.subr.bf16.mxu1 %v18463_v55  ;;  %v18491_v48 = vld [vmem:[%s19863_s12 + $0x1a70] ss:$12 sps:$4 sm:$0xff]  }
 0x3a9   : > { %v18496_v55 = vld [vmem:[%s19863_s12 + $0x18dc] ss:$12 sps:$4 sm:$0xff]  }
 0x3aa   : > { %12938 = vmatpush2.bf16.msra.mxu0 %v18458_v29  ;;  %v18499_v29 = vld [vmem:[%s19863_s12 + $0x1a5c] ss:$12 sps:$4 sm:$0xff]  }
 0x3ab   : > { %12979 = vmatpush2.bf16.msra.mxu1 %v18461_v24  ;;  %12939 = vmatprep.subr.bf16.mxu0 %v18466_v13  ;;  %v1777_v24 = vcombine.high %v1601_v34, %v1601_v34  ;;  %v18494_v13 = vld [vmem:[%s19863_s12 + $0x18d8] ss:$12 sps:$4 sm:$0xff]  }
 0x3ac   : > { %12980 = vmatprep.subr.bf16.mxu1 %v18469_v0  ;;  %v18497_v0 = vld [vmem:[%s19863_s12 + $0x1a58] ss:$12 sps:$4 sm:$0xff]  }
 0x3ae   : > { %12940 = vmatpush2.bf16.msra.mxu0 %v18464_v21  ;;  %v18502_v21 = vld [vmem:[%s19863_s12 + $0x18c4] ss:$12 sps:$4 sm:$0xff]  }
 0x3af   : > { %12981 = vmatpush2.bf16.msra.mxu1 %v18467_v5  ;;  %12941 = vmatprep.subr.bf16.mxu0 %v18472_v8  ;;  %v18505_v5 = vld [vmem:[%s19863_s12 + $0x1a44] ss:$12 sps:$4 sm:$0xff]   ;;  %v21779_v8 = vrot.slane %v1601_v34, %v20994_v19 }
 0x3b0   : > { %12982 = vmatprep.subr.bf16.mxu1 %v18475_v12  ;;  %v21782_v12 = vrot.slane %v1777_v24, %v20994_v19  ;;  %v18513_v34 = vld [vmem:[%s19863_s12 + $0x1b90] ss:$12 sps:$4 sm:$0xff]  }
 0x3b2   : > { %12942 = vmatpush2.bf16.msra.mxu0 %v18470_v9  ;;  %v18500_v9 = vld [vmem:[%s19863_s12 + $0x18c0] ss:$12 sps:$4 sm:$0xff]  }
 0x3b3   : > { %12983 = vmatpush2.bf16.msra.mxu1 %v18473_v18  ;;  %12943 = vmatprep.subr.bf16.mxu0 %v18478_v63  ;;  %v18503_v18 = vld [vmem:[%s19863_s12 + $0x1a40] ss:$12 sps:$4 sm:$0xff]  }
 0x3b4   : > { %12984 = vmatprep.subr.bf16.mxu1 %v18481_v32  ;;  %v18509_v63 = vld [vmem:[%s19863_s12 + $0x1bac] ss:$12 sps:$4 sm:$0xff]  }
 0x3b5   : > { %v18512_v32 = vld [vmem:[%s19863_s12 + $0x1d2c] ss:$12 sps:$4 sm:$0xff]  }
 0x3b6   : > { %12944 = vmatpush2.bf16.msra.mxu0 %v18476_v30  ;;  %v18507_v30 = vld [vmem:[%s19863_s12 + $0x1ba8] ss:$12 sps:$4 sm:$0xff]  }
 0x3b7   : > { %12985 = vmatpush2.bf16.msra.mxu1 %v18479_v37  ;;  %12945 = vmatprep.subr.bf16.mxu0 %v18484_v1  ;;  %v18510_v37 = vld [vmem:[%s19863_s12 + $0x1d28] ss:$12 sps:$4 sm:$0xff]   ;;  %v1792_v1 = vcombine.high %v21779_v8, %v21779_v8 }
 0x3b8   : > { %12986 = vmatprep.subr.bf16.mxu1 %v18487_v42  ;;  %v1793_v42 = vcombine.high %v21782_v12, %v21782_v12 }
 0x3ba   : > { %12946 = vmatpush2.bf16.msra.mxu0 %v18482_v57  ;;  %v21796_v57 = vpack.c.bf16 %v21682_v10, %v21682_v10 }
 0x3bb   : > { %12987 = vmatpush2.bf16.msra.mxu1 %v18485_v43  ;;  %12947 = vmatprep.subr.bf16.mxu0 %v18490_v49  ;;  %v21800_v43 = vpack.c.bf16 %v21685_v58, %v21685_v58  ;;  %v18515_v49 = vld [vmem:[%s19863_s12 + $0x1b94] ss:$12 sps:$4 sm:$0xff]  }
 0x3bc   : > { %12988 = vmatprep.subr.bf16.mxu1 %v18493_v33  ;;  %v18518_v33 = vld [vmem:[%s19863_s12 + $0x1d14] ss:$12 sps:$4 sm:$0xff]  }
 0x3be   : > { %12948 = vmatpush2.bf16.msra.mxu0 %v18488_v28  ;;  %v18516_v28 = vld [vmem:[%s19863_s12 + $0x1d10] ss:$12 sps:$4 sm:$0xff]  }
 0x3bf   : > { %12989 = vmatpush2.bf16.msra.mxu1 %v18491_v48  ;;  %12949 = vmatprep.subr.bf16.mxu0 %v18496_v55  ;;  %v21806_v48 = vpack.c.bf16 %v1792_v1, %v1792_v1  ;;  %v21808_v55 = vpack.c.bf16 %v1793_v42, %v1793_v42  ;;  %v18530_v42 = vld [vmem:[%s19863_s12 + $0x1ce4] ss:$12 sps:$4 sm:$0xff]  }
 0x3c0   : > { %12990 = vmatprep.subr.bf16.mxu1 %v18499_v29 }
 0x3c2   : > { %12950 = vmatpush2.bf16.msra.mxu0 %v18494_v13 }
 0x3c3   : > { %12991 = vmatpush2.bf16.msra.mxu1 %v18497_v0  ;;  %12951 = vmatprep.subr.bf16.mxu0 %v18502_v21  ;;  %v18521_v0 = vld [vmem:[%s19863_s12 + $0x1b7c] ss:$12 sps:$4 sm:$0xff]  }
 0x3c4   : > { %12992 = vmatprep.subr.bf16.mxu1 %v18505_v5  ;;  %v18524_v21 = vld [vmem:[%s19863_s12 + $0x1cfc] ss:$12 sps:$4 sm:$0xff]  }
 0x3c6   : > { %12952 = vmatpush2.bf16.msra.mxu0 %v18500_v9 }
 0x3c7   : > { %12993 = vmatpush2.bf16.msra.mxu1 %v18503_v18  ;;  %13003 = vmatprep.subr.bf16.mxu0 %v18509_v63  ;;  %v18519_v18 = vld [vmem:[%s19863_s12 + $0x1b78] ss:$12 sps:$4 sm:$0xff]  }
 0x3c8   : > { %13044 = vmatprep.subr.bf16.mxu1 %v18512_v32  ;;  %v18522_v63 = vld [vmem:[%s19863_s12 + $0x1cf8] ss:$12 sps:$4 sm:$0xff]  }
 0x3c9   : > { %v12709_v10 = vpop.f32.mrf.mxu0  ;;  %12954 = vmatmul.mubr.bf16.vlgmr.msra.gmra.mxu0 %v21796_v57 }
 0x3ca   : > { %v12750_v29 = vpop.f32.mrf.mxu1  ;;  %12995 = vmatmul.mubr.bf16.vlgmr.msra.gmra.mxu1 %v21800_v43  ;;  %v12710_v58 = vadd.f32 %v12709_v10, %v21718_v46  ;;  %13004 = vmatpush1.bf16.msra.mxu0 %v18507_v30  ;;  %v18531_v10 = vld [vmem:[%s19863_s12 + $0x1b48] ss:$12 sps:$4 sm:$0xff]  }
 0x3cb   : > { %13045 = vmatpush1.bf16.msra.mxu1 %v18510_v37  ;;  %v12711_v24 = vpop.f32.mrf.mxu0  ;;  %13005 = vmatprep.subr.bf16.mxu0 %v18515_v49  ;;  %v18525_v49 = vld [vmem:[%s19863_s12 + $0x1b60] ss:$12 sps:$4 sm:$0xff]  }
 0x3cc   : > { %v12752_v13 = vpop.f32.mrf.mxu1  ;;  %13046 = vmatprep.subr.bf16.mxu1 %v18518_v33  ;;  %v21815_v5 = vadd.f32 %v12750_v29, %v12710_v58  ;;  %v12712_v9 = vadd.f32 %v12711_v24, %v21725_v23  ;;  %13035 = vmatprep.mubr.bf16.mxu0 %v21806_v48  ;;  %v18527_v23 = vld [vmem:[%s19863_s12 + $0x1b64] ss:$12 sps:$4 sm:$0xff]   ;;  %v18528_v33 = vld [vmem:[%s19863_s12 + $0x1ce0] ss:$12 sps:$4 sm:$0xff]   ;;  %v18534_v29 = vld [vmem:[%s19863_s12 + $0x1cc8] ss:$12 sps:$4 sm:$0xff]  }
 0x3cd   : > { %13076 = vmatprep.mubr.bf16.mxu1 %v21808_v55  ;;  %v12713_v46 = vpop.f32.mrf.mxu0  ;;  %v18539_v58 = vld [vmem:[%s19863_s12 + $0x1b34] ss:$12 sps:$4 sm:$0xff]  }
 0x3ce   : > { %v12754_v32 = vpop.f32.mrf.mxu1  ;;  %v21822_v30 = vadd.f32 %v12752_v13, %v12712_v9  ;;  %13006 = vmatpush1.bf16.msra.mxu0 %v18513_v34  ;;  %v18533_v34 = vld [vmem:[%s19863_s12 + $0x1b4c] ss:$12 sps:$4 sm:$0xff]   ;;  %v18542_v24 = vld [vmem:[%s19863_s12 + $0x1cb4] ss:$12 sps:$4 sm:$0xff]   ;;  %v18537_v13 = vld [vmem:[%s19863_s12 + $0x1b30] ss:$12 sps:$4 sm:$0xff]  }
 0x3cf   : > { %13047 = vmatpush1.bf16.msra.mxu1 %v18516_v28  ;;  %v12714_v37 = vpop.f32.mrf.mxu0  ;;  %13007 = vmatprep.subr.bf16.mxu0 %v18521_v0  ;;  %v18536_v28 = vld [vmem:[%s19863_s12 + $0x1ccc] ss:$12 sps:$4 sm:$0xff]   ;;  %v18540_v0 = vld [vmem:[%s19863_s12 + $0x1cb0] ss:$12 sps:$4 sm:$0xff]  }
 0x3d0   : > { %v12755_v1 = vpop.f32.mrf.mxu1  ;;  %13048 = vmatprep.subr.bf16.mxu1 %v18524_v21  ;;  %v18545_v21 = vld [vmem:[%s19863_s12 + $0x1b1c] ss:$12 sps:$4 sm:$0xff]   ;;  %v18551_v46 = vld [vmem:[%s19863_s12 + $0x1b04] ss:$12 sps:$4 sm:$0xff]   ;;  %v18549_v37 = vld [vmem:[%s19863_s12 + $0x1b00] ss:$12 sps:$4 sm:$0xff]  }
 0x3d1   : > { %v18548_v9 = vld [vmem:[%s19863_s12 + $0x1c9c] ss:$12 sps:$4 sm:$0xff]   ;;  %v18554_v32 = vld [vmem:[%s19863_s12 + $0x1c84] ss:$12 sps:$4 sm:$0xff]   ;;  %v18552_v1 = vld [vmem:[%s19863_s12 + $0x1c80] ss:$12 sps:$4 sm:$0xff]  }
 0x3d2   : > { %13008 = vmatpush1.bf16.msra.mxu0 %v18519_v18  ;;  %v18543_v18 = vld [vmem:[%s19863_s12 + $0x1b18] ss:$12 sps:$4 sm:$0xff]  }
 0x3d3   : > { %13049 = vmatpush1.bf16.msra.mxu1 %v18522_v63  ;;  %13009 = vmatprep.subr.bf16.mxu0 %v18527_v23  ;;  %v18546_v63 = vld [vmem:[%s19863_s12 + $0x1c98] ss:$12 sps:$4 sm:$0xff]  }
 0x3d4   : > { %13050 = vmatprep.subr.bf16.mxu1 %v18530_v42  ;;  %v18557_v23 = vld [vmem:[%s19863_s12 + $0x1c6c] ss:$12 sps:$4 sm:$0xff]  }
 0x3d5   : > { %v18560_v42 = vld [vmem:[%s19863_s12 + $0x1dec] ss:$12 sps:$4 sm:$0xff]  }
 0x3d6   : > { %13010 = vmatpush1.bf16.msra.mxu0 %v18525_v49  ;;  %v18555_v49 = vld [vmem:[%s19863_s12 + $0x1c68] ss:$12 sps:$4 sm:$0xff]  }
 0x3d7   : > { %13051 = vmatpush1.bf16.msra.mxu1 %v18528_v33  ;;  %13011 = vmatprep.subr.bf16.mxu0 %v18533_v34  ;;  %v18558_v33 = vld [vmem:[%s19863_s12 + $0x1de8] ss:$12 sps:$4 sm:$0xff]  }
 0x3d8   : > { %13052 = vmatprep.subr.bf16.mxu1 %v18536_v28  ;;  %v18563_v34 = vld [vmem:[%s19863_s12 + $0x1c54] ss:$12 sps:$4 sm:$0xff]  }
 0x3d9   : > { %v18566_v28 = vld [vmem:[%s19863_s12 + $0x1dd4] ss:$12 sps:$4 sm:$0xff]  }
 0x3da   : > { %13012 = vmatpush1.bf16.msra.mxu0 %v18531_v10  ;;  %v18561_v10 = vld [vmem:[%s19863_s12 + $0x1c50] ss:$12 sps:$4 sm:$0xff]  }
 0x3db   : > { %13053 = vmatpush1.bf16.msra.mxu1 %v18534_v29  ;;  %13013 = vmatprep.subr.bf16.mxu0 %v18539_v58  ;;  %v18564_v29 = vld [vmem:[%s19863_s12 + $0x1dd0] ss:$12 sps:$4 sm:$0xff]  }
 0x3dc   : > { %13054 = vmatprep.subr.bf16.mxu1 %v18542_v24  ;;  %v18569_v58 = vld [vmem:[%s19863_s12 + $0x1c3c] ss:$12 sps:$4 sm:$0xff]  }
 0x3dd   : > { %v18572_v24 = vld [vmem:[%s19863_s12 + $0x1dbc] ss:$12 sps:$4 sm:$0xff]  }
 0x3de   : > { %13014 = vmatpush1.bf16.msra.mxu0 %v18537_v13  ;;  %v18567_v13 = vld [vmem:[%s19863_s12 + $0x1c38] ss:$12 sps:$4 sm:$0xff]  }
 0x3df   : > { %13055 = vmatpush1.bf16.msra.mxu1 %v18540_v0  ;;  %13015 = vmatprep.subr.bf16.mxu0 %v18545_v21  ;;  %v18570_v0 = vld [vmem:[%s19863_s12 + $0x1db8] ss:$12 sps:$4 sm:$0xff]  }
 0x3e0   : > { %13056 = vmatprep.subr.bf16.mxu1 %v18548_v9  ;;  %v18575_v21 = vld [vmem:[%s19863_s12 + $0x1c24] ss:$12 sps:$4 sm:$0xff]  }
 0x3e1   : > { %v18578_v9 = vld [vmem:[%s19863_s12 + $0x1da4] ss:$12 sps:$4 sm:$0xff]  }
 0x3e2   : > { %13016 = vmatpush1.bf16.msra.mxu0 %v18543_v18  ;;  %v18573_v18 = vld [vmem:[%s19863_s12 + $0x1c20] ss:$12 sps:$4 sm:$0xff]  }
 0x3e3   : > { %13057 = vmatpush1.bf16.msra.mxu1 %v18546_v63  ;;  %13017 = vmatprep.subr.bf16.mxu0 %v18551_v46  ;;  %v18576_v63 = vld [vmem:[%s19863_s12 + $0x1da0] ss:$12 sps:$4 sm:$0xff]  }
 0x3e4   : > { %13058 = vmatprep.subr.bf16.mxu1 %v18554_v32  ;;  %v18581_v46 = vld [vmem:[%s19863_s12 + $0x1c0c] ss:$12 sps:$4 sm:$0xff]  }
 0x3e5   : > { %v18584_v32 = vld [vmem:[%s19863_s12 + $0x1d8c] ss:$12 sps:$4 sm:$0xff]  }
 0x3e6   : > { %13018 = vmatpush1.bf16.msra.mxu0 %v18549_v37  ;;  %v18579_v37 = vld [vmem:[%s19863_s12 + $0x1c08] ss:$12 sps:$4 sm:$0xff]  }
 0x3e7   : > { %13059 = vmatpush1.bf16.msra.mxu1 %v18552_v1  ;;  %13019 = vmatprep.subr.bf16.mxu0 %v18557_v23  ;;  %v18582_v1 = vld [vmem:[%s19863_s12 + $0x1d88] ss:$12 sps:$4 sm:$0xff]  }
 0x3e8   : > { %13060 = vmatprep.subr.bf16.mxu1 %v18560_v42  ;;  %v18587_v23 = vld [vmem:[%s19863_s12 + $0x1bf4] ss:$12 sps:$4 sm:$0xff]  }
 0x3e9   : > { %v18590_v42 = vld [vmem:[%s19863_s12 + $0x1d74] ss:$12 sps:$4 sm:$0xff]  }
 0x3ea   : > { %13020 = vmatpush2.bf16.msra.mxu0 %v18555_v49  ;;  %v1602_v49 = vld [vmem:[%s20998_s16 + $0x50] sm:$0xff] }
 0x3eb   : > { %13061 = vmatpush2.bf16.msra.mxu1 %v18558_v33  ;;  %13021 = vmatprep.subr.bf16.mxu0 %v18563_v34  ;;  %v18585_v33 = vld [vmem:[%s19863_s12 + $0x1bf0] ss:$12 sps:$4 sm:$0xff]  }
 0x3ec   : > { %13062 = vmatprep.subr.bf16.mxu1 %v18566_v28  ;;  %v18588_v34 = vld [vmem:[%s19863_s12 + $0x1d70] ss:$12 sps:$4 sm:$0xff]  }
 0x3ed   : > { %v18593_v28 = vld [vmem:[%s19863_s12 + $0x1bdc] ss:$12 sps:$4 sm:$0xff]  }
 0x3ee   : > { %13022 = vmatpush2.bf16.msra.mxu0 %v18561_v10  ;;  %v18596_v10 = vld [vmem:[%s19863_s12 + $0x1d5c] ss:$12 sps:$4 sm:$0xff]  }
 0x3ef   : > { %13063 = vmatpush2.bf16.msra.mxu1 %v18564_v29  ;;  %13023 = vmatprep.subr.bf16.mxu0 %v18569_v58  ;;  %v1794_v29 = vcombine.high %v1602_v49, %v1602_v49  ;;  %v18591_v58 = vld [vmem:[%s19863_s12 + $0x1bd8] ss:$12 sps:$4 sm:$0xff]  }
 0x3f0   : > { %13064 = vmatprep.subr.bf16.mxu1 %v18572_v24  ;;  %v18594_v24 = vld [vmem:[%s19863_s12 + $0x1d58] ss:$12 sps:$4 sm:$0xff]  }
 0x3f2   : > { %13024 = vmatpush2.bf16.msra.mxu0 %v18567_v13  ;;  %v18599_v13 = vld [vmem:[%s19863_s12 + $0x1bc4] ss:$12 sps:$4 sm:$0xff]  }
 0x3f3   : > { %13065 = vmatpush2.bf16.msra.mxu1 %v18570_v0  ;;  %13025 = vmatprep.subr.bf16.mxu0 %v18575_v21  ;;  %v18602_v0 = vld [vmem:[%s19863_s12 + $0x1d44] ss:$12 sps:$4 sm:$0xff]   ;;  %v21876_v21 = vrot.slane %v1602_v49, %v20994_v19  ;;  %v21893_v49 = vpack.c.bf16 %v21779_v8, %v21779_v8 }
 0x3f4   : > { %13066 = vmatprep.subr.bf16.mxu1 %v18578_v9  ;;  %v21879_v9 = vrot.slane %v1794_v29, %v20994_v19  ;;  %v18613_v29 = vld [vmem:[%s19863_s12 + $0x2010] ss:$12 sps:$4 sm:$0xff]  }
 0x3f6   : > { %13026 = vmatpush2.bf16.msra.mxu0 %v18573_v18  ;;  %v18597_v18 = vld [vmem:[%s19863_s12 + $0x1bc0] ss:$12 sps:$4 sm:$0xff]  }
 0x3f7   : > { %13067 = vmatpush2.bf16.msra.mxu1 %v18576_v63  ;;  %13027 = vmatprep.subr.bf16.mxu0 %v18581_v46  ;;  %v18600_v63 = vld [vmem:[%s19863_s12 + $0x1d40] ss:$12 sps:$4 sm:$0xff]  }
 0x3f8   : > { %13068 = vmatprep.subr.bf16.mxu1 %v18584_v32  ;;  %v18606_v46 = vld [vmem:[%s19863_s12 + $0x1eac] ss:$12 sps:$4 sm:$0xff]  }
 0x3f9   : > { %v18609_v32 = vld [vmem:[%s19863_s12 + $0x202c] ss:$12 sps:$4 sm:$0xff]  }
 0x3fa   : > { %13028 = vmatpush2.bf16.msra.mxu0 %v18579_v37  ;;  %v18604_v37 = vld [vmem:[%s19863_s12 + $0x1ea8] ss:$12 sps:$4 sm:$0xff]  }
 0x3fb   : > { %13069 = vmatpush2.bf16.msra.mxu1 %v18582_v1  ;;  %13029 = vmatprep.subr.bf16.mxu0 %v18587_v23  ;;  %v18607_v1 = vld [vmem:[%s19863_s12 + $0x2028] ss:$12 sps:$4 sm:$0xff]   ;;  %v1809_v23 = vcombine.high %v21876_v21, %v21876_v21 }
 0x3fc   : > { %13070 = vmatprep.subr.bf16.mxu1 %v18590_v42  ;;  %v1810_v42 = vcombine.high %v21879_v9, %v21879_v9 }
 0x3fe   : > { %13030 = vmatpush2.bf16.msra.mxu0 %v18585_v33  ;;  %v21897_v33 = vpack.c.bf16 %v21782_v12, %v21782_v12 }
 0x3ff   : > { %13071 = vmatpush2.bf16.msra.mxu1 %v18588_v34  ;;  %13031 = vmatprep.subr.bf16.mxu0 %v18593_v28  ;;  %v18612_v34 = vld [vmem:[%s19863_s12 + $0x1e94] ss:$12 sps:$4 sm:$0xff]  }
 0x400   : > { %13072 = vmatprep.subr.bf16.mxu1 %v18596_v10  ;;  %23177 = vst [vmem:[#allocation14_spill] sm:$0xff] %v21897_v33  ;;  %v18615_v28 = vld [vmem:[%s19863_s12 + $0x2014] ss:$12 sps:$4 sm:$0xff]   ;;  %v18610_v10 = vld [vmem:[%s19863_s12 + $0x1e90] ss:$12 sps:$4 sm:$0xff]  }
 0x402   : > { %13032 = vmatpush2.bf16.msra.mxu0 %v18591_v58  ;;  %v21903_v58 = vpack.c.bf16 %v1809_v23, %v1809_v23 }
 0x403   : > { %13073 = vmatpush2.bf16.msra.mxu1 %v18594_v24  ;;  %13033 = vmatprep.subr.bf16.mxu0 %v18599_v13  ;;  %v21905_v24 = vpack.c.bf16 %v1810_v42, %v1810_v42  ;;  %v18616_v42 = vld [vmem:[%s19863_s12 + $0x1e78] ss:$12 sps:$4 sm:$0xff]  }
 0x404   : > { %13074 = vmatprep.subr.bf16.mxu1 %v18602_v0  ;;  %23178 = vst [vmem:[#allocation15_spill] sm:$0xff] %v21903_v58 }
 0x405   : > { %23179 = vst [vmem:[#allocation16_spill] sm:$0xff] %v21905_v24 }
 0x406   : > { %13034 = vmatpush2.bf16.msra.mxu0 %v18597_v18 }
 0x407   : > { %13075 = vmatpush2.bf16.msra.mxu1 %v18600_v63  ;;  %13085 = vmatprep.subr.bf16.mxu0 %v18606_v46  ;;  %v18618_v63 = vld [vmem:[%s19863_s12 + $0x1e7c] ss:$12 sps:$4 sm:$0xff]  }
 0x408   : > { %13126 = vmatprep.subr.bf16.mxu1 %v18609_v32  ;;  %v18621_v46 = vld [vmem:[%s19863_s12 + $0x1ffc] ss:$12 sps:$4 sm:$0xff]  }
 0x409   : > { %v12791_v8 = vpop.f32.mrf.mxu0  ;;  %13036 = vmatmul.mubr.bf16.vlgmr.msra.gmra.mxu0 %v21893_v49 }
 0x40a   : > { %v12832_v13 = vpop.f32.mrf.mxu1  ;;  %13077 = vmatmul.mubr.bf16.vlgmr.msra.gmra.mxu1 %v21897_v33  ;;  %v12792_v12 = vadd.f32 %v12791_v8, %v21815_v5  ;;  %13086 = vmatpush1.bf16.msra.mxu0 %v18604_v37  ;;  %v18627_v8 = vld [vmem:[%s19863_s12 + $0x1fe4] ss:$12 sps:$4 sm:$0xff]  }
 0x40b   : > { %13127 = vmatpush1.bf16.msra.mxu1 %v18607_v1  ;;  %v12793_v0 = vpop.f32.mrf.mxu0  ;;  %13087 = vmatprep.subr.bf16.mxu0 %v18612_v34  ;;  %v18713_v33 = vld [vmem:[%s19863_s12 + $0x2178] ss:$12 sps:$4 sm:$0xff]  }
 0x40c   : > { %v12834_v18 = vpop.f32.mrf.mxu1  ;;  %13128 = vmatprep.subr.bf16.mxu1 %v18615_v28  ;;  %v21912_v32 = vadd.f32 %v12832_v13, %v12792_v12  ;;  %v12794_v23 = vadd.f32 %v12793_v0, %v21822_v30  ;;  %13117 = vmatprep.mubr.bf16.mxu0 %v21903_v58  ;;  %v18624_v30 = vld [vmem:[%s19863_s12 + $0x1e64] ss:$12 sps:$4 sm:$0xff]   ;;  %v18622_v13 = vld [vmem:[%s19863_s12 + $0x1e60] ss:$12 sps:$4 sm:$0xff]   ;;  %v18628_v0 = vld [vmem:[%s19863_s12 + $0x1e48] ss:$12 sps:$4 sm:$0xff]  }
 0x40d   : > { %13158 = vmatprep.mubr.bf16.mxu1 %v21905_v24  ;;  %v12795_v5 = vpop.f32.mrf.mxu0  ;;  %v18625_v12 = vld [vmem:[%s19863_s12 + $0x1fe0] ss:$12 sps:$4 sm:$0xff]  }
 0x40e   : > { %v12836_v37 = vpop.f32.mrf.mxu1  ;;  %v21919_v1 = vadd.f32 %v12834_v18, %v12794_v23  ;;  %13088 = vmatpush1.bf16.msra.mxu0 %v18610_v10  ;;  %v18630_v10 = vld [vmem:[%s19863_s12 + $0x1e4c] ss:$12 sps:$4 sm:$0xff]   ;;  %v18631_v18 = vld [vmem:[%s19863_s12 + $0x1fc8] ss:$12 sps:$4 sm:$0xff]   ;;  %v18637_v23 = vld [vmem:[%s19863_s12 + $0x1fb0] ss:$12 sps:$4 sm:$0xff]  }
 0x40f   : > { %13129 = vmatpush1.bf16.msra.mxu1 %v18613_v29  ;;  %v12796_v34 = vpop.f32.mrf.mxu0  ;;  %13089 = vmatprep.subr.bf16.mxu0 %v18618_v63  ;;  %v18633_v29 = vld [vmem:[%s19863_s12 + $0x1fcc] ss:$12 sps:$4 sm:$0xff]   ;;  %v18636_v63 = vld [vmem:[%s19863_s12 + $0x1e34] ss:$12 sps:$4 sm:$0xff]   ;;  %v18645_v5 = vld [vmem:[%s19863_s12 + $0x1f9c] ss:$12 sps:$4 sm:$0xff]  }
 0x410   : > { %v12837_v28 = vpop.f32.mrf.mxu1  ;;  %13130 = vmatprep.subr.bf16.mxu1 %v18621_v46  ;;  %v18634_v46 = vld [vmem:[%s19863_s12 + $0x1e30] ss:$12 sps:$4 sm:$0xff]   ;;  %v18640_v37 = vld [vmem:[%s19863_s12 + $0x1e18] ss:$12 sps:$4 sm:$0xff]  }
 0x411   : > { %v18643_v34 = vld [vmem:[%s19863_s12 + $0x1f98] ss:$12 sps:$4 sm:$0xff]  }
 0x412   : > { %13090 = vmatpush1.bf16.msra.mxu0 %v18616_v42  ;;  %v18642_v42 = vld [vmem:[%s19863_s12 + $0x1e1c] ss:$12 sps:$4 sm:$0xff]   ;;  %v18648_v28 = vld [vmem:[%s19863_s12 + $0x1e04] ss:$12 sps:$4 sm:$0xff]  }
 0x413   : > { %13131 = vmatpush1.bf16.msra.mxu1 %v18619_v45  ;;  %13091 = vmatprep.subr.bf16.mxu0 %v18624_v30  ;;  %v18639_v45 = vld [vmem:[%s19863_s12 + $0x1fb4] ss:$12 sps:$4 sm:$0xff]   ;;  %v18651_v30 = vld [vmem:[%s19863_s12 + $0x1f84] ss:$12 sps:$4 sm:$0xff]  }
 0x414   : > { %13132 = vmatprep.subr.bf16.mxu1 %v18627_v8  ;;  %v18646_v8 = vld [vmem:[%s19863_s12 + $0x1e00] ss:$12 sps:$4 sm:$0xff]  }
 0x416   : > { %13092 = vmatpush1.bf16.msra.mxu0 %v18622_v13  ;;  %v18649_v13 = vld [vmem:[%s19863_s12 + $0x1f80] ss:$12 sps:$4 sm:$0xff]  }
 0x417   : > { %13133 = vmatpush1.bf16.msra.mxu1 %v18625_v12  ;;  %13093 = vmatprep.subr.bf16.mxu0 %v18630_v10  ;;  %v18654_v12 = vld [vmem:[%s19863_s12 + $0x1f6c] ss:$12 sps:$4 sm:$0xff]  }
 0x418   : > { %13134 = vmatprep.subr.bf16.mxu1 %v18633_v29  ;;  %v18657_v10 = vld [vmem:[%s19863_s12 + $0x20ec] ss:$12 sps:$4 sm:$0xff]   ;;  %v18652_v29 = vld [vmem:[%s19863_s12 + $0x1f68] ss:$12 sps:$4 sm:$0xff]  }
 0x41a   : > { %13094 = vmatpush1.bf16.msra.mxu0 %v18628_v0  ;;  %v18655_v0 = vld [vmem:[%s19863_s12 + $0x20e8] ss:$12 sps:$4 sm:$0xff]  }
 0x41b   : > { %13135 = vmatpush1.bf16.msra.mxu1 %v18631_v18  ;;  %13095 = vmatprep.subr.bf16.mxu0 %v18636_v63  ;;  %v18660_v18 = vld [vmem:[%s19863_s12 + $0x1f54] ss:$12 sps:$4 sm:$0xff]  }
 0x41c   : > { %13136 = vmatprep.subr.bf16.mxu1 %v18639_v45  ;;  %v18663_v63 = vld [vmem:[%s19863_s12 + $0x20d4] ss:$12 sps:$4 sm:$0xff]   ;;  %v18658_v45 = vld [vmem:[%s19863_s12 + $0x1f50] ss:$12 sps:$4 sm:$0xff]  }
 0x41e   : > { %13096 = vmatpush1.bf16.msra.mxu0 %v18634_v46  ;;  %v18661_v46 = vld [vmem:[%s19863_s12 + $0x20d0] ss:$12 sps:$4 sm:$0xff]  }
 0x41f   : > { %13137 = vmatpush1.bf16.msra.mxu1 %v18637_v23  ;;  %13097 = vmatprep.subr.bf16.mxu0 %v18642_v42  ;;  %v18666_v23 = vld [vmem:[%s19863_s12 + $0x1f3c] ss:$12 sps:$4 sm:$0xff]  }
 0x420   : > { %13138 = vmatprep.subr.bf16.mxu1 %v18645_v5  ;;  %v18669_v42 = vld [vmem:[%s19863_s12 + $0x20bc] ss:$12 sps:$4 sm:$0xff]   ;;  %v18664_v5 = vld [vmem:[%s19863_s12 + $0x1f38] ss:$12 sps:$4 sm:$0xff]  }
 0x422   : > { %13098 = vmatpush1.bf16.msra.mxu0 %v18640_v37  ;;  %v18667_v37 = vld [vmem:[%s19863_s12 + $0x20b8] ss:$12 sps:$4 sm:$0xff]  }
 0x423   : > { %13139 = vmatpush1.bf16.msra.mxu1 %v18643_v34  ;;  %13099 = vmatprep.subr.bf16.mxu0 %v18648_v28  ;;  %v18672_v34 = vld [vmem:[%s19863_s12 + $0x1f24] ss:$12 sps:$4 sm:$0xff]  }
 0x424   : > { %13140 = vmatprep.subr.bf16.mxu1 %v18651_v30  ;;  %v18675_v28 = vld [vmem:[%s19863_s12 + $0x20a4] ss:$12 sps:$4 sm:$0xff]   ;;  %v18670_v30 = vld [vmem:[%s19863_s12 + $0x1f20] ss:$12 sps:$4 sm:$0xff]  }
 0x426   : > { %13100 = vmatpush1.bf16.msra.mxu0 %v18646_v8  ;;  %v18673_v8 = vld [vmem:[%s19863_s12 + $0x20a0] ss:$12 sps:$4 sm:$0xff]  }
 0x427   : > { %13141 = vmatpush1.bf16.msra.mxu1 %v18649_v13  ;;  %13101 = vmatprep.subr.bf16.mxu0 %v18654_v12  ;;  %v18678_v13 = vld [vmem:[%s19863_s12 + $0x1f0c] ss:$12 sps:$4 sm:$0xff]  }
 0x428   : > { %13142 = vmatprep.subr.bf16.mxu1 %v18657_v10  ;;  %v18681_v12 = vld [vmem:[%s19863_s12 + $0x208c] ss:$12 sps:$4 sm:$0xff]   ;;  %v18676_v10 = vld [vmem:[%s19863_s12 + $0x1f08] ss:$12 sps:$4 sm:$0xff]  }
 0x42a   : > { %13102 = vmatpush2.bf16.msra.mxu0 %v18652_v29  ;;  %v18679_v29 = vld [vmem:[%s19863_s12 + $0x2088] ss:$12 sps:$4 sm:$0xff]  }
 0x42b   : > { %13143 = vmatpush2.bf16.msra.mxu1 %v18655_v0  ;;  %13103 = vmatprep.subr.bf16.mxu0 %v18660_v18  ;;  %v18684_v0 = vld [vmem:[%s19863_s12 + $0x1ef4] ss:$12 sps:$4 sm:$0xff]  }
 0x42c   : > { %13144 = vmatprep.subr.bf16.mxu1 %v18663_v63  ;;  %v18687_v18 = vld [vmem:[%s19863_s12 + $0x2074] ss:$12 sps:$4 sm:$0xff]   ;;  %v1603_v63 = vld [vmem:[%s20998_s16 + $0x58] sm:$0xff] }
 0x42e   : > { %13104 = vmatpush2.bf16.msra.mxu0 %v18658_v45  ;;  %v18682_v45 = vld [vmem:[%s19863_s12 + $0x1ef0] ss:$12 sps:$4 sm:$0xff]  }
 0x42f   : > { %13145 = vmatpush2.bf16.msra.mxu1 %v18661_v46  ;;  %13105 = vmatprep.subr.bf16.mxu0 %v18666_v23  ;;  %v18685_v46 = vld [vmem:[%s19863_s12 + $0x2070] ss:$12 sps:$4 sm:$0xff]  }
 0x430   : > { %13146 = vmatprep.subr.bf16.mxu1 %v18669_v42  ;;  %v18690_v23 = vld [vmem:[%s19863_s12 + $0x1edc] ss:$12 sps:$4 sm:$0xff]  }
 0x431   : > { %v18693_v42 = vld [vmem:[%s19863_s12 + $0x205c] ss:$12 sps:$4 sm:$0xff]  }
 0x432   : > { %13106 = vmatpush2.bf16.msra.mxu0 %v18664_v5  ;;  %v1811_v5 = vcombine.high %v1603_v63, %v1603_v63 }
 0x433   : > { %13147 = vmatpush2.bf16.msra.mxu1 %v18667_v37  ;;  %13107 = vmatprep.subr.bf16.mxu0 %v18672_v34  ;;  %v18688_v37 = vld [vmem:[%s19863_s12 + $0x1ed8] ss:$12 sps:$4 sm:$0xff]  }
 0x434   : > { %13148 = vmatprep.subr.bf16.mxu1 %v18675_v28  ;;  %v18691_v34 = vld [vmem:[%s19863_s12 + $0x2058] ss:$12 sps:$4 sm:$0xff]  }
 0x435   : > { %v18696_v28 = vld [vmem:[%s19863_s12 + $0x1ec4] ss:$12 sps:$4 sm:$0xff]  }
 0x436   : > { %13108 = vmatpush2.bf16.msra.mxu0 %v18670_v30  ;;  %v18699_v30 = vld [vmem:[%s19863_s12 + $0x2044] ss:$12 sps:$4 sm:$0xff]  }
 0x437   : > { %13149 = vmatpush2.bf16.msra.mxu1 %v18673_v8  ;;  %13109 = vmatprep.subr.bf16.mxu0 %v18678_v13  ;;  %v21973_v8 = vrot.slane %v1603_v63, %v20994_v19  ;;  %v21976_v13 = vrot.slane %v1811_v5, %v20994_v19  ;;  %v18709_v5 = vld [vmem:[%s19863_s12 + $0x2194] ss:$12 sps:$4 sm:$0xff]  }
 0x438   : > { %13150 = vmatprep.subr.bf16.mxu1 %v18681_v12  ;;  %v18694_v12 = vld [vmem:[%s19863_s12 + $0x1ec0] ss:$12 sps:$4 sm:$0xff]  }
 0x439   : > { %v1826_v63 = vcombine.high %v21973_v8, %v21973_v8 }
 0x43a   : > { %13110 = vmatpush2.bf16.msra.mxu0 %v18676_v10  ;;  %v18697_v10 = vld [vmem:[%s19863_s12 + $0x2040] ss:$12 sps:$4 sm:$0xff]  }
 0x43b   : > { %13151 = vmatpush2.bf16.msra.mxu1 %v18679_v29  ;;  %13111 = vmatprep.subr.bf16.mxu0 %v18684_v0  ;;  %v18703_v29 = vld [vmem:[%s19863_s12 + $0x21ac] ss:$12 sps:$4 sm:$0xff]  }
 0x43c   : > { %13152 = vmatprep.subr.bf16.mxu1 %v18687_v18  ;;  %v18706_v0 = vld [vmem:[%s19863_s12 + $0x232c] ss:$12 sps:$4 sm:$0xff]   ;;  %v18701_v18 = vld [vmem:[%s19863_s12 + $0x21a8] ss:$12 sps:$4 sm:$0xff]  }
 0x43e   : > { %13112 = vmatpush2.bf16.msra.mxu0 %v18682_v45  ;;  %v18704_v45 = vld [vmem:[%s19863_s12 + $0x2328] ss:$12 sps:$4 sm:$0xff]  }
 0x43f   : > { %13153 = vmatpush2.bf16.msra.mxu1 %v18685_v46  ;;  %13113 = vmatprep.subr.bf16.mxu0 %v18690_v23  ;;  %v1827_v46 = vcombine.high %v21976_v13, %v21976_v13  ;;  %v21990_v23 = vpack.c.bf16 %v21876_v21, %v21876_v21 }
 0x440   : > { %13154 = vmatprep.subr.bf16.mxu1 %v18693_v42  ;;  %v21994_v42 = vpack.c.bf16 %v21879_v9, %v21879_v9 }
 0x441   : > { %23180 = vst [vmem:[#allocation17_spill] sm:$0xff] %v21990_v23  ;;  %v22002_v24 = vpack.c.bf16 %v1827_v46, %v1827_v46 }
 0x442   : > { %13114 = vmatpush2.bf16.msra.mxu0 %v18688_v37  ;;  %23181 = vst [vmem:[#allocation18_spill] sm:$0xff] %v21994_v42  ;;  %v18712_v37 = vld [vmem:[%s19863_s12 + $0x2314] ss:$12 sps:$4 sm:$0xff]  }
 0x443   : > { %13155 = vmatpush2.bf16.msra.mxu1 %v18691_v34  ;;  %13115 = vmatprep.subr.bf16.mxu0 %v18696_v28  ;;  %v18707_v34 = vld [vmem:[%s19863_s12 + $0x2190] ss:$12 sps:$4 sm:$0xff]   ;;  %23183 = vst [vmem:[#allocation20_spill] sm:$0xff] %v22002_v24 }
 0x444   : > { %13156 = vmatprep.subr.bf16.mxu1 %v18699_v30  ;;  %v18710_v28 = vld [vmem:[%s19863_s12 + $0x2310] ss:$12 sps:$4 sm:$0xff]   ;;  %v22000_v30 = vpack.c.bf16 %v1826_v63, %v1826_v63 }
 0x446   : > { %13116 = vmatpush2.bf16.msra.mxu0 %v18694_v12  ;;  %23182 = vst [vmem:[#allocation19_spill] sm:$0xff] %v22000_v30 }
 0x447   : > { %13157 = vmatpush2.bf16.msra.mxu1 %v18697_v10  ;;  %13167 = vmatprep.subr.bf16.mxu0 %v18703_v29  ;;  %v18715_v29 = vld [vmem:[%s19863_s12 + $0x217c] ss:$12 sps:$4 sm:$0xff]  }
 0x448   : > { %13208 = vmatprep.subr.bf16.mxu1 %v18706_v0  ;;  %v18718_v0 = vld [vmem:[%s19863_s12 + $0x22fc] ss:$12 sps:$4 sm:$0xff]  }
 0x449   : > { %v12873_v21 = vpop.f32.mrf.mxu0  ;;  %13118 = vmatmul.mubr.bf16.vlgmr.msra.gmra.mxu0 %v21990_v23  ;;  %v18716_v23 = vld [vmem:[%s19863_s12 + $0x22f8] ss:$12 sps:$4 sm:$0xff]  }
 0x44a   : > { %v12914_v58 = vpop.f32.mrf.mxu1  ;;  %13159 = vmatmul.mubr.bf16.vlgmr.msra.gmra.mxu1 %v21994_v42  ;;  %v12874_v9 = vadd.f32 %v12873_v21, %v21912_v32  ;;  %13168 = vmatpush1.bf16.msra.mxu0 %v18701_v18  ;;  %v18719_v21 = vld [vmem:[%s19863_s12 + $0x2160] ss:$12 sps:$4 sm:$0xff]   ;;  %v18810_v42 = vld [vmem:[%s19863_s12 + $0x2478] ss:$12 sps:$4 sm:$0xff]  }
 0x44b   : > { %13209 = vmatpush1.bf16.msra.mxu1 %v18704_v45  ;;  %v12875_v12 = vpop.f32.mrf.mxu0  ;;  %13169 = vmatprep.subr.bf16.mxu0 %v18709_v5 }
 0x44c   : > { %v12916_v10 = vpop.f32.mrf.mxu1  ;;  %13210 = vmatprep.subr.bf16.mxu1 %v18712_v37  ;;  %v22009_v63 = vadd.f32 %v12914_v58, %v12874_v9  ;;  %v12876_v46 = vadd.f32 %v12875_v12, %v21919_v1  ;;  %13199 = vmatprep.mubr.bf16.mxu0 %v22000_v30  ;;  %v18721_v1 = vld [vmem:[%s19863_s12 + $0x2164] ss:$12 sps:$4 sm:$0xff]   ;;  %v18722_v9 = vld [vmem:[%s19863_s12 + $0x22e0] ss:$12 sps:$4 sm:$0xff]   ;;  %v18725_v12 = vld [vmem:[%s19863_s12 + $0x2148] ss:$12 sps:$4 sm:$0xff]  }
 0x44d   : > { %13240 = vmatprep.mubr.bf16.mxu1 %v22002_v24  ;;  %v12877_v32 = vpop.f32.mrf.mxu0  ;;  %v18724_v37 = vld [vmem:[%s19863_s12 + $0x22e4] ss:$12 sps:$4 sm:$0xff]  }
 0x44e   : > { %v12918_v18 = vpop.f32.mrf.mxu1  ;;  %v22016_v45 = vadd.f32 %v12916_v10, %v12876_v46  ;;  %13170 = vmatpush1.bf16.msra.mxu0 %v18707_v34  ;;  %v18727_v34 = vld [vmem:[%s19863_s12 + $0x214c] ss:$12 sps:$4 sm:$0xff]   ;;  %v18728_v10 = vld [vmem:[%s19863_s12 + $0x22c8] ss:$12 sps:$4 sm:$0xff]  }
 0x44f   : > { %13211 = vmatpush1.bf16.msra.mxu1 %v18710_v28  ;;  %v12878_v58 = vpop.f32.mrf.mxu0  ;;  %13171 = vmatprep.subr.bf16.mxu0 %v18715_v29  ;;  %v18730_v28 = vld [vmem:[%s19863_s12 + $0x22cc] ss:$12 sps:$4 sm:$0xff]   ;;  %v18731_v29 = vld [vmem:[%s19863_s12 + $0x2130] ss:$12 sps:$4 sm:$0xff]  }
 0x450   : > { %v12919_v5 = vpop.f32.mrf.mxu1  ;;  %13212 = vmatprep.subr.bf16.mxu1 %v18718_v0  ;;  %v18734_v0 = vld [vmem:[%s19863_s12 + $0x22b0] ss:$12 sps:$4 sm:$0xff]   ;;  %v18737_v18 = vld [vmem:[%s19863_s12 + $0x2118] ss:$12 sps:$4 sm:$0xff]  }
 0x451   : > { %v18739_v46 = vld [vmem:[%s19863_s12 + $0x211c] ss:$12 sps:$4 sm:$0xff]   ;;  %v18740_v58 = vld [vmem:[%s19863_s12 + $0x2298] ss:$12 sps:$4 sm:$0xff]  }
 0x452   : > { %13172 = vmatpush1.bf16.msra.mxu0 %v18713_v33  ;;  %v18733_v33 = vld [vmem:[%s19863_s12 + $0x2134] ss:$12 sps:$4 sm:$0xff]   ;;  %v18742_v32 = vld [vmem:[%s19863_s12 + $0x229c] ss:$12 sps:$4 sm:$0xff]   ;;  %v18745_v5 = vld [vmem:[%s19863_s12 + $0x2104] ss:$12 sps:$4 sm:$0xff]  }
 0x453   : > { %13213 = vmatpush1.bf16.msra.mxu1 %v18716_v23  ;;  %13173 = vmatprep.subr.bf16.mxu0 %v18721_v1  ;;  %v18736_v23 = vld [vmem:[%s19863_s12 + $0x22b4] ss:$12 sps:$4 sm:$0xff]   ;;  %v18748_v1 = vld [vmem:[%s19863_s12 + $0x2284] ss:$12 sps:$4 sm:$0xff]  }
 0x454   : > { %13214 = vmatprep.subr.bf16.mxu1 %v18724_v37  ;;  %v18743_v37 = vld [vmem:[%s19863_s12 + $0x2100] ss:$12 sps:$4 sm:$0xff]  }
 0x456   : > { %13174 = vmatpush1.bf16.msra.mxu0 %v18719_v21  ;;  %v18746_v21 = vld [vmem:[%s19863_s12 + $0x2280] ss:$12 sps:$4 sm:$0xff]  }
 0x457   : > { %13215 = vmatpush1.bf16.msra.mxu1 %v18722_v9  ;;  %13175 = vmatprep.subr.bf16.mxu0 %v18727_v34  ;;  %v18751_v9 = vld [vmem:[%s19863_s12 + $0x226c] ss:$12 sps:$4 sm:$0xff]  }
 0x458   : > { %13216 = vmatprep.subr.bf16.mxu1 %v18730_v28  ;;  %v18754_v34 = vld [vmem:[%s19863_s12 + $0x23ec] ss:$12 sps:$4 sm:$0xff]   ;;  %v18749_v28 = vld [vmem:[%s19863_s12 + $0x2268] ss:$12 sps:$4 sm:$0xff]  }
 0x45a   : > { %13176 = vmatpush1.bf16.msra.mxu0 %v18725_v12  ;;  %v18752_v12 = vld [vmem:[%s19863_s12 + $0x23e8] ss:$12 sps:$4 sm:$0xff]  }
 0x45b   : > { %13217 = vmatpush1.bf16.msra.mxu1 %v18728_v10  ;;  %13177 = vmatprep.subr.bf16.mxu0 %v18733_v33  ;;  %v18757_v10 = vld [vmem:[%s19863_s12 + $0x2254] ss:$12 sps:$4 sm:$0xff]  }
 0x45c   : > { %13218 = vmatprep.subr.bf16.mxu1 %v18736_v23  ;;  %v18760_v33 = vld [vmem:[%s19863_s12 + $0x23d4] ss:$12 sps:$4 sm:$0xff]   ;;  %v18755_v23 = vld [vmem:[%s19863_s12 + $0x2250] ss:$12 sps:$4 sm:$0xff]  }
 0x45e   : > { %13178 = vmatpush1.bf16.msra.mxu0 %v18731_v29  ;;  %v18758_v29 = vld [vmem:[%s19863_s12 + $0x23d0] ss:$12 sps:$4 sm:$0xff]  }
 0x45f   : > { %13219 = vmatpush1.bf16.msra.mxu1 %v18734_v0  ;;  %13179 = vmatprep.subr.bf16.mxu0 %v18739_v46  ;;  %v18763_v0 = vld [vmem:[%s19863_s12 + $0x223c] ss:$12 sps:$4 sm:$0xff]  }
 0x460   : > { %13220 = vmatprep.subr.bf16.mxu1 %v18742_v32  ;;  %v18766_v46 = vld [vmem:[%s19863_s12 + $0x23bc] ss:$12 sps:$4 sm:$0xff]   ;;  %v18761_v32 = vld [vmem:[%s19863_s12 + $0x2238] ss:$12 sps:$4 sm:$0xff]  }
 0x462   : > { %13180 = vmatpush1.bf16.msra.mxu0 %v18737_v18  ;;  %v18764_v18 = vld [vmem:[%s19863_s12 + $0x23b8] ss:$12 sps:$4 sm:$0xff]  }
 0x463   : > { %13221 = vmatpush1.bf16.msra.mxu1 %v18740_v58  ;;  %13181 = vmatprep.subr.bf16.mxu0 %v18745_v5  ;;  %v18769_v58 = vld [vmem:[%s19863_s12 + $0x2224] ss:$12 sps:$4 sm:$0xff]  }
 0x464   : > { %13222 = vmatprep.subr.bf16.mxu1 %v18748_v1  ;;  %v18772_v5 = vld [vmem:[%s19863_s12 + $0x23a4] ss:$12 sps:$4 sm:$0xff]   ;;  %v18767_v1 = vld [vmem:[%s19863_s12 + $0x2220] ss:$12 sps:$4 sm:$0xff]  }
 0x466   : > { %13182 = vmatpush1.bf16.msra.mxu0 %v18743_v37  ;;  %v18770_v37 = vld [vmem:[%s19863_s12 + $0x23a0] ss:$12 sps:$4 sm:$0xff]  }
 0x467   : > { %13223 = vmatpush1.bf16.msra.mxu1 %v18746_v21  ;;  %13183 = vmatprep.subr.bf16.mxu0 %v18751_v9  ;;  %v18775_v21 = vld [vmem:[%s19863_s12 + $0x220c] ss:$12 sps:$4 sm:$0xff]  }
 0x468   : > { %13224 = vmatprep.subr.bf16.mxu1 %v18754_v34  ;;  %v18778_v9 = vld [vmem:[%s19863_s12 + $0x238c] ss:$12 sps:$4 sm:$0xff]   ;;  %v18773_v34 = vld [vmem:[%s19863_s12 + $0x2208] ss:$12 sps:$4 sm:$0xff]  }
 0x46a   : > { %13184 = vmatpush2.bf16.msra.mxu0 %v18749_v28  ;;  %v18776_v28 = vld [vmem:[%s19863_s12 + $0x2388] ss:$12 sps:$4 sm:$0xff]  }
 0x46b   : > { %13225 = vmatpush2.bf16.msra.mxu1 %v18752_v12  ;;  %13185 = vmatprep.subr.bf16.mxu0 %v18757_v10  ;;  %v18781_v12 = vld [vmem:[%s19863_s12 + $0x21f4] ss:$12 sps:$4 sm:$0xff]  }
 0x46c   : > { %13226 = vmatprep.subr.bf16.mxu1 %v18760_v33  ;;  %v18784_v10 = vld [vmem:[%s19863_s12 + $0x2374] ss:$12 sps:$4 sm:$0xff]  }
 0x46d   : > { %v1604_v33 = vld [vmem:[%s20998_s16 + $0x60] sm:$0xff] }
 0x46e   : > { %13186 = vmatpush2.bf16.msra.mxu0 %v18755_v23  ;;  %v18779_v23 = vld [vmem:[%s19863_s12 + $0x21f0] ss:$12 sps:$4 sm:$0xff]  }
 0x46f   : > { %13227 = vmatpush2.bf16.msra.mxu1 %v18758_v29  ;;  %13187 = vmatprep.subr.bf16.mxu0 %v18763_v0  ;;  %v18782_v29 = vld [vmem:[%s19863_s12 + $0x2370] ss:$12 sps:$4 sm:$0xff]  }
 0x470   : > { %13228 = vmatprep.subr.bf16.mxu1 %v18766_v46  ;;  %v18787_v0 = vld [vmem:[%s19863_s12 + $0x21dc] ss:$12 sps:$4 sm:$0xff]  }
 0x471   : > { %v18790_v46 = vld [vmem:[%s19863_s12 + $0x235c] ss:$12 sps:$4 sm:$0xff]  }
 0x472   : > { %13188 = vmatpush2.bf16.msra.mxu0 %v18761_v32  ;;  %v1828_v32 = vcombine.high %v1604_v33, %v1604_v33 }
 0x473   : > { %13229 = vmatpush2.bf16.msra.mxu1 %v18764_v18  ;;  %13189 = vmatprep.subr.bf16.mxu0 %v18769_v58  ;;  %v18785_v18 = vld [vmem:[%s19863_s12 + $0x21d8] ss:$12 sps:$4 sm:$0xff]  }
 0x474   : > { %13230 = vmatprep.subr.bf16.mxu1 %v18772_v5  ;;  %v18788_v58 = vld [vmem:[%s19863_s12 + $0x2358] ss:$12 sps:$4 sm:$0xff]  }
 0x475   : > { %v18793_v5 = vld [vmem:[%s19863_s12 + $0x21c4] ss:$12 sps:$4 sm:$0xff]  }
 0x476   : > { %13190 = vmatpush2.bf16.msra.mxu0 %v18767_v1  ;;  %v18796_v1 = vld [vmem:[%s19863_s12 + $0x2344] ss:$12 sps:$4 sm:$0xff]  }
 0x477   : > { %13231 = vmatpush2.bf16.msra.mxu1 %v18770_v37  ;;  %13191 = vmatprep.subr.bf16.mxu0 %v18775_v21  ;;  %v22070_v37 = vrot.slane %v1604_v33, %v20994_v19  ;;  %v22073_v21 = vrot.slane %v1828_v32, %v20994_v19  ;;  %v18806_v32 = vld [vmem:[%s19863_s12 + $0x2494] ss:$12 sps:$4 sm:$0xff]  }
 0x478   : > { %13232 = vmatprep.subr.bf16.mxu1 %v18778_v9  ;;  %v18791_v9 = vld [vmem:[%s19863_s12 + $0x21c0] ss:$12 sps:$4 sm:$0xff]  }
 0x479   : > { %v1843_v33 = vcombine.high %v22070_v37, %v22070_v37 }
 0x47a   : > { %13192 = vmatpush2.bf16.msra.mxu0 %v18773_v34  ;;  %v18794_v34 = vld [vmem:[%s19863_s12 + $0x2340] ss:$12 sps:$4 sm:$0xff]  }
 0x47b   : > { %13233 = vmatpush2.bf16.msra.mxu1 %v18776_v28  ;;  %13193 = vmatprep.subr.bf16.mxu0 %v18781_v12  ;;  %v18800_v28 = vld [vmem:[%s19863_s12 + $0x24ac] ss:$12 sps:$4 sm:$0xff]  }
 0x47c   : > { %13234 = vmatprep.subr.bf16.mxu1 %v18784_v10  ;;  %v18803_v12 = vld [vmem:[%s19863_s12 + $0x262c] ss:$12 sps:$4 sm:$0xff]   ;;  %v18798_v10 = vld [vmem:[%s19863_s12 + $0x24a8] ss:$12 sps:$4 sm:$0xff]  }
 0x47e   : > { %13194 = vmatpush2.bf16.msra.mxu0 %v18779_v23  ;;  %v18801_v23 = vld [vmem:[%s19863_s12 + $0x2628] ss:$12 sps:$4 sm:$0xff]  }
 0x47f   : > { %13235 = vmatpush2.bf16.msra.mxu1 %v18782_v29  ;;  %13195 = vmatprep.subr.bf16.mxu0 %v18787_v0  ;;  %v1844_v29 = vcombine.high %v22073_v21, %v22073_v21  ;;  %v22087_v0 = vpack.c.bf16 %v21973_v8, %v21973_v8 }
 0x480   : > { %13236 = vmatprep.subr.bf16.mxu1 %v18790_v46  ;;  %v22091_v46 = vpack.c.bf16 %v21976_v13, %v21976_v13 }
 0x481   : > { %23184 = vst [vmem:[#allocation21_spill] sm:$0xff] %v22087_v0  ;;  %v22099_v24 = vpack.c.bf16 %v1844_v29, %v1844_v29 }
 0x482   : > { %13196 = vmatpush2.bf16.msra.mxu0 %v18785_v18  ;;  %23185 = vst [vmem:[#allocation22_spill] sm:$0xff] %v22091_v46  ;;  %v18809_v18 = vld [vmem:[%s19863_s12 + $0x2614] ss:$12 sps:$4 sm:$0xff]  }
 0x483   : > { %13237 = vmatpush2.bf16.msra.mxu1 %v18788_v58  ;;  %13197 = vmatprep.subr.bf16.mxu0 %v18793_v5  ;;  %v18804_v58 = vld [vmem:[%s19863_s12 + $0x2490] ss:$12 sps:$4 sm:$0xff]   ;;  %23187 = vst [vmem:[#allocation24_spill] sm:$0xff] %v22099_v24 }
 0x484   : > { %13238 = vmatprep.subr.bf16.mxu1 %v18796_v1  ;;  %v18807_v5 = vld [vmem:[%s19863_s12 + $0x2610] ss:$12 sps:$4 sm:$0xff]   ;;  %v22097_v1 = vpack.c.bf16 %v1843_v33, %v1843_v33 }
 0x486   : > { %13198 = vmatpush2.bf16.msra.mxu0 %v18791_v9  ;;  %23186 = vst [vmem:[#allocation23_spill] sm:$0xff] %v22097_v1 }
 0x487   : > { %13239 = vmatpush2.bf16.msra.mxu1 %v18794_v34  ;;  %13249 = vmatprep.subr.bf16.mxu0 %v18800_v28  ;;  %v18812_v28 = vld [vmem:[%s19863_s12 + $0x247c] ss:$12 sps:$4 sm:$0xff]  }
 0x488   : > { %13290 = vmatprep.subr.bf16.mxu1 %v18803_v12  ;;  %v18815_v12 = vld [vmem:[%s19863_s12 + $0x25fc] ss:$12 sps:$4 sm:$0xff]  }
 0x489   : > { %v12955_v8 = vpop.f32.mrf.mxu0  ;;  %13200 = vmatmul.mubr.bf16.vlgmr.msra.gmra.mxu0 %v22087_v0  ;;  %v18813_v0 = vld [vmem:[%s19863_s12 + $0x25f8] ss:$12 sps:$4 sm:$0xff]  }
 0x48a   : > { %v12996_v30 = vpop.f32.mrf.mxu1  ;;  %13241 = vmatmul.mubr.bf16.vlgmr.msra.gmra.mxu1 %v22091_v46  ;;  %v12956_v13 = vadd.f32 %v12955_v8, %v22009_v63  ;;  %13250 = vmatpush1.bf16.msra.mxu0 %v18798_v10  ;;  %v18816_v8 = vld [vmem:[%s19863_s12 + $0x2460] ss:$12 sps:$4 sm:$0xff]   ;;  %v18907_v46 = vld [vmem:[%s19863_s12 + $0x2778] ss:$12 sps:$4 sm:$0xff]  }
 0x48b   : > { %13291 = vmatpush1.bf16.msra.mxu1 %v18801_v23  ;;  %v12957_v9 = vpop.f32.mrf.mxu0  ;;  %13251 = vmatprep.subr.bf16.mxu0 %v18806_v32 }
 0x48c   : > { %v12998_v34 = vpop.f32.mrf.mxu1  ;;  %13292 = vmatprep.subr.bf16.mxu1 %v18809_v18  ;;  %v22106_v33 = vadd.f32 %v12996_v30, %v12956_v13  ;;  %v12958_v29 = vadd.f32 %v12957_v9, %v22016_v45  ;;  %13281 = vmatprep.mubr.bf16.mxu0 %v22097_v1  ;;  %v18818_v45 = vld [vmem:[%s19863_s12 + $0x2464] ss:$12 sps:$4 sm:$0xff]   ;;  %v18819_v13 = vld [vmem:[%s19863_s12 + $0x25e0] ss:$12 sps:$4 sm:$0xff]   ;;  %v18822_v9 = vld [vmem:[%s19863_s12 + $0x2448] ss:$12 sps:$4 sm:$0xff]  }
 0x48d   : > { %13322 = vmatprep.mubr.bf16.mxu1 %v22099_v24  ;;  %v12959_v63 = vpop.f32.mrf.mxu0  ;;  %v18821_v18 = vld [vmem:[%s19863_s12 + $0x25e4] ss:$12 sps:$4 sm:$0xff]  }
 0x48e   : > { %v13000_v10 = vpop.f32.mrf.mxu1  ;;  %v22113_v23 = vadd.f32 %v12998_v34, %v12958_v29  ;;  %13252 = vmatpush1.bf16.msra.mxu0 %v18804_v58  ;;  %v18824_v58 = vld [vmem:[%s19863_s12 + $0x244c] ss:$12 sps:$4 sm:$0xff]   ;;  %v18825_v34 = vld [vmem:[%s19863_s12 + $0x25c8] ss:$12 sps:$4 sm:$0xff]  }
 0x48f   : > { %13293 = vmatpush1.bf16.msra.mxu1 %v18807_v5  ;;  %v12960_v30 = vpop.f32.mrf.mxu0  ;;  %13253 = vmatprep.subr.bf16.mxu0 %v18812_v28  ;;  %v18827_v5 = vld [vmem:[%s19863_s12 + $0x25cc] ss:$12 sps:$4 sm:$0xff]   ;;  %v18828_v28 = vld [vmem:[%s19863_s12 + $0x2430] ss:$12 sps:$4 sm:$0xff]  }
 0x490   : > { %v13001_v32 = vpop.f32.mrf.mxu1  ;;  %13294 = vmatprep.subr.bf16.mxu1 %v18815_v12  ;;  %v18831_v12 = vld [vmem:[%s19863_s12 + $0x25b0] ss:$12 sps:$4 sm:$0xff]   ;;  %v18834_v10 = vld [vmem:[%s19863_s12 + $0x2418] ss:$12 sps:$4 sm:$0xff]  }
 0x491   : > { %v18836_v29 = vld [vmem:[%s19863_s12 + $0x241c] ss:$12 sps:$4 sm:$0xff]   ;;  %v18837_v30 = vld [vmem:[%s19863_s12 + $0x2598] ss:$12 sps:$4 sm:$0xff]  }
 0x492   : > { %13254 = vmatpush1.bf16.msra.mxu0 %v18810_v42  ;;  %v18830_v42 = vld [vmem:[%s19863_s12 + $0x2434] ss:$12 sps:$4 sm:$0xff]   ;;  %v18839_v63 = vld [vmem:[%s19863_s12 + $0x259c] ss:$12 sps:$4 sm:$0xff]   ;;  %v18842_v32 = vld [vmem:[%s19863_s12 + $0x2404] ss:$12 sps:$4 sm:$0xff]  }
 0x493   : > { %13295 = vmatpush1.bf16.msra.mxu1 %v18813_v0  ;;  %13255 = vmatprep.subr.bf16.mxu0 %v18818_v45  ;;  %v18833_v0 = vld [vmem:[%s19863_s12 + $0x25b4] ss:$12 sps:$4 sm:$0xff]   ;;  %v18845_v45 = vld [vmem:[%s19863_s12 + $0x2584] ss:$12 sps:$4 sm:$0xff]  }
 0x494   : > { %13296 = vmatprep.subr.bf16.mxu1 %v18821_v18  ;;  %v18840_v18 = vld [vmem:[%s19863_s12 + $0x2400] ss:$12 sps:$4 sm:$0xff]  }
 0x496   : > { %13256 = vmatpush1.bf16.msra.mxu0 %v18816_v8  ;;  %v18843_v8 = vld [vmem:[%s19863_s12 + $0x2580] ss:$12 sps:$4 sm:$0xff]  }
 0x497   : > { %13297 = vmatpush1.bf16.msra.mxu1 %v18819_v13  ;;  %13257 = vmatprep.subr.bf16.mxu0 %v18824_v58  ;;  %v18848_v13 = vld [vmem:[%s19863_s12 + $0x256c] ss:$12 sps:$4 sm:$0xff]  }
 0x498   : > { %13298 = vmatprep.subr.bf16.mxu1 %v18827_v5  ;;  %v18851_v58 = vld [vmem:[%s19863_s12 + $0x26ec] ss:$12 sps:$4 sm:$0xff]   ;;  %v18846_v5 = vld [vmem:[%s19863_s12 + $0x2568] ss:$12 sps:$4 sm:$0xff]  }
 0x49a   : > { %13258 = vmatpush1.bf16.msra.mxu0 %v18822_v9  ;;  %v18849_v9 = vld [vmem:[%s19863_s12 + $0x26e8] ss:$12 sps:$4 sm:$0xff]  }
 0x49b   : > { %13299 = vmatpush1.bf16.msra.mxu1 %v18825_v34  ;;  %13259 = vmatprep.subr.bf16.mxu0 %v18830_v42  ;;  %v18854_v34 = vld [vmem:[%s19863_s12 + $0x2554] ss:$12 sps:$4 sm:$0xff]  }
 0x49c   : > { %13300 = vmatprep.subr.bf16.mxu1 %v18833_v0  ;;  %v18857_v42 = vld [vmem:[%s19863_s12 + $0x26d4] ss:$12 sps:$4 sm:$0xff]   ;;  %v18852_v0 = vld [vmem:[%s19863_s12 + $0x2550] ss:$12 sps:$4 sm:$0xff]  }
 0x49e   : > { %13260 = vmatpush1.bf16.msra.mxu0 %v18828_v28  ;;  %v18855_v28 = vld [vmem:[%s19863_s12 + $0x26d0] ss:$12 sps:$4 sm:$0xff]  }
 0x49f   : > { %13301 = vmatpush1.bf16.msra.mxu1 %v18831_v12  ;;  %13261 = vmatprep.subr.bf16.mxu0 %v18836_v29  ;;  %v18860_v12 = vld [vmem:[%s19863_s12 + $0x253c] ss:$12 sps:$4 sm:$0xff]  }
 0x4a0   : > { %13302 = vmatprep.subr.bf16.mxu1 %v18839_v63  ;;  %v18863_v29 = vld [vmem:[%s19863_s12 + $0x26bc] ss:$12 sps:$4 sm:$0xff]   ;;  %v18858_v63 = vld [vmem:[%s19863_s12 + $0x2538] ss:$12 sps:$4 sm:$0xff]  }
 0x4a2   : > { %13262 = vmatpush1.bf16.msra.mxu0 %v18834_v10  ;;  %v18861_v10 = vld [vmem:[%s19863_s12 + $0x26b8] ss:$12 sps:$4 sm:$0xff]  }
 0x4a3   : > { %13303 = vmatpush1.bf16.msra.mxu1 %v18837_v30  ;;  %13263 = vmatprep.subr.bf16.mxu0 %v18842_v32  ;;  %v18866_v30 = vld [vmem:[%s19863_s12 + $0x2524] ss:$12 sps:$4 sm:$0xff]  }
 0x4a4   : > { %13304 = vmatprep.subr.bf16.mxu1 %v18845_v45  ;;  %v18869_v32 = vld [vmem:[%s19863_s12 + $0x26a4] ss:$12 sps:$4 sm:$0xff]   ;;  %v18864_v45 = vld [vmem:[%s19863_s12 + $0x2520] ss:$12 sps:$4 sm:$0xff]  }
 0x4a6   : > { %13264 = vmatpush1.bf16.msra.mxu0 %v18840_v18  ;;  %v18867_v18 = vld [vmem:[%s19863_s12 + $0x26a0] ss:$12 sps:$4 sm:$0xff]  }
 0x4a7   : > { %13305 = vmatpush1.bf16.msra.mxu1 %v18843_v8  ;;  %13265 = vmatprep.subr.bf16.mxu0 %v18848_v13  ;;  %v18872_v8 = vld [vmem:[%s19863_s12 + $0x250c] ss:$12 sps:$4 sm:$0xff]  }
 0x4a8   : > { %13306 = vmatprep.subr.bf16.mxu1 %v18851_v58  ;;  %v18875_v13 = vld [vmem:[%s19863_s12 + $0x268c] ss:$12 sps:$4 sm:$0xff]   ;;  %v18870_v58 = vld [vmem:[%s19863_s12 + $0x2508] ss:$12 sps:$4 sm:$0xff]  }
 0x4aa   : > { %13266 = vmatpush2.bf16.msra.mxu0 %v18846_v5  ;;  %v18873_v5 = vld [vmem:[%s19863_s12 + $0x2688] ss:$12 sps:$4 sm:$0xff]  }
 0x4ab   : > { %13307 = vmatpush2.bf16.msra.mxu1 %v18849_v9  ;;  %13267 = vmatprep.subr.bf16.mxu0 %v18854_v34  ;;  %v18878_v9 = vld [vmem:[%s19863_s12 + $0x24f4] ss:$12 sps:$4 sm:$0xff]  }
 0x4ac   : > { %13308 = vmatprep.subr.bf16.mxu1 %v18857_v42  ;;  %v18881_v34 = vld [vmem:[%s19863_s12 + $0x2674] ss:$12 sps:$4 sm:$0xff]   ;;  %v1605_v42 = vld [vmem:[%s20998_s16 + $0x68] sm:$0xff] }
 0x4ae   : > { %13268 = vmatpush2.bf16.msra.mxu0 %v18852_v0  ;;  %v18876_v0 = vld [vmem:[%s19863_s12 + $0x24f0] ss:$12 sps:$4 sm:$0xff]  }
 0x4af   : > { %13309 = vmatpush2.bf16.msra.mxu1 %v18855_v28  ;;  %13269 = vmatprep.subr.bf16.mxu0 %v18860_v12  ;;  %v18879_v28 = vld [vmem:[%s19863_s12 + $0x2670] ss:$12 sps:$4 sm:$0xff]  }
 0x4b0   : > { %13310 = vmatprep.subr.bf16.mxu1 %v18863_v29  ;;  %v18884_v12 = vld [vmem:[%s19863_s12 + $0x24dc] ss:$12 sps:$4 sm:$0xff]  }
 0x4b1   : > { %v18887_v29 = vld [vmem:[%s19863_s12 + $0x265c] ss:$12 sps:$4 sm:$0xff]  }
 0x4b2   : > { %13270 = vmatpush2.bf16.msra.mxu0 %v18858_v63  ;;  %v1845_v63 = vcombine.high %v1605_v42, %v1605_v42 }
 0x4b3   : > { %13311 = vmatpush2.bf16.msra.mxu1 %v18861_v10  ;;  %13271 = vmatprep.subr.bf16.mxu0 %v18866_v30  ;;  %v18882_v10 = vld [vmem:[%s19863_s12 + $0x24d8] ss:$12 sps:$4 sm:$0xff]  }
 0x4b4   : > { %13312 = vmatprep.subr.bf16.mxu1 %v18869_v32  ;;  %v18885_v30 = vld [vmem:[%s19863_s12 + $0x2658] ss:$12 sps:$4 sm:$0xff]  }
 0x4b5   : > { %v18890_v32 = vld [vmem:[%s19863_s12 + $0x24c4] ss:$12 sps:$4 sm:$0xff]  }
 0x4b6   : > { %13272 = vmatpush2.bf16.msra.mxu0 %v18864_v45  ;;  %v18893_v45 = vld [vmem:[%s19863_s12 + $0x2644] ss:$12 sps:$4 sm:$0xff]  }
 0x4b7   : > { %13313 = vmatpush2.bf16.msra.mxu1 %v18867_v18  ;;  %13273 = vmatprep.subr.bf16.mxu0 %v18872_v8  ;;  %v22167_v18 = vrot.slane %v1605_v42, %v20994_v19  ;;  %v22170_v8 = vrot.slane %v1845_v63, %v20994_v19  ;;  %v18903_v63 = vld [vmem:[%s19863_s12 + $0x2794] ss:$12 sps:$4 sm:$0xff]  }
 0x4b8   : > { %13314 = vmatprep.subr.bf16.mxu1 %v18875_v13  ;;  %v18888_v13 = vld [vmem:[%s19863_s12 + $0x24c0] ss:$12 sps:$4 sm:$0xff]  }
 0x4b9   : > { %v1860_v42 = vcombine.high %v22167_v18, %v22167_v18 }
 0x4ba   : > { %13274 = vmatpush2.bf16.msra.mxu0 %v18870_v58  ;;  %v18891_v58 = vld [vmem:[%s19863_s12 + $0x2640] ss:$12 sps:$4 sm:$0xff]  }
 0x4bb   : > { %13315 = vmatpush2.bf16.msra.mxu1 %v18873_v5  ;;  %13275 = vmatprep.subr.bf16.mxu0 %v18878_v9  ;;  %v18897_v5 = vld [vmem:[%s19863_s12 + $0x27ac] ss:$12 sps:$4 sm:$0xff]  }
 0x4bc   : > { %13316 = vmatprep.subr.bf16.mxu1 %v18881_v34  ;;  %v18900_v9 = vld [vmem:[%s19863_s12 + $0x292c] ss:$12 sps:$4 sm:$0xff]   ;;  %v18895_v34 = vld [vmem:[%s19863_s12 + $0x27a8] ss:$12 sps:$4 sm:$0xff]  }
 0x4be   : > { %13276 = vmatpush2.bf16.msra.mxu0 %v18876_v0  ;;  %v18898_v0 = vld [vmem:[%s19863_s12 + $0x2928] ss:$12 sps:$4 sm:$0xff]  }
 0x4bf   : > { %13317 = vmatpush2.bf16.msra.mxu1 %v18879_v28  ;;  %13277 = vmatprep.subr.bf16.mxu0 %v18884_v12  ;;  %v1861_v28 = vcombine.high %v22170_v8, %v22170_v8  ;;  %v22184_v12 = vpack.c.bf16 %v22070_v37, %v22070_v37 }
 0x4c0   : > { %13318 = vmatprep.subr.bf16.mxu1 %v18887_v29  ;;  %v22188_v29 = vpack.c.bf16 %v22073_v21, %v22073_v21 }
 0x4c1   : > { %23188 = vst [vmem:[#allocation25_spill] sm:$0xff] %v22184_v12  ;;  %v22196_v24 = vpack.c.bf16 %v1861_v28, %v1861_v28 }
 0x4c2   : > { %13278 = vmatpush2.bf16.msra.mxu0 %v18882_v10  ;;  %23189 = vst [vmem:[#allocation26_spill] sm:$0xff] %v22188_v29  ;;  %v18906_v10 = vld [vmem:[%s19863_s12 + $0x2914] ss:$12 sps:$4 sm:$0xff]  }
 0x4c3   : > { %13319 = vmatpush2.bf16.msra.mxu1 %v18885_v30  ;;  %13279 = vmatprep.subr.bf16.mxu0 %v18890_v32  ;;  %v18901_v30 = vld [vmem:[%s19863_s12 + $0x2790] ss:$12 sps:$4 sm:$0xff]   ;;  %23191 = vst [vmem:[#allocation28_spill] sm:$0xff] %v22196_v24 }
 0x4c4   : > { %13320 = vmatprep.subr.bf16.mxu1 %v18893_v45  ;;  %v18904_v32 = vld [vmem:[%s19863_s12 + $0x2910] ss:$12 sps:$4 sm:$0xff]   ;;  %v22194_v45 = vpack.c.bf16 %v1860_v42, %v1860_v42 }
 0x4c6   : > { %13280 = vmatpush2.bf16.msra.mxu0 %v18888_v13  ;;  %23190 = vst [vmem:[#allocation27_spill] sm:$0xff] %v22194_v45 }
 0x4c7   : > { %13321 = vmatpush2.bf16.msra.mxu1 %v18891_v58  ;;  %13331 = vmatprep.subr.bf16.mxu0 %v18897_v5  ;;  %v18909_v5 = vld [vmem:[%s19863_s12 + $0x277c] ss:$12 sps:$4 sm:$0xff]  }
 0x4c8   : > { %13372 = vmatprep.subr.bf16.mxu1 %v18900_v9  ;;  %v18912_v9 = vld [vmem:[%s19863_s12 + $0x28fc] ss:$12 sps:$4 sm:$0xff]  }
 0x4c9   : > { %v13037_v37 = vpop.f32.mrf.mxu0  ;;  %13282 = vmatmul.mubr.bf16.vlgmr.msra.gmra.mxu0 %v22184_v12  ;;  %v18910_v12 = vld [vmem:[%s19863_s12 + $0x28f8] ss:$12 sps:$4 sm:$0xff]  }
 0x4ca   : > { %v13078_v1 = vpop.f32.mrf.mxu1  ;;  %13323 = vmatmul.mubr.bf16.vlgmr.msra.gmra.mxu1 %v22188_v29  ;;  %v13038_v21 = vadd.f32 %v13037_v37, %v22106_v33  ;;  %13332 = vmatpush1.bf16.msra.mxu0 %v18895_v34  ;;  %v18913_v37 = vld [vmem:[%s19863_s12 + $0x2760] ss:$12 sps:$4 sm:$0xff]   ;;  %v19007_v29 = vld [vmem:[%s19863_s12 + $0x2bf8] ss:$12 sps:$4 sm:$0xff]  }
 0x4cb   : > { %13373 = vmatpush1.bf16.msra.mxu1 %v18898_v0  ;;  %v13039_v13 = vpop.f32.mrf.mxu0  ;;  %13333 = vmatprep.subr.bf16.mxu0 %v18903_v63 }
 0x4cc   : > { %v13080_v58 = vpop.f32.mrf.mxu1  ;;  %13374 = vmatprep.subr.bf16.mxu1 %v18906_v10  ;;  %v22203_v42 = vadd.f32 %v13078_v1, %v13038_v21  ;;  %v13040_v28 = vadd.f32 %v13039_v13, %v22113_v23  ;;  %13363 = vmatprep.mubr.bf16.mxu0 %v22194_v45  ;;  %v18915_v23 = vld [vmem:[%s19863_s12 + $0x2764] ss:$12 sps:$4 sm:$0xff]   ;;  %v18916_v21 = vld [vmem:[%s19863_s12 + $0x28e0] ss:$12 sps:$4 sm:$0xff]   ;;  %v18919_v13 = vld [vmem:[%s19863_s12 + $0x2748] ss:$12 sps:$4 sm:$0xff]  }
 0x4cd   : > { %13404 = vmatprep.mubr.bf16.mxu1 %v22196_v24  ;;  %v13041_v33 = vpop.f32.mrf.mxu0  ;;  %v18918_v10 = vld [vmem:[%s19863_s12 + $0x28e4] ss:$12 sps:$4 sm:$0xff]  }
 0x4ce   : > { %v13082_v34 = vpop.f32.mrf.mxu1  ;;  %v22210_v0 = vadd.f32 %v13080_v58, %v13040_v28  ;;  %13334 = vmatpush1.bf16.msra.mxu0 %v18901_v30  ;;  %v18921_v30 = vld [vmem:[%s19863_s12 + $0x274c] ss:$12 sps:$4 sm:$0xff]   ;;  %v18922_v58 = vld [vmem:[%s19863_s12 + $0x28c8] ss:$12 sps:$4 sm:$0xff]  }
 0x4cf   : > { %13375 = vmatpush1.bf16.msra.mxu1 %v18904_v32  ;;  %v13042_v1 = vpop.f32.mrf.mxu0  ;;  %13335 = vmatprep.subr.bf16.mxu0 %v18909_v5  ;;  %v18924_v32 = vld [vmem:[%s19863_s12 + $0x28cc] ss:$12 sps:$4 sm:$0xff]   ;;  %v18925_v5 = vld [vmem:[%s19863_s12 + $0x2730] ss:$12 sps:$4 sm:$0xff]  }
 0x4d0   : > { %v13083_v63 = vpop.f32.mrf.mxu1  ;;  %13376 = vmatprep.subr.bf16.mxu1 %v18912_v9  ;;  %v18928_v9 = vld [vmem:[%s19863_s12 + $0x28b0] ss:$12 sps:$4 sm:$0xff]   ;;  %v18931_v34 = vld [vmem:[%s19863_s12 + $0x2718] ss:$12 sps:$4 sm:$0xff]  }
 0x4d1   : > { %v18933_v28 = vld [vmem:[%s19863_s12 + $0x271c] ss:$12 sps:$4 sm:$0xff]   ;;  %v18934_v1 = vld [vmem:[%s19863_s12 + $0x2898] ss:$12 sps:$4 sm:$0xff]  }
 0x4d2   : > { %13336 = vmatpush1.bf16.msra.mxu0 %v18907_v46  ;;  %v18927_v46 = vld [vmem:[%s19863_s12 + $0x2734] ss:$12 sps:$4 sm:$0xff]   ;;  %v18936_v33 = vld [vmem:[%s19863_s12 + $0x289c] ss:$12 sps:$4 sm:$0xff]   ;;  %v18939_v63 = vld [vmem:[%s19863_s12 + $0x2704] ss:$12 sps:$4 sm:$0xff]  }
 0x4d3   : > { %13377 = vmatpush1.bf16.msra.mxu1 %v18910_v12  ;;  %13337 = vmatprep.subr.bf16.mxu0 %v18915_v23  ;;  %v18930_v12 = vld [vmem:[%s19863_s12 + $0x28b4] ss:$12 sps:$4 sm:$0xff]   ;;  %v18942_v23 = vld [vmem:[%s19863_s12 + $0x2884] ss:$12 sps:$4 sm:$0xff]  }
 0x4d4   : > { %13378 = vmatprep.subr.bf16.mxu1 %v18918_v10  ;;  %v18937_v10 = vld [vmem:[%s19863_s12 + $0x2700] ss:$12 sps:$4 sm:$0xff]  }
 0x4d6   : > { %13338 = vmatpush1.bf16.msra.mxu0 %v18913_v37  ;;  %v18940_v37 = vld [vmem:[%s19863_s12 + $0x2880] ss:$12 sps:$4 sm:$0xff]  }
 0x4d7   : > { %13379 = vmatpush1.bf16.msra.mxu1 %v18916_v21  ;;  %13339 = vmatprep.subr.bf16.mxu0 %v18921_v30  ;;  %v18945_v21 = vld [vmem:[%s19863_s12 + $0x286c] ss:$12 sps:$4 sm:$0xff]  }
 0x4d8   : > { %13380 = vmatprep.subr.bf16.mxu1 %v18924_v32  ;;  %v18948_v30 = vld [vmem:[%s19863_s12 + $0x29ec] ss:$12 sps:$4 sm:$0xff]   ;;  %v18943_v32 = vld [vmem:[%s19863_s12 + $0x2868] ss:$12 sps:$4 sm:$0xff]  }
 0x4da   : > { %13340 = vmatpush1.bf16.msra.mxu0 %v18919_v13  ;;  %v18946_v13 = vld [vmem:[%s19863_s12 + $0x29e8] ss:$12 sps:$4 sm:$0xff]  }
 0x4db   : > { %13381 = vmatpush1.bf16.msra.mxu1 %v18922_v58  ;;  %13341 = vmatprep.subr.bf16.mxu0 %v18927_v46  ;;  %v18951_v58 = vld [vmem:[%s19863_s12 + $0x2854] ss:$12 sps:$4 sm:$0xff]  }
 0x4dc   : > { %13382 = vmatprep.subr.bf16.mxu1 %v18930_v12  ;;  %v18954_v46 = vld [vmem:[%s19863_s12 + $0x29d4] ss:$12 sps:$4 sm:$0xff]   ;;  %v18949_v12 = vld [vmem:[%s19863_s12 + $0x2850] ss:$12 sps:$4 sm:$0xff]  }
 0x4de   : > { %13342 = vmatpush1.bf16.msra.mxu0 %v18925_v5  ;;  %v18952_v5 = vld [vmem:[%s19863_s12 + $0x29d0] ss:$12 sps:$4 sm:$0xff]  }
 0x4df   : > { %13383 = vmatpush1.bf16.msra.mxu1 %v18928_v9  ;;  %13343 = vmatprep.subr.bf16.mxu0 %v18933_v28  ;;  %v18957_v9 = vld [vmem:[%s19863_s12 + $0x283c] ss:$12 sps:$4 sm:$0xff]  }
 0x4e0   : > { %13384 = vmatprep.subr.bf16.mxu1 %v18936_v33  ;;  %v18960_v28 = vld [vmem:[%s19863_s12 + $0x29bc] ss:$12 sps:$4 sm:$0xff]   ;;  %v18955_v33 = vld [vmem:[%s19863_s12 + $0x2838] ss:$12 sps:$4 sm:$0xff]  }
 0x4e2   : > { %13344 = vmatpush1.bf16.msra.mxu0 %v18931_v34  ;;  %v18958_v34 = vld [vmem:[%s19863_s12 + $0x29b8] ss:$12 sps:$4 sm:$0xff]  }
 0x4e3   : > { %13385 = vmatpush1.bf16.msra.mxu1 %v18934_v1  ;;  %13345 = vmatprep.subr.bf16.mxu0 %v18939_v63  ;;  %v18963_v1 = vld [vmem:[%s19863_s12 + $0x2824] ss:$12 sps:$4 sm:$0xff]  }
 0x4e4   : > { %13386 = vmatprep.subr.bf16.mxu1 %v18942_v23  ;;  %v18966_v63 = vld [vmem:[%s19863_s12 + $0x29a4] ss:$12 sps:$4 sm:$0xff]   ;;  %v18961_v23 = vld [vmem:[%s19863_s12 + $0x2820] ss:$12 sps:$4 sm:$0xff]  }
 0x4e6   : > { %13346 = vmatpush1.bf16.msra.mxu0 %v18937_v10  ;;  %v18964_v10 = vld [vmem:[%s19863_s12 + $0x29a0] ss:$12 sps:$4 sm:$0xff]  }
 0x4e7   : > { %13387 = vmatpush1.bf16.msra.mxu1 %v18940_v37  ;;  %13347 = vmatprep.subr.bf16.mxu0 %v18945_v21  ;;  %v18969_v37 = vld [vmem:[%s19863_s12 + $0x280c] ss:$12 sps:$4 sm:$0xff]  }
 0x4e8   : > { %13388 = vmatprep.subr.bf16.mxu1 %v18948_v30  ;;  %v18972_v21 = vld [vmem:[%s19863_s12 + $0x298c] ss:$12 sps:$4 sm:$0xff]   ;;  %v18967_v30 = vld [vmem:[%s19863_s12 + $0x2808] ss:$12 sps:$4 sm:$0xff]  }
 0x4ea   : > { %13348 = vmatpush2.bf16.msra.mxu0 %v18943_v32  ;;  %v18970_v32 = vld [vmem:[%s19863_s12 + $0x2988] ss:$12 sps:$4 sm:$0xff]  }
 0x4eb   : > { %13389 = vmatpush2.bf16.msra.mxu1 %v18946_v13  ;;  %13349 = vmatprep.subr.bf16.mxu0 %v18951_v58  ;;  %v18975_v13 = vld [vmem:[%s19863_s12 + $0x27f4] ss:$12 sps:$4 sm:$0xff]  }
 0x4ec   : > { %13390 = vmatprep.subr.bf16.mxu1 %v18954_v46  ;;  %v18978_v58 = vld [vmem:[%s19863_s12 + $0x2974] ss:$12 sps:$4 sm:$0xff]  }
 0x4ed   : > { %v1606_v46 = vld [vmem:[%s20998_s16 + $0x70] sm:$0xff] }
 0x4ee   : > { %13350 = vmatpush2.bf16.msra.mxu0 %v18949_v12  ;;  %v18973_v12 = vld [vmem:[%s19863_s12 + $0x27f0] ss:$12 sps:$4 sm:$0xff]  }
 0x4ef   : > { %13391 = vmatpush2.bf16.msra.mxu1 %v18952_v5  ;;  %13351 = vmatprep.subr.bf16.mxu0 %v18957_v9  ;;  %v18976_v5 = vld [vmem:[%s19863_s12 + $0x2970] ss:$12 sps:$4 sm:$0xff]  }
 0x4f0   : > { %13392 = vmatprep.subr.bf16.mxu1 %v18960_v28  ;;  %v18981_v9 = vld [vmem:[%s19863_s12 + $0x27dc] ss:$12 sps:$4 sm:$0xff]  }
 0x4f1   : > { %v18984_v28 = vld [vmem:[%s19863_s12 + $0x295c] ss:$12 sps:$4 sm:$0xff]  }
 0x4f2   : > { %13352 = vmatpush2.bf16.msra.mxu0 %v18955_v33  ;;  %v1862_v33 = vcombine.high %v1606_v46, %v1606_v46 }
 0x4f3   : > { %13393 = vmatpush2.bf16.msra.mxu1 %v18958_v34  ;;  %13353 = vmatprep.subr.bf16.mxu0 %v18963_v1  ;;  %v18979_v34 = vld [vmem:[%s19863_s12 + $0x27d8] ss:$12 sps:$4 sm:$0xff]  }
 0x4f4   : > { %13394 = vmatprep.subr.bf16.mxu1 %v18966_v63  ;;  %v18982_v1 = vld [vmem:[%s19863_s12 + $0x2958] ss:$12 sps:$4 sm:$0xff]  }
 0x4f5   : > { %v18987_v63 = vld [vmem:[%s19863_s12 + $0x27c4] ss:$12 sps:$4 sm:$0xff]  }
 0x4f6   : > { %13354 = vmatpush2.bf16.msra.mxu0 %v18961_v23  ;;  %v18990_v23 = vld [vmem:[%s19863_s12 + $0x2944] ss:$12 sps:$4 sm:$0xff]  }
 0x4f7   : > { %13395 = vmatpush2.bf16.msra.mxu1 %v18964_v10  ;;  %13355 = vmatprep.subr.bf16.mxu0 %v18969_v37  ;;  %v22264_v10 = vrot.slane %v1606_v46, %v20994_v19  ;;  %v22267_v37 = vrot.slane %v1862_v33, %v20994_v19  ;;  %v19000_v33 = vld [vmem:[%s19863_s12 + $0x2a94] ss:$12 sps:$4 sm:$0xff]  }
 0x4f8   : > { %13396 = vmatprep.subr.bf16.mxu1 %v18972_v21  ;;  %v18985_v21 = vld [vmem:[%s19863_s12 + $0x27c0] ss:$12 sps:$4 sm:$0xff]  }
 0x4f9   : > { %v1877_v46 = vcombine.high %v22264_v10, %v22264_v10 }
 0x4fa   : > { %13356 = vmatpush2.bf16.msra.mxu0 %v18967_v30  ;;  %v18988_v30 = vld [vmem:[%s19863_s12 + $0x2940] ss:$12 sps:$4 sm:$0xff]  }
 0x4fb   : > { %13397 = vmatpush2.bf16.msra.mxu1 %v18970_v32  ;;  %13357 = vmatprep.subr.bf16.mxu0 %v18975_v13  ;;  %v18994_v32 = vld [vmem:[%s19863_s12 + $0x2aac] ss:$12 sps:$4 sm:$0xff]  }
 0x4fc   : > { %13398 = vmatprep.subr.bf16.mxu1 %v18978_v58  ;;  %v18997_v13 = vld [vmem:[%s19863_s12 + $0x2c2c] ss:$12 sps:$4 sm:$0xff]   ;;  %v18992_v58 = vld [vmem:[%s19863_s12 + $0x2aa8] ss:$12 sps:$4 sm:$0xff]  }
 0x4fe   : > { %13358 = vmatpush2.bf16.msra.mxu0 %v18973_v12  ;;  %v18995_v12 = vld [vmem:[%s19863_s12 + $0x2c28] ss:$12 sps:$4 sm:$0xff]  }
 0x4ff   : > { %13399 = vmatpush2.bf16.msra.mxu1 %v18976_v5  ;;  %13359 = vmatprep.subr.bf16.mxu0 %v18981_v9  ;;  %v1878_v5 = vcombine.high %v22267_v37, %v22267_v37  ;;  %v22281_v9 = vpack.c.bf16 %v22167_v18, %v22167_v18 }
 0x500   : > { %13400 = vmatprep.subr.bf16.mxu1 %v18984_v28  ;;  %v22285_v28 = vpack.c.bf16 %v22170_v8, %v22170_v8 }
 0x501   : > { %23192 = vst [vmem:[#allocation29_spill] sm:$0xff] %v22281_v9  ;;  %v22293_v24 = vpack.c.bf16 %v1878_v5, %v1878_v5 }
 0x502   : > { %13360 = vmatpush2.bf16.msra.mxu0 %v18979_v34  ;;  %v19003_v34 = vld [vmem:[%s19863_s12 + $0x2c14] ss:$12 sps:$4 sm:$0xff]  }
 0x503   : > { %13401 = vmatpush2.bf16.msra.mxu1 %v18982_v1  ;;  %13361 = vmatprep.subr.bf16.mxu0 %v18987_v63  ;;  %v18998_v1 = vld [vmem:[%s19863_s12 + $0x2a90] ss:$12 sps:$4 sm:$0xff]   ;;  %23194 = vst [vmem:[#allocation31_spill] sm:$0xff] %v22293_v24 }
 0x504   : > { %13402 = vmatprep.subr.bf16.mxu1 %v18990_v23  ;;  %v19001_v63 = vld [vmem:[%s19863_s12 + $0x2c10] ss:$12 sps:$4 sm:$0xff]   ;;  %v22291_v23 = vpack.c.bf16 %v1877_v46, %v1877_v46 }
 0x506   : > { %13362 = vmatpush2.bf16.msra.mxu0 %v18985_v21  ;;  %23193 = vst [vmem:[#allocation30_spill] sm:$0xff] %v22291_v23 }
 0x507   : > { %13403 = vmatpush2.bf16.msra.mxu1 %v18988_v30  ;;  %13413 = vmatprep.subr.bf16.mxu0 %v18994_v32  ;;  %v19006_v32 = vld [vmem:[%s19863_s12 + $0x2a7c] ss:$12 sps:$4 sm:$0xff]  }
 0x508   : > { %13454 = vmatprep.subr.bf16.mxu1 %v18997_v13  ;;  %v19009_v13 = vld [vmem:[%s19863_s12 + $0x2bfc] ss:$12 sps:$4 sm:$0xff]  }
 0x509   : > { %v13119_v18 = vpop.f32.mrf.mxu0  ;;  %13364 = vmatmul.mubr.bf16.vlgmr.msra.gmra.mxu0 %v22281_v9  ;;  %v19004_v9 = vld [vmem:[%s19863_s12 + $0x2a78] ss:$12 sps:$4 sm:$0xff]  }
 0x50a   : > { %v13160_v45 = vpop.f32.mrf.mxu1  ;;  %13405 = vmatmul.mubr.bf16.vlgmr.msra.gmra.mxu1 %v22285_v28  ;;  %v13120_v8 = vadd.f32 %v13119_v18, %v22203_v42  ;;  %13414 = vmatpush1.bf16.msra.mxu0 %v18992_v58  ;;  %v19010_v18 = vld [vmem:[%s19863_s12 + $0x2a60] ss:$12 sps:$4 sm:$0xff]  }
 0x50b   : > { %13455 = vmatpush1.bf16.msra.mxu1 %v18995_v12  ;;  %v13121_v21 = vpop.f32.mrf.mxu0  ;;  %13415 = vmatprep.subr.bf16.mxu0 %v19000_v33 }
 0x50c   : > { %v13162_v30 = vpop.f32.mrf.mxu1  ;;  %13456 = vmatprep.subr.bf16.mxu1 %v19003_v34  ;;  %v22300_v46 = vadd.f32 %v13160_v45, %v13120_v8  ;;  %v13122_v5 = vadd.f32 %v13121_v21, %v22210_v0  ;;  %13445 = vmatprep.mubr.bf16.mxu0 %v22291_v23  ;;  %v19012_v0 = vld [vmem:[%s19863_s12 + $0x2a64] ss:$12 sps:$4 sm:$0xff]   ;;  %v19013_v8 = vld [vmem:[%s19863_s12 + $0x2be0] ss:$12 sps:$4 sm:$0xff]   ;;  %v19016_v21 = vld [vmem:[%s19863_s12 + $0x2a48] ss:$12 sps:$4 sm:$0xff]  }
 0x50d   : > { %13486 = vmatprep.mubr.bf16.mxu1 %v22293_v24  ;;  %v13123_v42 = vpop.f32.mrf.mxu0  ;;  %v19015_v34 = vld [vmem:[%s19863_s12 + $0x2be4] ss:$12 sps:$4 sm:$0xff]  }
 0x50e   : > { %v13164_v58 = vpop.f32.mrf.mxu1  ;;  %v22307_v12 = vadd.f32 %v13162_v30, %v13122_v5  ;;  %13416 = vmatpush1.bf16.msra.mxu0 %v18998_v1  ;;  %v19018_v1 = vld [vmem:[%s19863_s12 + $0x2a4c] ss:$12 sps:$4 sm:$0xff]   ;;  %v19019_v30 = vld [vmem:[%s19863_s12 + $0x2bc8] ss:$12 sps:$4 sm:$0xff]  }
 0x50f   : > { %13457 = vmatpush1.bf16.msra.mxu1 %v19001_v63  ;;  %v13124_v45 = vpop.f32.mrf.mxu0  ;;  %13417 = vmatprep.subr.bf16.mxu0 %v19006_v32  ;;  %v19021_v63 = vld [vmem:[%s19863_s12 + $0x2bcc] ss:$12 sps:$4 sm:$0xff]   ;;  %v19024_v32 = vld [vmem:[%s19863_s12 + $0x2a34] ss:$12 sps:$4 sm:$0xff]   ;;  %v19030_v5 = vld [vmem:[%s19863_s12 + $0x2a1c] ss:$12 sps:$4 sm:$0xff]  }
 0x510   : > { %v13165_v33 = vpop.f32.mrf.mxu1  ;;  %13458 = vmatprep.subr.bf16.mxu1 %v19009_v13  ;;  %v19025_v13 = vld [vmem:[%s19863_s12 + $0x2bb0] ss:$12 sps:$4 sm:$0xff]   ;;  %v19028_v58 = vld [vmem:[%s19863_s12 + $0x2a18] ss:$12 sps:$4 sm:$0xff]  }
 0x511   : > { %v19033_v42 = vld [vmem:[%s19863_s12 + $0x2b9c] ss:$12 sps:$4 sm:$0xff]   ;;  %v19031_v45 = vld [vmem:[%s19863_s12 + $0x2b98] ss:$12 sps:$4 sm:$0xff]  }
 0x512   : > { %13418 = vmatpush1.bf16.msra.mxu0 %v19004_v9  ;;  %v19027_v9 = vld [vmem:[%s19863_s12 + $0x2bb4] ss:$12 sps:$4 sm:$0xff]   ;;  %v19036_v33 = vld [vmem:[%s19863_s12 + $0x2a04] ss:$12 sps:$4 sm:$0xff]  }
 0x513   : > { %13459 = vmatpush1.bf16.msra.mxu1 %v19007_v29  ;;  %13419 = vmatprep.subr.bf16.mxu0 %v19012_v0  ;;  %v19022_v29 = vld [vmem:[%s19863_s12 + $0x2a30] ss:$12 sps:$4 sm:$0xff]   ;;  %v19104_v23 = vld [vmem:[%s19863_s12 + $0x2ef8] ss:$12 sps:$4 sm:$0xff]  }
 0x514   : > { %13460 = vmatprep.subr.bf16.mxu1 %v19015_v34  ;;  %v19039_v0 = vld [vmem:[%s19863_s12 + $0x2b84] ss:$12 sps:$4 sm:$0xff]   ;;  %v19034_v34 = vld [vmem:[%s19863_s12 + $0x2a00] ss:$12 sps:$4 sm:$0xff]  }
 0x516   : > { %13420 = vmatpush1.bf16.msra.mxu0 %v19010_v18  ;;  %v19037_v18 = vld [vmem:[%s19863_s12 + $0x2b80] ss:$12 sps:$4 sm:$0xff]  }
 0x517   : > { %13461 = vmatpush1.bf16.msra.mxu1 %v19013_v8  ;;  %13421 = vmatprep.subr.bf16.mxu0 %v19018_v1  ;;  %v19042_v8 = vld [vmem:[%s19863_s12 + $0x2b6c] ss:$12 sps:$4 sm:$0xff]  }
 0x518   : > { %13462 = vmatprep.subr.bf16.mxu1 %v19021_v63  ;;  %v19045_v1 = vld [vmem:[%s19863_s12 + $0x2cec] ss:$12 sps:$4 sm:$0xff]   ;;  %v19040_v63 = vld [vmem:[%s19863_s12 + $0x2b68] ss:$12 sps:$4 sm:$0xff]  }
 0x51a   : > { %13422 = vmatpush1.bf16.msra.mxu0 %v19016_v21  ;;  %v19043_v21 = vld [vmem:[%s19863_s12 + $0x2ce8] ss:$12 sps:$4 sm:$0xff]  }
 0x51b   : > { %13463 = vmatpush1.bf16.msra.mxu1 %v19019_v30  ;;  %13423 = vmatprep.subr.bf16.mxu0 %v19024_v32  ;;  %v19048_v30 = vld [vmem:[%s19863_s12 + $0x2b54] ss:$12 sps:$4 sm:$0xff]  }
 0x51c   : > { %13464 = vmatprep.subr.bf16.mxu1 %v19027_v9  ;;  %v19051_v32 = vld [vmem:[%s19863_s12 + $0x2cd4] ss:$12 sps:$4 sm:$0xff]   ;;  %v19046_v9 = vld [vmem:[%s19863_s12 + $0x2b50] ss:$12 sps:$4 sm:$0xff]  }
 0x51e   : > { %13424 = vmatpush1.bf16.msra.mxu0 %v19022_v29  ;;  %v19049_v29 = vld [vmem:[%s19863_s12 + $0x2cd0] ss:$12 sps:$4 sm:$0xff]  }
 0x51f   : > { %13465 = vmatpush1.bf16.msra.mxu1 %v19025_v13  ;;  %13425 = vmatprep.subr.bf16.mxu0 %v19030_v5  ;;  %v19054_v13 = vld [vmem:[%s19863_s12 + $0x2b3c] ss:$12 sps:$4 sm:$0xff]  }
 0x520   : > { %13466 = vmatprep.subr.bf16.mxu1 %v19033_v42  ;;  %v19057_v5 = vld [vmem:[%s19863_s12 + $0x2cbc] ss:$12 sps:$4 sm:$0xff]   ;;  %v19052_v42 = vld [vmem:[%s19863_s12 + $0x2b38] ss:$12 sps:$4 sm:$0xff]  }
 0x522   : > { %13426 = vmatpush1.bf16.msra.mxu0 %v19028_v58  ;;  %v19055_v58 = vld [vmem:[%s19863_s12 + $0x2cb8] ss:$12 sps:$4 sm:$0xff]  }
 0x523   : > { %13467 = vmatpush1.bf16.msra.mxu1 %v19031_v45  ;;  %13427 = vmatprep.subr.bf16.mxu0 %v19036_v33  ;;  %v19060_v45 = vld [vmem:[%s19863_s12 + $0x2b24] ss:$12 sps:$4 sm:$0xff]  }
 0x524   : > { %13468 = vmatprep.subr.bf16.mxu1 %v19039_v0  ;;  %v19063_v33 = vld [vmem:[%s19863_s12 + $0x2ca4] ss:$12 sps:$4 sm:$0xff]   ;;  %v19058_v0 = vld [vmem:[%s19863_s12 + $0x2b20] ss:$12 sps:$4 sm:$0xff]  }
 0x526   : > { %13428 = vmatpush1.bf16.msra.mxu0 %v19034_v34  ;;  %v19061_v34 = vld [vmem:[%s19863_s12 + $0x2ca0] ss:$12 sps:$4 sm:$0xff]  }
 0x527   : > { %13469 = vmatpush1.bf16.msra.mxu1 %v19037_v18  ;;  %13429 = vmatprep.subr.bf16.mxu0 %v19042_v8  ;;  %v19066_v18 = vld [vmem:[%s19863_s12 + $0x2b0c] ss:$12 sps:$4 sm:$0xff]  }
 0x528   : > { %13470 = vmatprep.subr.bf16.mxu1 %v19045_v1  ;;  %v19069_v8 = vld [vmem:[%s19863_s12 + $0x2c8c] ss:$12 sps:$4 sm:$0xff]   ;;  %v19064_v1 = vld [vmem:[%s19863_s12 + $0x2b08] ss:$12 sps:$4 sm:$0xff]  }
 0x52a   : > { %13430 = vmatpush2.bf16.msra.mxu0 %v19040_v63  ;;  %v19067_v63 = vld [vmem:[%s19863_s12 + $0x2c88] ss:$12 sps:$4 sm:$0xff]  }
 0x52b   : > { %13471 = vmatpush2.bf16.msra.mxu1 %v19043_v21  ;;  %13431 = vmatprep.subr.bf16.mxu0 %v19048_v30  ;;  %v19072_v21 = vld [vmem:[%s19863_s12 + $0x2af4] ss:$12 sps:$4 sm:$0xff]  }
 0x52c   : > { %13472 = vmatprep.subr.bf16.mxu1 %v19051_v32  ;;  %v19075_v30 = vld [vmem:[%s19863_s12 + $0x2c74] ss:$12 sps:$4 sm:$0xff]   ;;  %v19070_v32 = vld [vmem:[%s19863_s12 + $0x2af0] ss:$12 sps:$4 sm:$0xff]  }
 0x52e   : > { %13432 = vmatpush2.bf16.msra.mxu0 %v19046_v9  ;;  %v1607_v9 = vld [vmem:[%s20998_s16 + $0x78] sm:$0xff] }
 0x52f   : > { %13473 = vmatpush2.bf16.msra.mxu1 %v19049_v29  ;;  %13433 = vmatprep.subr.bf16.mxu0 %v19054_v13  ;;  %v19073_v29 = vld [vmem:[%s19863_s12 + $0x2c70] ss:$12 sps:$4 sm:$0xff]  }
 0x530   : > { %13474 = vmatprep.subr.bf16.mxu1 %v19057_v5  ;;  %v19078_v13 = vld [vmem:[%s19863_s12 + $0x2adc] ss:$12 sps:$4 sm:$0xff]  }
 0x531   : > { %v19081_v5 = vld [vmem:[%s19863_s12 + $0x2c5c] ss:$12 sps:$4 sm:$0xff]  }
 0x532   : > { %13434 = vmatpush2.bf16.msra.mxu0 %v19052_v42  ;;  %v19076_v42 = vld [vmem:[%s19863_s12 + $0x2ad8] ss:$12 sps:$4 sm:$0xff]  }
 0x533   : > { %13475 = vmatpush2.bf16.msra.mxu1 %v19055_v58  ;;  %13435 = vmatprep.subr.bf16.mxu0 %v19060_v45  ;;  %v1879_v58 = vcombine.high %v1607_v9, %v1607_v9  ;;  %v19079_v45 = vld [vmem:[%s19863_s12 + $0x2c58] ss:$12 sps:$4 sm:$0xff]  }
 0x534   : > { %13476 = vmatprep.subr.bf16.mxu1 %v19063_v33  ;;  %v19084_v33 = vld [vmem:[%s19863_s12 + $0x2ac4] ss:$12 sps:$4 sm:$0xff]  }
 0x536   : > { %13436 = vmatpush2.bf16.msra.mxu0 %v19058_v0  ;;  %v19087_v0 = vld [vmem:[%s19863_s12 + $0x2c44] ss:$12 sps:$4 sm:$0xff]  }
 0x537   : > { %13477 = vmatpush2.bf16.msra.mxu1 %v19061_v34  ;;  %13437 = vmatprep.subr.bf16.mxu0 %v19066_v18  ;;  %v19082_v34 = vld [vmem:[%s19863_s12 + $0x2ac0] ss:$12 sps:$4 sm:$0xff]   ;;  %v22362_v18 = vrot.slane %v1607_v9, %v20994_v19 }
 0x538   : > { %13478 = vmatprep.subr.bf16.mxu1 %v19069_v8  ;;  %v22365_v8 = vrot.slane %v1879_v58, %v20994_v19  ;;  %v19100_v58 = vld [vmem:[%s19863_s12 + $0x2f14] ss:$12 sps:$4 sm:$0xff]  }
 0x539   : > { %v1894_v9 = vcombine.high %v22362_v18, %v22362_v18 }
 0x53a   : > { %13438 = vmatpush2.bf16.msra.mxu0 %v19064_v1  ;;  %v19085_v1 = vld [vmem:[%s19863_s12 + $0x2c40] ss:$12 sps:$4 sm:$0xff]  }
 0x53b   : > { %13479 = vmatpush2.bf16.msra.mxu1 %v19067_v63  ;;  %13439 = vmatprep.subr.bf16.mxu0 %v19072_v21  ;;  %v19091_v63 = vld [vmem:[%s19863_s12 + $0x2dac] ss:$12 sps:$4 sm:$0xff]  }
 0x53c   : > { %13480 = vmatprep.subr.bf16.mxu1 %v19075_v30  ;;  %v19094_v21 = vld [vmem:[%s19863_s12 + $0x2f2c] ss:$12 sps:$4 sm:$0xff]   ;;  %v19089_v30 = vld [vmem:[%s19863_s12 + $0x2da8] ss:$12 sps:$4 sm:$0xff]  }
 0x53e   : > { %13440 = vmatpush2.bf16.msra.mxu0 %v19070_v32  ;;  %v19092_v32 = vld [vmem:[%s19863_s12 + $0x2f28] ss:$12 sps:$4 sm:$0xff]  }
 0x53f   : > { %13481 = vmatpush2.bf16.msra.mxu1 %v19073_v29  ;;  %13441 = vmatprep.subr.bf16.mxu0 %v19078_v13  ;;  %v1895_v29 = vcombine.high %v22365_v8, %v22365_v8  ;;  %v22378_v13 = vpack.c.bf16 %v22264_v10, %v22264_v10 }
 0x540   : > { %13482 = vmatprep.subr.bf16.mxu1 %v19081_v5  ;;  %v22382_v5 = vpack.c.bf16 %v22267_v37, %v22267_v37 }
 0x541   : > { %23195 = vst [vmem:[#allocation32_spill] sm:$0xff] %v22378_v13  ;;  %v22390_v19 = vpack.c.bf16 %v1895_v29, %v1895_v29 }
 0x542   : > { %13442 = vmatpush2.bf16.msra.mxu0 %v19076_v42  ;;  %v19097_v42 = vld [vmem:[%s19863_s12 + $0x2d94] ss:$12 sps:$4 sm:$0xff]  }
 0x543   : > { %13483 = vmatpush2.bf16.msra.mxu1 %v19079_v45  ;;  %13443 = vmatprep.subr.bf16.mxu0 %v19084_v33  ;;  %v19095_v45 = vld [vmem:[%s19863_s12 + $0x2d90] ss:$12 sps:$4 sm:$0xff]  }
 0x544   : > { %13484 = vmatprep.subr.bf16.mxu1 %v19087_v0  ;;  %v19098_v33 = vld [vmem:[%s19863_s12 + $0x2f10] ss:$12 sps:$4 sm:$0xff]   ;;  %v22388_v0 = vpack.c.bf16 %v1894_v9, %v1894_v9 }
 0x546   : > { %13444 = vmatpush2.bf16.msra.mxu0 %v19082_v34 }
 0x547   : > { %13485 = vmatpush2.bf16.msra.mxu1 %v19085_v1  ;;  %13495 = vmatprep.subr.bf16.mxu0 %v19091_v63  ;;  %v19103_v63 = vld [vmem:[%s19863_s12 + $0x2d7c] ss:$12 sps:$4 sm:$0xff]  }
 0x548   : > { %13536 = vmatprep.subr.bf16.mxu1 %v19094_v21  ;;  %v19106_v21 = vld [vmem:[%s19863_s12 + $0x2efc] ss:$12 sps:$4 sm:$0xff]  }
 0x549   : > { %v13201_v10 = vpop.f32.mrf.mxu0  ;;  %13446 = vmatmul.mubr.bf16.vlgmr.msra.gmra.mxu0 %v22378_v13  ;;  %v19101_v13 = vld [vmem:[%s19863_s12 + $0x2d78] ss:$12 sps:$4 sm:$0xff]  }
 0x54a   : > { %v13242_v24 = vpop.f32.mrf.mxu1  ;;  %13487 = vmatmul.mubr.bf16.vlgmr.msra.gmra.mxu1 %v22382_v5  ;;  %v13202_v37 = vadd.f32 %v13201_v10, %v22300_v46  ;;  %13496 = vmatpush1.bf16.msra.mxu0 %v19089_v30  ;;  %v19107_v10 = vld [vmem:[%s19863_s12 + $0x2d60] ss:$12 sps:$4 sm:$0xff]  }
 0x54b   : > { %13537 = vmatpush1.bf16.msra.mxu1 %v19092_v32  ;;  %v13203_v34 = vpop.f32.mrf.mxu0  ;;  %13497 = vmatprep.subr.bf16.mxu0 %v19097_v42 }
 0x54c   : > { %v13244_v1 = vpop.f32.mrf.mxu1  ;;  %13538 = vmatprep.subr.bf16.mxu1 %v19100_v58  ;;  %v22397_v9 = vadd.f32 %v13242_v24, %v13202_v37  ;;  %v13204_v29 = vadd.f32 %v13203_v34, %v22307_v12  ;;  %13527 = vmatprep.mubr.bf16.mxu0 %v22388_v0  ;;  %v19109_v12 = vld [vmem:[%s19863_s12 + $0x2d64] ss:$12 sps:$4 sm:$0xff]   ;;  %v19110_v37 = vld [vmem:[%s19863_s12 + $0x2ee0] ss:$12 sps:$4 sm:$0xff]   ;;  %v19113_v34 = vld [vmem:[%s19863_s12 + $0x2d48] ss:$12 sps:$4 sm:$0xff]  }
 0x54d   : > { %13568 = vmatprep.mubr.bf16.mxu1 %v22390_v19  ;;  %v13205_v46 = vpop.f32.mrf.mxu0  ;;  %v19112_v58 = vld [vmem:[%s19863_s12 + $0x2ee4] ss:$12 sps:$4 sm:$0xff]  }
 0x54e   : > { %v13246_v30 = vpop.f32.mrf.mxu1  ;;  %v22404_v32 = vadd.f32 %v13244_v1, %v13204_v29  ;;  %13498 = vmatpush1.bf16.msra.mxu0 %v19095_v45  ;;  %v19115_v45 = vld [vmem:[%s19863_s12 + $0x2d4c] ss:$12 sps:$4 sm:$0xff]   ;;  %v19116_v1 = vld [vmem:[%s19863_s12 + $0x2ec8] ss:$12 sps:$4 sm:$0xff]  }
 0x54f   : > { %13539 = vmatpush1.bf16.msra.mxu1 %v19098_v33  ;;  %v13206_v24 = vpop.f32.mrf.mxu0  ;;  %13499 = vmatprep.subr.bf16.mxu0 %v19103_v63  ;;  %v19118_v33 = vld [vmem:[%s19863_s12 + $0x2ecc] ss:$12 sps:$4 sm:$0xff]   ;;  %v19121_v63 = vld [vmem:[%s19863_s12 + $0x2d34] ss:$12 sps:$4 sm:$0xff]   ;;  %v19127_v29 = vld [vmem:[%s19863_s12 + $0x2d1c] ss:$12 sps:$4 sm:$0xff]  }
 0x550   : > { %v13247_v42 = vpop.f32.mrf.mxu1  ;;  %13540 = vmatprep.subr.bf16.mxu1 %v19106_v21  ;;  %v19122_v21 = vld [vmem:[%s19863_s12 + $0x2eb0] ss:$12 sps:$4 sm:$0xff]   ;;  %v19125_v30 = vld [vmem:[%s19863_s12 + $0x2d18] ss:$12 sps:$4 sm:$0xff]  }
 0x551   : > { %v19130_v46 = vld [vmem:[%s19863_s12 + $0x2e9c] ss:$12 sps:$4 sm:$0xff]   ;;  %v19128_v24 = vld [vmem:[%s19863_s12 + $0x2e98] ss:$12 sps:$4 sm:$0xff]  }
 0x552   : > { %13500 = vmatpush1.bf16.msra.mxu0 %v19101_v13  ;;  %v19124_v13 = vld [vmem:[%s19863_s12 + $0x2eb4] ss:$12 sps:$4 sm:$0xff]   ;;  %v19133_v42 = vld [vmem:[%s19863_s12 + $0x2d04] ss:$12 sps:$4 sm:$0xff]  }
 0x553   : > { %13541 = vmatpush1.bf16.msra.mxu1 %v19104_v23  ;;  %13501 = vmatprep.subr.bf16.mxu0 %v19109_v12  ;;  %v19119_v23 = vld [vmem:[%s19863_s12 + $0x2d30] ss:$12 sps:$4 sm:$0xff]  }
 0x554   : > { %13542 = vmatprep.subr.bf16.mxu1 %v19112_v58  ;;  %v19136_v12 = vld [vmem:[%s19863_s12 + $0x2e84] ss:$12 sps:$4 sm:$0xff]   ;;  %v19131_v58 = vld [vmem:[%s19863_s12 + $0x2d00] ss:$12 sps:$4 sm:$0xff]  }
 0x556   : > { %13502 = vmatpush1.bf16.msra.mxu0 %v19107_v10  ;;  %v19134_v10 = vld [vmem:[%s19863_s12 + $0x2e80] ss:$12 sps:$4 sm:$0xff]  }
 0x557   : > { %13543 = vmatpush1.bf16.msra.mxu1 %v19110_v37  ;;  %13503 = vmatprep.subr.bf16.mxu0 %v19115_v45  ;;  %v19139_v37 = vld [vmem:[%s19863_s12 + $0x2e6c] ss:$12 sps:$4 sm:$0xff]  }
 0x558   : > { %13544 = vmatprep.subr.bf16.mxu1 %v19118_v33  ;;  %v19142_v45 = vld [vmem:[%s19863_s12 + $0x2fec] ss:$12 sps:$4 sm:$0xff]   ;;  %v19137_v33 = vld [vmem:[%s19863_s12 + $0x2e68] ss:$12 sps:$4 sm:$0xff]  }
 0x55a   : > { %13504 = vmatpush1.bf16.msra.mxu0 %v19113_v34  ;;  %v19140_v34 = vld [vmem:[%s19863_s12 + $0x2fe8] ss:$12 sps:$4 sm:$0xff]  }
 0x55b   : > { %13545 = vmatpush1.bf16.msra.mxu1 %v19116_v1  ;;  %13505 = vmatprep.subr.bf16.mxu0 %v19121_v63  ;;  %v19145_v1 = vld [vmem:[%s19863_s12 + $0x2e54] ss:$12 sps:$4 sm:$0xff]  }
 0x55c   : > { %13546 = vmatprep.subr.bf16.mxu1 %v19124_v13  ;;  %v19148_v63 = vld [vmem:[%s19863_s12 + $0x2fd4] ss:$12 sps:$4 sm:$0xff]   ;;  %v19143_v13 = vld [vmem:[%s19863_s12 + $0x2e50] ss:$12 sps:$4 sm:$0xff]  }
 0x55e   : > { %13506 = vmatpush1.bf16.msra.mxu0 %v19119_v23  ;;  %v19146_v23 = vld [vmem:[%s19863_s12 + $0x2fd0] ss:$12 sps:$4 sm:$0xff]  }
 0x55f   : > { %13547 = vmatpush1.bf16.msra.mxu1 %v19122_v21  ;;  %13507 = vmatprep.subr.bf16.mxu0 %v19127_v29  ;;  %v19151_v21 = vld [vmem:[%s19863_s12 + $0x2e3c] ss:$12 sps:$4 sm:$0xff]  }
 0x560   : > { %13548 = vmatprep.subr.bf16.mxu1 %v19130_v46  ;;  %v19154_v29 = vld [vmem:[%s19863_s12 + $0x2fbc] ss:$12 sps:$4 sm:$0xff]   ;;  %v19149_v46 = vld [vmem:[%s19863_s12 + $0x2e38] ss:$12 sps:$4 sm:$0xff]  }
 0x562   : > { %13508 = vmatpush1.bf16.msra.mxu0 %v19125_v30  ;;  %v19152_v30 = vld [vmem:[%s19863_s12 + $0x2fb8] ss:$12 sps:$4 sm:$0xff]  }
 0x563   : > { %13549 = vmatpush1.bf16.msra.mxu1 %v19128_v24  ;;  %13509 = vmatprep.subr.bf16.mxu0 %v19133_v42  ;;  %v19157_v24 = vld [vmem:[%s19863_s12 + $0x2e24] ss:$12 sps:$4 sm:$0xff]  }
 0x564   : > { %13550 = vmatprep.subr.bf16.mxu1 %v19136_v12  ;;  %v19160_v42 = vld [vmem:[%s19863_s12 + $0x2fa4] ss:$12 sps:$4 sm:$0xff]   ;;  %v19155_v12 = vld [vmem:[%s19863_s12 + $0x2e20] ss:$12 sps:$4 sm:$0xff]  }
 0x566   : > { %13510 = vmatpush1.bf16.msra.mxu0 %v19131_v58  ;;  %v19158_v58 = vld [vmem:[%s19863_s12 + $0x2fa0] ss:$12 sps:$4 sm:$0xff]  }
 0x567   : > { %13551 = vmatpush1.bf16.msra.mxu1 %v19134_v10  ;;  %13511 = vmatprep.subr.bf16.mxu0 %v19139_v37  ;;  %v19163_v10 = vld [vmem:[%s19863_s12 + $0x2e0c] ss:$12 sps:$4 sm:$0xff]  }
 0x568   : > { %13552 = vmatprep.subr.bf16.mxu1 %v19142_v45  ;;  %v19166_v37 = vld [vmem:[%s19863_s12 + $0x2f8c] ss:$12 sps:$4 sm:$0xff]   ;;  %v19161_v45 = vld [vmem:[%s19863_s12 + $0x2e08] ss:$12 sps:$4 sm:$0xff]  }
 0x56a   : > { %13512 = vmatpush2.bf16.msra.mxu0 %v19137_v33  ;;  %v19164_v33 = vld [vmem:[%s19863_s12 + $0x2f88] ss:$12 sps:$4 sm:$0xff]  }
 0x56b   : > { %13553 = vmatpush2.bf16.msra.mxu1 %v19140_v34  ;;  %13513 = vmatprep.subr.bf16.mxu0 %v19145_v1  ;;  %v19169_v34 = vld [vmem:[%s19863_s12 + $0x2df4] ss:$12 sps:$4 sm:$0xff]  }
 0x56c   : > { %13554 = vmatprep.subr.bf16.mxu1 %v19148_v63  ;;  %v19172_v1 = vld [vmem:[%s19863_s12 + $0x2f74] ss:$12 sps:$4 sm:$0xff]   ;;  %v19167_v63 = vld [vmem:[%s19863_s12 + $0x2df0] ss:$12 sps:$4 sm:$0xff]  }
 0x56e   : > { %13514 = vmatpush2.bf16.msra.mxu0 %v19143_v13  ;;  %v19170_v13 = vld [vmem:[%s19863_s12 + $0x2f70] ss:$12 sps:$4 sm:$0xff]  }
 0x56f   : > { %13555 = vmatpush2.bf16.msra.mxu1 %v19146_v23  ;;  %13515 = vmatprep.subr.bf16.mxu0 %v19151_v21  ;;  %v19175_v23 = vld [vmem:[%s19863_s12 + $0x2ddc] ss:$12 sps:$4 sm:$0xff]  }
 0x570   : > { %13556 = vmatprep.subr.bf16.mxu1 %v19154_v29  ;;  %v19178_v21 = vld [vmem:[%s19863_s12 + $0x2f5c] ss:$12 sps:$4 sm:$0xff]   ;;  %v19173_v29 = vld [vmem:[%s19863_s12 + $0x2dd8] ss:$12 sps:$4 sm:$0xff]  }
 0x572   : > { %13516 = vmatpush2.bf16.msra.mxu0 %v19149_v46  ;;  %v19176_v46 = vld [vmem:[%s19863_s12 + $0x2f58] ss:$12 sps:$4 sm:$0xff]  }
 0x573   : > { %13557 = vmatpush2.bf16.msra.mxu1 %v19152_v30  ;;  %13517 = vmatprep.subr.bf16.mxu0 %v19157_v24  ;;  %v19181_v30 = vld [vmem:[%s19863_s12 + $0x2dc4] ss:$12 sps:$4 sm:$0xff]  }
 0x574   : > { %13558 = vmatprep.subr.bf16.mxu1 %v19160_v42  ;;  %v19184_v24 = vld [vmem:[%s19863_s12 + $0x2f44] ss:$12 sps:$4 sm:$0xff]   ;;  %v19179_v42 = vld [vmem:[%s19863_s12 + $0x2dc0] ss:$12 sps:$4 sm:$0xff]  }
 0x576   : > { %13518 = vmatpush2.bf16.msra.mxu0 %v19155_v12  ;;  %v19182_v12 = vld [vmem:[%s19863_s12 + $0x2f40] ss:$12 sps:$4 sm:$0xff]  }
 0x577   : > { %13559 = vmatpush2.bf16.msra.mxu1 %v19158_v58  ;;  %13519 = vmatprep.subr.bf16.mxu0 %v19163_v10  ;;  %v19186_v58 = vld [vmem:[%s19863_s12 + $0x170] ss:$12 sps:$4 sm:$0xff]  }
 0x578   : > { %13560 = vmatprep.subr.bf16.mxu1 %v19166_v37  ;;  %v19187_v10 = vld [vmem:[%s19863_s12 + $0x2f0] ss:$12 sps:$4 sm:$0xff]  }
 0x579   : > { %v19188_v37 = vld [vmem:[%s19863_s12 + $0xb0] ss:$12 sps:$4 sm:$0xff]  }
 0x57a   : > { %13520 = vmatpush2.bf16.msra.mxu0 %v19161_v45  ;;  %v19189_v45 = vld [vmem:[%s19863_s12 + $0x230] ss:$12 sps:$4 sm:$0xff]  }
 0x57b   : > { %13561 = vmatpush2.bf16.msra.mxu1 %v19164_v33  ;;  %13521 = vmatprep.subr.bf16.mxu0 %v19169_v34  ;;  %v22464_v33 = vpack.c.bf16 %v22362_v18, %v22362_v18  ;;  %v22468_v34 = vpack.c.bf16 %v22365_v8, %v22365_v8 }
 0x57c   : > { %13562 = vmatprep.subr.bf16.mxu1 %v19172_v1  ;;  %v19190_v1 = vld [vmem:[%s19863_s12 + $0x158] ss:$12 sps:$4 sm:$0xff]  }
 0x57e   : > { %13522 = vmatpush2.bf16.msra.mxu0 %v19167_v63  ;;  %v19191_v63 = vld [vmem:[%s19863_s12 + $0x2d8] ss:$12 sps:$4 sm:$0xff]  }
 0x57f   : > { %13563 = vmatpush2.bf16.msra.mxu1 %v19170_v13  ;;  %13523 = vmatprep.subr.bf16.mxu0 %v19175_v23  ;;  %v19192_v13 = vld [vmem:[%s19863_s12 + $0x98] ss:$12 sps:$4 sm:$0xff]  }
 0x580   : > { %13564 = vmatprep.subr.bf16.mxu1 %v19178_v21  ;;  %v19193_v23 = vld [vmem:[%s19863_s12 + $0x218] ss:$12 sps:$4 sm:$0xff]  }
 0x582   : > { %13524 = vmatpush2.bf16.msra.mxu0 %v19173_v29 }
 0x583   : > { %13565 = vmatpush2.bf16.msra.mxu1 %v19176_v46  ;;  %13525 = vmatprep.subr.bf16.mxu0 %v19181_v30  ;;  %v19194_v30 = vld [vmem:[%s19863_s12 + $0x140] ss:$12 sps:$4 sm:$0xff]  }
 0x584   : > { %13566 = vmatprep.subr.bf16.mxu1 %v19184_v24  ;;  %v19195_v24 = vld [vmem:[%s19863_s12 + $0x2c0] ss:$12 sps:$4 sm:$0xff]  }
 0x586   : > { %13526 = vmatpush2.bf16.msra.mxu0 %v19179_v42 }
 0x587   : > { %13567 = vmatpush2.bf16.msra.mxu1 %v19182_v12  ;;  %16873 = vmatprep.subr.bf16.mxu0 %v19186_v58  ;;  %v19196_v58 = vld [vmem:[%s19863_s12 + $0x80] ss:$12 sps:$4 sm:$0xff]  }
 0x588   : > { %16895 = vmatprep.subr.bf16.mxu1 %v19187_v10  ;;  %v19197_v10 = vld [vmem:[%s19863_s12 + $0x200] ss:$12 sps:$4 sm:$0xff]  }
 0x589   : > { %v13283_v21 = vpop.f32.mrf.mxu0  ;;  %13528 = vmatmul.mubr.bf16.vlgmr.msra.gmra.mxu0 %v22464_v33 }
 0x58a   : > { %v13324_v29 = vpop.f32.mrf.mxu1  ;;  %13569 = vmatmul.mubr.bf16.vlgmr.msra.gmra.mxu1 %v22468_v34  ;;  %v13284_v18 = vadd.f32 %v13283_v21, %v22397_v9  ;;  %16874 = vmatpush3.bf16.msra.mxu0 %v19188_v37  ;;  %v19200_v21 = vld [vmem:[%s19863_s12 + $0x68] ss:$12 sps:$4 sm:$0xff]  }
 0x58b   : > { %16896 = vmatpush3.bf16.msra.mxu1 %v19189_v45  ;;  %v13285_v8 = vpop.f32.mrf.mxu0  ;;  %16875 = vmatprep.subr.bf16.mxu0 %v19190_v1 }
 0x58c   : > { %v13326_v46 = vpop.f32.mrf.mxu1  ;;  %16897 = vmatprep.subr.bf16.mxu1 %v19191_v63  ;;  %v22479_v42 = vadd.f32 %v13324_v29, %v13284_v18  ;;  %v13286_v12 = vadd.f32 %v13285_v8, %v22404_v32  ;;  %13609 = vmatprep.mubr.bf16.mxu0 %v21008_v56  ;;  %v19198_v32 = vld [vmem:[%s19863_s12 + $0x128] ss:$12 sps:$4 sm:$0xff]   ;;  %v19204_v29 = vld [vmem:[%s19863_s12 + $0x50] ss:$12 sps:$4 sm:$0xff]   ;;  %v19206_v8 = vld [vmem:[%s19863_s12 + $0xf8] ss:$12 sps:$4 sm:$0xff]  }
 0x58d   : > { %13649 = vmatprep.mubr.bf16.mxu1 %v21013_v59  ;;  %v13287_v9 = vpop.f32.mrf.mxu0  ;;  %v19199_v56 = vld [vmem:[%s19863_s12 + $0x2a8] ss:$12 sps:$4 sm:$0xff]   ;;  %v19205_v18 = vld [vmem:[%s19863_s12 + $0x1d0] ss:$12 sps:$4 sm:$0xff]  }
 0x58e   : > { %v13328_v37 = vpop.f32.mrf.mxu1  ;;  %v22486_v45 = vadd.f32 %v13326_v46, %v13286_v12  ;;  %16876 = vmatpush3.bf16.msra.mxu0 %v19192_v13  ;;  %v19201_v59 = vld [vmem:[%s19863_s12 + $0x1e8] ss:$12 sps:$4 sm:$0xff]   ;;  %v19202_v13 = vld [vmem:[%s19863_s12 + $0x110] ss:$12 sps:$4 sm:$0xff]   ;;  %v19207_v46 = vld [vmem:[%s19863_s12 + $0x278] ss:$12 sps:$4 sm:$0xff]  }
 0x58f   : > { %16898 = vmatpush3.bf16.msra.mxu1 %v19193_v23  ;;  %v13288_v1 = vpop.f32.mrf.mxu0  ;;  %16877 = vmatprep.subr.bf16.mxu0 %v19194_v30  ;;  %v19203_v23 = vld [vmem:[%s19863_s12 + $0x290] ss:$12 sps:$4 sm:$0xff]   ;;  %v19208_v30 = vld [vmem:[%s19863_s12 + $0x38] ss:$12 sps:$4 sm:$0xff]   ;;  %v19210_v12 = vld [vmem:[%s19863_s12 + $0xe0] ss:$12 sps:$4 sm:$0xff]  }
 0x590   : > { %v13329_v63 = vpop.f32.mrf.mxu1  ;;  %16899 = vmatprep.subr.bf16.mxu1 %v19195_v24  ;;  %v19209_v24 = vld [vmem:[%s19863_s12 + $0x1b8] ss:$12 sps:$4 sm:$0xff]   ;;  %v19213_v9 = vld [vmem:[%s19863_s12 + $0x1a0] ss:$12 sps:$4 sm:$0xff]   ;;  %v19214_v37 = vld [vmem:[%s19863_s12 + $0xc8] ss:$12 sps:$4 sm:$0xff]  }
 0x591   : > { %v19215_v1 = vld [vmem:[%s19863_s12 + $0x248] ss:$12 sps:$4 sm:$0xff]  }
 0x592   : > { %16878 = vmatpush3.bf16.msra.mxu0 %v19196_v58  ;;  %v19211_v58 = vld [vmem:[%s19863_s12 + $0x260] ss:$12 sps:$4 sm:$0xff]   ;;  %v19216_v63 = vld [vmem:[%s19863_s12 + $0x8] ss:$12 sps:$4 sm:$0xff]  }
 0x593   : > { %16900 = vmatpush3.bf16.msra.mxu1 %v19197_v10  ;;  %16879 = vmatprep.subr.bf16.mxu0 %v19198_v32  ;;  %v19212_v10 = vld [vmem:[%s19863_s12 + $0x20] ss:$12 sps:$4 sm:$0xff]   ;;  %v19217_v32 = vld [vmem:[%s19863_s12 + $0x188] ss:$12 sps:$4 sm:$0xff]  }
 0x594   : > { %16901 = vmatprep.subr.bf16.mxu1 %v19199_v56  ;;  %v19218_v56 = vld [vmem:[%s19863_s12 + $0x470] ss:$12 sps:$4 sm:$0xff]  }
 0x596   : > { %16880 = vmatpush3.bf16.msra.mxu0 %v19200_v21  ;;  %v19219_v21 = vld [vmem:[%s19863_s12 + $0x5f0] ss:$12 sps:$4 sm:$0xff]  }
 0x597   : > { %16902 = vmatpush3.bf16.msra.mxu1 %v19201_v59  ;;  %16881 = vmatprep.subr.bf16.mxu0 %v19202_v13  ;;  %v19220_v59 = vld [vmem:[%s19863_s12 + $0x3b0] ss:$12 sps:$4 sm:$0xff]  }
 0x598   : > { %16903 = vmatprep.subr.bf16.mxu1 %v19203_v23  ;;  %v19221_v13 = vld [vmem:[%s19863_s12 + $0x530] ss:$12 sps:$4 sm:$0xff]   ;;  %v19222_v23 = vld [vmem:[%s19863_s12 + $0x458] ss:$12 sps:$4 sm:$0xff]  }
 0x59a   : > { %16882 = vmatpush3.bf16.msra.mxu0 %v19204_v29  ;;  %v19223_v29 = vld [vmem:[%s19863_s12 + $0x5d8] ss:$12 sps:$4 sm:$0xff]  }
 0x59b   : > { %16904 = vmatpush3.bf16.msra.mxu1 %v19205_v18  ;;  %16883 = vmatprep.subr.bf16.mxu0 %v19206_v8  ;;  %v19224_v18 = vld [vmem:[%s19863_s12 + $0x398] ss:$12 sps:$4 sm:$0xff]  }
 0x59c   : > { %16905 = vmatprep.subr.bf16.mxu1 %v19207_v46  ;;  %v19225_v8 = vld [vmem:[%s19863_s12 + $0x518] ss:$12 sps:$4 sm:$0xff]   ;;  %v19226_v46 = vld [vmem:[%s19863_s12 + $0x440] ss:$12 sps:$4 sm:$0xff]  }
 0x59e   : > { %16884 = vmatpush3.bf16.msra.mxu0 %v19208_v30  ;;  %v19227_v30 = vld [vmem:[%s19863_s12 + $0x5c0] ss:$12 sps:$4 sm:$0xff]  }
 0x59f   : > { %16906 = vmatpush3.bf16.msra.mxu1 %v19209_v24  ;;  %16885 = vmatprep.subr.bf16.mxu0 %v19210_v12  ;;  %v19228_v24 = vld [vmem:[%s19863_s12 + $0x380] ss:$12 sps:$4 sm:$0xff]   ;;  %v19231_v12 = vld [vmem:[%s19863_s12 + $0x5a8] ss:$12 sps:$4 sm:$0xff]  }
 0x5a0   : > { %16907 = vmatprep.subr.bf16.mxu1 %v19211_v58  ;;  %v19232_v58 = vld [vmem:[%s19863_s12 + $0x368] ss:$12 sps:$4 sm:$0xff]  }
 0x5a2   : > { %16886 = vmatpush3.bf16.msra.mxu0 %v19212_v10  ;;  %v19233_v10 = vld [vmem:[%s19863_s12 + $0x4e8] ss:$12 sps:$4 sm:$0xff]  }
 0x5a3   : > { %16908 = vmatpush3.bf16.msra.mxu1 %v19213_v9  ;;  %16887 = vmatprep.subr.bf16.mxu0 %v19214_v37  ;;  %v19236_v9 = vld [vmem:[%s19863_s12 + $0x350] ss:$12 sps:$4 sm:$0xff]  }
 0x5a4   : > { %16909 = vmatprep.subr.bf16.mxu1 %v19215_v1  ;;  %v19237_v37 = vld [vmem:[%s19863_s12 + $0x4d0] ss:$12 sps:$4 sm:$0xff]   ;;  %v19238_v1 = vld [vmem:[%s19863_s12 + $0x3f8] ss:$12 sps:$4 sm:$0xff]  }
 0x5a6   : > { %16888 = vmatpush3.bf16.msra.mxu0 %v19216_v63  ;;  %v19239_v63 = vld [vmem:[%s19863_s12 + $0x578] ss:$12 sps:$4 sm:$0xff]  }
 0x5a7   : > { %16910 = vmatpush3.bf16.msra.mxu1 %v19217_v32  ;;  %16917 = vmatprep.subr.bf16.mxu0 %v19218_v56  ;;  %v19240_v32 = vld [vmem:[%s19863_s12 + $0x338] ss:$12 sps:$4 sm:$0xff]  }
 0x5a8   : > { %16939 = vmatprep.subr.bf16.mxu1 %v19219_v21  ;;  %v19241_v56 = vld [vmem:[%s19863_s12 + $0x4b8] ss:$12 sps:$4 sm:$0xff]   ;;  %v19242_v21 = vld [vmem:[%s19863_s12 + $0x3e0] ss:$12 sps:$4 sm:$0xff]  }
 0x5a9   : > { %13610 = vmatmul.mubr.bf16.vlgmr.msra.gmra.mxu0 %v21029_v20  ;;  %v19229_v20 = vld [vmem:[%s19863_s12 + $0x500] ss:$12 sps:$4 sm:$0xff]  }
 0x5aa   : > { %13650 = vmatmul.mubr.bf16.vlgmr.msra.gmra.mxu1 %v21031_v22  ;;  %16918 = vmatpush3.bf16.msra.mxu0 %v19220_v59  ;;  %v19230_v22 = vld [vmem:[%s19863_s12 + $0x428] ss:$12 sps:$4 sm:$0xff]   ;;  %v19243_v59 = vld [vmem:[%s19863_s12 + $0x560] ss:$12 sps:$4 sm:$0xff]  }
 0x5ab   : > { %16940 = vmatpush3.bf16.msra.mxu1 %v19221_v13  ;;  %16919 = vmatprep.subr.bf16.mxu0 %v19222_v23  ;;  %v19244_v13 = vld [vmem:[%s19863_s12 + $0x320] ss:$12 sps:$4 sm:$0xff]  }
 0x5ac   : > { %16941 = vmatprep.subr.bf16.mxu1 %v19223_v29  ;;  %13689 = vmatprep.mubr.bf16.mxu0 %v21072_v50  ;;  %v19234_v50 = vld [vmem:[%s19863_s12 + $0x410] ss:$12 sps:$4 sm:$0xff]   ;;  %v19245_v23 = vld [vmem:[%s19863_s12 + $0x4a0] ss:$12 sps:$4 sm:$0xff]   ;;  %v19246_v29 = vld [vmem:[%s19863_s12 + $0x3c8] ss:$12 sps:$4 sm:$0xff]  }
 0x5ad   : > { %13729 = vmatprep.mubr.bf16.mxu1 %v21078_v62  ;;  %v19235_v62 = vld [vmem:[%s19863_s12 + $0x590] ss:$12 sps:$4 sm:$0xff]  }
 0x5ae   : > { %16920 = vmatpush3.bf16.msra.mxu0 %v19224_v18  ;;  %v19247_v18 = vld [vmem:[%s19863_s12 + $0x548] ss:$12 sps:$4 sm:$0xff]  }
 0x5af   : > { %16942 = vmatpush3.bf16.msra.mxu1 %v19225_v8  ;;  %16921 = vmatprep.subr.bf16.mxu0 %v19226_v46  ;;  %v19248_v8 = vld [vmem:[%s19863_s12 + $0x308] ss:$12 sps:$4 sm:$0xff]  }
 0x5b0   : > { %16943 = vmatprep.subr.bf16.mxu1 %v19227_v30  ;;  %v19249_v46 = vld [vmem:[%s19863_s12 + $0x488] ss:$12 sps:$4 sm:$0xff]   ;;  %v19250_v30 = vld [vmem:[%s19863_s12 + $0x770] ss:$12 sps:$4 sm:$0xff]  }
 0x5b2   : > { %16922 = vmatpush3.bf16.msra.mxu0 %v19228_v24  ;;  %v19251_v24 = vld [vmem:[%s19863_s12 + $0x8f0] ss:$12 sps:$4 sm:$0xff]  }
 0x5b3   : > { %16944 = vmatpush3.bf16.msra.mxu1 %v19229_v20  ;;  %16923 = vmatprep.subr.bf16.mxu0 %v19230_v22  ;;  %v19252_v20 = vld [vmem:[%s19863_s12 + $0x6b0] ss:$12 sps:$4 sm:$0xff]  }
 0x5b4   : > { %16945 = vmatprep.subr.bf16.mxu1 %v19231_v12  ;;  %v19253_v22 = vld [vmem:[%s19863_s12 + $0x830] ss:$12 sps:$4 sm:$0xff]   ;;  %v19254_v12 = vld [vmem:[%s19863_s12 + $0x758] ss:$12 sps:$4 sm:$0xff]  }
 0x5b6   : > { %16924 = vmatpush3.bf16.msra.mxu0 %v19232_v58  ;;  %v19255_v58 = vld [vmem:[%s19863_s12 + $0x8d8] ss:$12 sps:$4 sm:$0xff]  }
 0x5b7   : > { %16946 = vmatpush3.bf16.msra.mxu1 %v19233_v10  ;;  %16925 = vmatprep.subr.bf16.mxu0 %v19234_v50  ;;  %v19256_v10 = vld [vmem:[%s19863_s12 + $0x698] ss:$12 sps:$4 sm:$0xff]  }
 0x5b8   : > { %16947 = vmatprep.subr.bf16.mxu1 %v19235_v62  ;;  %v19257_v50 = vld [vmem:[%s19863_s12 + $0x818] ss:$12 sps:$4 sm:$0xff]  }
 0x5ba   : > { %16926 = vmatpush3.bf16.msra.mxu0 %v19236_v9 }
 0x5bb   : > { %16948 = vmatpush3.bf16.msra.mxu1 %v19237_v37  ;;  %16927 = vmatprep.subr.bf16.mxu0 %v19238_v1 }
 0x5bc   : > { %16949 = vmatprep.subr.bf16.mxu1 %v19239_v63 }
 0x5be   : > { %16928 = vmatpush3.bf16.msra.mxu0 %v19240_v32  ;;  %v19258_v32 = vld [vmem:[%s19863_s12 + $0x740] ss:$12 sps:$4 sm:$0xff]  }
 0x5bf   : > { %16950 = vmatpush3.bf16.msra.mxu1 %v19241_v56  ;;  %16929 = vmatprep.subr.bf16.mxu0 %v19242_v21  ;;  %v19259_v56 = vld [vmem:[%s19863_s12 + $0x8c0] ss:$12 sps:$4 sm:$0xff]  }
 0x5c0   : > { %16951 = vmatprep.subr.bf16.mxu1 %v19243_v59 }
 0x5c2   : > { %16930 = vmatpush3.bf16.msra.mxu0 %v19244_v13  ;;  %v19260_v13 = vld [vmem:[%s19863_s12 + $0x680] ss:$12 sps:$4 sm:$0xff]  }
 0x5c3   : > { %16952 = vmatpush3.bf16.msra.mxu1 %v19245_v23  ;;  %16931 = vmatprep.subr.bf16.mxu0 %v19246_v29  ;;  %v19261_v23 = vld [vmem:[%s19863_s12 + $0x800] ss:$12 sps:$4 sm:$0xff]  }
 0x5c4   : > { %16953 = vmatprep.subr.bf16.mxu1 %v19247_v18 }
 0x5c6   : > { %16932 = vmatpush3.bf16.msra.mxu0 %v19248_v8  ;;  %v19265_v8 = vld [vmem:[%s19863_s12 + $0x7e8] ss:$12 sps:$4 sm:$0xff]  }
 0x5c7   : > { %16954 = vmatpush3.bf16.msra.mxu1 %v19249_v46  ;;  %16961 = vmatprep.subr.bf16.mxu0 %v19250_v30  ;;  %v19266_v46 = vld [vmem:[%s19863_s12 + $0x710] ss:$12 sps:$4 sm:$0xff]  }
 0x5c8   : > { %16983 = vmatprep.subr.bf16.mxu1 %v19251_v24  ;;  %v19267_v30 = vld [vmem:[%s19863_s12 + $0x890] ss:$12 sps:$4 sm:$0xff]  }
 0x5c9   : > { %v13365_v62 = vpop.f32.mrf.mxu0  ;;  %13690 = vmatmul.mubr.bf16.vlgmr.msra.gmra.mxu0 %v21118_v38  ;;  %v19268_v24 = vld [vmem:[%s19863_s12 + $0x650] ss:$12 sps:$4 sm:$0xff]  }
 0x5ca   : > { %v13406_v9 = vpop.f32.mrf.mxu1  ;;  %13730 = vmatmul.mubr.bf16.vlgmr.msra.gmra.mxu1 %v21122_v39  ;;  %v13366_v37 = vadd.f32 %v13365_v62, %v22479_v42  ;;  %16962 = vmatpush3.bf16.msra.mxu0 %v19252_v20  ;;  %v19269_v20 = vld [vmem:[%s19863_s12 + $0x7d0] ss:$12 sps:$4 sm:$0xff]   ;;  %v19275_v62 = vld [vmem:[%s19863_s12 + $0x860] ss:$12 sps:$4 sm:$0xff]  }
 0x5cb   : > { %16984 = vmatpush3.bf16.msra.mxu1 %v19253_v22  ;;  %v13367_v1 = vpop.f32.mrf.mxu0  ;;  %16963 = vmatprep.subr.bf16.mxu0 %v19254_v12  ;;  %v19270_v22 = vld [vmem:[%s19863_s12 + $0x6f8] ss:$12 sps:$4 sm:$0xff]  }
 0x5cc   : > { %v13408_v63 = vpop.f32.mrf.mxu1  ;;  %16985 = vmatprep.subr.bf16.mxu1 %v19255_v58  ;;  %v22557_v21 = vadd.f32 %v13406_v9, %v13366_v37  ;;  %v13368_v38 = vadd.f32 %v13367_v1, %v22486_v45  ;;  %13769 = vmatprep.mubr.bf16.mxu0 %v21143_v47  ;;  %v19262_v47 = vld [vmem:[%s19863_s12 + $0x728] ss:$12 sps:$4 sm:$0xff]   ;;  %v19271_v12 = vld [vmem:[%s19863_s12 + $0x878] ss:$12 sps:$4 sm:$0xff]   ;;  %v19276_v9 = vld [vmem:[%s19863_s12 + $0x620] ss:$12 sps:$4 sm:$0xff]  }
 0x5cd   : > { %13809 = vmatprep.mubr.bf16.mxu1 %v21149_v11  ;;  %v13369_v39 = vpop.f32.mrf.mxu0  ;;  %v19263_v11 = vld [vmem:[%s19863_s12 + $0x8a8] ss:$12 sps:$4 sm:$0xff]   ;;  %v19272_v58 = vld [vmem:[%s19863_s12 + $0x638] ss:$12 sps:$4 sm:$0xff]   ;;  %v19277_v37 = vld [vmem:[%s19863_s12 + $0x7a0] ss:$12 sps:$4 sm:$0xff]  }
 0x5ce   : > { %v13410_v42 = vpop.f32.mrf.mxu1  ;;  %v22562_v59 = vadd.f32 %v13408_v63, %v13368_v38  ;;  %16964 = vmatpush3.bf16.msra.mxu0 %v19256_v10  ;;  %v19264_v45 = vld [vmem:[%s19863_s12 + $0x668] ss:$12 sps:$4 sm:$0xff]   ;;  %v19273_v10 = vld [vmem:[%s19863_s12 + $0x7b8] ss:$12 sps:$4 sm:$0xff]   ;;  %v19282_v38 = vld [vmem:[%s19863_s12 + $0xa70] ss:$12 sps:$4 sm:$0xff]  }
 0x5cf   : > { %16986 = vmatpush3.bf16.msra.mxu1 %v19257_v50  ;;  %v13370_v29 = vpop.f32.mrf.mxu0  ;;  %16965 = vmatprep.subr.bf16.mxu0 %v19258_v32  ;;  %v19274_v50 = vld [vmem:[%s19863_s12 + $0x6e0] ss:$12 sps:$4 sm:$0xff]   ;;  %v19278_v1 = vld [vmem:[%s19863_s12 + $0x6c8] ss:$12 sps:$4 sm:$0xff]   ;;  %v19283_v39 = vld [vmem:[%s19863_s12 + $0xbf0] ss:$12 sps:$4 sm:$0xff]  }
 0x5d0   : > { %v13411_v18 = vpop.f32.mrf.mxu1  ;;  %16987 = vmatprep.subr.bf16.mxu1 %v19259_v56  ;;  %v19279_v63 = vld [vmem:[%s19863_s12 + $0x848] ss:$12 sps:$4 sm:$0xff]   ;;  %v19284_v42 = vld [vmem:[%s19863_s12 + $0x9b0] ss:$12 sps:$4 sm:$0xff]   ;;  %v19287_v29 = vld [vmem:[%s19863_s12 + $0xbd8] ss:$12 sps:$4 sm:$0xff]  }
 0x5d1   : > { %v19280_v32 = vld [vmem:[%s19863_s12 + $0x608] ss:$12 sps:$4 sm:$0xff]   ;;  %v19288_v18 = vld [vmem:[%s19863_s12 + $0x998] ss:$12 sps:$4 sm:$0xff]  }
 0x5d2   : > { %16966 = vmatpush3.bf16.msra.mxu0 %v19260_v13  ;;  %v19281_v56 = vld [vmem:[%s19863_s12 + $0x788] ss:$12 sps:$4 sm:$0xff]   ;;  %v19285_v13 = vld [vmem:[%s19863_s12 + $0xb30] ss:$12 sps:$4 sm:$0xff]  }
 0x5d3   : > { %16988 = vmatpush3.bf16.msra.mxu1 %v19261_v23  ;;  %16967 = vmatprep.subr.bf16.mxu0 %v19262_v47  ;;  %v19286_v23 = vld [vmem:[%s19863_s12 + $0xa58] ss:$12 sps:$4 sm:$0xff]  }
 0x5d4   : > { %16989 = vmatprep.subr.bf16.mxu1 %v19263_v11  ;;  %v19289_v47 = vld [vmem:[%s19863_s12 + $0xb18] ss:$12 sps:$4 sm:$0xff]   ;;  %v19290_v11 = vld [vmem:[%s19863_s12 + $0xa40] ss:$12 sps:$4 sm:$0xff]  }
 0x5d6   : > { %16968 = vmatpush3.bf16.msra.mxu0 %v19264_v45  ;;  %v19291_v45 = vld [vmem:[%s19863_s12 + $0xbc0] ss:$12 sps:$4 sm:$0xff]  }
 0x5d7   : > { %16990 = vmatpush3.bf16.msra.mxu1 %v19265_v8  ;;  %16969 = vmatprep.subr.bf16.mxu0 %v19266_v46  ;;  %v19294_v8 = vld [vmem:[%s19863_s12 + $0xa28] ss:$12 sps:$4 sm:$0xff]  }
 0x5d8   : > { %16991 = vmatprep.subr.bf16.mxu1 %v19267_v30  ;;  %v19295_v46 = vld [vmem:[%s19863_s12 + $0xba8] ss:$12 sps:$4 sm:$0xff]  }
 0x5d9   : > { %v19296_v30 = vld [vmem:[%s19863_s12 + $0x968] ss:$12 sps:$4 sm:$0xff]  }
 0x5da   : > { %16970 = vmatpush3.bf16.msra.mxu0 %v19268_v24  ;;  %v19299_v24 = vld [vmem:[%s19863_s12 + $0xb90] ss:$12 sps:$4 sm:$0xff]  }
 0x5db   : > { %16992 = vmatpush3.bf16.msra.mxu1 %v19269_v20  ;;  %16971 = vmatprep.subr.bf16.mxu0 %v19270_v22  ;;  %v19300_v20 = vld [vmem:[%s19863_s12 + $0x950] ss:$12 sps:$4 sm:$0xff]  }
 0x5dc   : > { %16993 = vmatprep.subr.bf16.mxu1 %v19271_v12  ;;  %v19301_v22 = vld [vmem:[%s19863_s12 + $0xad0] ss:$12 sps:$4 sm:$0xff]   ;;  %v19302_v12 = vld [vmem:[%s19863_s12 + $0x9f8] ss:$12 sps:$4 sm:$0xff]  }
 0x5de   : > { %16972 = vmatpush3.bf16.msra.mxu0 %v19272_v58  ;;  %v19303_v58 = vld [vmem:[%s19863_s12 + $0xb78] ss:$12 sps:$4 sm:$0xff]  }
 0x5df   : > { %16994 = vmatpush3.bf16.msra.mxu1 %v19273_v10  ;;  %16973 = vmatprep.subr.bf16.mxu0 %v19274_v50  ;;  %v19304_v10 = vld [vmem:[%s19863_s12 + $0x938] ss:$12 sps:$4 sm:$0xff]  }
 0x5e0   : > { %16995 = vmatprep.subr.bf16.mxu1 %v19275_v62  ;;  %v19305_v50 = vld [vmem:[%s19863_s12 + $0xab8] ss:$12 sps:$4 sm:$0xff]   ;;  %v19306_v62 = vld [vmem:[%s19863_s12 + $0x9e0] ss:$12 sps:$4 sm:$0xff]  }
 0x5e2   : > { %16974 = vmatpush3.bf16.msra.mxu0 %v19276_v9  ;;  %v19307_v9 = vld [vmem:[%s19863_s12 + $0xb60] ss:$12 sps:$4 sm:$0xff]  }
 0x5e3   : > { %16996 = vmatpush3.bf16.msra.mxu1 %v19277_v37  ;;  %16975 = vmatprep.subr.bf16.mxu0 %v19278_v1  ;;  %v19308_v37 = vld [vmem:[%s19863_s12 + $0x920] ss:$12 sps:$4 sm:$0xff]  }
 0x5e4   : > { %16997 = vmatprep.subr.bf16.mxu1 %v19279_v63  ;;  %v19309_v1 = vld [vmem:[%s19863_s12 + $0xaa0] ss:$12 sps:$4 sm:$0xff]   ;;  %v19310_v63 = vld [vmem:[%s19863_s12 + $0x9c8] ss:$12 sps:$4 sm:$0xff]  }
 0x5e6   : > { %16976 = vmatpush3.bf16.msra.mxu0 %v19280_v32  ;;  %v19311_v32 = vld [vmem:[%s19863_s12 + $0xb48] ss:$12 sps:$4 sm:$0xff]  }
 0x5e7   : > { %16998 = vmatpush3.bf16.msra.mxu1 %v19281_v56  ;;  %17005 = vmatprep.subr.bf16.mxu0 %v19282_v38  ;;  %v19312_v56 = vld [vmem:[%s19863_s12 + $0x908] ss:$12 sps:$4 sm:$0xff]  }
 0x5e8   : > { %17027 = vmatprep.subr.bf16.mxu1 %v19283_v39  ;;  %v19313_v38 = vld [vmem:[%s19863_s12 + $0xa88] ss:$12 sps:$4 sm:$0xff]   ;;  %v19314_v39 = vld [vmem:[%s19863_s12 + $0xd70] ss:$12 sps:$4 sm:$0xff]  }
 0x5e9   : > { %13770 = vmatmul.mubr.bf16.vlgmr.msra.gmra.mxu0 %v21220_v60  ;;  %v19292_v60 = vld [vmem:[%s19863_s12 + $0x980] ss:$12 sps:$4 sm:$0xff]  }
 0x5ea   : > { %13810 = vmatmul.mubr.bf16.vlgmr.msra.gmra.mxu1 %v21224_v61  ;;  %17006 = vmatpush3.bf16.msra.mxu0 %v19284_v42  ;;  %v19293_v61 = vld [vmem:[%s19863_s12 + $0xb00] ss:$12 sps:$4 sm:$0xff]   ;;  %v19315_v42 = vld [vmem:[%s19863_s12 + $0xef0] ss:$12 sps:$4 sm:$0xff]  }
 0x5eb   : > { %17028 = vmatpush3.bf16.msra.mxu1 %v19285_v13  ;;  %17007 = vmatprep.subr.bf16.mxu0 %v19286_v23  ;;  %v19316_v13 = vld [vmem:[%s19863_s12 + $0xcb0] ss:$12 sps:$4 sm:$0xff]  }
 0x5ec   : > { %17029 = vmatprep.subr.bf16.mxu1 %v19287_v29  ;;  %13849 = vmatprep.mubr.bf16.mxu0 %v21230_v7  ;;  %v19297_v7 = vld [vmem:[%s19863_s12 + $0xae8] ss:$12 sps:$4 sm:$0xff]   ;;  %v19317_v23 = vld [vmem:[%s19863_s12 + $0xe30] ss:$12 sps:$4 sm:$0xff]   ;;  %v19318_v29 = vld [vmem:[%s19863_s12 + $0xd58] ss:$12 sps:$4 sm:$0xff]  }
 0x5ed   : > { %13889 = vmatprep.mubr.bf16.mxu1 %v21232_v27  ;;  %v19298_v27 = vld [vmem:[%s19863_s12 + $0xa10] ss:$12 sps:$4 sm:$0xff]  }
 0x5ee   : > { %17008 = vmatpush3.bf16.msra.mxu0 %v19288_v18  ;;  %v19319_v18 = vld [vmem:[%s19863_s12 + $0xed8] ss:$12 sps:$4 sm:$0xff]  }
 0x5ef   : > { %17030 = vmatpush3.bf16.msra.mxu1 %v19289_v47  ;;  %17009 = vmatprep.subr.bf16.mxu0 %v19290_v11 }
 0x5f0   : > { %17031 = vmatprep.subr.bf16.mxu1 %v19291_v45 }
 0x5f2   : > { %17010 = vmatpush3.bf16.msra.mxu0 %v19292_v60  ;;  %v19320_v60 = vld [vmem:[%s19863_s12 + $0xc98] ss:$12 sps:$4 sm:$0xff]  }
 0x5f3   : > { %17032 = vmatpush3.bf16.msra.mxu1 %v19293_v61  ;;  %17011 = vmatprep.subr.bf16.mxu0 %v19294_v8  ;;  %v19321_v61 = vld [vmem:[%s19863_s12 + $0xe18] ss:$12 sps:$4 sm:$0xff]  }
 0x5f4   : > { %17033 = vmatprep.subr.bf16.mxu1 %v19295_v46 }
 0x5f6   : > { %17012 = vmatpush3.bf16.msra.mxu0 %v19296_v30  ;;  %v19322_v30 = vld [vmem:[%s19863_s12 + $0xd40] ss:$12 sps:$4 sm:$0xff]  }
 0x5f7   : > { %17034 = vmatpush3.bf16.msra.mxu1 %v19297_v7  ;;  %17013 = vmatprep.subr.bf16.mxu0 %v19298_v27  ;;  %v19323_v7 = vld [vmem:[%s19863_s12 + $0xec0] ss:$12 sps:$4 sm:$0xff]  }
 0x5f8   : > { %17035 = vmatprep.subr.bf16.mxu1 %v19299_v24 }
 0x5fa   : > { %17014 = vmatpush3.bf16.msra.mxu0 %v19300_v20  ;;  %v19324_v20 = vld [vmem:[%s19863_s12 + $0xc80] ss:$12 sps:$4 sm:$0xff]  }
 0x5fb   : > { %17036 = vmatpush3.bf16.msra.mxu1 %v19301_v22  ;;  %17015 = vmatprep.subr.bf16.mxu0 %v19302_v12  ;;  %v19325_v22 = vld [vmem:[%s19863_s12 + $0xe00] ss:$12 sps:$4 sm:$0xff]  }
 0x5fc   : > { %17037 = vmatprep.subr.bf16.mxu1 %v19303_v58 }
 0x5fe   : > { %17016 = vmatpush3.bf16.msra.mxu0 %v19304_v10  ;;  %v19329_v10 = vld [vmem:[%s19863_s12 + $0xde8] ss:$12 sps:$4 sm:$0xff]  }
 0x5ff   : > { %17038 = vmatpush3.bf16.msra.mxu1 %v19305_v50  ;;  %17017 = vmatprep.subr.bf16.mxu0 %v19306_v62  ;;  %v19330_v50 = vld [vmem:[%s19863_s12 + $0xd10] ss:$12 sps:$4 sm:$0xff]  }
 0x600   : > { %17039 = vmatprep.subr.bf16.mxu1 %v19307_v9  ;;  %v19331_v62 = vld [vmem:[%s19863_s12 + $0xe90] ss:$12 sps:$4 sm:$0xff]  }
 0x601   : > { %v19332_v9 = vld [vmem:[%s19863_s12 + $0xc50] ss:$12 sps:$4 sm:$0xff]  }
 0x602   : > { %17018 = vmatpush3.bf16.msra.mxu0 %v19308_v37  ;;  %v19333_v37 = vld [vmem:[%s19863_s12 + $0xdd0] ss:$12 sps:$4 sm:$0xff]  }
 0x603   : > { %17040 = vmatpush3.bf16.msra.mxu1 %v19309_v1  ;;  %17019 = vmatprep.subr.bf16.mxu0 %v19310_v63  ;;  %v19334_v1 = vld [vmem:[%s19863_s12 + $0xcf8] ss:$12 sps:$4 sm:$0xff]  }
 0x604   : > { %17041 = vmatprep.subr.bf16.mxu1 %v19311_v32  ;;  %v19335_v63 = vld [vmem:[%s19863_s12 + $0xe78] ss:$12 sps:$4 sm:$0xff]  }
 0x605   : > { %v19336_v32 = vld [vmem:[%s19863_s12 + $0xc38] ss:$12 sps:$4 sm:$0xff]  }
 0x606   : > { %17020 = vmatpush3.bf16.msra.mxu0 %v19312_v56  ;;  %v19337_v56 = vld [vmem:[%s19863_s12 + $0xdb8] ss:$12 sps:$4 sm:$0xff]  }
 0x607   : > { %17042 = vmatpush3.bf16.msra.mxu1 %v19313_v38  ;;  %17049 = vmatprep.subr.bf16.mxu0 %v19314_v39  ;;  %v19338_v38 = vld [vmem:[%s19863_s12 + $0xce0] ss:$12 sps:$4 sm:$0xff]  }
 0x608   : > { %17071 = vmatprep.subr.bf16.mxu1 %v19315_v42  ;;  %v19339_v39 = vld [vmem:[%s19863_s12 + $0xe60] ss:$12 sps:$4 sm:$0xff]  }
 0x609   : > { %v13447_v47 = vpop.f32.mrf.mxu0  ;;  %13850 = vmatmul.mubr.bf16.vlgmr.msra.gmra.mxu0 %v21311_v40  ;;  %v19340_v42 = vld [vmem:[%s19863_s12 + $0xc20] ss:$12 sps:$4 sm:$0xff]  }
 0x60a   : > { %v13488_v11 = vpop.f32.mrf.mxu1  ;;  %13890 = vmatmul.mubr.bf16.vlgmr.msra.gmra.mxu1 %v21315_v4  ;;  %v13448_v45 = vadd.f32 %v13447_v47, %v22557_v21  ;;  %17050 = vmatpush3.bf16.msra.mxu0 %v19316_v13  ;;  %v19341_v13 = vld [vmem:[%s19863_s12 + $0xda0] ss:$12 sps:$4 sm:$0xff]   ;;  %v19345_v47 = vld [vmem:[%s19863_s12 + $0xd88] ss:$12 sps:$4 sm:$0xff]  }
 0x60b   : > { %17072 = vmatpush3.bf16.msra.mxu1 %v19317_v23  ;;  %v13449_v8 = vpop.f32.mrf.mxu0  ;;  %17051 = vmatprep.subr.bf16.mxu0 %v19318_v29  ;;  %v19342_v23 = vld [vmem:[%s19863_s12 + $0xcc8] ss:$12 sps:$4 sm:$0xff]  }
 0x60c   : > { %v13490_v46 = vpop.f32.mrf.mxu1  ;;  %17073 = vmatprep.subr.bf16.mxu1 %v19319_v18  ;;  %v22635_v27 = vadd.f32 %v13488_v11, %v13448_v45  ;;  %v13450_v40 = vadd.f32 %v13449_v8, %v22562_v59  ;;  %13929 = vmatprep.mubr.bf16.mxu0 %v21321_v44  ;;  %v19326_v44 = vld [vmem:[%s19863_s12 + $0xd28] ss:$12 sps:$4 sm:$0xff]   ;;  %v19346_v11 = vld [vmem:[%s19863_s12 + $0x1070] ss:$12 sps:$4 sm:$0xff]   ;;  %v19350_v8 = vld [vmem:[%s19863_s12 + $0x1058] ss:$12 sps:$4 sm:$0xff]  }
 0x60d   : > { %13969 = vmatprep.mubr.bf16.mxu1 %v21323_v53  ;;  %v13451_v4 = vpop.f32.mrf.mxu0  ;;  %v19327_v53 = vld [vmem:[%s19863_s12 + $0xea8] ss:$12 sps:$4 sm:$0xff]   ;;  %v19347_v45 = vld [vmem:[%s19863_s12 + $0x11f0] ss:$12 sps:$4 sm:$0xff]  }
 0x60e   : > { %v13492_v21 = vpop.f32.mrf.mxu1  ;;  %v22640_v24 = vadd.f32 %v13490_v46, %v13450_v40  ;;  %17052 = vmatpush3.bf16.msra.mxu0 %v19320_v60  ;;  %v19328_v59 = vld [vmem:[%s19863_s12 + $0xc68] ss:$12 sps:$4 sm:$0xff]   ;;  %v19348_v60 = vld [vmem:[%s19863_s12 + $0xfb0] ss:$12 sps:$4 sm:$0xff]   ;;  %v19351_v46 = vld [vmem:[%s19863_s12 + $0x11d8] ss:$12 sps:$4 sm:$0xff]  }
 0x60f   : > { %17074 = vmatpush3.bf16.msra.mxu1 %v19321_v61  ;;  %v13452_v12 = vpop.f32.mrf.mxu0  ;;  %17053 = vmatprep.subr.bf16.mxu0 %v19322_v30  ;;  %v19343_v29 = vld [vmem:[%s19863_s12 + $0xe48] ss:$12 sps:$4 sm:$0xff]   ;;  %v19349_v61 = vld [vmem:[%s19863_s12 + $0x1130] ss:$12 sps:$4 sm:$0xff]   ;;  %v19352_v30 = vld [vmem:[%s19863_s12 + $0xf98] ss:$12 sps:$4 sm:$0xff]  }
 0x610   : > { %v13493_v58 = vpop.f32.mrf.mxu1  ;;  %17075 = vmatprep.subr.bf16.mxu1 %v19323_v7  ;;  %v19344_v18 = vld [vmem:[%s19863_s12 + $0xc08] ss:$12 sps:$4 sm:$0xff]   ;;  %v19353_v7 = vld [vmem:[%s19863_s12 + $0x1118] ss:$12 sps:$4 sm:$0xff]   ;;  %v19354_v40 = vld [vmem:[%s19863_s12 + $0x1040] ss:$12 sps:$4 sm:$0xff]  }
 0x611   : > { %v19355_v4 = vld [vmem:[%s19863_s12 + $0x11c0] ss:$12 sps:$4 sm:$0xff]   ;;  %v19358_v21 = vld [vmem:[%s19863_s12 + $0x1028] ss:$12 sps:$4 sm:$0xff]   ;;  %v19363_v12 = vld [vmem:[%s19863_s12 + $0x1190] ss:$12 sps:$4 sm:$0xff]  }
 0x612   : > { %17054 = vmatpush3.bf16.msra.mxu0 %v19324_v20  ;;  %v19359_v20 = vld [vmem:[%s19863_s12 + $0x11a8] ss:$12 sps:$4 sm:$0xff]   ;;  %v19364_v58 = vld [vmem:[%s19863_s12 + $0xf50] ss:$12 sps:$4 sm:$0xff]  }
 0x613   : > { %17076 = vmatpush3.bf16.msra.mxu1 %v19325_v22  ;;  %17055 = vmatprep.subr.bf16.mxu0 %v19326_v44  ;;  %v19360_v22 = vld [vmem:[%s19863_s12 + $0xf68] ss:$12 sps:$4 sm:$0xff]   ;;  %v19365_v44 = vld [vmem:[%s19863_s12 + $0x10d0] ss:$12 sps:$4 sm:$0xff]  }
 0x614   : > { %17077 = vmatprep.subr.bf16.mxu1 %v19327_v53  ;;  %v19366_v53 = vld [vmem:[%s19863_s12 + $0xff8] ss:$12 sps:$4 sm:$0xff]  }
 0x616   : > { %17056 = vmatpush3.bf16.msra.mxu0 %v19328_v59  ;;  %v19367_v59 = vld [vmem:[%s19863_s12 + $0x1178] ss:$12 sps:$4 sm:$0xff]  }
 0x617   : > { %17078 = vmatpush3.bf16.msra.mxu1 %v19329_v10  ;;  %17057 = vmatprep.subr.bf16.mxu0 %v19330_v50  ;;  %v19368_v10 = vld [vmem:[%s19863_s12 + $0xf38] ss:$12 sps:$4 sm:$0xff]  }
 0x618   : > { %17079 = vmatprep.subr.bf16.mxu1 %v19331_v62  ;;  %v19369_v50 = vld [vmem:[%s19863_s12 + $0x10b8] ss:$12 sps:$4 sm:$0xff]   ;;  %v19370_v62 = vld [vmem:[%s19863_s12 + $0xfe0] ss:$12 sps:$4 sm:$0xff]  }
 0x61a   : > { %17058 = vmatpush3.bf16.msra.mxu0 %v19332_v9  ;;  %v19371_v9 = vld [vmem:[%s19863_s12 + $0x1160] ss:$12 sps:$4 sm:$0xff]  }
 0x61b   : > { %17080 = vmatpush3.bf16.msra.mxu1 %v19333_v37  ;;  %17059 = vmatprep.subr.bf16.mxu0 %v19334_v1  ;;  %v19372_v37 = vld [vmem:[%s19863_s12 + $0xf20] ss:$12 sps:$4 sm:$0xff]  }
 0x61c   : > { %17081 = vmatprep.subr.bf16.mxu1 %v19335_v63  ;;  %v19373_v1 = vld [vmem:[%s19863_s12 + $0x10a0] ss:$12 sps:$4 sm:$0xff]   ;;  %v19374_v63 = vld [vmem:[%s19863_s12 + $0xfc8] ss:$12 sps:$4 sm:$0xff]  }
 0x61e   : > { %17060 = vmatpush3.bf16.msra.mxu0 %v19336_v32  ;;  %v19375_v32 = vld [vmem:[%s19863_s12 + $0x1148] ss:$12 sps:$4 sm:$0xff]  }
 0x61f   : > { %17082 = vmatpush3.bf16.msra.mxu1 %v19337_v56  ;;  %17061 = vmatprep.subr.bf16.mxu0 %v19338_v38  ;;  %v19376_v56 = vld [vmem:[%s19863_s12 + $0xf08] ss:$12 sps:$4 sm:$0xff]  }
 0x620   : > { %17083 = vmatprep.subr.bf16.mxu1 %v19339_v39  ;;  %v19377_v38 = vld [vmem:[%s19863_s12 + $0x1088] ss:$12 sps:$4 sm:$0xff]   ;;  %v19378_v39 = vld [vmem:[%s19863_s12 + $0x1370] ss:$12 sps:$4 sm:$0xff]  }
 0x622   : > { %17062 = vmatpush3.bf16.msra.mxu0 %v19340_v42  ;;  %v19379_v42 = vld [vmem:[%s19863_s12 + $0x14f0] ss:$12 sps:$4 sm:$0xff]  }
 0x623   : > { %17084 = vmatpush3.bf16.msra.mxu1 %v19341_v13  ;;  %17063 = vmatprep.subr.bf16.mxu0 %v19342_v23  ;;  %v19380_v13 = vld [vmem:[%s19863_s12 + $0x12b0] ss:$12 sps:$4 sm:$0xff]  }
 0x624   : > { %17085 = vmatprep.subr.bf16.mxu1 %v19343_v29  ;;  %v19381_v23 = vld [vmem:[%s19863_s12 + $0x1430] ss:$12 sps:$4 sm:$0xff]   ;;  %v19382_v29 = vld [vmem:[%s19863_s12 + $0x1358] ss:$12 sps:$4 sm:$0xff]  }
 0x626   : > { %17064 = vmatpush3.bf16.msra.mxu0 %v19344_v18  ;;  %v19383_v18 = vld [vmem:[%s19863_s12 + $0x14d8] ss:$12 sps:$4 sm:$0xff]  }
 0x627   : > { %17086 = vmatpush3.bf16.msra.mxu1 %v19345_v47  ;;  %17093 = vmatprep.subr.bf16.mxu0 %v19346_v11 }
 0x628   : > { %17115 = vmatprep.subr.bf16.mxu1 %v19347_v45 }
 0x629   : > { %13930 = vmatmul.mubr.bf16.vlgmr.msra.gmra.mxu0 %v21408_v15  ;;  %v19356_v15 = vld [vmem:[%s19863_s12 + $0xf80] ss:$12 sps:$4 sm:$0xff]  }
 0x62a   : > { %13970 = vmatmul.mubr.bf16.vlgmr.msra.gmra.mxu1 %v21412_v41  ;;  %17094 = vmatpush3.bf16.msra.mxu0 %v19348_v60  ;;  %v19357_v41 = vld [vmem:[%s19863_s12 + $0x1100] ss:$12 sps:$4 sm:$0xff]   ;;  %v19384_v60 = vld [vmem:[%s19863_s12 + $0x1298] ss:$12 sps:$4 sm:$0xff]  }
 0x62b   : > { %17116 = vmatpush3.bf16.msra.mxu1 %v19349_v61  ;;  %17095 = vmatprep.subr.bf16.mxu0 %v19350_v8  ;;  %v19385_v61 = vld [vmem:[%s19863_s12 + $0x1418] ss:$12 sps:$4 sm:$0xff]  }
 0x62c   : > { %17117 = vmatprep.subr.bf16.mxu1 %v19351_v46  ;;  %14009 = vmatprep.mubr.bf16.mxu0 %v21418_v25  ;;  %v19361_v25 = vld [vmem:[%s19863_s12 + $0x10e8] ss:$12 sps:$4 sm:$0xff]  }
 0x62d   : > { %14049 = vmatprep.mubr.bf16.mxu1 %v21420_v51  ;;  %v19362_v51 = vld [vmem:[%s19863_s12 + $0x1010] ss:$12 sps:$4 sm:$0xff]  }
 0x62e   : > { %17096 = vmatpush3.bf16.msra.mxu0 %v19352_v30  ;;  %v19386_v30 = vld [vmem:[%s19863_s12 + $0x1340] ss:$12 sps:$4 sm:$0xff]  }
 0x62f   : > { %17118 = vmatpush3.bf16.msra.mxu1 %v19353_v7  ;;  %17097 = vmatprep.subr.bf16.mxu0 %v19354_v40  ;;  %v19387_v7 = vld [vmem:[%s19863_s12 + $0x14c0] ss:$12 sps:$4 sm:$0xff]  }
 0x630   : > { %17119 = vmatprep.subr.bf16.mxu1 %v19355_v4 }
 0x632   : > { %17098 = vmatpush3.bf16.msra.mxu0 %v19356_v15  ;;  %v19388_v15 = vld [vmem:[%s19863_s12 + $0x1280] ss:$12 sps:$4 sm:$0xff]  }
 0x633   : > { %17120 = vmatpush3.bf16.msra.mxu1 %v19357_v41  ;;  %17099 = vmatprep.subr.bf16.mxu0 %v19358_v21  ;;  %v19389_v41 = vld [vmem:[%s19863_s12 + $0x1400] ss:$12 sps:$4 sm:$0xff]  }
 0x634   : > { %17121 = vmatprep.subr.bf16.mxu1 %v19359_v20 }
 0x636   : > { %17100 = vmatpush3.bf16.msra.mxu0 %v19360_v22  ;;  %v19392_v22 = vld [vmem:[%s19863_s12 + $0x1268] ss:$12 sps:$4 sm:$0xff]  }
 0x637   : > { %17122 = vmatpush3.bf16.msra.mxu1 %v19361_v25  ;;  %17101 = vmatprep.subr.bf16.mxu0 %v19362_v51  ;;  %v19393_v25 = vld [vmem:[%s19863_s12 + $0x13e8] ss:$12 sps:$4 sm:$0xff]   ;;  %v19394_v51 = vld [vmem:[%s19863_s12 + $0x1310] ss:$12 sps:$4 sm:$0xff]  }
 0x638   : > { %17123 = vmatprep.subr.bf16.mxu1 %v19363_v12  ;;  %v19395_v12 = vld [vmem:[%s19863_s12 + $0x1490] ss:$12 sps:$4 sm:$0xff]  }
 0x63a   : > { %17102 = vmatpush3.bf16.msra.mxu0 %v19364_v58  ;;  %v19396_v58 = vld [vmem:[%s19863_s12 + $0x1250] ss:$12 sps:$4 sm:$0xff]  }
 0x63b   : > { %17124 = vmatpush3.bf16.msra.mxu1 %v19365_v44  ;;  %17103 = vmatprep.subr.bf16.mxu0 %v19366_v53  ;;  %v19397_v44 = vld [vmem:[%s19863_s12 + $0x13d0] ss:$12 sps:$4 sm:$0xff]   ;;  %v19398_v53 = vld [vmem:[%s19863_s12 + $0x12f8] ss:$12 sps:$4 sm:$0xff]  }
 0x63c   : > { %17125 = vmatprep.subr.bf16.mxu1 %v19367_v59  ;;  %v19399_v59 = vld [vmem:[%s19863_s12 + $0x1478] ss:$12 sps:$4 sm:$0xff]  }
 0x63e   : > { %17104 = vmatpush3.bf16.msra.mxu0 %v19368_v10  ;;  %v19400_v10 = vld [vmem:[%s19863_s12 + $0x1238] ss:$12 sps:$4 sm:$0xff]  }
 0x63f   : > { %17126 = vmatpush3.bf16.msra.mxu1 %v19369_v50  ;;  %17105 = vmatprep.subr.bf16.mxu0 %v19370_v62  ;;  %v19401_v50 = vld [vmem:[%s19863_s12 + $0x13b8] ss:$12 sps:$4 sm:$0xff]   ;;  %v19402_v62 = vld [vmem:[%s19863_s12 + $0x12e0] ss:$12 sps:$4 sm:$0xff]  }
 0x640   : > { %17127 = vmatprep.subr.bf16.mxu1 %v19371_v9  ;;  %v19403_v9 = vld [vmem:[%s19863_s12 + $0x1460] ss:$12 sps:$4 sm:$0xff]  }
 0x642   : > { %17106 = vmatpush3.bf16.msra.mxu0 %v19372_v37  ;;  %v19404_v37 = vld [vmem:[%s19863_s12 + $0x1220] ss:$12 sps:$4 sm:$0xff]  }
 0x643   : > { %17128 = vmatpush3.bf16.msra.mxu1 %v19373_v1  ;;  %17107 = vmatprep.subr.bf16.mxu0 %v19374_v63  ;;  %v19405_v1 = vld [vmem:[%s19863_s12 + $0x13a0] ss:$12 sps:$4 sm:$0xff]   ;;  %v19406_v63 = vld [vmem:[%s19863_s12 + $0x12c8] ss:$12 sps:$4 sm:$0xff]  }
 0x644   : > { %17129 = vmatprep.subr.bf16.mxu1 %v19375_v32  ;;  %v19407_v32 = vld [vmem:[%s19863_s12 + $0x1448] ss:$12 sps:$4 sm:$0xff]  }
 0x646   : > { %17108 = vmatpush3.bf16.msra.mxu0 %v19376_v56  ;;  %v19408_v56 = vld [vmem:[%s19863_s12 + $0x1208] ss:$12 sps:$4 sm:$0xff]  }
 0x647   : > { %17130 = vmatpush3.bf16.msra.mxu1 %v19377_v38  ;;  %17137 = vmatprep.subr.bf16.mxu0 %v19378_v39  ;;  %v19409_v38 = vld [vmem:[%s19863_s12 + $0x1388] ss:$12 sps:$4 sm:$0xff]   ;;  %v19410_v39 = vld [vmem:[%s19863_s12 + $0x1670] ss:$12 sps:$4 sm:$0xff]  }
 0x648   : > { %17159 = vmatprep.subr.bf16.mxu1 %v19379_v42  ;;  %v19411_v42 = vld [vmem:[%s19863_s12 + $0x17f0] ss:$12 sps:$4 sm:$0xff]  }
 0x649   : > { %v13529_v47 = vpop.f32.mrf.mxu0  ;;  %14010 = vmatmul.mubr.bf16.vlgmr.msra.gmra.mxu0 %v21505_v2 }
 0x64a   : > { %v13570_v11 = vpop.f32.mrf.mxu1  ;;  %14050 = vmatmul.mubr.bf16.vlgmr.msra.gmra.mxu1 %v21509_v52  ;;  %v13530_v45 = vadd.f32 %v13529_v47, %v22635_v27  ;;  %17138 = vmatpush3.bf16.msra.mxu0 %v19380_v13  ;;  %v19412_v13 = vld [vmem:[%s19863_s12 + $0x15b0] ss:$12 sps:$4 sm:$0xff]  }
 0x64b   : > { %17160 = vmatpush3.bf16.msra.mxu1 %v19381_v23  ;;  %v13531_v8 = vpop.f32.mrf.mxu0  ;;  %17139 = vmatprep.subr.bf16.mxu0 %v19382_v29  ;;  %v19413_v23 = vld [vmem:[%s19863_s12 + $0x1730] ss:$12 sps:$4 sm:$0xff]   ;;  %v19414_v29 = vld [vmem:[%s19863_s12 + $0x1658] ss:$12 sps:$4 sm:$0xff]  }
 0x64c   : > { %v13572_v46 = vpop.f32.mrf.mxu1  ;;  %17161 = vmatprep.subr.bf16.mxu1 %v19383_v18  ;;  %v22713_v40 = vadd.f32 %v13570_v11, %v13530_v45  ;;  %v13532_v2 = vadd.f32 %v13531_v8, %v22640_v24  ;;  %14089 = vmatprep.mubr.bf16.mxu0 %v21515_v6  ;;  %v19390_v6 = vld [vmem:[%s19863_s12 + $0x1328] ss:$12 sps:$4 sm:$0xff]   ;;  %v19415_v18 = vld [vmem:[%s19863_s12 + $0x17d8] ss:$12 sps:$4 sm:$0xff]  }
 0x64d   : > { %14129 = vmatprep.mubr.bf16.mxu1 %v21517_v17  ;;  %v13533_v52 = vpop.f32.mrf.mxu0  ;;  %v19391_v17 = vld [vmem:[%s19863_s12 + $0x14a8] ss:$12 sps:$4 sm:$0xff]   ;;  %v19416_v45 = vld [vmem:[%s19863_s12 + $0x1598] ss:$12 sps:$4 sm:$0xff]  }
 0x64e   : > { %v13574_v27 = vpop.f32.mrf.mxu1  ;;  %v22718_v4 = vadd.f32 %v13572_v46, %v13532_v2  ;;  %17140 = vmatpush3.bf16.msra.mxu0 %v19384_v60  ;;  %v19417_v60 = vld [vmem:[%s19863_s12 + $0x1718] ss:$12 sps:$4 sm:$0xff]   ;;  %v19418_v46 = vld [vmem:[%s19863_s12 + $0x1640] ss:$12 sps:$4 sm:$0xff]  }
 0x64f   : > { %17162 = vmatpush3.bf16.msra.mxu1 %v19385_v61  ;;  %v13534_v21 = vpop.f32.mrf.mxu0  ;;  %17141 = vmatprep.subr.bf16.mxu0 %v19386_v30  ;;  %v19419_v30 = vld [vmem:[%s19863_s12 + $0x17c0] ss:$12 sps:$4 sm:$0xff]  }
 0x650   : > { %v13575_v20 = vpop.f32.mrf.mxu1  ;;  %17163 = vmatprep.subr.bf16.mxu1 %v19387_v7  ;;  %v14860_v24 = vcombine.low %v22713_v40, %v22718_v4  ;;  %v19420_v27 = vld [vmem:[%s19863_s12 + $0x1580] ss:$12 sps:$4 sm:$0xff]  }
 0x651   : > { %v19424_v20 = vld [vmem:[%s19863_s12 + $0x1568] ss:$12 sps:$4 sm:$0xff]  }
 0x652   : > { %17142 = vmatpush3.bf16.msra.mxu0 %v19388_v15  ;;  %v19421_v15 = vld [vmem:[%s19863_s12 + $0x1700] ss:$12 sps:$4 sm:$0xff]  }
 0x653   : > { %17164 = vmatpush3.bf16.msra.mxu1 %v19389_v41  ;;  %17143 = vmatprep.subr.bf16.mxu0 %v19390_v6  ;;  %v19425_v6 = vld [vmem:[%s19863_s12 + $0x16e8] ss:$12 sps:$4 sm:$0xff]  }
 0x654   : > { %17165 = vmatprep.subr.bf16.mxu1 %v19391_v17  ;;  %v19426_v17 = vld [vmem:[%s19863_s12 + $0x1610] ss:$12 sps:$4 sm:$0xff]  }
 0x656   : > { %17144 = vmatpush3.bf16.msra.mxu0 %v19392_v22  ;;  %v19427_v22 = vld [vmem:[%s19863_s12 + $0x1790] ss:$12 sps:$4 sm:$0xff]  }
 0x657   : > { %17166 = vmatpush3.bf16.msra.mxu1 %v19393_v25  ;;  %17145 = vmatprep.subr.bf16.mxu0 %v19394_v51  ;;  %v19428_v25 = vld [vmem:[%s19863_s12 + $0x1550] ss:$12 sps:$4 sm:$0xff]  }
 0x658   : > { %17167 = vmatprep.subr.bf16.mxu1 %v19395_v12  ;;  %v19429_v51 = vld [vmem:[%s19863_s12 + $0x16d0] ss:$12 sps:$4 sm:$0xff]   ;;  %v19430_v12 = vld [vmem:[%s19863_s12 + $0x15f8] ss:$12 sps:$4 sm:$0xff]  }
 0x65a   : > { %17146 = vmatpush3.bf16.msra.mxu0 %v19396_v58  ;;  %v19431_v58 = vld [vmem:[%s19863_s12 + $0x1778] ss:$12 sps:$4 sm:$0xff]  }
 0x65b   : > { %17168 = vmatpush3.bf16.msra.mxu1 %v19397_v44  ;;  %17147 = vmatprep.subr.bf16.mxu0 %v19398_v53  ;;  %v19432_v44 = vld [vmem:[%s19863_s12 + $0x1538] ss:$12 sps:$4 sm:$0xff]  }
 0x65c   : > { %17169 = vmatprep.subr.bf16.mxu1 %v19399_v59  ;;  %v19433_v53 = vld [vmem:[%s19863_s12 + $0x16b8] ss:$12 sps:$4 sm:$0xff]   ;;  %v19434_v59 = vld [vmem:[%s19863_s12 + $0x15e0] ss:$12 sps:$4 sm:$0xff]  }
 0x65e   : > { %17148 = vmatpush3.bf16.msra.mxu0 %v19400_v10  ;;  %v19435_v10 = vld [vmem:[%s19863_s12 + $0x1760] ss:$12 sps:$4 sm:$0xff]  }
 0x65f   : > { %17170 = vmatpush3.bf16.msra.mxu1 %v19401_v50  ;;  %17149 = vmatprep.subr.bf16.mxu0 %v19402_v62  ;;  %v19436_v50 = vld [vmem:[%s19863_s12 + $0x1520] ss:$12 sps:$4 sm:$0xff]  }
 0x660   : > { %17171 = vmatprep.subr.bf16.mxu1 %v19403_v9  ;;  %v19437_v62 = vld [vmem:[%s19863_s12 + $0x16a0] ss:$12 sps:$4 sm:$0xff]   ;;  %v19438_v9 = vld [vmem:[%s19863_s12 + $0x15c8] ss:$12 sps:$4 sm:$0xff]  }
 0x662   : > { %17150 = vmatpush3.bf16.msra.mxu0 %v19404_v37  ;;  %v19439_v37 = vld [vmem:[%s19863_s12 + $0x1748] ss:$12 sps:$4 sm:$0xff]  }
 0x663   : > { %17172 = vmatpush3.bf16.msra.mxu1 %v19405_v1  ;;  %17151 = vmatprep.subr.bf16.mxu0 %v19406_v63  ;;  %v19440_v1 = vld [vmem:[%s19863_s12 + $0x1508] ss:$12 sps:$4 sm:$0xff]  }
 0x664   : > { %17173 = vmatprep.subr.bf16.mxu1 %v19407_v32  ;;  %v19441_v63 = vld [vmem:[%s19863_s12 + $0x1688] ss:$12 sps:$4 sm:$0xff]   ;;  %v19442_v32 = vld [vmem:[%s19863_s12 + $0x1970] ss:$12 sps:$4 sm:$0xff]  }
 0x666   : > { %17152 = vmatpush3.bf16.msra.mxu0 %v19408_v56  ;;  %v19443_v56 = vld [vmem:[%s19863_s12 + $0x1af0] ss:$12 sps:$4 sm:$0xff]  }
 0x667   : > { %17174 = vmatpush3.bf16.msra.mxu1 %v19409_v38  ;;  %17181 = vmatprep.subr.bf16.mxu0 %v19410_v39  ;;  %v19444_v38 = vld [vmem:[%s19863_s12 + $0x18b0] ss:$12 sps:$4 sm:$0xff]  }
 0x668   : > { %17203 = vmatprep.subr.bf16.mxu1 %v19411_v42  ;;  %v19445_v39 = vld [vmem:[%s19863_s12 + $0x1a30] ss:$12 sps:$4 sm:$0xff]   ;;  %v19446_v42 = vld [vmem:[%s19863_s12 + $0x1958] ss:$12 sps:$4 sm:$0xff]  }
 0x669   : > { %v16889_v47 = vpop.f32.mrf.mxu0  ;;  %14090 = vmatmul.mubr.bf16.vlgmr.msra.gmra.mxu0 %v21602_v26 }
 0x66a   : > { %v16911_v11 = vpop.f32.mrf.mxu1  ;;  %14130 = vmatmul.mubr.bf16.vlgmr.msra.gmra.mxu1 %v21606_v31  ;;  %17182 = vmatpush3.bf16.msra.mxu0 %v19412_v13  ;;  %v19447_v13 = vld [vmem:[%s19863_s12 + $0x1ad8] ss:$12 sps:$4 sm:$0xff]  }
 0x66b   : > { %17204 = vmatpush3.bf16.msra.mxu1 %v19413_v23  ;;  %v16890_v61 = vpop.f32.mrf.mxu0  ;;  %17183 = vmatprep.subr.bf16.mxu0 %v19414_v29 }
 0x66c   : > { %v16912_v8 = vpop.f32.mrf.mxu1  ;;  %17205 = vmatprep.subr.bf16.mxu1 %v19415_v18  ;;  %v16891_v7 = vadd.f32 %v16890_v61, %v16889_v47  ;;  %14169 = vmatprep.mubr.bf16.mxu0 %v21612_v36  ;;  %v19422_v36 = vld [vmem:[%s19863_s12 + $0x1628] ss:$12 sps:$4 sm:$0xff]   ;;  %v19448_v18 = vld [vmem:[%s19863_s12 + $0x1898] ss:$12 sps:$4 sm:$0xff]   ;;  %v19451_v61 = vld [vmem:[%s19863_s12 + $0x1ac0] ss:$12 sps:$4 sm:$0xff]  }
 0x66d   : > { %v16913_v2 = vadd.f32 %v16912_v8, %v16911_v11  ;;  %14209 = vmatprep.mubr.bf16.mxu1 %v21614_v3  ;;  %v16892_v26 = vpop.f32.mrf.mxu0  ;;  %v19423_v3 = vld [vmem:[%s19863_s12 + $0x17a8] ss:$12 sps:$4 sm:$0xff]   ;;  %v19449_v47 = vld [vmem:[%s19863_s12 + $0x1a18] ss:$12 sps:$4 sm:$0xff]  }
 0x66e   : > { %v16914_v31 = vpop.f32.mrf.mxu1  ;;  %17184 = vmatpush3.bf16.msra.mxu0 %v19416_v45 }
 0x66f   : > { %v22758_v52 = vadd.f32 %v16913_v2, %v16891_v7  ;;  %17206 = vmatpush3.bf16.msra.mxu1 %v19417_v60  ;;  %v16893_v41 = vpop.f32.mrf.mxu0  ;;  %17185 = vmatprep.subr.bf16.mxu0 %v19418_v46  ;;  %v19450_v60 = vld [vmem:[%s19863_s12 + $0x1940] ss:$12 sps:$4 sm:$0xff]  }
 0x670   : > { %v16915_v21 = vpop.f32.mrf.mxu1  ;;  %17207 = vmatprep.subr.bf16.mxu1 %v19419_v30  ;;  %v19452_v7 = vld [vmem:[%s19863_s12 + $0x1880] ss:$12 sps:$4 sm:$0xff]   ;;  %v19458_v41 = vld [vmem:[%s19863_s12 + $0x1910] ss:$12 sps:$4 sm:$0xff]  }
 0x671   : > { %v19453_v2 = vld [vmem:[%s19863_s12 + $0x1a00] ss:$12 sps:$4 sm:$0xff]   ;;  %v19459_v21 = vld [vmem:[%s19863_s12 + $0x1a90] ss:$12 sps:$4 sm:$0xff]  }
 0x672   : > { %17186 = vmatpush3.bf16.msra.mxu0 %v19420_v27 }
 0x673   : > { %17208 = vmatpush3.bf16.msra.mxu1 %v19421_v15  ;;  %17187 = vmatprep.subr.bf16.mxu0 %v19422_v36  ;;  %v19457_v15 = vld [vmem:[%s19863_s12 + $0x19e8] ss:$12 sps:$4 sm:$0xff]   ;;  %v19460_v36 = vld [vmem:[%s19863_s12 + $0x1850] ss:$12 sps:$4 sm:$0xff]  }
 0x674   : > { %17209 = vmatprep.subr.bf16.mxu1 %v19423_v3  ;;  %v19461_v3 = vld [vmem:[%s19863_s12 + $0x19d0] ss:$12 sps:$4 sm:$0xff]  }
 0x676   : > { %17188 = vmatpush3.bf16.msra.mxu0 %v19424_v20  ;;  %v19462_v20 = vld [vmem:[%s19863_s12 + $0x18f8] ss:$12 sps:$4 sm:$0xff]  }
 0x677   : > { %17210 = vmatpush3.bf16.msra.mxu1 %v19425_v6  ;;  %17189 = vmatprep.subr.bf16.mxu0 %v19426_v17  ;;  %v19463_v6 = vld [vmem:[%s19863_s12 + $0x1a78] ss:$12 sps:$4 sm:$0xff]  }
 0x678   : > { %17211 = vmatprep.subr.bf16.mxu1 %v19427_v22  ;;  %v19464_v17 = vld [vmem:[%s19863_s12 + $0x1838] ss:$12 sps:$4 sm:$0xff]  }
 0x679   : > { %v19465_v22 = vld [vmem:[%s19863_s12 + $0x19b8] ss:$12 sps:$4 sm:$0xff]  }
 0x67a   : > { %17190 = vmatpush3.bf16.msra.mxu0 %v19428_v25  ;;  %v19466_v25 = vld [vmem:[%s19863_s12 + $0x18e0] ss:$12 sps:$4 sm:$0xff]  }
 0x67b   : > { %17212 = vmatpush3.bf16.msra.mxu1 %v19429_v51  ;;  %17191 = vmatprep.subr.bf16.mxu0 %v19430_v12  ;;  %v19467_v51 = vld [vmem:[%s19863_s12 + $0x1a60] ss:$12 sps:$4 sm:$0xff]  }
 0x67c   : > { %17213 = vmatprep.subr.bf16.mxu1 %v19431_v58  ;;  %v19468_v12 = vld [vmem:[%s19863_s12 + $0x1820] ss:$12 sps:$4 sm:$0xff]  }
 0x67d   : > { %v19469_v58 = vld [vmem:[%s19863_s12 + $0x19a0] ss:$12 sps:$4 sm:$0xff]  }
 0x67e   : > { %17192 = vmatpush3.bf16.msra.mxu0 %v19432_v44  ;;  %v19470_v44 = vld [vmem:[%s19863_s12 + $0x18c8] ss:$12 sps:$4 sm:$0xff]  }
 0x67f   : > { %17214 = vmatpush3.bf16.msra.mxu1 %v19433_v53  ;;  %17193 = vmatprep.subr.bf16.mxu0 %v19434_v59  ;;  %v19471_v53 = vld [vmem:[%s19863_s12 + $0x1a48] ss:$12 sps:$4 sm:$0xff]  }
 0x680   : > { %17215 = vmatprep.subr.bf16.mxu1 %v19435_v10  ;;  %v19472_v59 = vld [vmem:[%s19863_s12 + $0x1808] ss:$12 sps:$4 sm:$0xff]  }
 0x681   : > { %v19473_v10 = vld [vmem:[%s19863_s12 + $0x1988] ss:$12 sps:$4 sm:$0xff]  }
 0x682   : > { %17194 = vmatpush3.bf16.msra.mxu0 %v19436_v50  ;;  %v19474_v50 = vld [vmem:[%s19863_s12 + $0x1c70] ss:$12 sps:$4 sm:$0xff]  }
 0x683   : > { %17216 = vmatpush3.bf16.msra.mxu1 %v19437_v62  ;;  %17195 = vmatprep.subr.bf16.mxu0 %v19438_v9  ;;  %v19475_v62 = vld [vmem:[%s19863_s12 + $0x1df0] ss:$12 sps:$4 sm:$0xff]  }
 0x684   : > { %17217 = vmatprep.subr.bf16.mxu1 %v19439_v37  ;;  %v19476_v9 = vld [vmem:[%s19863_s12 + $0x1bb0] ss:$12 sps:$4 sm:$0xff]  }
 0x685   : > { %v19477_v37 = vld [vmem:[%s19863_s12 + $0x1d30] ss:$12 sps:$4 sm:$0xff]  }
 0x686   : > { %17196 = vmatpush3.bf16.msra.mxu0 %v19440_v1  ;;  %v19478_v1 = vld [vmem:[%s19863_s12 + $0x1c58] ss:$12 sps:$4 sm:$0xff]  }
 0x687   : > { %17218 = vmatpush3.bf16.msra.mxu1 %v19441_v63  ;;  %17225 = vmatprep.subr.bf16.mxu0 %v19442_v32  ;;  %v19479_v63 = vld [vmem:[%s19863_s12 + $0x1dd8] ss:$12 sps:$4 sm:$0xff]  }
 0x688   : > { %17247 = vmatprep.subr.bf16.mxu1 %v19443_v56 }
 0x689   : > { %v16933_v23 = vpop.f32.mrf.mxu0  ;;  %14170 = vmatmul.mubr.bf16.vlgmr.msra.gmra.mxu0 %v21699_v14 }
 0x68a   : > { %v16955_v29 = vpop.f32.mrf.mxu1  ;;  %14210 = vmatmul.mubr.bf16.vlgmr.msra.gmra.mxu1 %v21703_v16  ;;  %17226 = vmatpush3.bf16.msra.mxu0 %v19444_v38  ;;  %v19480_v38 = vld [vmem:[%s19863_s12 + $0x1b98] ss:$12 sps:$4 sm:$0xff]  }
 0x68b   : > { %17248 = vmatpush3.bf16.msra.mxu1 %v19445_v39  ;;  %v16934_v11 = vpop.f32.mrf.mxu0  ;;  %17227 = vmatprep.subr.bf16.mxu0 %v19446_v42  ;;  %v19481_v39 = vld [vmem:[%s19863_s12 + $0x1d18] ss:$12 sps:$4 sm:$0xff]  }
 0x68c   : > { %v16956_v45 = vpop.f32.mrf.mxu1  ;;  %17249 = vmatprep.subr.bf16.mxu1 %v19447_v13  ;;  %v16935_v8 = vadd.f32 %v16934_v11, %v16933_v23  ;;  %14249 = vmatprep.mubr.bf16.mxu0 %v21709_v54  ;;  %v19454_v54 = vld [vmem:[%s19863_s12 + $0x1928] ss:$12 sps:$4 sm:$0xff]   ;;  %v19482_v23 = vld [vmem:[%s19863_s12 + $0x1c40] ss:$12 sps:$4 sm:$0xff]  }
 0x68d   : > { %v16957_v46 = vadd.f32 %v16956_v45, %v16955_v29  ;;  %14289 = vmatprep.mubr.bf16.mxu1 %v21711_v35  ;;  %v16936_v14 = vpop.f32.mrf.mxu0  ;;  %v19455_v35 = vld [vmem:[%s19863_s12 + $0x1aa8] ss:$12 sps:$4 sm:$0xff]   ;;  %v19483_v29 = vld [vmem:[%s19863_s12 + $0x1dc0] ss:$12 sps:$4 sm:$0xff]  }
 0x68e   : > { %v16958_v16 = vpop.f32.mrf.mxu1  ;;  %v13692_v30 = vadd.f32 %v16935_v8, %v22758_v52  ;;  %17228 = vmatpush3.bf16.msra.mxu0 %v19448_v18  ;;  %v19456_v52 = vld [vmem:[%s19863_s12 + $0x1868] ss:$12 sps:$4 sm:$0xff]   ;;  %v19484_v45 = vld [vmem:[%s19863_s12 + $0x1b80] ss:$12 sps:$4 sm:$0xff]  }
 0x68f   : > { %17250 = vmatpush3.bf16.msra.mxu1 %v19449_v47  ;;  %v16937_v26 = vpop.f32.mrf.mxu0  ;;  %17229 = vmatprep.subr.bf16.mxu0 %v19450_v60  ;;  %v19485_v60 = vld [vmem:[%s19863_s12 + $0x1d00] ss:$12 sps:$4 sm:$0xff]   ;;  %v19488_v14 = vld [vmem:[%s19863_s12 + $0x1b68] ss:$12 sps:$4 sm:$0xff]  }
 0x690   : > { %v16959_v31 = vpop.f32.mrf.mxu1  ;;  %17251 = vmatprep.subr.bf16.mxu1 %v19451_v61  ;;  %v22801_v27 = vadd.f32 %v16957_v46, %v13692_v30  ;;  %v19489_v16 = vld [vmem:[%s19863_s12 + $0x1ce8] ss:$12 sps:$4 sm:$0xff]   ;;  %v19490_v30 = vld [vmem:[%s19863_s12 + $0x1c10] ss:$12 sps:$4 sm:$0xff]  }
 0x691   : > { %v19493_v26 = vld [vmem:[%s19863_s12 + $0x1cd0] ss:$12 sps:$4 sm:$0xff]   ;;  %v19494_v31 = vld [vmem:[%s19863_s12 + $0x1bf8] ss:$12 sps:$4 sm:$0xff]  }
 0x692   : > { %17230 = vmatpush3.bf16.msra.mxu0 %v19452_v7  ;;  %v19491_v7 = vld [vmem:[%s19863_s12 + $0x1d90] ss:$12 sps:$4 sm:$0xff]  }
 0x693   : > { %17252 = vmatpush3.bf16.msra.mxu1 %v19453_v2  ;;  %17231 = vmatprep.subr.bf16.mxu0 %v19454_v54  ;;  %v19492_v2 = vld [vmem:[%s19863_s12 + $0x1b50] ss:$12 sps:$4 sm:$0xff]   ;;  %v19495_v54 = vld [vmem:[%s19863_s12 + $0x1d78] ss:$12 sps:$4 sm:$0xff]  }
 0x694   : > { %17253 = vmatprep.subr.bf16.mxu1 %v19455_v35  ;;  %v19496_v35 = vld [vmem:[%s19863_s12 + $0x1b38] ss:$12 sps:$4 sm:$0xff]  }
 0x696   : > { %17232 = vmatpush3.bf16.msra.mxu0 %v19456_v52  ;;  %v19498_v52 = vld [vmem:[%s19863_s12 + $0x1be0] ss:$12 sps:$4 sm:$0xff]  }
 0x697   : > { %17254 = vmatpush3.bf16.msra.mxu1 %v19457_v15  ;;  %17233 = vmatprep.subr.bf16.mxu0 %v19458_v41  ;;  %v19499_v15 = vld [vmem:[%s19863_s12 + $0x1d60] ss:$12 sps:$4 sm:$0xff]  }
 0x698   : > { %17255 = vmatprep.subr.bf16.mxu1 %v19459_v21  ;;  %v19500_v41 = vld [vmem:[%s19863_s12 + $0x1b20] ss:$12 sps:$4 sm:$0xff]  }
 0x699   : > { %v19501_v21 = vld [vmem:[%s19863_s12 + $0x1ca0] ss:$12 sps:$4 sm:$0xff]  }
 0x69a   : > { %17234 = vmatpush3.bf16.msra.mxu0 %v19460_v36  ;;  %v19502_v36 = vld [vmem:[%s19863_s12 + $0x1bc8] ss:$12 sps:$4 sm:$0xff]  }
 0x69b   : > { %17256 = vmatpush3.bf16.msra.mxu1 %v19461_v3  ;;  %17235 = vmatprep.subr.bf16.mxu0 %v19462_v20  ;;  %v19503_v3 = vld [vmem:[%s19863_s12 + $0x1d48] ss:$12 sps:$4 sm:$0xff]  }
 0x69c   : > { %17257 = vmatprep.subr.bf16.mxu1 %v19463_v6  ;;  %v19504_v20 = vld [vmem:[%s19863_s12 + $0x1b08] ss:$12 sps:$4 sm:$0xff]  }
 0x69d   : > { %v19505_v6 = vld [vmem:[%s19863_s12 + $0x1c88] ss:$12 sps:$4 sm:$0xff]  }
 0x69e   : > { %17236 = vmatpush3.bf16.msra.mxu0 %v19464_v17  ;;  %v19506_v17 = vld [vmem:[%s19863_s12 + $0x1f70] ss:$12 sps:$4 sm:$0xff]  }
 0x69f   : > { %17258 = vmatpush3.bf16.msra.mxu1 %v19465_v22  ;;  %17237 = vmatprep.subr.bf16.mxu0 %v19466_v25  ;;  %v19507_v22 = vld [vmem:[%s19863_s12 + $0x20f0] ss:$12 sps:$4 sm:$0xff]  }
 0x6a0   : > { %17259 = vmatprep.subr.bf16.mxu1 %v19467_v51  ;;  %v19508_v25 = vld [vmem:[%s19863_s12 + $0x1eb0] ss:$12 sps:$4 sm:$0xff]  }
 0x6a1   : > { %v19509_v51 = vld [vmem:[%s19863_s12 + $0x2030] ss:$12 sps:$4 sm:$0xff]  }
 0x6a2   : > { %17238 = vmatpush3.bf16.msra.mxu0 %v19468_v12  ;;  %v19510_v12 = vld [vmem:[%s19863_s12 + $0x1f58] ss:$12 sps:$4 sm:$0xff]  }
 0x6a3   : > { %17260 = vmatpush3.bf16.msra.mxu1 %v19469_v58  ;;  %17239 = vmatprep.subr.bf16.mxu0 %v19470_v44  ;;  %v19511_v58 = vld [vmem:[%s19863_s12 + $0x20d8] ss:$12 sps:$4 sm:$0xff]  }
 0x6a4   : > { %17261 = vmatprep.subr.bf16.mxu1 %v19471_v53 }
 0x6a6   : > { %17240 = vmatpush3.bf16.msra.mxu0 %v19472_v59  ;;  %v23196_v59 = vld [vmem:[#allocation14_spill] sm:$0xff] }
 0x6a7   : > { %17262 = vmatpush3.bf16.msra.mxu1 %v19473_v10  ;;  %17269 = vmatprep.subr.bf16.mxu0 %v19474_v50  ;;  %v19512_v10 = vld [vmem:[%s19863_s12 + $0x1e98] ss:$12 sps:$4 sm:$0xff]  }
 0x6a8   : > { %17291 = vmatprep.subr.bf16.mxu1 %v19475_v62  ;;  %v19513_v50 = vld [vmem:[%s19863_s12 + $0x2018] ss:$12 sps:$4 sm:$0xff]  }
 0x6a9   : > { %v16977_v32 = vpop.f32.mrf.mxu0  ;;  %14250 = vmatmul.mubr.bf16.vlgmr.msra.gmra.mxu0 %v21796_v57 }
 0x6aa   : > { %v16999_v56 = vpop.f32.mrf.mxu1  ;;  %14290 = vmatmul.mubr.bf16.vlgmr.msra.gmra.mxu1 %v21800_v43  ;;  %17270 = vmatpush3.bf16.msra.mxu0 %v19476_v9 }
 0x6ab   : > { %17292 = vmatpush3.bf16.msra.mxu1 %v19477_v37  ;;  %v16978_v42 = vpop.f32.mrf.mxu0  ;;  %17271 = vmatprep.subr.bf16.mxu0 %v19478_v1  ;;  %v19514_v37 = vld [vmem:[%s19863_s12 + $0x1f40] ss:$12 sps:$4 sm:$0xff]  }
 0x6ac   : > { %v17000_v13 = vpop.f32.mrf.mxu1  ;;  %17293 = vmatprep.subr.bf16.mxu1 %v19479_v63  ;;  %v16979_v18 = vadd.f32 %v16978_v42, %v16977_v32  ;;  %14329 = vmatprep.mubr.bf16.mxu0 %v21806_v48  ;;  %v19486_v48 = vld [vmem:[%s19863_s12 + $0x1c28] ss:$12 sps:$4 sm:$0xff]   ;;  %v19515_v1 = vld [vmem:[%s19863_s12 + $0x20c0] ss:$12 sps:$4 sm:$0xff]  }
 0x6ad   : > { %v17001_v47 = vadd.f32 %v17000_v13, %v16999_v56  ;;  %14369 = vmatprep.mubr.bf16.mxu1 %v21808_v55  ;;  %v16980_v57 = vpop.f32.mrf.mxu0  ;;  %v19487_v55 = vld [vmem:[%s19863_s12 + $0x1da8] ss:$12 sps:$4 sm:$0xff]   ;;  %v23197_v56 = vld [vmem:[#allocation15_spill] sm:$0xff] }
 0x6ae   : > { %v17002_v43 = vpop.f32.mrf.mxu1  ;;  %v13772_v11 = vadd.f32 %v16979_v18, %v22801_v27  ;;  %17272 = vmatpush3.bf16.msra.mxu0 %v19480_v38  ;;  %v19497_v27 = vld [vmem:[%s19863_s12 + $0x1cb8] ss:$12 sps:$4 sm:$0xff]   ;;  %v19516_v13 = vld [vmem:[%s19863_s12 + $0x1e80] ss:$12 sps:$4 sm:$0xff]   ;;  %v19519_v57 = vld [vmem:[%s19863_s12 + $0x20a8] ss:$12 sps:$4 sm:$0xff]  }
 0x6af   : > { %17294 = vmatpush3.bf16.msra.mxu1 %v19481_v39  ;;  %v16981_v61 = vpop.f32.mrf.mxu0  ;;  %17273 = vmatprep.subr.bf16.mxu0 %v19482_v23  ;;  %v19517_v23 = vld [vmem:[%s19863_s12 + $0x2000] ss:$12 sps:$4 sm:$0xff]  }
 0x6b0   : > { %v17003_v8 = vpop.f32.mrf.mxu1  ;;  %17295 = vmatprep.subr.bf16.mxu1 %v19483_v29  ;;  %v22840_v46 = vadd.f32 %v17001_v47, %v13772_v11  ;;  %v19518_v47 = vld [vmem:[%s19863_s12 + $0x1f28] ss:$12 sps:$4 sm:$0xff]   ;;  %v19523_v61 = vld [vmem:[%s19863_s12 + $0x2090] ss:$12 sps:$4 sm:$0xff]  }
 0x6b1   : > { %v19520_v11 = vld [vmem:[%s19863_s12 + $0x1e68] ss:$12 sps:$4 sm:$0xff]   ;;  %v19524_v8 = vld [vmem:[%s19863_s12 + $0x1e50] ss:$12 sps:$4 sm:$0xff]  }
 0x6b2   : > { %17274 = vmatpush3.bf16.msra.mxu0 %v19484_v45  ;;  %v19521_v45 = vld [vmem:[%s19863_s12 + $0x1fe8] ss:$12 sps:$4 sm:$0xff]  }
 0x6b3   : > { %17296 = vmatpush3.bf16.msra.mxu1 %v19485_v60  ;;  %17275 = vmatprep.subr.bf16.mxu0 %v19486_v48  ;;  %v19522_v60 = vld [vmem:[%s19863_s12 + $0x1f10] ss:$12 sps:$4 sm:$0xff]  }
 0x6b4   : > { %17297 = vmatprep.subr.bf16.mxu1 %v19487_v55  ;;  %v19525_v48 = vld [vmem:[%s19863_s12 + $0x1fd0] ss:$12 sps:$4 sm:$0xff]   ;;  %v19526_v55 = vld [vmem:[%s19863_s12 + $0x1ef8] ss:$12 sps:$4 sm:$0xff]  }
 0x6b6   : > { %17276 = vmatpush3.bf16.msra.mxu0 %v19488_v14  ;;  %v19528_v14 = vld [vmem:[%s19863_s12 + $0x1e38] ss:$12 sps:$4 sm:$0xff]  }
 0x6b7   : > { %17298 = vmatpush3.bf16.msra.mxu1 %v19489_v16  ;;  %17277 = vmatprep.subr.bf16.mxu0 %v19490_v30  ;;  %v19529_v16 = vld [vmem:[%s19863_s12 + $0x1fb8] ss:$12 sps:$4 sm:$0xff]   ;;  %v19530_v30 = vld [vmem:[%s19863_s12 + $0x1ee0] ss:$12 sps:$4 sm:$0xff]  }
 0x6b8   : > { %17299 = vmatprep.subr.bf16.mxu1 %v19491_v7  ;;  %v19531_v7 = vld [vmem:[%s19863_s12 + $0x2060] ss:$12 sps:$4 sm:$0xff]  }
 0x6ba   : > { %17278 = vmatpush3.bf16.msra.mxu0 %v19492_v2  ;;  %v19532_v2 = vld [vmem:[%s19863_s12 + $0x1e20] ss:$12 sps:$4 sm:$0xff]  }
 0x6bb   : > { %17300 = vmatpush3.bf16.msra.mxu1 %v19493_v26  ;;  %17279 = vmatprep.subr.bf16.mxu0 %v19494_v31  ;;  %v19533_v26 = vld [vmem:[%s19863_s12 + $0x1fa0] ss:$12 sps:$4 sm:$0xff]   ;;  %v19534_v31 = vld [vmem:[%s19863_s12 + $0x1ec8] ss:$12 sps:$4 sm:$0xff]  }
 0x6bc   : > { %17301 = vmatprep.subr.bf16.mxu1 %v19495_v54  ;;  %v19535_v54 = vld [vmem:[%s19863_s12 + $0x2048] ss:$12 sps:$4 sm:$0xff]  }
 0x6be   : > { %17280 = vmatpush3.bf16.msra.mxu0 %v19496_v35  ;;  %v19536_v35 = vld [vmem:[%s19863_s12 + $0x1e08] ss:$12 sps:$4 sm:$0xff]  }
 0x6bf   : > { %17302 = vmatpush3.bf16.msra.mxu1 %v19497_v27  ;;  %17281 = vmatprep.subr.bf16.mxu0 %v19498_v52  ;;  %v19537_v27 = vld [vmem:[%s19863_s12 + $0x1f88] ss:$12 sps:$4 sm:$0xff]   ;;  %v19538_v52 = vld [vmem:[%s19863_s12 + $0x2270] ss:$12 sps:$4 sm:$0xff]  }
 0x6c0   : > { %17303 = vmatprep.subr.bf16.mxu1 %v19499_v15  ;;  %v19539_v15 = vld [vmem:[%s19863_s12 + $0x23f0] ss:$12 sps:$4 sm:$0xff]  }
 0x6c2   : > { %17282 = vmatpush3.bf16.msra.mxu0 %v19500_v41  ;;  %v19540_v41 = vld [vmem:[%s19863_s12 + $0x21b0] ss:$12 sps:$4 sm:$0xff]  }
 0x6c3   : > { %17304 = vmatpush3.bf16.msra.mxu1 %v19501_v21  ;;  %17283 = vmatprep.subr.bf16.mxu0 %v19502_v36  ;;  %v19541_v21 = vld [vmem:[%s19863_s12 + $0x2330] ss:$12 sps:$4 sm:$0xff]   ;;  %v19542_v36 = vld [vmem:[%s19863_s12 + $0x2258] ss:$12 sps:$4 sm:$0xff]  }
 0x6c4   : > { %17305 = vmatprep.subr.bf16.mxu1 %v19503_v3  ;;  %v19543_v3 = vld [vmem:[%s19863_s12 + $0x23d8] ss:$12 sps:$4 sm:$0xff]  }
 0x6c6   : > { %17284 = vmatpush3.bf16.msra.mxu0 %v19504_v20 }
 0x6c7   : > { %17306 = vmatpush3.bf16.msra.mxu1 %v19505_v6  ;;  %17313 = vmatprep.subr.bf16.mxu0 %v19506_v17  ;;  %v23199_v17 = vld [vmem:[#allocation17_spill] sm:$0xff] }
 0x6c8   : > { %17335 = vmatprep.subr.bf16.mxu1 %v19507_v22  ;;  %v23200_v22 = vld [vmem:[#allocation18_spill] sm:$0xff] }
 0x6c9   : > { %v17021_v44 = vpop.f32.mrf.mxu0  ;;  %14330 = vmatmul.mubr.bf16.vlgmr.msra.gmra.mxu0 %v21893_v49  ;;  %v23198_v49 = vld [vmem:[#allocation16_spill] sm:$0xff] }
 0x6ca   : > { %v17043_v53 = vpop.f32.mrf.mxu1  ;;  %14370 = vmatmul.mubr.bf16.vlgmr.msra.gmra.mxu1 %v23196_v59  ;;  %17314 = vmatpush3.bf16.msra.mxu0 %v19508_v25  ;;  %v19544_v25 = vld [vmem:[%s19863_s12 + $0x2198] ss:$12 sps:$4 sm:$0xff]  }
 0x6cb   : > { %17336 = vmatpush3.bf16.msra.mxu1 %v19509_v51  ;;  %v17022_v62 = vpop.f32.mrf.mxu0  ;;  %17315 = vmatprep.subr.bf16.mxu0 %v19510_v12  ;;  %v19545_v51 = vld [vmem:[%s19863_s12 + $0x2318] ss:$12 sps:$4 sm:$0xff]  }
 0x6cc   : > { %v17044_v9 = vpop.f32.mrf.mxu1  ;;  %17337 = vmatprep.subr.bf16.mxu1 %v19511_v58  ;;  %v17023_v63 = vadd.f32 %v17022_v62, %v17021_v44  ;;  %14409 = vmatprep.mubr.bf16.mxu0 %v23197_v56  ;;  %v19546_v44 = vld [vmem:[%s19863_s12 + $0x2240] ss:$12 sps:$4 sm:$0xff]  }
 0x6cd   : > { %v17045_v32 = vadd.f32 %v17044_v9, %v17043_v53  ;;  %14449 = vmatprep.mubr.bf16.mxu1 %v23198_v49  ;;  %v17024_v38 = vpop.f32.mrf.mxu0  ;;  %v19547_v53 = vld [vmem:[%s19863_s12 + $0x23c0] ss:$12 sps:$4 sm:$0xff]  }
 0x6ce   : > { %v17046_v39 = vpop.f32.mrf.mxu1  ;;  %v13852_v42 = vadd.f32 %v17023_v63, %v22840_v46  ;;  %17316 = vmatpush3.bf16.msra.mxu0 %v19512_v10  ;;  %v19527_v46 = vld [vmem:[%s19863_s12 + $0x2078] ss:$12 sps:$4 sm:$0xff]   ;;  %v19548_v63 = vld [vmem:[%s19863_s12 + $0x2180] ss:$12 sps:$4 sm:$0xff]   ;;  %v19550_v38 = vld [vmem:[%s19863_s12 + $0x2228] ss:$12 sps:$4 sm:$0xff]  }
 0x6cf   : > { %17338 = vmatpush3.bf16.msra.mxu1 %v19513_v50  ;;  %v17025_v29 = vpop.f32.mrf.mxu0  ;;  %17317 = vmatprep.subr.bf16.mxu0 %v19514_v37  ;;  %v23201_v50 = vld [vmem:[#allocation19_spill] sm:$0xff]  ;;  %v23202_v62 = vld [vmem:[#allocation20_spill] sm:$0xff] }
 0x6d0   : > { %v17047_v18 = vpop.f32.mrf.mxu1  ;;  %17339 = vmatprep.subr.bf16.mxu1 %v19515_v1  ;;  %v22879_v43 = vadd.f32 %v17045_v32, %v13852_v42  ;;  %v19549_v32 = vld [vmem:[%s19863_s12 + $0x2300] ss:$12 sps:$4 sm:$0xff]   ;;  %v19551_v39 = vld [vmem:[%s19863_s12 + $0x23a8] ss:$12 sps:$4 sm:$0xff]   ;;  %v19554_v29 = vld [vmem:[%s19863_s12 + $0x2210] ss:$12 sps:$4 sm:$0xff]  }
 0x6d1   : > { %v19555_v18 = vld [vmem:[%s19863_s12 + $0x2390] ss:$12 sps:$4 sm:$0xff]  }
 0x6d2   : > { %17318 = vmatpush3.bf16.msra.mxu0 %v19516_v13  ;;  %v19552_v13 = vld [vmem:[%s19863_s12 + $0x2168] ss:$12 sps:$4 sm:$0xff]  }
 0x6d3   : > { %17340 = vmatpush3.bf16.msra.mxu1 %v19517_v23  ;;  %17319 = vmatprep.subr.bf16.mxu0 %v19518_v47  ;;  %v19553_v23 = vld [vmem:[%s19863_s12 + $0x22e8] ss:$12 sps:$4 sm:$0xff]   ;;  %v19556_v47 = vld [vmem:[%s19863_s12 + $0x2150] ss:$12 sps:$4 sm:$0xff]  }
 0x6d4   : > { %17341 = vmatprep.subr.bf16.mxu1 %v19519_v57  ;;  %v19557_v57 = vld [vmem:[%s19863_s12 + $0x22d0] ss:$12 sps:$4 sm:$0xff]  }
 0x6d6   : > { %17320 = vmatpush3.bf16.msra.mxu0 %v19520_v11  ;;  %v19559_v11 = vld [vmem:[%s19863_s12 + $0x2378] ss:$12 sps:$4 sm:$0xff]  }
 0x6d7   : > { %17342 = vmatpush3.bf16.msra.mxu1 %v19521_v45  ;;  %17321 = vmatprep.subr.bf16.mxu0 %v19522_v60  ;;  %v19560_v45 = vld [vmem:[%s19863_s12 + $0x2138] ss:$12 sps:$4 sm:$0xff]  }
 0x6d8   : > { %17343 = vmatprep.subr.bf16.mxu1 %v19523_v61  ;;  %v19561_v60 = vld [vmem:[%s19863_s12 + $0x22b8] ss:$12 sps:$4 sm:$0xff]   ;;  %v19562_v61 = vld [vmem:[%s19863_s12 + $0x21e0] ss:$12 sps:$4 sm:$0xff]  }
 0x6da   : > { %17322 = vmatpush3.bf16.msra.mxu0 %v19524_v8  ;;  %v19563_v8 = vld [vmem:[%s19863_s12 + $0x2360] ss:$12 sps:$4 sm:$0xff]  }
 0x6db   : > { %17344 = vmatpush3.bf16.msra.mxu1 %v19525_v48  ;;  %17323 = vmatprep.subr.bf16.mxu0 %v19526_v55  ;;  %v19564_v48 = vld [vmem:[%s19863_s12 + $0x2120] ss:$12 sps:$4 sm:$0xff]  }
 0x6dc   : > { %17345 = vmatprep.subr.bf16.mxu1 %v19527_v46  ;;  %v19565_v55 = vld [vmem:[%s19863_s12 + $0x22a0] ss:$12 sps:$4 sm:$0xff]   ;;  %v19566_v46 = vld [vmem:[%s19863_s12 + $0x21c8] ss:$12 sps:$4 sm:$0xff]  }
 0x6de   : > { %17324 = vmatpush3.bf16.msra.mxu0 %v19528_v14  ;;  %v19567_v14 = vld [vmem:[%s19863_s12 + $0x2348] ss:$12 sps:$4 sm:$0xff]  }
 0x6df   : > { %17346 = vmatpush3.bf16.msra.mxu1 %v19529_v16  ;;  %17325 = vmatprep.subr.bf16.mxu0 %v19530_v30  ;;  %v19568_v16 = vld [vmem:[%s19863_s12 + $0x2108] ss:$12 sps:$4 sm:$0xff]  }
 0x6e0   : > { %17347 = vmatprep.subr.bf16.mxu1 %v19531_v7  ;;  %v19569_v30 = vld [vmem:[%s19863_s12 + $0x2288] ss:$12 sps:$4 sm:$0xff]   ;;  %v19570_v7 = vld [vmem:[%s19863_s12 + $0x2570] ss:$12 sps:$4 sm:$0xff]  }
 0x6e2   : > { %17326 = vmatpush3.bf16.msra.mxu0 %v19532_v2  ;;  %v19571_v2 = vld [vmem:[%s19863_s12 + $0x26f0] ss:$12 sps:$4 sm:$0xff]  }
 0x6e3   : > { %17348 = vmatpush3.bf16.msra.mxu1 %v19533_v26  ;;  %17327 = vmatprep.subr.bf16.mxu0 %v19534_v31  ;;  %v19572_v26 = vld [vmem:[%s19863_s12 + $0x24b0] ss:$12 sps:$4 sm:$0xff]  }
 0x6e4   : > { %17349 = vmatprep.subr.bf16.mxu1 %v19535_v54  ;;  %v19573_v31 = vld [vmem:[%s19863_s12 + $0x2630] ss:$12 sps:$4 sm:$0xff]   ;;  %v19574_v54 = vld [vmem:[%s19863_s12 + $0x2558] ss:$12 sps:$4 sm:$0xff]  }
 0x6e6   : > { %17328 = vmatpush3.bf16.msra.mxu0 %v19536_v35  ;;  %v19575_v35 = vld [vmem:[%s19863_s12 + $0x26d8] ss:$12 sps:$4 sm:$0xff]  }
 0x6e7   : > { %17350 = vmatpush3.bf16.msra.mxu1 %v19537_v27  ;;  %17357 = vmatprep.subr.bf16.mxu0 %v19538_v52 }
 0x6e8   : > { %17379 = vmatprep.subr.bf16.mxu1 %v19539_v15  ;;  %v23203_v15 = vld [vmem:[#allocation21_spill] sm:$0xff] }
 0x6e9   : > { %v17065_v20 = vpop.f32.mrf.mxu0  ;;  %14410 = vmatmul.mubr.bf16.vlgmr.msra.gmra.mxu0 %v23199_v17  ;;  %v19579_v17 = vld [vmem:[%s19863_s12 + $0x26c0] ss:$12 sps:$4 sm:$0xff]  }
 0x6ea   : > { %v17087_v6 = vpop.f32.mrf.mxu1  ;;  %14450 = vmatmul.mubr.bf16.vlgmr.msra.gmra.mxu1 %v23200_v22  ;;  %17358 = vmatpush3.bf16.msra.mxu0 %v19540_v41  ;;  %v23204_v41 = vld [vmem:[#allocation22_spill] sm:$0xff] }
 0x6eb   : > { %17380 = vmatpush3.bf16.msra.mxu1 %v19541_v21  ;;  %v17066_v12 = vpop.f32.mrf.mxu0  ;;  %17359 = vmatprep.subr.bf16.mxu0 %v19542_v36  ;;  %v19576_v21 = vld [vmem:[%s19863_s12 + $0x2498] ss:$12 sps:$4 sm:$0xff]  }
 0x6ec   : > { %v17088_v58 = vpop.f32.mrf.mxu1  ;;  %17381 = vmatprep.subr.bf16.mxu1 %v19543_v3  ;;  %v17067_v59 = vadd.f32 %v17066_v12, %v17065_v20  ;;  %14489 = vmatprep.mubr.bf16.mxu0 %v23201_v50  ;;  %v19577_v36 = vld [vmem:[%s19863_s12 + $0x2618] ss:$12 sps:$4 sm:$0xff]  }
 0x6ed   : > { %v17089_v10 = vadd.f32 %v17088_v58, %v17087_v6  ;;  %14529 = vmatprep.mubr.bf16.mxu1 %v23202_v62  ;;  %v17068_v9 = vpop.f32.mrf.mxu0  ;;  %v19578_v6 = vld [vmem:[%s19863_s12 + $0x2540] ss:$12 sps:$4 sm:$0xff]  }
 0x6ee   : > { %v17090_v37 = vpop.f32.mrf.mxu1  ;;  %v13932_v1 = vadd.f32 %v17067_v59, %v22879_v43  ;;  %17360 = vmatpush3.bf16.msra.mxu0 %v19544_v25  ;;  %v19558_v43 = vld [vmem:[%s19863_s12 + $0x21f8] ss:$12 sps:$4 sm:$0xff]   ;;  %v19580_v59 = vld [vmem:[%s19863_s12 + $0x2480] ss:$12 sps:$4 sm:$0xff]   ;;  %v19582_v9 = vld [vmem:[%s19863_s12 + $0x2528] ss:$12 sps:$4 sm:$0xff]  }
 0x6ef   : > { %17382 = vmatpush3.bf16.msra.mxu1 %v19545_v51  ;;  %v17069_v56 = vpop.f32.mrf.mxu0  ;;  %17361 = vmatprep.subr.bf16.mxu0 %v19546_v44  ;;  %v23205_v51 = vld [vmem:[#allocation23_spill] sm:$0xff]  ;;  %v23206_v12 = vld [vmem:[#allocation24_spill] sm:$0xff] }
 0x6f0   : > { %v17091_v49 = vpop.f32.mrf.mxu1  ;;  %17383 = vmatprep.subr.bf16.mxu1 %v19547_v53  ;;  %v22918_v42 = vadd.f32 %v17089_v10, %v13932_v1  ;;  %v19581_v10 = vld [vmem:[%s19863_s12 + $0x2600] ss:$12 sps:$4 sm:$0xff]   ;;  %v19583_v37 = vld [vmem:[%s19863_s12 + $0x26a8] ss:$12 sps:$4 sm:$0xff]   ;;  %v19586_v56 = vld [vmem:[%s19863_s12 + $0x2510] ss:$12 sps:$4 sm:$0xff]  }
 0x6f1   : > { %v19587_v49 = vld [vmem:[%s19863_s12 + $0x2690] ss:$12 sps:$4 sm:$0xff]  }
 0x6f2   : > { %17362 = vmatpush3.bf16.msra.mxu0 %v19548_v63  ;;  %v19584_v63 = vld [vmem:[%s19863_s12 + $0x2468] ss:$12 sps:$4 sm:$0xff]  }
 0x6f3   : > { %17384 = vmatpush3.bf16.msra.mxu1 %v19549_v32  ;;  %17363 = vmatprep.subr.bf16.mxu0 %v19550_v38  ;;  %v19585_v32 = vld [vmem:[%s19863_s12 + $0x25e8] ss:$12 sps:$4 sm:$0xff]   ;;  %v19588_v38 = vld [vmem:[%s19863_s12 + $0x2450] ss:$12 sps:$4 sm:$0xff]  }
 0x6f4   : > { %17385 = vmatprep.subr.bf16.mxu1 %v19551_v39  ;;  %v19589_v39 = vld [vmem:[%s19863_s12 + $0x25d0] ss:$12 sps:$4 sm:$0xff]  }
 0x6f6   : > { %17364 = vmatpush3.bf16.msra.mxu0 %v19552_v13  ;;  %v19591_v13 = vld [vmem:[%s19863_s12 + $0x2678] ss:$12 sps:$4 sm:$0xff]  }
 0x6f7   : > { %17386 = vmatpush3.bf16.msra.mxu1 %v19553_v23  ;;  %17365 = vmatprep.subr.bf16.mxu0 %v19554_v29  ;;  %v19592_v23 = vld [vmem:[%s19863_s12 + $0x2438] ss:$12 sps:$4 sm:$0xff]  }
 0x6f8   : > { %17387 = vmatprep.subr.bf16.mxu1 %v19555_v18  ;;  %v19593_v29 = vld [vmem:[%s19863_s12 + $0x25b8] ss:$12 sps:$4 sm:$0xff]   ;;  %v19594_v18 = vld [vmem:[%s19863_s12 + $0x24e0] ss:$12 sps:$4 sm:$0xff]  }
 0x6fa   : > { %17366 = vmatpush3.bf16.msra.mxu0 %v19556_v47  ;;  %v19595_v47 = vld [vmem:[%s19863_s12 + $0x2660] ss:$12 sps:$4 sm:$0xff]  }
 0x6fb   : > { %17388 = vmatpush3.bf16.msra.mxu1 %v19557_v57  ;;  %17367 = vmatprep.subr.bf16.mxu0 %v19558_v43  ;;  %v19596_v57 = vld [vmem:[%s19863_s12 + $0x2420] ss:$12 sps:$4 sm:$0xff]  }
 0x6fc   : > { %17389 = vmatprep.subr.bf16.mxu1 %v19559_v11  ;;  %v19597_v43 = vld [vmem:[%s19863_s12 + $0x25a0] ss:$12 sps:$4 sm:$0xff]   ;;  %v19598_v11 = vld [vmem:[%s19863_s12 + $0x24c8] ss:$12 sps:$4 sm:$0xff]  }
 0x6fe   : > { %17368 = vmatpush3.bf16.msra.mxu0 %v19560_v45  ;;  %v19599_v45 = vld [vmem:[%s19863_s12 + $0x2648] ss:$12 sps:$4 sm:$0xff]  }
 0x6ff   : > { %17390 = vmatpush3.bf16.msra.mxu1 %v19561_v60  ;;  %17369 = vmatprep.subr.bf16.mxu0 %v19562_v61  ;;  %v19600_v60 = vld [vmem:[%s19863_s12 + $0x2408] ss:$12 sps:$4 sm:$0xff]  }
 0x700   : > { %17391 = vmatprep.subr.bf16.mxu1 %v19563_v8  ;;  %v19601_v61 = vld [vmem:[%s19863_s12 + $0x2588] ss:$12 sps:$4 sm:$0xff]   ;;  %v19602_v8 = vld [vmem:[%s19863_s12 + $0x2870] ss:$12 sps:$4 sm:$0xff]  }
 0x702   : > { %17370 = vmatpush3.bf16.msra.mxu0 %v19564_v48  ;;  %v19603_v48 = vld [vmem:[%s19863_s12 + $0x29f0] ss:$12 sps:$4 sm:$0xff]  }
 0x703   : > { %17392 = vmatpush3.bf16.msra.mxu1 %v19565_v55  ;;  %17371 = vmatprep.subr.bf16.mxu0 %v19566_v46  ;;  %v19604_v55 = vld [vmem:[%s19863_s12 + $0x27b0] ss:$12 sps:$4 sm:$0xff]  }
 0x704   : > { %17393 = vmatprep.subr.bf16.mxu1 %v19567_v14  ;;  %v19605_v46 = vld [vmem:[%s19863_s12 + $0x2930] ss:$12 sps:$4 sm:$0xff]   ;;  %v19606_v14 = vld [vmem:[%s19863_s12 + $0x2858] ss:$12 sps:$4 sm:$0xff]  }
 0x706   : > { %17372 = vmatpush3.bf16.msra.mxu0 %v19568_v16  ;;  %v19607_v16 = vld [vmem:[%s19863_s12 + $0x29d8] ss:$12 sps:$4 sm:$0xff]  }
 0x707   : > { %17394 = vmatpush3.bf16.msra.mxu1 %v19569_v30  ;;  %17401 = vmatprep.subr.bf16.mxu0 %v19570_v7 }
 0x708   : > { %17423 = vmatprep.subr.bf16.mxu1 %v19571_v2  ;;  %v23207_v2 = vld [vmem:[#allocation25_spill] sm:$0xff] }
 0x709   : > { %v17109_v27 = vpop.f32.mrf.mxu0  ;;  %14490 = vmatmul.mubr.bf16.vlgmr.msra.gmra.mxu0 %v23203_v15  ;;  %v19611_v15 = vld [vmem:[%s19863_s12 + $0x29c0] ss:$12 sps:$4 sm:$0xff]  }
 0x70a   : > { %v17131_v52 = vpop.f32.mrf.mxu1  ;;  %14530 = vmatmul.mubr.bf16.vlgmr.msra.gmra.mxu1 %v23204_v41  ;;  %17402 = vmatpush3.bf16.msra.mxu0 %v19572_v26  ;;  %v23208_v26 = vld [vmem:[#allocation26_spill] sm:$0xff] }
 0x70b   : > { %17424 = vmatpush3.bf16.msra.mxu1 %v19573_v31  ;;  %v17110_v3 = vpop.f32.mrf.mxu0  ;;  %17403 = vmatprep.subr.bf16.mxu0 %v19574_v54  ;;  %v19608_v31 = vld [vmem:[%s19863_s12 + $0x2798] ss:$12 sps:$4 sm:$0xff]  }
 0x70c   : > { %v17132_v20 = vpop.f32.mrf.mxu1  ;;  %17425 = vmatprep.subr.bf16.mxu1 %v19575_v35  ;;  %v17111_v22 = vadd.f32 %v17110_v3, %v17109_v27  ;;  %14569 = vmatprep.mubr.bf16.mxu0 %v23205_v51  ;;  %v19609_v54 = vld [vmem:[%s19863_s12 + $0x2918] ss:$12 sps:$4 sm:$0xff]  }
 0x70d   : > { %v17133_v25 = vadd.f32 %v17132_v20, %v17131_v52  ;;  %14609 = vmatprep.mubr.bf16.mxu1 %v23206_v12  ;;  %v17112_v58 = vpop.f32.mrf.mxu0  ;;  %v19610_v52 = vld [vmem:[%s19863_s12 + $0x2840] ss:$12 sps:$4 sm:$0xff]  }
 0x70e   : > { %v17134_v44 = vpop.f32.mrf.mxu1  ;;  %v14012_v53 = vadd.f32 %v17111_v22, %v22918_v42  ;;  %17404 = vmatpush3.bf16.msra.mxu0 %v19576_v21  ;;  %v19590_v42 = vld [vmem:[%s19863_s12 + $0x24f8] ss:$12 sps:$4 sm:$0xff]   ;;  %v19612_v22 = vld [vmem:[%s19863_s12 + $0x2780] ss:$12 sps:$4 sm:$0xff]   ;;  %v19614_v58 = vld [vmem:[%s19863_s12 + $0x2828] ss:$12 sps:$4 sm:$0xff]  }
 0x70f   : > { %17426 = vmatpush3.bf16.msra.mxu1 %v19577_v36  ;;  %v17113_v50 = vpop.f32.mrf.mxu0  ;;  %17405 = vmatprep.subr.bf16.mxu0 %v19578_v6  ;;  %v23209_v36 = vld [vmem:[#allocation27_spill] sm:$0xff]  ;;  %v23210_v3 = vld [vmem:[#allocation28_spill] sm:$0xff] }
 0x710   : > { %v17135_v62 = vpop.f32.mrf.mxu1  ;;  %17427 = vmatprep.subr.bf16.mxu1 %v19579_v17  ;;  %v22957_v1 = vadd.f32 %v17133_v25, %v14012_v53  ;;  %v19613_v25 = vld [vmem:[%s19863_s12 + $0x2900] ss:$12 sps:$4 sm:$0xff]   ;;  %v19615_v44 = vld [vmem:[%s19863_s12 + $0x29a8] ss:$12 sps:$4 sm:$0xff]   ;;  %v19618_v50 = vld [vmem:[%s19863_s12 + $0x2810] ss:$12 sps:$4 sm:$0xff]  }
 0x711   : > { %v19619_v62 = vld [vmem:[%s19863_s12 + $0x2990] ss:$12 sps:$4 sm:$0xff]  }
 0x712   : > { %17406 = vmatpush3.bf16.msra.mxu0 %v19580_v59  ;;  %v19616_v59 = vld [vmem:[%s19863_s12 + $0x2768] ss:$12 sps:$4 sm:$0xff]  }
 0x713   : > { %17428 = vmatpush3.bf16.msra.mxu1 %v19581_v10  ;;  %17407 = vmatprep.subr.bf16.mxu0 %v19582_v9  ;;  %v19617_v10 = vld [vmem:[%s19863_s12 + $0x28e8] ss:$12 sps:$4 sm:$0xff]   ;;  %v19620_v9 = vld [vmem:[%s19863_s12 + $0x2750] ss:$12 sps:$4 sm:$0xff]  }
 0x714   : > { %17429 = vmatprep.subr.bf16.mxu1 %v19583_v37  ;;  %v19621_v37 = vld [vmem:[%s19863_s12 + $0x28d0] ss:$12 sps:$4 sm:$0xff]  }
 0x716   : > { %17408 = vmatpush3.bf16.msra.mxu0 %v19584_v63  ;;  %v19623_v63 = vld [vmem:[%s19863_s12 + $0x2978] ss:$12 sps:$4 sm:$0xff]  }
 0x717   : > { %17430 = vmatpush3.bf16.msra.mxu1 %v19585_v32  ;;  %17409 = vmatprep.subr.bf16.mxu0 %v19586_v56  ;;  %v19624_v32 = vld [vmem:[%s19863_s12 + $0x2738] ss:$12 sps:$4 sm:$0xff]  }
 0x718   : > { %17431 = vmatprep.subr.bf16.mxu1 %v19587_v49  ;;  %v19625_v56 = vld [vmem:[%s19863_s12 + $0x28b8] ss:$12 sps:$4 sm:$0xff]   ;;  %v19626_v49 = vld [vmem:[%s19863_s12 + $0x27e0] ss:$12 sps:$4 sm:$0xff]  }
 0x71a   : > { %17410 = vmatpush3.bf16.msra.mxu0 %v19588_v38  ;;  %v19627_v38 = vld [vmem:[%s19863_s12 + $0x2960] ss:$12 sps:$4 sm:$0xff]  }
 0x71b   : > { %17432 = vmatpush3.bf16.msra.mxu1 %v19589_v39  ;;  %17411 = vmatprep.subr.bf16.mxu0 %v19590_v42  ;;  %v19628_v39 = vld [vmem:[%s19863_s12 + $0x2720] ss:$12 sps:$4 sm:$0xff]  }
 0x71c   : > { %17433 = vmatprep.subr.bf16.mxu1 %v19591_v13  ;;  %v19629_v42 = vld [vmem:[%s19863_s12 + $0x28a0] ss:$12 sps:$4 sm:$0xff]   ;;  %v19630_v13 = vld [vmem:[%s19863_s12 + $0x27c8] ss:$12 sps:$4 sm:$0xff]  }
 0x71e   : > { %17412 = vmatpush3.bf16.msra.mxu0 %v19592_v23  ;;  %v19631_v23 = vld [vmem:[%s19863_s12 + $0x2948] ss:$12 sps:$4 sm:$0xff]  }
 0x71f   : > { %17434 = vmatpush3.bf16.msra.mxu1 %v19593_v29  ;;  %17413 = vmatprep.subr.bf16.mxu0 %v19594_v18  ;;  %v19632_v29 = vld [vmem:[%s19863_s12 + $0x2708] ss:$12 sps:$4 sm:$0xff]  }
 0x720   : > { %17435 = vmatprep.subr.bf16.mxu1 %v19595_v47  ;;  %v19633_v18 = vld [vmem:[%s19863_s12 + $0x2888] ss:$12 sps:$4 sm:$0xff]   ;;  %v19634_v47 = vld [vmem:[%s19863_s12 + $0x2b70] ss:$12 sps:$4 sm:$0xff]  }
 0x722   : > { %17414 = vmatpush3.bf16.msra.mxu0 %v19596_v57  ;;  %v19635_v57 = vld [vmem:[%s19863_s12 + $0x2cf0] ss:$12 sps:$4 sm:$0xff]  }
 0x723   : > { %17436 = vmatpush3.bf16.msra.mxu1 %v19597_v43  ;;  %17415 = vmatprep.subr.bf16.mxu0 %v19598_v11  ;;  %v19636_v43 = vld [vmem:[%s19863_s12 + $0x2ab0] ss:$12 sps:$4 sm:$0xff]  }
 0x724   : > { %17437 = vmatprep.subr.bf16.mxu1 %v19599_v45  ;;  %v19637_v11 = vld [vmem:[%s19863_s12 + $0x2c30] ss:$12 sps:$4 sm:$0xff]   ;;  %v19638_v45 = vld [vmem:[%s19863_s12 + $0x2b58] ss:$12 sps:$4 sm:$0xff]  }
 0x726   : > { %17416 = vmatpush3.bf16.msra.mxu0 %v19600_v60  ;;  %v19639_v60 = vld [vmem:[%s19863_s12 + $0x2cd8] ss:$12 sps:$4 sm:$0xff]  }
 0x727   : > { %17438 = vmatpush3.bf16.msra.mxu1 %v19601_v61  ;;  %17445 = vmatprep.subr.bf16.mxu0 %v19602_v8 }
 0x728   : > { %17467 = vmatprep.subr.bf16.mxu1 %v19603_v48  ;;  %v23211_v48 = vld [vmem:[#allocation29_spill] sm:$0xff] }
 0x729   : > { %v17153_v30 = vpop.f32.mrf.mxu0  ;;  %14570 = vmatmul.mubr.bf16.vlgmr.msra.gmra.mxu0 %v23207_v2 }
 0x72a   : > { %v17175_v7 = vpop.f32.mrf.mxu1  ;;  %14610 = vmatmul.mubr.bf16.vlgmr.msra.gmra.mxu1 %v23208_v26  ;;  %17446 = vmatpush3.bf16.msra.mxu0 %v19604_v55  ;;  %v19640_v55 = vld [vmem:[%s19863_s12 + $0x2a98] ss:$12 sps:$4 sm:$0xff]  }
 0x72b   : > { %17468 = vmatpush3.bf16.msra.mxu1 %v19605_v46  ;;  %v17154_v35 = vpop.f32.mrf.mxu0  ;;  %17447 = vmatprep.subr.bf16.mxu0 %v19606_v14  ;;  %v19641_v46 = vld [vmem:[%s19863_s12 + $0x2c18] ss:$12 sps:$4 sm:$0xff]  }
 0x72c   : > { %v17176_v27 = vpop.f32.mrf.mxu1  ;;  %17469 = vmatprep.subr.bf16.mxu1 %v19607_v16  ;;  %v17155_v41 = vadd.f32 %v17154_v35, %v17153_v30  ;;  %14649 = vmatprep.mubr.bf16.mxu0 %v23209_v36  ;;  %v19642_v30 = vld [vmem:[%s19863_s12 + $0x2b40] ss:$12 sps:$4 sm:$0xff]   ;;  %v19646_v36 = vld [vmem:[%s19863_s12 + $0x2b28] ss:$12 sps:$4 sm:$0xff]  }
 0x72d   : > { %v17177_v21 = vadd.f32 %v17176_v27, %v17175_v7  ;;  %14689 = vmatprep.mubr.bf16.mxu1 %v23210_v3  ;;  %v17156_v20 = vpop.f32.mrf.mxu0  ;;  %v19643_v7 = vld [vmem:[%s19863_s12 + $0x2cc0] ss:$12 sps:$4 sm:$0xff]   ;;  %v19647_v3 = vld [vmem:[%s19863_s12 + $0x2ca8] ss:$12 sps:$4 sm:$0xff]  }
 0x72e   : > { %v17178_v6 = vpop.f32.mrf.mxu1  ;;  %v14092_v17 = vadd.f32 %v17155_v41, %v22957_v1  ;;  %17448 = vmatpush3.bf16.msra.mxu0 %v19608_v31  ;;  %v19622_v1 = vld [vmem:[%s19863_s12 + $0x27f8] ss:$12 sps:$4 sm:$0xff]  }
 0x72f   : > { %17470 = vmatpush3.bf16.msra.mxu1 %v19609_v54  ;;  %v17157_v51 = vpop.f32.mrf.mxu0  ;;  %17449 = vmatprep.subr.bf16.mxu0 %v19610_v52  ;;  %v23212_v31 = vld [vmem:[#allocation30_spill] sm:$0xff]  ;;  %v23213_v54 = vld [vmem:[#allocation31_spill] sm:$0xff] }
 0x730   : > { %v17179_v12 = vpop.f32.mrf.mxu1  ;;  %17471 = vmatprep.subr.bf16.mxu1 %v19611_v15  ;;  %v22996_v53 = vadd.f32 %v17177_v21, %v14092_v17  ;;  %v19644_v52 = vld [vmem:[%s19863_s12 + $0x2a80] ss:$12 sps:$4 sm:$0xff]   ;;  %v19648_v6 = vld [vmem:[%s19863_s12 + $0x2a68] ss:$12 sps:$4 sm:$0xff]   ;;  %v19652_v51 = vld [vmem:[%s19863_s12 + $0x2a50] ss:$12 sps:$4 sm:$0xff]  }
 0x731   : > { %v19645_v15 = vld [vmem:[%s19863_s12 + $0x2c00] ss:$12 sps:$4 sm:$0xff]   ;;  %v19649_v17 = vld [vmem:[%s19863_s12 + $0x2be8] ss:$12 sps:$4 sm:$0xff]   ;;  %v19653_v12 = vld [vmem:[%s19863_s12 + $0x2bd0] ss:$12 sps:$4 sm:$0xff]  }
 0x732   : > { %17450 = vmatpush3.bf16.msra.mxu0 %v19612_v22  ;;  %v19650_v22 = vld [vmem:[%s19863_s12 + $0x2b10] ss:$12 sps:$4 sm:$0xff]  }
 0x733   : > { %17472 = vmatpush3.bf16.msra.mxu1 %v19613_v25  ;;  %17451 = vmatprep.subr.bf16.mxu0 %v19614_v58  ;;  %v19651_v25 = vld [vmem:[%s19863_s12 + $0x2c90] ss:$12 sps:$4 sm:$0xff]   ;;  %v19654_v58 = vld [vmem:[%s19863_s12 + $0x2af8] ss:$12 sps:$4 sm:$0xff]  }
 0x734   : > { %17473 = vmatprep.subr.bf16.mxu1 %v19615_v44  ;;  %v19655_v44 = vld [vmem:[%s19863_s12 + $0x2c78] ss:$12 sps:$4 sm:$0xff]  }
 0x736   : > { %17452 = vmatpush3.bf16.msra.mxu0 %v19616_v59  ;;  %v19657_v59 = vld [vmem:[%s19863_s12 + $0x2bb8] ss:$12 sps:$4 sm:$0xff]  }
 0x737   : > { %17474 = vmatpush3.bf16.msra.mxu1 %v19617_v10  ;;  %17453 = vmatprep.subr.bf16.mxu0 %v19618_v50  ;;  %v19658_v10 = vld [vmem:[%s19863_s12 + $0x2ae0] ss:$12 sps:$4 sm:$0xff]  }
 0x738   : > { %17475 = vmatprep.subr.bf16.mxu1 %v19619_v62  ;;  %v19659_v50 = vld [vmem:[%s19863_s12 + $0x2c60] ss:$12 sps:$4 sm:$0xff]  }
 0x739   : > { %v19660_v62 = vld [vmem:[%s19863_s12 + $0x2a20] ss:$12 sps:$4 sm:$0xff]  }
 0x73a   : > { %17454 = vmatpush3.bf16.msra.mxu0 %v19620_v9  ;;  %v19661_v9 = vld [vmem:[%s19863_s12 + $0x2ba0] ss:$12 sps:$4 sm:$0xff]  }
 0x73b   : > { %17476 = vmatpush3.bf16.msra.mxu1 %v19621_v37  ;;  %17455 = vmatprep.subr.bf16.mxu0 %v19622_v1  ;;  %v19662_v37 = vld [vmem:[%s19863_s12 + $0x2ac8] ss:$12 sps:$4 sm:$0xff]  }
 0x73c   : > { %17477 = vmatprep.subr.bf16.mxu1 %v19623_v63  ;;  %v19663_v1 = vld [vmem:[%s19863_s12 + $0x2c48] ss:$12 sps:$4 sm:$0xff]  }
 0x73d   : > { %v19664_v63 = vld [vmem:[%s19863_s12 + $0x2a08] ss:$12 sps:$4 sm:$0xff]  }
 0x73e   : > { %17456 = vmatpush3.bf16.msra.mxu0 %v19624_v32  ;;  %v19665_v32 = vld [vmem:[%s19863_s12 + $0x2b88] ss:$12 sps:$4 sm:$0xff]  }
 0x73f   : > { %17478 = vmatpush3.bf16.msra.mxu1 %v19625_v56  ;;  %17457 = vmatprep.subr.bf16.mxu0 %v19626_v49  ;;  %v19666_v56 = vld [vmem:[%s19863_s12 + $0x2e70] ss:$12 sps:$4 sm:$0xff]  }
 0x740   : > { %17479 = vmatprep.subr.bf16.mxu1 %v19627_v38  ;;  %v19667_v49 = vld [vmem:[%s19863_s12 + $0x2ff0] ss:$12 sps:$4 sm:$0xff]  }
 0x741   : > { %v19668_v38 = vld [vmem:[%s19863_s12 + $0x2db0] ss:$12 sps:$4 sm:$0xff]  }
 0x742   : > { %17458 = vmatpush3.bf16.msra.mxu0 %v19628_v39  ;;  %v19669_v39 = vld [vmem:[%s19863_s12 + $0x2f30] ss:$12 sps:$4 sm:$0xff]  }
 0x743   : > { %17480 = vmatpush3.bf16.msra.mxu1 %v19629_v42  ;;  %17459 = vmatprep.subr.bf16.mxu0 %v19630_v13  ;;  %v19670_v42 = vld [vmem:[%s19863_s12 + $0x2e58] ss:$12 sps:$4 sm:$0xff]  }
 0x744   : > { %17481 = vmatprep.subr.bf16.mxu1 %v19631_v23  ;;  %v19671_v13 = vld [vmem:[%s19863_s12 + $0x2fd8] ss:$12 sps:$4 sm:$0xff]  }
 0x746   : > { %17460 = vmatpush3.bf16.msra.mxu0 %v19632_v29 }
 0x747   : > { %17482 = vmatpush3.bf16.msra.mxu1 %v19633_v18  ;;  %17489 = vmatprep.subr.bf16.mxu0 %v19634_v47  ;;  %v23214_v18 = vld [vmem:[#allocation32_spill] sm:$0xff] }
 0x748   : > { %17511 = vmatprep.subr.bf16.mxu1 %v19635_v57  ;;  %v19672_v47 = vld [vmem:[%s19863_s12 + $0x2d98] ss:$12 sps:$4 sm:$0xff]  }
 0x749   : > { %v17197_v61 = vpop.f32.mrf.mxu0  ;;  %14650 = vmatmul.mubr.bf16.vlgmr.msra.gmra.mxu0 %v23211_v48  ;;  %v19673_v57 = vld [vmem:[%s19863_s12 + $0x2f18] ss:$12 sps:$4 sm:$0xff]  }
 0x74a   : > { %v17219_v8 = vpop.f32.mrf.mxu1  ;;  %14690 = vmatmul.mubr.bf16.vlgmr.msra.gmra.mxu1 %v22285_v28  ;;  %17490 = vmatpush3.bf16.msra.mxu0 %v19636_v43 }
 0x74b   : > { %17512 = vmatpush3.bf16.msra.mxu1 %v19637_v11  ;;  %v17198_v14 = vpop.f32.mrf.mxu0  ;;  %17491 = vmatprep.subr.bf16.mxu0 %v19638_v45  ;;  %v19674_v45 = vld [vmem:[%s19863_s12 + $0x2e40] ss:$12 sps:$4 sm:$0xff]  }
 0x74c   : > { %v17220_v16 = vpop.f32.mrf.mxu1  ;;  %17513 = vmatprep.subr.bf16.mxu1 %v19639_v60  ;;  %v17199_v2 = vadd.f32 %v17198_v14, %v17197_v61  ;;  %14729 = vmatprep.mubr.bf16.mxu0 %v23212_v31  ;;  %v19675_v60 = vld [vmem:[%s19863_s12 + $0x2fc0] ss:$12 sps:$4 sm:$0xff]   ;;  %v19682_v31 = vld [vmem:[%s19863_s12 + $0x2e10] ss:$12 sps:$4 sm:$0xff]  }
 0x74d   : > { %v17221_v26 = vadd.f32 %v17220_v16, %v17219_v8  ;;  %14769 = vmatprep.mubr.bf16.mxu1 %v23213_v54  ;;  %v17200_v28 = vpop.f32.mrf.mxu0  ;;  %v19677_v14 = vld [vmem:[%s19863_s12 + $0x2f00] ss:$12 sps:$4 sm:$0xff]   ;;  %v19683_v54 = vld [vmem:[%s19863_s12 + $0x2f90] ss:$12 sps:$4 sm:$0xff]  }
 0x74e   : > { %v17222_v35 = vpop.f32.mrf.mxu1  ;;  %v14172_v27 = vadd.f32 %v17199_v2, %v22996_v53  ;;  %17492 = vmatpush3.bf16.msra.mxu0 %v19640_v55  ;;  %v19656_v53 = vld [vmem:[%s19863_s12 + $0x2a38] ss:$12 sps:$4 sm:$0xff]   ;;  %v19680_v2 = vld [vmem:[%s19863_s12 + $0x2d68] ss:$12 sps:$4 sm:$0xff]   ;;  %v19684_v28 = vld [vmem:[%s19863_s12 + $0x2d50] ss:$12 sps:$4 sm:$0xff]  }
 0x74f   : > { %17514 = vmatpush3.bf16.msra.mxu1 %v19641_v46  ;;  %v17201_v41 = vpop.f32.mrf.mxu0  ;;  %17493 = vmatprep.subr.bf16.mxu0 %v19642_v30  ;;  %v19676_v46 = vld [vmem:[%s19863_s12 + $0x2d80] ss:$12 sps:$4 sm:$0xff]   ;;  %v19685_v35 = vld [vmem:[%s19863_s12 + $0x2ed0] ss:$12 sps:$4 sm:$0xff]  }
 0x750   : > { %v17223_v21 = vpop.f32.mrf.mxu1  ;;  %17515 = vmatprep.subr.bf16.mxu1 %v19643_v7  ;;  %v23035_v20 = vadd.f32 %v17221_v26, %v14172_v27  ;;  %v19681_v26 = vld [vmem:[%s19863_s12 + $0x2ee8] ss:$12 sps:$4 sm:$0xff]   ;;  %v19686_v27 = vld [vmem:[%s19863_s12 + $0x2df8] ss:$12 sps:$4 sm:$0xff]  }
 0x751   : > { %v19689_v41 = vld [vmem:[%s19863_s12 + $0x2eb8] ss:$12 sps:$4 sm:$0xff]   ;;  %v19690_v21 = vld [vmem:[%s19863_s12 + $0x2de0] ss:$12 sps:$4 sm:$0xff]  }
 0x752   : > { %17494 = vmatpush3.bf16.msra.mxu0 %v19644_v52  ;;  %v19687_v52 = vld [vmem:[%s19863_s12 + $0x2f78] ss:$12 sps:$4 sm:$0xff]  }
 0x753   : > { %17516 = vmatpush3.bf16.msra.mxu1 %v19645_v15  ;;  %17495 = vmatprep.subr.bf16.mxu0 %v19646_v36  ;;  %v19688_v15 = vld [vmem:[%s19863_s12 + $0x2d38] ss:$12 sps:$4 sm:$0xff]   ;;  %v19691_v36 = vld [vmem:[%s19863_s12 + $0x2f60] ss:$12 sps:$4 sm:$0xff]  }
 0x754   : > { %17517 = vmatprep.subr.bf16.mxu1 %v19647_v3  ;;  %v19692_v3 = vld [vmem:[%s19863_s12 + $0x2d20] ss:$12 sps:$4 sm:$0xff]  }
 0x756   : > { %17496 = vmatpush3.bf16.msra.mxu0 %v19648_v6  ;;  %v19694_v6 = vld [vmem:[%s19863_s12 + $0x2dc8] ss:$12 sps:$4 sm:$0xff]  }
 0x757   : > { %17518 = vmatpush3.bf16.msra.mxu1 %v19649_v17  ;;  %17497 = vmatprep.subr.bf16.mxu0 %v19650_v22  ;;  %v19695_v17 = vld [vmem:[%s19863_s12 + $0x2f48] ss:$12 sps:$4 sm:$0xff]  }
 0x758   : > { %17519 = vmatprep.subr.bf16.mxu1 %v19651_v25  ;;  %v19696_v22 = vld [vmem:[%s19863_s12 + $0x2d08] ss:$12 sps:$4 sm:$0xff]  }
 0x759   : > { %v19697_v25 = vld [vmem:[%s19863_s12 + $0x2e88] ss:$12 sps:$4 sm:$0xff]  }
 0x75a   : > { %17498 = vmatpush3.bf16.msra.mxu0 %v19652_v51 }
 0x75b   : > { %17520 = vmatpush3.bf16.msra.mxu1 %v19653_v12  ;;  %17499 = vmatprep.subr.bf16.mxu0 %v19654_v58 }
 0x75c   : > { %17521 = vmatprep.subr.bf16.mxu1 %v19655_v44 }
 0x75e   : > { %17500 = vmatpush3.bf16.msra.mxu0 %v19656_v53 }
 0x75f   : > { %17522 = vmatpush3.bf16.msra.mxu1 %v19657_v59  ;;  %17501 = vmatprep.subr.bf16.mxu0 %v19658_v10 }
 0x760   : > { %17523 = vmatprep.subr.bf16.mxu1 %v19659_v50 }
 0x762   : > { %17502 = vmatpush3.bf16.msra.mxu0 %v19660_v62 }
 0x763   : > { %17524 = vmatpush3.bf16.msra.mxu1 %v19661_v9  ;;  %17503 = vmatprep.subr.bf16.mxu0 %v19662_v37 }
 0x764   : > { %17525 = vmatprep.subr.bf16.mxu1 %v19663_v1 }
 0x766   : > { %17504 = vmatpush3.bf16.msra.mxu0 %v19664_v63 }
 0x767   : > { %17526 = vmatpush3.bf16.msra.mxu1 %v19665_v32  ;;  %17533 = vmatprep.subr.bf16.mxu0 %v19666_v56 }
 0x768   : > { %17555 = vmatprep.subr.bf16.mxu1 %v19667_v49 }
 0x769   : > { %v17241_v23 = vpop.f32.mrf.mxu0  ;;  %14730 = vmatmul.mubr.bf16.vlgmr.msra.gmra.mxu0 %v23214_v18 }
 0x76a   : > { %v17263_v29 = vpop.f32.mrf.mxu1  ;;  %14770 = vmatmul.mubr.bf16.vlgmr.msra.gmra.mxu1 %v22382_v5  ;;  %17534 = vmatpush3.bf16.msra.mxu0 %v19668_v38 }
 0x76b   : > { %17556 = vmatpush3.bf16.msra.mxu1 %v19669_v39  ;;  %v17242_v43 = vpop.f32.mrf.mxu0  ;;  %17535 = vmatprep.subr.bf16.mxu0 %v19670_v42 }
 0x76c   : > { %v17264_v11 = vpop.f32.mrf.mxu1  ;;  %17557 = vmatprep.subr.bf16.mxu1 %v19671_v13  ;;  %v17243_v61 = vadd.f32 %v17242_v43, %v17241_v23  ;;  %14809 = vmatprep.mubr.bf16.mxu0 %v22388_v0  ;;  %v19678_v0 = vld [vmem:[%s19863_s12 + $0x2e28] ss:$12 sps:$4 sm:$0xff]  }
 0x76d   : > { %v17265_v8 = vadd.f32 %v17264_v11, %v17263_v29  ;;  %14849 = vmatprep.mubr.bf16.mxu1 %v22390_v19  ;;  %v17244_v5 = vpop.f32.mrf.mxu0  ;;  %v19679_v19 = vld [vmem:[%s19863_s12 + $0x2fa8] ss:$12 sps:$4 sm:$0xff]  }
 0x76e   : > { %v17266_v48 = vpop.f32.mrf.mxu1  ;;  %v14252_v55 = vadd.f32 %v17243_v61, %v23035_v20  ;;  %17536 = vmatpush3.bf16.msra.mxu0 %v19672_v47  ;;  %v19693_v20 = vld [vmem:[%s19863_s12 + $0x2ea0] ss:$12 sps:$4 sm:$0xff]  }
 0x76f   : > { %17558 = vmatpush3.bf16.msra.mxu1 %v19673_v57  ;;  %v17245_v16 = vpop.f32.mrf.mxu0  ;;  %17537 = vmatprep.subr.bf16.mxu0 %v19674_v45 }
 0x770   : > { %v17267_v30 = vpop.f32.mrf.mxu1  ;;  %17559 = vmatprep.subr.bf16.mxu1 %v19675_v60  ;;  %v14292_v7 = vadd.f32 %v17265_v8, %v14252_v55 }
 0x772   : > { %17538 = vmatpush3.bf16.msra.mxu0 %v19676_v46 }
 0x773   : > { %17560 = vmatpush3.bf16.msra.mxu1 %v19677_v14  ;;  %17539 = vmatprep.subr.bf16.mxu0 %v19678_v0 }
 0x774   : > { %17561 = vmatprep.subr.bf16.mxu1 %v19679_v19 }
 0x776   : > { %17540 = vmatpush3.bf16.msra.mxu0 %v19680_v2 }
 0x777   : > { %17562 = vmatpush3.bf16.msra.mxu1 %v19681_v26  ;;  %17541 = vmatprep.subr.bf16.mxu0 %v19682_v31 }
 0x778   : > { %17563 = vmatprep.subr.bf16.mxu1 %v19683_v54 }
 0x77a   : > { %17542 = vmatpush3.bf16.msra.mxu0 %v19684_v28 }
 0x77b   : > { %17564 = vmatpush3.bf16.msra.mxu1 %v19685_v35  ;;  %17543 = vmatprep.subr.bf16.mxu0 %v19686_v27 }
 0x77c   : > { %17565 = vmatprep.subr.bf16.mxu1 %v19687_v52 }
 0x77e   : > { %17544 = vmatpush3.bf16.msra.mxu0 %v19688_v15 }
 0x77f   : > { %17566 = vmatpush3.bf16.msra.mxu1 %v19689_v41  ;;  %17545 = vmatprep.subr.bf16.mxu0 %v19690_v21 }
 0x780   : > { %17567 = vmatprep.subr.bf16.mxu1 %v19691_v36 }
 0x782   : > { %17546 = vmatpush3.bf16.msra.mxu0 %v19692_v3 }
 0x783   : > { %17568 = vmatpush3.bf16.msra.mxu1 %v19693_v20  ;;  %17547 = vmatprep.subr.bf16.mxu0 %v19694_v6 }
 0x784   : > { %17569 = vmatprep.subr.bf16.mxu1 %v19695_v17 }
 0x786   : > { %17548 = vmatpush3.bf16.msra.mxu0 %v19696_v22 }
 0x787   : > { %17570 = vmatpush3.bf16.msra.mxu1 %v19697_v25 }
 0x789   : > { %v17285_v51 = vpop.f32.mrf.mxu0  ;;  %14810 = vmatmul.mubr.bf16.vlgmr.msra.gmra.mxu0 %v22464_v33 }
 0x78a   : > { %v17307_v12 = vpop.f32.mrf.mxu1  ;;  %14850 = vmatmul.mubr.bf16.vlgmr.msra.gmra.mxu1 %v22468_v34 }
 0x78b   : > { %v17286_v58 = vpop.f32.mrf.mxu0 }
 0x78c   : > { %v17308_v44 = vpop.f32.mrf.mxu1  ;;  %v17287_v53 = vadd.f32 %v17286_v58, %v17285_v51 }
 0x78d   : > { %v17309_v59 = vadd.f32 %v17308_v44, %v17307_v12  ;;  %v17288_v10 = vpop.f32.mrf.mxu0 }
 0x78e   : > { %v17310_v50 = vpop.f32.mrf.mxu1  ;;  %v14332_v62 = vadd.f32 %v17287_v53, %v14292_v7 }
 0x78f   : > { %v17289_v9 = vpop.f32.mrf.mxu0 }
 0x790   : > { %v17311_v37 = vpop.f32.mrf.mxu1  ;;  %v14372_v1 = vadd.f32 %v17309_v59, %v14332_v62 }
 0x7a9   : > { %v17329_v63 = vpop.f32.mrf.mxu0 }
 0x7aa   : > { %v17351_v32 = vpop.f32.mrf.mxu1 }
 0x7ab   : > { %v17330_v56 = vpop.f32.mrf.mxu0 }
 0x7ac   : > { %v17352_v49 = vpop.f32.mrf.mxu1  ;;  %v17331_v38 = vadd.f32 %v17330_v56, %v17329_v63 }
 0x7ad   : > { %v17353_v39 = vadd.f32 %v17352_v49, %v17351_v32  ;;  %v17332_v42 = vpop.f32.mrf.mxu0 }
 0x7ae   : > { %v17354_v33 = vpop.f32.mrf.mxu1  ;;  %v14412_v13 = vadd.f32 %v17331_v38, %v14372_v1 }
 0x7af   : > { %v17333_v34 = vpop.f32.mrf.mxu0 }
 0x7b0   : > { %v17355_v23 = vpop.f32.mrf.mxu1  ;;  %v14452_v29 = vadd.f32 %v17353_v39, %v14412_v13 }
 0x7c9   : > { %v17373_v18 = vpop.f32.mrf.mxu0 }
 0x7ca   : > { %v17395_v47 = vpop.f32.mrf.mxu1 }
 0x7cb   : > { %v17374_v57 = vpop.f32.mrf.mxu0 }
 0x7cc   : > { %v17396_v43 = vpop.f32.mrf.mxu1  ;;  %v17375_v11 = vadd.f32 %v17374_v57, %v17373_v18  ;;  %v2024_v57 = vld [vmem:[#allocation8] sm:$0x3f] }
 0x7cd   : > { %v17397_v45 = vadd.f32 %v17396_v43, %v17395_v47  ;;  %v17376_v60 = vpop.f32.mrf.mxu0 }
 0x7ce   : > { %v17398_v61 = vpop.f32.mrf.mxu1  ;;  %v14492_v8 = vadd.f32 %v17375_v11, %v14452_v29  ;;  %v23215_v29 = vld [vmem:[#allocation13_spill] sm:$0xff] }
 0x7cf   : > { %v17377_v5 = vpop.f32.mrf.mxu0  ;;  %v14867_v18 = vrot.slane %v14860_v24, %v23215_v29 }
 0x7d0   : > { %v17399_v48 = vpop.f32.mrf.mxu1  ;;  %v14532_v55 = vadd.f32 %v17397_v45, %v14492_v8 }
 0x7e9   : > { %v17417_v46 = vpop.f32.mrf.mxu0 }
 0x7ea   : > { %v17439_v14 = vpop.f32.mrf.mxu1 }
 0x7eb   : > { %v17418_v16 = vpop.f32.mrf.mxu0 }
 0x7ec   : > { %v17440_v30 = vpop.f32.mrf.mxu1  ;;  %v17419_v0 = vadd.f32 %v17418_v16, %v17417_v46 }
 0x7ed   : > { %v17441_v19 = vadd.f32 %v17440_v30, %v17439_v14  ;;  %v17420_v7 = vpop.f32.mrf.mxu0 }
 0x7ee   : > { %v17442_v2 = vpop.f32.mrf.mxu1  ;;  %v14572_v26 = vadd.f32 %v17419_v0, %v14532_v55 }
 0x7ef   : > { %v17421_v31 = vpop.f32.mrf.mxu0 }
 0x7f0   : > { %v17443_v54 = vpop.f32.mrf.mxu1  ;;  %v14612_v28 = vadd.f32 %v17441_v19, %v14572_v26 }
 0x809   : > { %v17461_v35 = vpop.f32.mrf.mxu0 }
 0x80a   : > { %v17483_v27 = vpop.f32.mrf.mxu1 }
 0x80b   : > { %v17462_v52 = vpop.f32.mrf.mxu0 }
 0x80c   : > { %v17484_v15 = vpop.f32.mrf.mxu1  ;;  %v17463_v44 = vadd.f32 %v17462_v52, %v17461_v35 }
 0x80d   : > { %v17464_v41 = vpop.f32.mrf.mxu0  ;;  %v17485_v59 = vadd.f32 %v17484_v15, %v17483_v27 }
 0x80e   : > { %v17486_v21 = vpop.f32.mrf.mxu1  ;;  %v14652_v53 = vadd.f32 %v17463_v44, %v14612_v28 }
 0x80f   : > { %v17465_v36 = vpop.f32.mrf.mxu0 }
 0x810   : > { %v17487_v3 = vpop.f32.mrf.mxu1  ;;  %v14692_v50 = vadd.f32 %v17485_v59, %v14652_v53 }
 0x829   : > { %v17505_v20 = vpop.f32.mrf.mxu0 }
 0x82a   : > { %v17527_v6 = vpop.f32.mrf.mxu1 }
 0x82b   : > { %v17506_v17 = vpop.f32.mrf.mxu0 }
 0x82c   : > { %v17528_v22 = vpop.f32.mrf.mxu1  ;;  %v17507_v10 = vadd.f32 %v17506_v17, %v17505_v20 }
 0x82d   : > { %v17508_v25 = vpop.f32.mrf.mxu0  ;;  %v17529_v9 = vadd.f32 %v17528_v22, %v17527_v6 }
 0x82e   : > { %v17530_v51 = vpop.f32.mrf.mxu1  ;;  %v14732_v62 = vadd.f32 %v17507_v10, %v14692_v50 }
 0x82f   : > { %v17509_v12 = vpop.f32.mrf.mxu0 }
 0x830   : > { %v17531_v58 = vpop.f32.mrf.mxu1  ;;  %v14772_v56 = vadd.f32 %v17529_v9, %v14732_v62 }
 0x849   : > { %v17549_v37 = vpop.f32.mrf.mxu0 }
 0x84a   : > { %v17571_v1 = vpop.f32.mrf.mxu1 }
 0x84b   : > { %v17550_v63 = vpop.f32.mrf.mxu0 }
 0x84c   : > { %v17572_v32 = vpop.f32.mrf.mxu1  ;;  %v17551_v49 = vadd.f32 %v17550_v63, %v17549_v37 }
 0x84d   : > { %v17552_v38 = vpop.f32.mrf.mxu0  ;;  %v17573_v33 = vadd.f32 %v17572_v32, %v17571_v1 }
 0x84e   : > { %v17574_v39 = vpop.f32.mrf.mxu1  ;;  %v14812_v42 = vadd.f32 %v17551_v49, %v14772_v56 }
 0x84f   : > { %v17553_v13 = vpop.f32.mrf.mxu0 }
 0x850   : > { %v17575_v34 = vpop.f32.mrf.mxu1  ;;  %v14852_v23 = vadd.f32 %v17573_v33, %v14812_v42 }
 0x852   : > { %v14874_v47 = vrot.slane %v14852_v23, %v23215_v29 }
 0x854   : > { %v14875_v43 = vcombine.low %v14867_v18, %v14874_v47  ;;  %14887 = sbr.rel (%p16868_p6) target bundleno = 2153 (0x869), region = 56 }
 0x856   : > { %v14877_v45 = vadd.f32 %v14875_v43, %v2024_v57 }
 0x858   : > { %14883 = vst.msk [vmem:[#allocation8] sm:$0x3f] %vm23099_vm13, %v14877_v45 }
 0x859   : > { %v14889_v40 = vld [vmem:[%s23135_s4] sm:$0x7]  ;;  %v23218_v4 = vld [vmem:[#allocation12_spill] sm:$0xff]  ;;  %v23219_v46 = vld [vmem:[#allocation13_spill] sm:$0xff] }
 0x85a   : > { %v14893_v24 = vsub.s32 0, %v23218_v4  ;;  %v14897_v60 = vsub.s32 1, %v23218_v4  ;;  %v14901_v61 = vsub.s32 2, %v23218_v4 }
 0x85c   : > { %v14894_v8 = vrot.slane %v14889_v40, %v14893_v24  ;;  %v14898_v5 = vrot.slane %v14889_v40, %v14897_v60  ;;  %v14902_v48 = vrot.slane %v14889_v40, %v14901_v61 }
 0x85e   : > { %v14903_v55 = vcombine.low %v14894_v8, %v14898_v5  ;;  %v14917_v14 = vrot.slane %v14902_v48, %v23219_v46 }
 0x85f   : > { %v14888_v30 = vld [vmem:[#allocation8] sm:$0x3f] }
 0x860   : > { %v14910_v16 = vrot.slane %v14903_v55, %v23219_v46 }
 0x862   : > { %v14918_v0 = vcombine.low %v14910_v16, %v14917_v14 }
 0x864   : > { %v14920_v19 = vadd.f32 %v14918_v0, %v14888_v30 }
 0x866   : > { %v14921_v7 = vmax.f32 %v14920_v19, 0.0 }
 0x868   : > { %14922 = vst.msk [vmem:[#allocation8] sm:$0x3f] %vm23099_vm13, %v14921_v7 }
 0x869 PF: > { %p17601_p13 = scmp.eq.s32.totalorder %s19813_s19, 1  ;;  %s19776_s21 = smov [#allocation8]  }
 0x86a   : > { %s14930_s22 = sshll.u32 %s19776_s21, 4  ;;  %s14931_s22 = int_to_ptr.vmem [resolvable:$true] %s14930_s22 }
 0x86b   : > { %s19728_s23 = scalar_lea.vmem %s14931_s22, 96  ;;  %p19735_p7 = scmp.lt.s32.totalorder %s14931_s22, %s14931_s22 }
 0x86c   : > { %p19729_p0 = scmp.ne.s32.totalorder %s14931_s22, %s19728_s23  ;;  %p19736_p9 = scmp.lt.s32.totalorder %s19728_s23, %s19728_s23 }
 0x86e   : > { %p19730_p1 = pnand %p19729_p0, %p17601_p13  ;;  %p19737_p10 = por %p19736_p9, %p19735_p7 }
 0x870   : > { %p19731_p5 = pneg %p19730_p1 }
 0x872   : > { %p19738_p11 = pnand %p19737_p10, %p19731_p5 }
 0x874   : > { %19741 = shalt.err (!%p19738_p11)
}
 0x875   : > { %17587 = dma.vmem_to_hbm [thread:$0]  (%p17601_p13), %s14931_s22, 96, %s23136_s5, [#allocation4]  }
 0x876   : > { %19765 = dma.done.wait (%p17601_p13), [#allocation4], 96  }
 0x877   : > { %19767 = vsyncadd (%p17601_p13), [#allocation4], 4294967200 }
 0x878 PF: > { %s18_s18 = sadd.s32 1, %s19770_s18  }
 0x879   : > { %p15_p12 = scmp.ge.s32.totalorder %s18_s18, 4  }
 0x87b   :  { %17 = sbr.rel (!%p15_p12) target bundleno = 3 (0x3), region = 93 }
 0x880   :  { %14943 = vsyncpa [#allocation4], 1 }
 0x881   :  { %14945 = vsyncpa [#allocation4 + $0x1], 1 }
 0x882   :  { %14946 = vsyncpa [#allocation5], 1 }
 0x883   :  { %14948 = vsyncpa [#allocation5 + $0x1], 1 }
 0x884   :  { %14949 = vsyncpa [#allocation7], 1 }

</bundles_post_ra>
